<compile_context>
chip_gen: v7x
topology: tpu7x:2x2x1
jax: 0.10.0
libtpu: 0.0.40
codegen_flags: <defaults>
</compile_context>

<pallas_src>
import functools

import jax
import jax.numpy as jnp
from jax.experimental import pallas as pl
from jax.experimental.pallas import tpu as pltpu


def _round_up(x, m):
    return (x + m - 1) // m * m


# ---------------------------------------------------------------------------
# Fused kernel: conv1 -> ReLU -> conv2 -> ReLU -> maxpool2x2 for BOTH images of a
# pair, SmoothL1 over their pooled features, MSE over the raw images; scalar
# partial sums accumulate in SMEM and the combined loss is emitted at the last step.
# ---------------------------------------------------------------------------
def _fused_generator_loss_kernel(
        po_ref, pt_ref, oi_ref, ti_ref, w1_ref, b1_ref, w2_ref, b2_ref,  # inputs
        loss_ref,                                                         # output
        pad_ref, col2_ref, cand_ref, acc_ref,                             # scratch
        *, H, W, Wpd, Hpd, Cout, n_img, n_feat):
    i = pl.program_id(0)
    M1 = H * Wpd              # matmul rows: flat r = y*Wpd + x  (x >= W is garbage, masked)
    Hh = H // 2
    halo_lo = Wpd + 1         # real pixel (y, x) lives at padded flat row y*Wpd + x + halo_lo
    halo_hi = halo_lo + M1

    @pl.when(i == 0)
    def _():
        acc_ref[0] = 0.0
        acc_ref[1] = 0.0
        # Zero the padded-layout halo rows once; only the middle slab changes per image.
        pad_ref[0:halo_lo, :] = jnp.zeros((halo_lo, Cout), jnp.float32)
        pad_ref[halo_hi:, :] = jnp.zeros((Hpd * Wpd - halo_hi, Cout), jnp.float32)

    # 1.0 where flat row r is a real image column (r % Wpd < W), else 0.0 (hoisted,
    # shared by both branches).
    r_idx = jax.lax.broadcasted_iota(jnp.int32, (M1, 1), 0)
    col_valid = (r_idx % Wpd < W).astype(jnp.float32)

    def vgg_branch(p_ref):
        # conv1: one matmul (M1, 27) @ (27, 64); bias + ReLU in f32; garbage cols -> 0
        # so they double as the zero padding consumed by conv2.
        a1 = jnp.dot(p_ref[0], w1_ref[...], preferred_element_type=jnp.float32)
        a1 = jnp.maximum(a1 + b1_ref[...], 0.0) * col_valid
        # ONE slab store into the zero-padded flat layout (no per-row masked stores).
        pad_ref[halo_lo:halo_hi, :] = a1
        # conv2 im2col: each tap is one contiguous sublane-offset window copy (cast bf16).
        for dy in range(3):
            for dx in range(3):
                j = dy * 3 + dx
                off = dy * Wpd + dx
                col2_ref[:, j * Cout:(j + 1) * Cout] = (
                    pad_ref[off:off + M1, :].astype(jnp.bfloat16))
        a2 = jnp.dot(col2_ref[...], w2_ref[...], preferred_element_type=jnp.float32)
        a2 = jnp.maximum(a2 + b2_ref[...], 0.0)
        # 2x2 max pool, fully vectorized: row pairs via reshape, column pairs via a
        # shifted slice. Pooled values sit at even x positions (< W); rest is masked later.
        a2 = a2.reshape(Hh, 2 * Wpd, Cout)
        rowp = jnp.maximum(a2[:, :Wpd, :], a2[:, Wpd:, :])            # (Hh, Wpd, Cout)
        return jnp.maximum(rowp[:, :Wpd - 1, :], rowp[:, 1:, :])      # (Hh, Wpd-1, Cout)

    # Route the first branch's pooled features through VMEM scratch (bounded vregs).
    cand_ref[...] = vgg_branch(po_ref)
    d = vgg_branch(pt_ref) - cand_ref[...]

    # SmoothL1 (beta = 1.0) summed over the real pooled positions only (even x < W).
    x_idx = jax.lax.broadcasted_iota(jnp.int32, (1, Wpd - 1, 1), 1)
    pool_mask = jnp.logical_and(x_idx % 2 == 0, x_idx < W).astype(jnp.float32)
    ad = jnp.abs(d)
    sl1 = jnp.where(ad < 1.0, 0.5 * d * d, ad - 0.5) * pool_mask
    acc_ref[1] = acc_ref[1] + jnp.sum(sl1)

    # Image MSE partial sum from the raw flat images (elementwise => layout free).
    di = oi_ref[...] - ti_ref[...]
    acc_ref[0] = acc_ref[0] + jnp.sum(di * di)

    @pl.when(i == pl.num_programs(0) - 1)
    def _():
        loss_ref[0, 0] = acc_ref[0] / n_img + 0.5 * (acc_ref[1] / n_feat)


# ---------------------------------------------------------------------------
# GeneratorLoss forward (Pallas path)
# ---------------------------------------------------------------------------
def generator_loss(out_images, target_images, params):
    B, C, H, W = out_images.shape
    assert H % 2 == 0 and W % 2 == 0, "max-pool requires even spatial dims"
    Cout = params["w1"].shape[-1]
    Wpd = _round_up(W + 2, 8)     # padded row length (aligned row segments)
    Hpd = H + 3                   # keeps every conv2 im2col tap window in bounds
    M1 = H * Wpd
    NI = C * H * W

    def im2col_conv1(x_nchw):
        # Rows r = y*Wpd + x (x >= W is padding/garbage, masked in-kernel); columns are
        # (dy, dx, cin) row-major to match params["w1"].reshape(9*C, Cout).
        x = jnp.transpose(x_nchw, (0, 2, 3, 1))                         # NHWC
        xp = jnp.pad(x, ((0, 0), (1, 1), (1, Wpd + 1 - W), (0, 0)))     # (B, H+2, Wpd+2, C)
        taps = [xp[:, dy:dy + H, dx:dx + Wpd, :]
                for dy in range(3) for dx in range(3)]
        p = jnp.concatenate(taps, axis=-1)                              # (B, H, Wpd, 9*C)
        return p.reshape(B, M1, 9 * C).astype(jnp.bfloat16)

    po = im2col_conv1(out_images)
    pt = im2col_conv1(target_images)
    oi = out_images.reshape(B, 1, NI)                                   # lane-dense f32
    ti = target_images.reshape(B, 1, NI)
    w1 = params["w1"].reshape(9 * C, Cout).astype(jnp.bfloat16)
    b1 = params["b1"].reshape(1, Cout).astype(jnp.float32)
    w2 = params["w2"].reshape(9 * Cout, Cout).astype(jnp.bfloat16)
    b2 = params["b2"].reshape(1, Cout).astype(jnp.float32)

    kernel = functools.partial(
        _fused_generator_loss_kernel, H=H, W=W, Wpd=Wpd, Hpd=Hpd, Cout=Cout,
        n_img=float(B * NI), n_feat=float(B * (H // 2) * (W // 2) * Cout))

    loss = pl.pallas_call(
        kernel,
        out_shape=jax.ShapeDtypeStruct((1, 1), jnp.float32),
        grid=(B,),
        in_specs=[
            pl.BlockSpec((1, M1, 9 * C), lambda b: (b, 0, 0)),      # conv1 patches (out)
            pl.BlockSpec((1, M1, 9 * C), lambda b: (b, 0, 0)),      # conv1 patches (target)
            pl.BlockSpec((1, 1, NI), lambda b: (b, 0, 0)),          # raw out image (MSE)
            pl.BlockSpec((1, 1, NI), lambda b: (b, 0, 0)),          # raw target image (MSE)
            pl.BlockSpec((9 * C, Cout), lambda b: (0, 0)),          # w1 (bf16)
            pl.BlockSpec((1, Cout), lambda b: (0, 0)),              # b1 (f32)
            pl.BlockSpec((9 * Cout, Cout), lambda b: (0, 0)),       # w2 (bf16)
            pl.BlockSpec((1, Cout), lambda b: (0, 0)),              # b2 (f32)
        ],
        out_specs=pl.BlockSpec((1, 1), lambda b: (0, 0),
                               memory_space=pltpu.MemorySpace.SMEM),
        scratch_shapes=[
            pltpu.VMEM((Hpd * Wpd, Cout), jnp.float32),             # padded conv1 activation
            pltpu.VMEM((M1, 9 * Cout), jnp.bfloat16),               # conv2 im2col patches
            pltpu.VMEM((H // 2, Wpd - 1, Cout), jnp.float32),       # pooled feats (out branch)
            pltpu.SMEM((2,), jnp.float32),                          # [mse_sum, smoothl1_sum]
        ],
        compiler_params=pltpu.CompilerParams(
            dimension_semantics=("arbitrary",)),                    # scalar accum across steps
    )(po, pt, oi, ti, w1, b1, w2, b2)
    return loss[0, 0]


# ---------------------------------------------------------------------------
# Pure-JAX f32 reference for verification
# ---------------------------------------------------------------------------
def reference_loss(out_nchw, tgt_nchw, params):
    def net(x_nchw):
        x = jnp.transpose(x_nchw, (0, 2, 3, 1))
        x = jax.lax.conv_general_dilated(
            x, params["w1"], (1, 1), "SAME",
            dimension_numbers=("NHWC", "HWIO", "NHWC")) + params["b1"]
        x = jnp.maximum(x, 0.0)
        x = jax.lax.conv_general_dilated(
            x, params["w2"], (1, 1), "SAME",
            dimension_numbers=("NHWC", "HWIO", "NHWC")) + params["b2"]
        x = jnp.maximum(x, 0.0)
        B, H, W, C = x.shape
        return x.reshape(B, H // 2, 2, W // 2, 2, C).max(axis=(2, 4))

    fo, ft = net(out_nchw), net(tgt_nchw)
    d = fo - ft
    ad = jnp.abs(d)
    vgg = jnp.mean(jnp.where(ad < 1.0, 0.5 * d * d, ad - 0.5))
    img = jnp.mean((out_nchw - tgt_nchw) ** 2)
    return img + 0.5 * vgg


if __name__ == "__main__":
    key = jax.random.PRNGKey(0)
    k1, k2, k3, k4, k5, k6 = jax.random.split(key, 6)

    B, C, H, W = 2, 3, 16, 16   # NCHW inputs, like the PyTorch module
    out_images = jax.random.normal(k1, (B, C, H, W), jnp.float32)
    target_images = jax.random.normal(k2, (B, C, H, W), jnp.float32)

    # Deterministic synthetic "VGG16 features[:5]" parameters (HWIO layout).
    params = {
        "w1": jax.random.normal(k3, (3, 3, 3, 64), jnp.float32) * 0.1,
        "b1": jax.random.normal(k4, (64,), jnp.float32) * 0.05,
        "w2": jax.random.normal(k5, (3, 3, 64, 64), jnp.float32) * 0.05,
        "b2": jax.random.normal(k6, (64,), jnp.float32) * 0.05,
    }

    loss = jax.jit(generator_loss)(out_images, target_images, params)
    loss = jax.block_until_ready(loss)

    ref = reference_loss(out_images, target_images, params)
    ref = jax.block_until_ready(ref)

    assert jnp.isfinite(loss), "non-finite loss"
    # bf16 MXU inputs (f32 accumulation) vs. the all-f32 reference: allow ~1% slack.
    assert abs(float(loss) - float(ref)) <= 1e-3 + 1e-2 * abs(float(ref)), (
        f"mismatch: pallas={float(loss)} ref={float(ref)}")

    print("KERNEL_OK")
</pallas_src>

<mosaic_0001>
module attributes {stable_mosaic.version = 11 : i64} {
  func.func @_fused_generator_loss_kernel(%arg0: i32, %arg1: memref<1x384x27xbf16, #tpu.memory_space<vmem>>, %arg2: memref<1x384x27xbf16, #tpu.memory_space<vmem>>, %arg3: memref<1x1x768xf32, #tpu.memory_space<vmem>>, %arg4: memref<1x1x768xf32, #tpu.memory_space<vmem>>, %arg5: memref<27x64xbf16, #tpu.memory_space<vmem>>, %arg6: memref<1x64xf32, #tpu.memory_space<vmem>>, %arg7: memref<576x64xbf16, #tpu.memory_space<vmem>>, %arg8: memref<1x64xf32, #tpu.memory_space<vmem>>, %arg9: memref<1x1xf32, #tpu.memory_space<smem>>, %arg10: memref<456x64xf32, #tpu.memory_space<vmem>>, %arg11: memref<384x576xbf16, #tpu.memory_space<vmem>>, %arg12: memref<8x23x64xf32, #tpu.memory_space<vmem>>, %arg13: memref<2xf32, #tpu.memory_space<smem>>) attributes {dimension_semantics = [#tpu.dimension_semantics<arbitrary>], iteration_bounds = array<i64: 2>, scalar_prefetch = 0 : i64, scratch_operands = 4 : i64, tpu.core_type = #tpu.core_type<tc>, window_params = [{transform_indices = @transform_0, window_bounds = array<i64: 1, 384, 27>}, {transform_indices = @transform_1, window_bounds = array<i64: 1, 384, 27>}, {transform_indices = @transform_2, window_bounds = array<i64: 1, 1, 768>}, {transform_indices = @transform_3, window_bounds = array<i64: 1, 1, 768>}, {pipeline_mode = #tpu.pipeline_mode<synchronous>, transform_indices = @transform_4, window_bounds = array<i64: 27, 64>}, {pipeline_mode = #tpu.pipeline_mode<synchronous>, transform_indices = @transform_5, window_bounds = array<i64: 1, 64>}, {pipeline_mode = #tpu.pipeline_mode<synchronous>, transform_indices = @transform_6, window_bounds = array<i64: 576, 64>}, {pipeline_mode = #tpu.pipeline_mode<synchronous>, transform_indices = @transform_7, window_bounds = array<i64: 1, 64>}, {transform_indices = @transform_8, window_bounds = array<i64: 1, 1>}]} {
    %c0_i32 = arith.constant 0 : i32
    %0 = arith.cmpi eq, %arg0, %c0_i32 : i32
    %1 = arith.extui %0 : i1 to i32
    %c0_i32_0 = arith.constant 0 : i32
    %2 = arith.cmpi ne, %1, %c0_i32_0 : i32
    scf.if %2 {
      %cst_127 = arith.constant 0.000000e+00 : f32
      %c0_128 = arith.constant 0 : index
      %191 = memref.load %arg13[%c0_128] : memref<2xf32, #tpu.memory_space<smem>>
      memref.store %cst_127, %arg13[%c0_128] : memref<2xf32, #tpu.memory_space<smem>>
      %cst_129 = arith.constant 0.000000e+00 : f32
      %c1_130 = arith.constant 1 : index
      %192 = memref.load %arg13[%c1_130] : memref<2xf32, #tpu.memory_space<smem>>
      memref.store %cst_129, %arg13[%c1_130] : memref<2xf32, #tpu.memory_space<smem>>
      %cst_131 = arith.constant 0.000000e+00 : f32
      %193 = vector.broadcast %cst_131 : f32 to vector<25x64xf32>
      %c0_132 = arith.constant 0 : index
      %c0_133 = arith.constant 0 : index
      %194 = vector.load %arg10[%c0_132, %c0_133] : memref<456x64xf32, #tpu.memory_space<vmem>>, vector<25x64xf32>
      tpu.vector_store %arg10[%c0_132, %c0_133], %193 {strides = array<i32>} : memref<456x64xf32, #tpu.memory_space<vmem>>, vector<25x64xf32>,
      %cst_134 = arith.constant 0.000000e+00 : f32
      %195 = vector.broadcast %cst_134 : f32 to vector<47x64xf32>
      %c409 = arith.constant 409 : index
      %c0_135 = arith.constant 0 : index
      %196 = vector.load %arg10[%c409, %c0_135] : memref<456x64xf32, #tpu.memory_space<vmem>>, vector<47x64xf32>
      tpu.vector_store %arg10[%c409, %c0_135], %195 {strides = array<i32>} : memref<456x64xf32, #tpu.memory_space<vmem>>, vector<47x64xf32>,
    } else {
    }
    %3 = tpu.iota {dimensions = array<i32: 0>} : vector<384x1xi32>
    %c24_i32 = arith.constant 24 : i32
    %c0_i32_1 = arith.constant 0 : i32
    %4 = arith.cmpi eq, %c24_i32, %c0_i32_1 : i32
    %c1_i32 = arith.constant 1 : i32
    %5 = arith.select %4, %c1_i32, %c24_i32 : i32
    %6 = vector.broadcast %5 : i32 to vector<384x1xi32>
    %7 = arith.remsi %3, %6 : vector<384x1xi32>
    %c0_i32_2 = arith.constant 0 : i32
    %8 = vector.broadcast %c0_i32_2 : i32 to vector<384x1xi32>
    %9 = arith.cmpi ne, %7, %8 : vector<384x1xi32>
    %c0_i32_3 = arith.constant 0 : i32
    %10 = vector.broadcast %c0_i32_3 : i32 to vector<384x1xi32>
    %11 = arith.cmpi slt, %7, %10 : vector<384x1xi32>
    %c0_i32_4 = arith.constant 0 : i32
    %12 = arith.cmpi slt, %5, %c0_i32_4 : i32
    %13 = vector.broadcast %12 : i1 to vector<384x1xi1>
    %14 = vector.broadcast %13 : vector<384x1xi1> to vector<384x1xi1>
    %15 = arith.xori %11, %14 : vector<384x1xi1>
    %16 = arith.andi %15, %9 : vector<384x1xi1>
    %17 = vector.broadcast %5 : i32 to vector<384x1xi32>
    %18 = arith.addi %7, %17 : vector<384x1xi32>
    %19 = arith.select %16, %18, %7 : vector<384x1xi1>, vector<384x1xi32>
    %c16_i32 = arith.constant 16 : i32
    %20 = vector.broadcast %c16_i32 : i32 to vector<384x1xi32>
    %21 = arith.cmpi slt, %19, %20 : vector<384x1xi32>
    %22 = arith.extui %21 : vector<384x1xi1> to vector<384x1xi32>
    %23 = arith.sitofp %22 : vector<384x1xi32> to vector<384x1xf32>
    %c0 = arith.constant 0 : index
    %c0_5 = arith.constant 0 : index
    %c0_6 = arith.constant 0 : index
    %24 = vector.load %arg1[%c0, %c0_5, %c0_6] : memref<1x384x27xbf16, #tpu.memory_space<vmem>>, vector<1x384x27xbf16>
    %25 = vector.shape_cast %24 : vector<1x384x27xbf16> to vector<384x27xbf16>
    %c0_7 = arith.constant 0 : index
    %c0_8 = arith.constant 0 : index
    %26 = vector.load %arg5[%c0_7, %c0_8] : memref<27x64xbf16, #tpu.memory_space<vmem>>, vector<27x64xbf16>
    %cst = arith.constant dense<0.000000e+00> : vector<384x64xf32>
    %27 = tpu.matmul %25, %26, %cst {dimension_numbers = #tpu.dot_dimension_numbers<[1], [0], [0], [1], [0, 0, 1, 1], [], []>} : vector<384x27xbf16>, vector<27x64xbf16>, vector<384x64xf32> -> vector<384x64xf32>
    %c0_9 = arith.constant 0 : index
    %c0_10 = arith.constant 0 : index
    %28 = vector.load %arg6[%c0_9, %c0_10] : memref<1x64xf32, #tpu.memory_space<vmem>>, vector<1x64xf32>
    %29 = vector.broadcast %28 : vector<1x64xf32> to vector<384x64xf32>
    %30 = arith.addf %27, %29 : vector<384x64xf32>
    %cst_11 = arith.constant 0.000000e+00 : f32
    %31 = vector.broadcast %cst_11 : f32 to vector<384x64xf32>
    %32 = arith.maximumf %30, %31 : vector<384x64xf32>
    %33 = vector.broadcast %23 : vector<384x1xf32> to vector<384x64xf32>
    %34 = arith.mulf %32, %33 : vector<384x64xf32>
    %c25 = arith.constant 25 : index
    %c0_12 = arith.constant 0 : index
    %35 = vector.load %arg10[%c25, %c0_12] : memref<456x64xf32, #tpu.memory_space<vmem>>, vector<384x64xf32>
    tpu.vector_store %arg10[%c25, %c0_12], %34 {strides = array<i32>} : memref<456x64xf32, #tpu.memory_space<vmem>>, vector<384x64xf32>,
    %c0_13 = arith.constant 0 : index
    %c0_14 = arith.constant 0 : index
    %36 = vector.load %arg10[%c0_13, %c0_14] : memref<456x64xf32, #tpu.memory_space<vmem>>, vector<384x64xf32>
    %37 = arith.truncf %36 : vector<384x64xf32> to vector<384x64xbf16>
    %c0_15 = arith.constant 0 : index
    %c0_16 = arith.constant 0 : index
    %38 = vector.load %arg11[%c0_15, %c0_16] : memref<384x576xbf16, #tpu.memory_space<vmem>>, vector<384x64xbf16>
    tpu.vector_store %arg11[%c0_15, %c0_16], %37 {strides = array<i32>} : memref<384x576xbf16, #tpu.memory_space<vmem>>, vector<384x64xbf16>,
    %c1 = arith.constant 1 : index
    %c0_17 = arith.constant 0 : index
    %39 = vector.load %arg10[%c1, %c0_17] : memref<456x64xf32, #tpu.memory_space<vmem>>, vector<384x64xf32>
    %40 = arith.truncf %39 : vector<384x64xf32> to vector<384x64xbf16>
    %c0_18 = arith.constant 0 : index
    %c64 = arith.constant 64 : index
    %41 = vector.load %arg11[%c0_18, %c64] : memref<384x576xbf16, #tpu.memory_space<vmem>>, vector<384x64xbf16>
    tpu.vector_store %arg11[%c0_18, %c64], %40 {strides = array<i32>} : memref<384x576xbf16, #tpu.memory_space<vmem>>, vector<384x64xbf16>,
    %c2 = arith.constant 2 : index
    %c0_19 = arith.constant 0 : index
    %42 = vector.load %arg10[%c2, %c0_19] : memref<456x64xf32, #tpu.memory_space<vmem>>, vector<384x64xf32>
    %43 = arith.truncf %42 : vector<384x64xf32> to vector<384x64xbf16>
    %c0_20 = arith.constant 0 : index
    %c128 = arith.constant 128 : index
    %44 = vector.load %arg11[%c0_20, %c128] : memref<384x576xbf16, #tpu.memory_space<vmem>>, vector<384x64xbf16>
    tpu.vector_store %arg11[%c0_20, %c128], %43 {strides = array<i32>} : memref<384x576xbf16, #tpu.memory_space<vmem>>, vector<384x64xbf16>,
    %c24 = arith.constant 24 : index
    %c0_21 = arith.constant 0 : index
    %45 = vector.load %arg10[%c24, %c0_21] : memref<456x64xf32, #tpu.memory_space<vmem>>, vector<384x64xf32>
    %46 = arith.truncf %45 : vector<384x64xf32> to vector<384x64xbf16>
    %c0_22 = arith.constant 0 : index
    %c192 = arith.constant 192 : index
    %47 = vector.load %arg11[%c0_22, %c192] : memref<384x576xbf16, #tpu.memory_space<vmem>>, vector<384x64xbf16>
    tpu.vector_store %arg11[%c0_22, %c192], %46 {strides = array<i32>} : memref<384x576xbf16, #tpu.memory_space<vmem>>, vector<384x64xbf16>,
    %c25_23 = arith.constant 25 : index
    %c0_24 = arith.constant 0 : index
    %48 = vector.load %arg10[%c25_23, %c0_24] : memref<456x64xf32, #tpu.memory_space<vmem>>, vector<384x64xf32>
    %49 = arith.truncf %48 : vector<384x64xf32> to vector<384x64xbf16>
    %c0_25 = arith.constant 0 : index
    %c256 = arith.constant 256 : index
    %50 = vector.load %arg11[%c0_25, %c256] : memref<384x576xbf16, #tpu.memory_space<vmem>>, vector<384x64xbf16>
    tpu.vector_store %arg11[%c0_25, %c256], %49 {strides = array<i32>} : memref<384x576xbf16, #tpu.memory_space<vmem>>, vector<384x64xbf16>,
    %c26 = arith.constant 26 : index
    %c0_26 = arith.constant 0 : index
    %51 = vector.load %arg10[%c26, %c0_26] : memref<456x64xf32, #tpu.memory_space<vmem>>, vector<384x64xf32>
    %52 = arith.truncf %51 : vector<384x64xf32> to vector<384x64xbf16>
    %c0_27 = arith.constant 0 : index
    %c320 = arith.constant 320 : index
    %53 = vector.load %arg11[%c0_27, %c320] : memref<384x576xbf16, #tpu.memory_space<vmem>>, vector<384x64xbf16>
    tpu.vector_store %arg11[%c0_27, %c320], %52 {strides = array<i32>} : memref<384x576xbf16, #tpu.memory_space<vmem>>, vector<384x64xbf16>,
    %c48 = arith.constant 48 : index
    %c0_28 = arith.constant 0 : index
    %54 = vector.load %arg10[%c48, %c0_28] : memref<456x64xf32, #tpu.memory_space<vmem>>, vector<384x64xf32>
    %55 = arith.truncf %54 : vector<384x64xf32> to vector<384x64xbf16>
    %c0_29 = arith.constant 0 : index
    %c384 = arith.constant 384 : index
    %56 = vector.load %arg11[%c0_29, %c384] : memref<384x576xbf16, #tpu.memory_space<vmem>>, vector<384x64xbf16>
    tpu.vector_store %arg11[%c0_29, %c384], %55 {strides = array<i32>} : memref<384x576xbf16, #tpu.memory_space<vmem>>, vector<384x64xbf16>,
    %c49 = arith.constant 49 : index
    %c0_30 = arith.constant 0 : index
    %57 = vector.load %arg10[%c49, %c0_30] : memref<456x64xf32, #tpu.memory_space<vmem>>, vector<384x64xf32>
    %58 = arith.truncf %57 : vector<384x64xf32> to vector<384x64xbf16>
    %c0_31 = arith.constant 0 : index
    %c448 = arith.constant 448 : index
    %59 = vector.load %arg11[%c0_31, %c448] : memref<384x576xbf16, #tpu.memory_space<vmem>>, vector<384x64xbf16>
    tpu.vector_store %arg11[%c0_31, %c448], %58 {strides = array<i32>} : memref<384x576xbf16, #tpu.memory_space<vmem>>, vector<384x64xbf16>,
    %c50 = arith.constant 50 : index
    %c0_32 = arith.constant 0 : index
    %60 = vector.load %arg10[%c50, %c0_32] : memref<456x64xf32, #tpu.memory_space<vmem>>, vector<384x64xf32>
    %61 = arith.truncf %60 : vector<384x64xf32> to vector<384x64xbf16>
    %c0_33 = arith.constant 0 : index
    %c512 = arith.constant 512 : index
    %62 = vector.load %arg11[%c0_33, %c512] : memref<384x576xbf16, #tpu.memory_space<vmem>>, vector<384x64xbf16>
    tpu.vector_store %arg11[%c0_33, %c512], %61 {strides = array<i32>} : memref<384x576xbf16, #tpu.memory_space<vmem>>, vector<384x64xbf16>,
    %c0_34 = arith.constant 0 : index
    %c0_35 = arith.constant 0 : index
    %63 = vector.load %arg11[%c0_34, %c0_35] : memref<384x576xbf16, #tpu.memory_space<vmem>>, vector<384x576xbf16>
    %c0_36 = arith.constant 0 : index
    %c0_37 = arith.constant 0 : index
    %64 = vector.load %arg7[%c0_36, %c0_37] : memref<576x64xbf16, #tpu.memory_space<vmem>>, vector<576x64xbf16>
    %cst_38 = arith.constant dense<0.000000e+00> : vector<384x64xf32>
    %65 = tpu.matmul %63, %64, %cst_38 {dimension_numbers = #tpu.dot_dimension_numbers<[1], [0], [0], [1], [0, 0, 1, 1], [], []>} : vector<384x576xbf16>, vector<576x64xbf16>, vector<384x64xf32> -> vector<384x64xf32>
    %c0_39 = arith.constant 0 : index
    %c0_40 = arith.constant 0 : index
    %66 = vector.load %arg8[%c0_39, %c0_40] : memref<1x64xf32, #tpu.memory_space<vmem>>, vector<1x64xf32>
    %67 = vector.broadcast %66 : vector<1x64xf32> to vector<384x64xf32>
    %68 = arith.addf %65, %67 : vector<384x64xf32>
    %cst_41 = arith.constant 0.000000e+00 : f32
    %69 = vector.broadcast %cst_41 : f32 to vector<384x64xf32>
    %70 = arith.maximumf %68, %69 : vector<384x64xf32>
    %71 = vector.shape_cast %70 : vector<384x64xf32> to vector<8x48x64xf32>
    %72 = vector.extract_strided_slice %71 {offsets = [0, 0, 0], sizes = [8, 24, 64], strides = [1, 1, 1]} : vector<8x48x64xf32> to vector<8x24x64xf32>
    %73 = vector.extract_strided_slice %71 {offsets = [0, 24, 0], sizes = [8, 24, 64], strides = [1, 1, 1]} : vector<8x48x64xf32> to vector<8x24x64xf32>
    %74 = arith.maximumf %72, %73 : vector<8x24x64xf32>
    %75 = vector.extract_strided_slice %74 {offsets = [0, 0, 0], sizes = [8, 23, 64], strides = [1, 1, 1]} : vector<8x24x64xf32> to vector<8x23x64xf32>
    %76 = vector.extract_strided_slice %74 {offsets = [0, 1, 0], sizes = [8, 23, 64], strides = [1, 1, 1]} : vector<8x24x64xf32> to vector<8x23x64xf32>
    %77 = arith.maximumf %75, %76 : vector<8x23x64xf32>
    %c0_42 = arith.constant 0 : index
    %c0_43 = arith.constant 0 : index
    %c0_44 = arith.constant 0 : index
    %78 = vector.load %arg12[%c0_42, %c0_43, %c0_44] : memref<8x23x64xf32, #tpu.memory_space<vmem>>, vector<8x23x64xf32>
    tpu.vector_store %arg12[%c0_42, %c0_43, %c0_44], %77 {strides = array<i32>} : memref<8x23x64xf32, #tpu.memory_space<vmem>>, vector<8x23x64xf32>,
    %c0_45 = arith.constant 0 : index
    %c0_46 = arith.constant 0 : index
    %c0_47 = arith.constant 0 : index
    %79 = vector.load %arg2[%c0_45, %c0_46, %c0_47] : memref<1x384x27xbf16, #tpu.memory_space<vmem>>, vector<1x384x27xbf16>
    %80 = vector.shape_cast %79 : vector<1x384x27xbf16> to vector<384x27xbf16>
    %c0_48 = arith.constant 0 : index
    %c0_49 = arith.constant 0 : index
    %81 = vector.load %arg5[%c0_48, %c0_49] : memref<27x64xbf16, #tpu.memory_space<vmem>>, vector<27x64xbf16>
    %cst_50 = arith.constant dense<0.000000e+00> : vector<384x64xf32>
    %82 = tpu.matmul %80, %81, %cst_50 {dimension_numbers = #tpu.dot_dimension_numbers<[1], [0], [0], [1], [0, 0, 1, 1], [], []>} : vector<384x27xbf16>, vector<27x64xbf16>, vector<384x64xf32> -> vector<384x64xf32>
    %c0_51 = arith.constant 0 : index
    %c0_52 = arith.constant 0 : index
    %83 = vector.load %arg6[%c0_51, %c0_52] : memref<1x64xf32, #tpu.memory_space<vmem>>, vector<1x64xf32>
    %84 = vector.broadcast %83 : vector<1x64xf32> to vector<384x64xf32>
    %85 = arith.addf %82, %84 : vector<384x64xf32>
    %cst_53 = arith.constant 0.000000e+00 : f32
    %86 = vector.broadcast %cst_53 : f32 to vector<384x64xf32>
    %87 = arith.maximumf %85, %86 : vector<384x64xf32>
    %88 = vector.broadcast %23 : vector<384x1xf32> to vector<384x64xf32>
    %89 = arith.mulf %87, %88 : vector<384x64xf32>
    %c25_54 = arith.constant 25 : index
    %c0_55 = arith.constant 0 : index
    %90 = vector.load %arg10[%c25_54, %c0_55] : memref<456x64xf32, #tpu.memory_space<vmem>>, vector<384x64xf32>
    tpu.vector_store %arg10[%c25_54, %c0_55], %89 {strides = array<i32>} : memref<456x64xf32, #tpu.memory_space<vmem>>, vector<384x64xf32>,
    %c0_56 = arith.constant 0 : index
    %c0_57 = arith.constant 0 : index
    %91 = vector.load %arg10[%c0_56, %c0_57] : memref<456x64xf32, #tpu.memory_space<vmem>>, vector<384x64xf32>
    %92 = arith.truncf %91 : vector<384x64xf32> to vector<384x64xbf16>
    %c0_58 = arith.constant 0 : index
    %c0_59 = arith.constant 0 : index
    %93 = vector.load %arg11[%c0_58, %c0_59] : memref<384x576xbf16, #tpu.memory_space<vmem>>, vector<384x64xbf16>
    tpu.vector_store %arg11[%c0_58, %c0_59], %92 {strides = array<i32>} : memref<384x576xbf16, #tpu.memory_space<vmem>>, vector<384x64xbf16>,
    %c1_60 = arith.constant 1 : index
    %c0_61 = arith.constant 0 : index
    %94 = vector.load %arg10[%c1_60, %c0_61] : memref<456x64xf32, #tpu.memory_space<vmem>>, vector<384x64xf32>
    %95 = arith.truncf %94 : vector<384x64xf32> to vector<384x64xbf16>
    %c0_62 = arith.constant 0 : index
    %c64_63 = arith.constant 64 : index
    %96 = vector.load %arg11[%c0_62, %c64_63] : memref<384x576xbf16, #tpu.memory_space<vmem>>, vector<384x64xbf16>
    tpu.vector_store %arg11[%c0_62, %c64_63], %95 {strides = array<i32>} : memref<384x576xbf16, #tpu.memory_space<vmem>>, vector<384x64xbf16>,
    %c2_64 = arith.constant 2 : index
    %c0_65 = arith.constant 0 : index
    %97 = vector.load %arg10[%c2_64, %c0_65] : memref<456x64xf32, #tpu.memory_space<vmem>>, vector<384x64xf32>
    %98 = arith.truncf %97 : vector<384x64xf32> to vector<384x64xbf16>
    %c0_66 = arith.constant 0 : index
    %c128_67 = arith.constant 128 : index
    %99 = vector.load %arg11[%c0_66, %c128_67] : memref<384x576xbf16, #tpu.memory_space<vmem>>, vector<384x64xbf16>
    tpu.vector_store %arg11[%c0_66, %c128_67], %98 {strides = array<i32>} : memref<384x576xbf16, #tpu.memory_space<vmem>>, vector<384x64xbf16>,
    %c24_68 = arith.constant 24 : index
    %c0_69 = arith.constant 0 : index
    %100 = vector.load %arg10[%c24_68, %c0_69] : memref<456x64xf32, #tpu.memory_space<vmem>>, vector<384x64xf32>
    %101 = arith.truncf %100 : vector<384x64xf32> to vector<384x64xbf16>
    %c0_70 = arith.constant 0 : index
    %c192_71 = arith.constant 192 : index
    %102 = vector.load %arg11[%c0_70, %c192_71] : memref<384x576xbf16, #tpu.memory_space<vmem>>, vector<384x64xbf16>
    tpu.vector_store %arg11[%c0_70, %c192_71], %101 {strides = array<i32>} : memref<384x576xbf16, #tpu.memory_space<vmem>>, vector<384x64xbf16>,
    %c25_72 = arith.constant 25 : index
    %c0_73 = arith.constant 0 : index
    %103 = vector.load %arg10[%c25_72, %c0_73] : memref<456x64xf32, #tpu.memory_space<vmem>>, vector<384x64xf32>
    %104 = arith.truncf %103 : vector<384x64xf32> to vector<384x64xbf16>
    %c0_74 = arith.constant 0 : index
    %c256_75 = arith.constant 256 : index
    %105 = vector.load %arg11[%c0_74, %c256_75] : memref<384x576xbf16, #tpu.memory_space<vmem>>, vector<384x64xbf16>
    tpu.vector_store %arg11[%c0_74, %c256_75], %104 {strides = array<i32>} : memref<384x576xbf16, #tpu.memory_space<vmem>>, vector<384x64xbf16>,
    %c26_76 = arith.constant 26 : index
    %c0_77 = arith.constant 0 : index
    %106 = vector.load %arg10[%c26_76, %c0_77] : memref<456x64xf32, #tpu.memory_space<vmem>>, vector<384x64xf32>
    %107 = arith.truncf %106 : vector<384x64xf32> to vector<384x64xbf16>
    %c0_78 = arith.constant 0 : index
    %c320_79 = arith.constant 320 : index
    %108 = vector.load %arg11[%c0_78, %c320_79] : memref<384x576xbf16, #tpu.memory_space<vmem>>, vector<384x64xbf16>
    tpu.vector_store %arg11[%c0_78, %c320_79], %107 {strides = array<i32>} : memref<384x576xbf16, #tpu.memory_space<vmem>>, vector<384x64xbf16>,
    %c48_80 = arith.constant 48 : index
    %c0_81 = arith.constant 0 : index
    %109 = vector.load %arg10[%c48_80, %c0_81] : memref<456x64xf32, #tpu.memory_space<vmem>>, vector<384x64xf32>
    %110 = arith.truncf %109 : vector<384x64xf32> to vector<384x64xbf16>
    %c0_82 = arith.constant 0 : index
    %c384_83 = arith.constant 384 : index
    %111 = vector.load %arg11[%c0_82, %c384_83] : memref<384x576xbf16, #tpu.memory_space<vmem>>, vector<384x64xbf16>
    tpu.vector_store %arg11[%c0_82, %c384_83], %110 {strides = array<i32>} : memref<384x576xbf16, #tpu.memory_space<vmem>>, vector<384x64xbf16>,
    %c49_84 = arith.constant 49 : index
    %c0_85 = arith.constant 0 : index
    %112 = vector.load %arg10[%c49_84, %c0_85] : memref<456x64xf32, #tpu.memory_space<vmem>>, vector<384x64xf32>
    %113 = arith.truncf %112 : vector<384x64xf32> to vector<384x64xbf16>
    %c0_86 = arith.constant 0 : index
    %c448_87 = arith.constant 448 : index
    %114 = vector.load %arg11[%c0_86, %c448_87] : memref<384x576xbf16, #tpu.memory_space<vmem>>, vector<384x64xbf16>
    tpu.vector_store %arg11[%c0_86, %c448_87], %113 {strides = array<i32>} : memref<384x576xbf16, #tpu.memory_space<vmem>>, vector<384x64xbf16>,
    %c50_88 = arith.constant 50 : index
    %c0_89 = arith.constant 0 : index
    %115 = vector.load %arg10[%c50_88, %c0_89] : memref<456x64xf32, #tpu.memory_space<vmem>>, vector<384x64xf32>
    %116 = arith.truncf %115 : vector<384x64xf32> to vector<384x64xbf16>
    %c0_90 = arith.constant 0 : index
    %c512_91 = arith.constant 512 : index
    %117 = vector.load %arg11[%c0_90, %c512_91] : memref<384x576xbf16, #tpu.memory_space<vmem>>, vector<384x64xbf16>
    tpu.vector_store %arg11[%c0_90, %c512_91], %116 {strides = array<i32>} : memref<384x576xbf16, #tpu.memory_space<vmem>>, vector<384x64xbf16>,
    %c0_92 = arith.constant 0 : index
    %c0_93 = arith.constant 0 : index
    %118 = vector.load %arg11[%c0_92, %c0_93] : memref<384x576xbf16, #tpu.memory_space<vmem>>, vector<384x576xbf16>
    %c0_94 = arith.constant 0 : index
    %c0_95 = arith.constant 0 : index
    %119 = vector.load %arg7[%c0_94, %c0_95] : memref<576x64xbf16, #tpu.memory_space<vmem>>, vector<576x64xbf16>
    %cst_96 = arith.constant dense<0.000000e+00> : vector<384x64xf32>
    %120 = tpu.matmul %118, %119, %cst_96 {dimension_numbers = #tpu.dot_dimension_numbers<[1], [0], [0], [1], [0, 0, 1, 1], [], []>} : vector<384x576xbf16>, vector<576x64xbf16>, vector<384x64xf32> -> vector<384x64xf32>
    %c0_97 = arith.constant 0 : index
    %c0_98 = arith.constant 0 : index
    %121 = vector.load %arg8[%c0_97, %c0_98] : memref<1x64xf32, #tpu.memory_space<vmem>>, vector<1x64xf32>
    %122 = vector.broadcast %121 : vector<1x64xf32> to vector<384x64xf32>
    %123 = arith.addf %120, %122 : vector<384x64xf32>
    %cst_99 = arith.constant 0.000000e+00 : f32
    %124 = vector.broadcast %cst_99 : f32 to vector<384x64xf32>
    %125 = arith.maximumf %123, %124 : vector<384x64xf32>
    %126 = vector.shape_cast %125 : vector<384x64xf32> to vector<8x48x64xf32>
    %127 = vector.extract_strided_slice %126 {offsets = [0, 0, 0], sizes = [8, 24, 64], strides = [1, 1, 1]} : vector<8x48x64xf32> to vector<8x24x64xf32>
    %128 = vector.extract_strided_slice %126 {offsets = [0, 24, 0], sizes = [8, 24, 64], strides = [1, 1, 1]} : vector<8x48x64xf32> to vector<8x24x64xf32>
    %129 = arith.maximumf %127, %128 : vector<8x24x64xf32>
    %130 = vector.extract_strided_slice %129 {offsets = [0, 0, 0], sizes = [8, 23, 64], strides = [1, 1, 1]} : vector<8x24x64xf32> to vector<8x23x64xf32>
    %131 = vector.extract_strided_slice %129 {offsets = [0, 1, 0], sizes = [8, 23, 64], strides = [1, 1, 1]} : vector<8x24x64xf32> to vector<8x23x64xf32>
    %132 = arith.maximumf %130, %131 : vector<8x23x64xf32>
    %c0_100 = arith.constant 0 : index
    %c0_101 = arith.constant 0 : index
    %c0_102 = arith.constant 0 : index
    %133 = vector.load %arg12[%c0_100, %c0_101, %c0_102] : memref<8x23x64xf32, #tpu.memory_space<vmem>>, vector<8x23x64xf32>
    %134 = arith.subf %132, %133 : vector<8x23x64xf32>
    %135 = tpu.iota {dimensions = array<i32: 1>} : vector<1x23x1xi32>
    %c2_i32 = arith.constant 2 : i32
    %c0_i32_103 = arith.constant 0 : i32
    %136 = arith.cmpi eq, %c2_i32, %c0_i32_103 : i32
    %c1_i32_104 = arith.constant 1 : i32
    %137 = arith.select %136, %c1_i32_104, %c2_i32 : i32
    %138 = vector.broadcast %137 : i32 to vector<1x23x1xi32>
    %139 = arith.remsi %135, %138 : vector<1x23x1xi32>
    %c0_i32_105 = arith.constant 0 : i32
    %140 = vector.broadcast %c0_i32_105 : i32 to vector<1x23x1xi32>
    %141 = arith.cmpi ne, %139, %140 : vector<1x23x1xi32>
    %c0_i32_106 = arith.constant 0 : i32
    %142 = vector.broadcast %c0_i32_106 : i32 to vector<1x23x1xi32>
    %143 = arith.cmpi slt, %139, %142 : vector<1x23x1xi32>
    %c0_i32_107 = arith.constant 0 : i32
    %144 = arith.cmpi slt, %137, %c0_i32_107 : i32
    %145 = vector.broadcast %144 : i1 to vector<1x23x1xi1>
    %146 = vector.broadcast %145 : vector<1x23x1xi1> to vector<1x23x1xi1>
    %147 = arith.xori %143, %146 : vector<1x23x1xi1>
    %148 = arith.andi %147, %141 : vector<1x23x1xi1>
    %149 = vector.broadcast %137 : i32 to vector<1x23x1xi32>
    %150 = arith.addi %139, %149 : vector<1x23x1xi32>
    %151 = arith.select %148, %150, %139 : vector<1x23x1xi1>, vector<1x23x1xi32>
    %c0_i32_108 = arith.constant 0 : i32
    %152 = vector.broadcast %c0_i32_108 : i32 to vector<1x23x1xi32>
    %153 = arith.cmpi eq, %151, %152 : vector<1x23x1xi32>
    %c16_i32_109 = arith.constant 16 : i32
    %154 = vector.broadcast %c16_i32_109 : i32 to vector<1x23x1xi32>
    %155 = arith.cmpi slt, %135, %154 : vector<1x23x1xi32>
    %156 = arith.andi %153, %155 : vector<1x23x1xi1>
    %157 = arith.extui %156 : vector<1x23x1xi1> to vector<1x23x1xi32>
    %158 = arith.sitofp %157 : vector<1x23x1xi32> to vector<1x23x1xf32>
    %159 = math.absf %134 : vector<8x23x64xf32>
    %cst_110 = arith.constant 1.000000e+00 : f32
    %160 = vector.broadcast %cst_110 : f32 to vector<8x23x64xf32>
    %161 = arith.cmpf olt, %159, %160 : vector<8x23x64xf32>
    %cst_111 = arith.constant 5.000000e-01 : f32
    %162 = vector.broadcast %cst_111 : f32 to vector<8x23x64xf32>
    %163 = arith.mulf %162, %134 : vector<8x23x64xf32>
    %164 = arith.mulf %163, %134 : vector<8x23x64xf32>
    %cst_112 = arith.constant 5.000000e-01 : f32
    %165 = vector.broadcast %cst_112 : f32 to vector<8x23x64xf32>
    %166 = arith.subf %159, %165 : vector<8x23x64xf32>
    %167 = arith.select %161, %164, %166 : vector<8x23x64xi1>, vector<8x23x64xf32>
    %168 = vector.broadcast %158 : vector<1x23x1xf32> to vector<8x23x64xf32>
    %169 = arith.mulf %167, %168 : vector<8x23x64xf32>
    %c1_113 = arith.constant 1 : index
    %170 = memref.load %arg13[%c1_113] : memref<2xf32, #tpu.memory_space<smem>>
    %171 = vector.shape_cast %169 : vector<8x23x64xf32> to vector<1x8x23x64xf32>
    %cst_114 = arith.constant dense<0.000000e+00> : vector<1xf32>
    %172 = vector.multi_reduction <add>, %171, %cst_114 [1, 2, 3] : vector<1x8x23x64xf32> to vector<1xf32>
    %173 = vector.shape_cast %172 : vector<1xf32> to vector<1x1x1x1xf32>
    %174 = vector.extract %173[0, 0, 0, 0] : f32 from vector<1x1x1x1xf32>
    %175 = arith.addf %170, %174 : f32
    %c1_115 = arith.constant 1 : index
    %176 = memref.load %arg13[%c1_115] : memref<2xf32, #tpu.memory_space<smem>>
    memref.store %175, %arg13[%c1_115] : memref<2xf32, #tpu.memory_space<smem>>
    %c0_116 = arith.constant 0 : index
    %c0_117 = arith.constant 0 : index
    %c0_118 = arith.constant 0 : index
    %177 = vector.load %arg3[%c0_116, %c0_117, %c0_118] : memref<1x1x768xf32, #tpu.memory_space<vmem>>, vector<1x1x768xf32>
    %c0_119 = arith.constant 0 : index
    %c0_120 = arith.constant 0 : index
    %c0_121 = arith.constant 0 : index
    %178 = vector.load %arg4[%c0_119, %c0_120, %c0_121] : memref<1x1x768xf32, #tpu.memory_space<vmem>>, vector<1x1x768xf32>
    %179 = arith.subf %177, %178 : vector<1x1x768xf32>
    %c0_122 = arith.constant 0 : index
    %180 = memref.load %arg13[%c0_122] : memref<2xf32, #tpu.memory_space<smem>>
    %181 = arith.mulf %179, %179 : vector<1x1x768xf32>
    %182 = vector.shape_cast %181 : vector<1x1x768xf32> to vector<1x1x1x768xf32>
    %cst_123 = arith.constant dense<0.000000e+00> : vector<1xf32>
    %183 = vector.multi_reduction <add>, %182, %cst_123 [1, 2, 3] : vector<1x1x1x768xf32> to vector<1xf32>
    %184 = vector.shape_cast %183 : vector<1xf32> to vector<1x1x1x1xf32>
    %185 = vector.extract %184[0, 0, 0, 0] : f32 from vector<1x1x1x1xf32>
    %186 = arith.addf %180, %185 : f32
    %c0_124 = arith.constant 0 : index
    %187 = memref.load %arg13[%c0_124] : memref<2xf32, #tpu.memory_space<smem>>
    memref.store %186, %arg13[%c0_124] : memref<2xf32, #tpu.memory_space<smem>>
    %c1_i32_125 = arith.constant 1 : i32
    %188 = arith.cmpi eq, %arg0, %c1_i32_125 : i32
    %189 = arith.extui %188 : i1 to i32
    %c0_i32_126 = arith.constant 0 : i32
    %190 = arith.cmpi ne, %189, %c0_i32_126 : i32
    scf.if %190 {
      %c0_127 = arith.constant 0 : index
      %191 = memref.load %arg13[%c0_127] : memref<2xf32, #tpu.memory_space<smem>>
      %cst_128 = arith.constant 1.536000e+03 : f32
      %192 = arith.divf %191, %cst_128 : f32
      %c1_129 = arith.constant 1 : index
      %193 = memref.load %arg13[%c1_129] : memref<2xf32, #tpu.memory_space<smem>>
      %cst_130 = arith.constant 8.192000e+03 : f32
      %194 = arith.divf %193, %cst_130 : f32
      %cst_131 = arith.constant 5.000000e-01 : f32
      %195 = arith.mulf %cst_131, %194 : f32
      %196 = arith.addf %192, %195 : f32
      %c0_132 = arith.constant 0 : index
      %c0_133 = arith.constant 0 : index
      %197 = memref.load %arg9[%c0_132, %c0_133] : memref<1x1xf32, #tpu.memory_space<smem>>
      memref.store %196, %arg9[%c0_132, %c0_133] : memref<1x1xf32, #tpu.memory_space<smem>>
    } else {
    }
    return
  }
  func.func @transform_0(%arg0: i32) -> (i32, i32, i32) {
    %c0_i32 = arith.constant 0 : i32
    %c0_i32_0 = arith.constant 0 : i32
    %c0_i32_1 = arith.constant 0 : i32
    return %arg0, %c0_i32, %c0_i32_0 : i32, i32, i32
  }
  func.func @transform_1(%arg0: i32) -> (i32, i32, i32) {
    %c0_i32 = arith.constant 0 : i32
    %c0_i32_0 = arith.constant 0 : i32
    %c0_i32_1 = arith.constant 0 : i32
    return %arg0, %c0_i32, %c0_i32_0 : i32, i32, i32
  }
  func.func @transform_2(%arg0: i32) -> (i32, i32, i32) {
    %c0_i32 = arith.constant 0 : i32
    %c0_i32_0 = arith.constant 0 : i32
    %c0_i32_1 = arith.constant 0 : i32
    return %arg0, %c0_i32, %c0_i32_0 : i32, i32, i32
  }
  func.func @transform_3(%arg0: i32) -> (i32, i32, i32) {
    %c0_i32 = arith.constant 0 : i32
    %c0_i32_0 = arith.constant 0 : i32
    %c0_i32_1 = arith.constant 0 : i32
    return %arg0, %c0_i32, %c0_i32_0 : i32, i32, i32
  }
  func.func @transform_4(%arg0: i32) -> (i32, i32) {
    %c0_i32 = arith.constant 0 : i32
    %c0_i32_0 = arith.constant 0 : i32
    %c0_i32_1 = arith.constant 0 : i32
    return %c0_i32, %c0_i32_0 : i32, i32
  }
  func.func @transform_5(%arg0: i32) -> (i32, i32) {
    %c0_i32 = arith.constant 0 : i32
    %c0_i32_0 = arith.constant 0 : i32
    %c0_i32_1 = arith.constant 0 : i32
    return %c0_i32, %c0_i32_0 : i32, i32
  }
  func.func @transform_6(%arg0: i32) -> (i32, i32) {
    %c0_i32 = arith.constant 0 : i32
    %c0_i32_0 = arith.constant 0 : i32
    %c0_i32_1 = arith.constant 0 : i32
    return %c0_i32, %c0_i32_0 : i32, i32
  }
  func.func @transform_7(%arg0: i32) -> (i32, i32) {
    %c0_i32 = arith.constant 0 : i32
    %c0_i32_0 = arith.constant 0 : i32
    %c0_i32_1 = arith.constant 0 : i32
    return %c0_i32, %c0_i32_0 : i32, i32
  }
  func.func @transform_8(%arg0: i32) -> (i32, i32) {
    %c0_i32 = arith.constant 0 : i32
    %c0_i32_0 = arith.constant 0 : i32
    %c0_i32_1 = arith.constant 0 : i32
    return %c0_i32, %c0_i32_0 : i32, i32
  }
}

</mosaic_0001>

<bundles_post_ra>
// kernel: generator_loss.1
= control target key start
LH: loop header
LB: loop body
LE: loop exit
PB: predicated region body
PF: predicated region fallthrough
CT: control target
= control target key end

     0   :  { %13 = vsyncpa [#allocation7], 0  ;;  %s9563_s27 = smov 0   ;;  %s14029_s0 = inlined_call_operand.vmem [shape: bf16[2,384,27], index: 0, kind: input, shape index: {}]   ;;  %s14030_s1 = inlined_call_operand.vmem [shape: bf16[2,384,27], index: 1, kind: input, shape index: {}]   ;;  %s14031_s2 = inlined_call_operand.vmem [shape: f32[2,1,768], index: 2, kind: input, shape index: {}]   ;;  %s14032_s3 = inlined_call_operand.vmem [shape: f32[2,1,768], index: 3, kind: input, shape index: {}]   ;;  %s14033_s4 = inlined_call_operand.vmem [shape: bf16[27,64], index: 4, kind: input, shape index: {}]   ;;  %s14034_s5 = inlined_call_operand.vmem [shape: f32[1,64], index: 5, kind: input, shape index: {}]   ;;  %s14035_s6 = inlined_call_operand.vmem [shape: bf16[576,64], index: 6, kind: input, shape index: {}]   ;;  %s14036_s7 = inlined_call_operand.vmem [shape: f32[1,64], index: 7, kind: input, shape index: {}]   ;;  %s14037_s8 = inlined_call_operand.hbm [shape: f32[1,1], index: 8, kind: output, shape index: {}]  }
   0x1 LB: > { %s9569_s28 = sadd.s32 4294967295, %s9509_s27   ;;  %p8305_p0 = scmp.ge.s32.totalorder %s9509_s27, 1  ;;  %s9509_s27 = sphi %s9563_s27, %s19_s27  }
   0x2   : > { %p286_p1 = scmp.lt.s32.totalorder %s9509_s27, 3 }
   0x4   : > { %p287_p2 = pnand %p8305_p0, %p286_p1 }
   0x6   : > { %290 = sbr.rel (%p287_p2) target bundleno = 1616 (0x650), region = 52 }
   0xd   : > { %p328_p3 = scmp.lt.s32.totalorder %s9569_s28, 1  ;;  %p8308_p4 = scmp.ne.s32.totalorder %s9569_s28, 0 }
   0xe   : > { %vm355_vm0 = vcmask (!%p8308_p4), 523264   ;;  %vm359_vm1 = vcmask (!%p8308_p4), 516096   ;;  %s9511_s22 = smov (!%p8308_p4), 0.0   ;;  %v9512_v0 = vmov (!%p8308_p4), 0.0  }
   0xf   : > { %s329_s29 = scalar_select %p328_p3, %s9569_s28, 1 }
  0x10   : > { %350 = sbr.rel (%p8308_p4) target bundleno = 23 (0x17), region = 56  ;;  %352 = sst [smem:[#allocation5]] (!%p8308_p4), %s9511_s22  ;;  %356 = vst.msk [vmem:[#allocation2] sm:$0xff] (!%p8308_p4), %vm355_vm0, %v9512_v0  ;;  %357 = vst.msk [vmem:[#allocation2 + $0x8] sm:$0xff] (!%p8308_p4), %vm355_vm0, %v9512_v0 }
  0x11   : > { %s9226_s30 = smul.u32 192, %s329_s29  ;;  %358 = vst.msk [vmem:[#allocation2 + $0x10] sm:$0xff] (!%p8308_p4), %vm355_vm0, %v9512_v0  ;;  %361 = vst.msk [vmem:[#allocation2 + $0x199] sm:$0xff] (!%p8308_p4), %vm355_vm0, %v9512_v0  ;;  %354 = sst [smem:[#allocation5 + $0x1]] (!%p8308_p4), %s9511_s22 }
  0x12   : > { %s9227_s9 = smul.u32 6, %s329_s29  ;;  %362 = vst.msk [vmem:[#allocation2 + $0x1a1] sm:$0xff] (!%p8308_p4), %vm355_vm0, %v9512_v0  ;;  %363 = vst.msk [vmem:[#allocation2 + $0x1a9] sm:$0xff] (!%p8308_p4), %vm355_vm0, %v9512_v0 }
  0x13   : > { %s9578_s12 = scalar_lea.vmem %s14029_s0, %s9226_s30  ;;  %s9583_s15 = scalar_lea.vmem %s14030_s1, %s9226_s30  ;;  %364 = vst.msk [vmem:[#allocation2 + $0x1b1] sm:$0xff] (!%p8308_p4), %vm355_vm0, %v9512_v0 }
  0x14   : > { %s9588_s18 = scalar_lea.vmem %s14031_s2, %s9227_s9  ;;  %s9593_s21 = scalar_lea.vmem %s14032_s3, %s9227_s9  ;;  %360 = vst.msk [vmem:[#allocation2 + $0x18] sm:$0x1] (!%p8308_p4), %vm359_vm1, %v9512_v0 }
  0x17 PF: > { %v9352_v1 = vld [vmem:[%s14033_s4] sm:$0xff]   ;;  %vm1592_vm2 = vcmask 1044480   ;;  %v9353_v2 = vld [vmem:[%s14033_s4 + $0x8] sm:$0x3f]   ;;  %vm1593_vm3 = vcmask 1045504   ;;  %v9513_v3 = vmov 65535   ;;  %v368_v16 = vlaneseq }
  0x18   : > { %8722 = vmatprep.subr.bf16.mxu1 %v9352_v1  ;;  %v1594_v4 = vsel %vm1592_vm2, 4294967295, %v9513_v3  ;;  %v9354_v5 = vld [vmem:[%s9578_s12] sm:$0xff]   ;;  %vm1519_vm4 = vcmask 220160   ;;  %v9355_v8 = vld [vmem:[%s9578_s12 + $0x8] sm:$0xff]   ;;  %v9356_v9 = vld [vmem:[%s9578_s12 + $0x10] sm:$0xff]   ;;  %s9516_s29 = smov 64  }
  0x19   : > { %8723 = vmatpush3.bf16.msra.mxu1 %v9352_v1  ;;  %v9603_v6 = vsel %vm1593_vm3, %v1594_v4, 0  ;;  %8726 = vmatprep.mubr.msk.bf16.mxu1 %vm1519_vm4, %v9354_v5  ;;  %v9357_v10 = vld [vmem:[%s9578_s12 + $0x18] sm:$0xff]   ;;  %v9358_v11 = vld [vmem:[%s9578_s12 + $0x20] sm:$0xff]   ;;  %v9359_v12 = vld [vmem:[%s9578_s12 + $0x28] sm:$0xff]   ;;  %v9625_v19 = vshrl.u32 %v368_v16, 7  ;;  %s8607_s17 = sld [smem:[#allocation5 + $0x1]] }
  0x1a   : > { %v1597_v7 = vand.u32 %v9353_v2, %v9603_v6  ;;  %v9360_v13 = vld [vmem:[%s9578_s12 + $0x30] sm:$0xff]   ;;  %v9361_v14 = vld [vmem:[%s9578_s12 + $0x38] sm:$0xff]   ;;  %v9362_v15 = vld [vmem:[%s9578_s12 + $0x40] sm:$0xff]   ;;  %s8148_s19 = sld [smem:[#allocation5]]  ;;  %p9334_p5 = scmp.eq.s32.totalorder %s9569_s28, 1 }
  0x1b   : > { %v9363_v17 = vld [vmem:[%s9578_s12 + $0x48] sm:$0xff]   ;;  %v9364_v18 = vld [vmem:[%s9578_s12 + $0x50] sm:$0xff]   ;;  %14158 = vst [vmem:[#allocation9_spill] sm:$0xff] %v9625_v19  ;;  %v9365_v20 = vld [vmem:[%s9578_s12 + $0x58] sm:$0xff]   ;;  %v371_v32 = vadd.s32 16, %v9625_v19  ;;  %v372_v35 = vadd.s32 24, %v9625_v19 }
  0x1c   : > { %8724 = vmatprep.subr.bf16.mxu1 %v1597_v7  ;;  %v9366_v21 = vld [vmem:[%s9578_s12 + $0x60] sm:$0xff]   ;;  %v9367_v22 = vld [vmem:[%s9578_s12 + $0x68] sm:$0xff]   ;;  %v9368_v23 = vld [vmem:[%s9578_s12 + $0x70] sm:$0xff]   ;;  %v9659_v36 = vadd.s32 8, %v9625_v19  ;;  %v9663_v38 = vmul.u32.u64.low 2863311531, %v9625_v19  ;;  %v9664_v39 = vmul.u32.u64.high 2863311531, %v9625_v19, %v9663_v38 }
  0x1d   : > { %8725 = vmatpush3.bf16.msra.mxu1 %v1597_v7  ;;  %v9369_v24 = vld [vmem:[%s9578_s12 + $0x78] sm:$0xff]   ;;  %v9370_v25 = vld [vmem:[%s9578_s12 + $0x80] sm:$0xff]   ;;  %v9371_v26 = vld [vmem:[%s9578_s12 + $0x88] sm:$0xff]   ;;  %v9653_v33 = vmul.u32.u64.low 2863311531, %v371_v32  ;;  %v9654_v34 = vmul.u32.u64.high 2863311531, %v371_v32, %v9653_v33  ;;  %v375_v40 = vadd.s32 48, %v9625_v19 }
  0x1e   : > { %v9372_v27 = vld [vmem:[%s9578_s12 + $0x90] sm:$0xff]   ;;  %v9373_v28 = vld [vmem:[%s9578_s12 + $0x98] sm:$0xff]   ;;  %v9374_v29 = vld [vmem:[%s9578_s12 + $0xa0] sm:$0xff]   ;;  %14159 = vst [vmem:[#allocation10_spill] sm:$0xff] %v9659_v36  ;;  %v9667_v41 = vmul.u32.u64.low 2863311531, %v372_v35  ;;  %v9668_v42 = vmul.u32.u64.high 2863311531, %v372_v35, %v9667_v41 }
  0x1f   : > { %v9375_v30 = vld [vmem:[%s9578_s12 + $0xa8] sm:$0xff]   ;;  %v9376_v31 = vld [vmem:[%s9578_s12 + $0xb0] sm:$0xff]   ;;  %v9377_v37 = vld [vmem:[%s9578_s12 + $0xb8] sm:$0xff]   ;;  %v9671_v43 = vmul.u32.u64.low 2863311531, %v9659_v36  ;;  %v9672_v44 = vmul.u32.u64.high 2863311531, %v9659_v36, %v9671_v43  ;;  %v445_v45 = vshrl.u32 %v9654_v34, 4 }
  0x20   : > { %8727 = vmatmul.mubr.msk.bf16.vlgmr.msra.gmra.mrb[0].mxu1 %vm1519_vm4, %v9355_v8  ;;  %v9676_v46 = vmul.u32.u64.low 2863311531, %v375_v40  ;;  %v9677_v47 = vmul.u32.u64.high 2863311531, %v375_v40, %v9676_v46  ;;  %v373_v48 = vadd.s32 32, %v9625_v19  ;;  %v423_v50 = vshrl.u32 %v9664_v39, 4  ;;  %v9380_v39 = vld [vmem:[%s14035_s6 + $0x110] sm:$0xff]   ;;  %s9487_s11 = scalar_lea.hbm %s14037_s8, 16 }
  0x21   : > { %8730 = vmatprep.mubr.msk.bf16.mxu1 %vm1519_vm4, %v9356_v9  ;;  %v446_v49 = vmul.u32 24, %v445_v45  ;;  %v9682_v51 = vadd.s32 56, %v9625_v19  ;;  %v456_v52 = vshrl.u32 %v9668_v42, 4  ;;  %v434_v53 = vshrl.u32 %v9672_v44, 4  ;;  %p9488_p6 = scmp.ne.s32.totalorder %s14037_s8, %s9487_s11  ;;  %p9493_p9 = scmp.lt.u32.totalorder %s9487_s11, %s14037_s8 }
  0x22   : > { %v9686_v54 = vmul.u32.u64.low 2863311531, %v373_v48  ;;  %v9687_v55 = vmul.u32.u64.high 2863311531, %v373_v48, %v9686_v54  ;;  %v9690_v56 = vadd.s32 40, %v9625_v19  ;;  %v424_v58 = vmul.u32 24, %v423_v50 }
  0x23   : > { %v447_v57 = vsub.s32 %v371_v32, %v446_v49  ;;  %v9693_v59 = vmul.u32.u64.low 2863311531, %v9682_v51  ;;  %v9694_v60 = vmul.u32.u64.high 2863311531, %v9682_v51, %v9693_v59  ;;  %v489_v61 = vshrl.u32 %v9677_v47, 4  ;;  %p9489_p7 = pnand %p9488_p6, %p9334_p5 }
  0x24   : > { %v457_v62 = vmul.u32 24, %v456_v52  ;;  %v435_v63 = vmul.u32 24, %v434_v53  ;;  %v425_v2 = vsub.s32 %v9625_v19, %v424_v58  ;;  %v467_v9 = vshrl.u32 %v9687_v55, 4 }
  0x25   : > { %v9698_v0 = vmul.u32.u64.low 2863311531, %v9690_v56  ;;  %v9699_v1 = vmul.u32.u64.high 2863311531, %v9690_v56, %v9698_v0  ;;  %vm947_vm5 = vcmp.ne.s32.totalorder %v447_v57, 0  ;;  %vm995_vm6 = vcmp.lt.s32.totalorder %v447_v57, 0  ;;  %p9490_p8 = pneg %p9489_p7 }
  0x26   : > { %v490_v3 = vmul.u32 24, %v489_v61  ;;  %v1091_v4 = vadd.s32 24, %v447_v57  ;;  %v9702_v5 = vsub.s32 %v372_v35, %v457_v62  ;;  %vm9704_vm7 = vmand %vm995_vm6, %vm947_vm5  ;;  %v9709_v8 = vsub.s32 %v9659_v36, %v435_v63 }
  0x27   : > { %vm945_vm8 = vcmp.ne.s32.totalorder %v425_v2, 0  ;;  %vm993_vm9 = vcmp.lt.s32.totalorder %v425_v2, 0  ;;  %v1089_v16 = vadd.s32 24, %v425_v2  ;;  %v9793_v44 = vadd.s32 72, %v9625_v19  ;;  %p9495_p10 = pnand %p9493_p9, %p9490_p8 }
  0x28   : > { %8731 = vmatmul.mubr.msk.bf16.gmra.mrb[4].mxu1 %vm1519_vm4, %v9357_v10  ;;  %v9378_v10 = vld [vmem:[%s14035_s6 + $0x100] sm:$0xff]   ;;  %vm948_vm10 = vcmp.ne.s32.totalorder %v9702_v5, 0  ;;  %vm996_vm11 = vcmp.lt.s32.totalorder %v9702_v5, 0  ;;  %vm9728_vm12 = vmand %vm993_vm9, %vm945_vm8  ;;  %vm946_vm13 = vcmp.ne.s32.totalorder %v9709_v8, 0  ;;  %vm994_vm14 = vcmp.lt.s32.totalorder %v9709_v8, 0 }
  0x29   : > { %8734 = vmatprep.mubr.msk.bf16.mxu1 %vm1519_vm4, %v9358_v11  ;;  %v500_v11 = vshrl.u32 %v9694_v60, 4  ;;  %8774 = vmatprep.subr.bf16.mxu0 %v9378_v10  ;;  %vm9757_vm1 = vmand %vm996_vm11, %vm948_vm10  ;;  %v9802_v47 = vadd.s32 112, %v9625_v19  ;;  %v9929_v43 = vadd.s32 136, %v9625_v19 }
  0x2a   : > { %8775 = vmatpush3.bf16.msra.mxu0 %v9378_v10  ;;  %vm9766_vm2 = vmand %vm994_vm14, %vm946_vm13 }
  0x30   : > { %8735 = vmatmul.mubr.msk.bf16.gmra.mrb[8].mxu1 %vm1519_vm4, %v9359_v12  ;;  %v9717_v12 = vadd.s32 80, %v9625_v19 }
  0x31   : > { %8738 = vmatprep.mubr.msk.bf16.mxu1 %vm1519_vm4, %v9360_v13  ;;  %v9719_v13 = vsub.s32 %v375_v40, %v490_v3 }
  0x33   : > { %vm951_vm15 = vcmp.ne.s32.totalorder %v9719_v13, 0  ;;  %vm999_vm0 = vcmp.lt.s32.totalorder %v9719_v13, 0  ;;  %v1095_v32 = vadd.s32 24, %v9719_v13 }
  0x34   : > { %vm9779_vm3 = vmand %vm999_vm0, %vm951_vm15 }
  0x35   : > { %v1143_v49 = vsel %vm9779_vm3, %v1095_v32, %v9719_v13 }
  0x38   : > { %8739 = vmatmul.mubr.msk.bf16.gmra.mrb[12].mxu1 %vm1519_vm4, %v9361_v14  ;;  %v9722_v14 = vadd.s32 64, %v9625_v19 }
  0x39   : > { %8742 = vmatprep.mubr.msk.bf16.mxu1 %vm1519_vm4, %v9362_v15  ;;  %v1139_v15 = vsel %vm9704_vm7, %v1091_v4, %v447_v57  ;;  %v9817_v57 = vmul.u32.u64.low 2863311531, %v9793_v44  ;;  %v9818_v58 = vmul.u32.u64.high 2863311531, %v9793_v44, %v9817_v57 }
  0x3a   : > { %vm9784_vm5 = vcmp.lt.s32.totalorder %v1139_v15, 16 }
  0x40   : > { %8743 = vmatmul.mubr.msk.bf16.gmra.mrb[16].mxu1 %vm1519_vm4, %v9363_v17 }
  0x41   : > { %8746 = vmatprep.mubr.msk.bf16.mxu1 %vm1519_vm4, %v9364_v18  ;;  %v468_v18 = vmul.u32 24, %v467_v9 }
  0x43   : > { %v469_v34 = vsub.s32 %v373_v48, %v468_v18  ;;  %v9805_v48 = vadd.s32 96, %v9625_v19  ;;  %v9868_v18 = vadd.s32 104, %v9625_v19 }
  0x45   : > { %vm949_vm7 = vcmp.ne.s32.totalorder %v469_v34, 0  ;;  %vm997_vm8 = vcmp.lt.s32.totalorder %v469_v34, 0  ;;  %v1093_v52 = vadd.s32 24, %v469_v34 }
  0x46   : > { %vm9820_vm11 = vmand %vm997_vm8, %vm949_vm7  ;;  %v9829_v61 = vmul.u32.u64.low 2863311531, %v9805_v48  ;;  %v9830_v62 = vmul.u32.u64.high 2863311531, %v9805_v48, %v9829_v61  ;;  %v9902_v32 = vmul.u32.u64.low 2863311531, %v9868_v18  ;;  %v9903_v33 = vmul.u32.u64.high 2863311531, %v9868_v18, %v9902_v32 }
  0x48   : > { %8747 = vmatmul.mubr.msk.bf16.gmra.mrb[20].mxu1 %vm1519_vm4, %v9365_v20  ;;  %v478_v20 = vshrl.u32 %v9699_v1, 4  ;;  %v9838_v1 = vadd.s32 120, %v9625_v19 }
  0x49   : > { %8750 = vmatprep.mubr.msk.bf16.mxu1 %vm1519_vm4, %v9366_v21  ;;  %v9735_v21 = vadd.s32 88, %v9625_v19 }
  0x4a   : > { %v479_v35 = vmul.u32 24, %v478_v20 }
  0x4c   : > { %v480_v50 = vsub.s32 %v9690_v56, %v479_v35  ;;  %v9825_v56 = vmul.u32.u64.low 2863311531, %v9802_v47  ;;  %v9826_v60 = vmul.u32.u64.high 2863311531, %v9802_v47, %v9825_v56  ;;  %v9914_v35 = vadd.s32 128, %v9625_v19 }
  0x4e   : > { %vm950_vm13 = vcmp.ne.s32.totalorder %v480_v50, 0  ;;  %vm998_vm14 = vcmp.lt.s32.totalorder %v480_v50, 0  ;;  %v1094_v7 = vadd.s32 24, %v480_v50 }
  0x50   : > { %8751 = vmatmul.mubr.msk.bf16.gmra.mrb[24].mxu1 %vm1519_vm4, %v9367_v22  ;;  %v9379_v22 = vld [vmem:[%s14035_s6 + $0x108] sm:$0xff]  }
  0x51   : > { %8754 = vmatprep.mubr.msk.bf16.mxu1 %vm1519_vm4, %v9368_v23  ;;  %v501_v23 = vmul.u32 24, %v500_v11  ;;  %8776 = vmatprep.subr.bf16.mxu0 %v9379_v22 }
  0x52   : > { %8777 = vmatpush3.bf16.msra.mxu0 %v9379_v22 }
  0x53   : > { %v502_v41 = vsub.s32 %v9682_v51, %v501_v23  ;;  %8778 = vmatprep.subr.bf16.mxu0 %v9380_v39  ;;  %v9381_v51 = vld [vmem:[%s14035_s6 + $0x118] sm:$0xff]  }
  0x55   : > { %vm952_vm9 = vcmp.ne.s32.totalorder %v502_v41, 0  ;;  %vm1000_vm10 = vcmp.lt.s32.totalorder %v502_v41, 0  ;;  %v1096_v54 = vadd.s32 24, %v502_v41 }
  0x56   : > { %8779 = vmatpush3.bf16.msra.mxu0 %v9380_v39 }
  0x57   : > { %8780 = vmatprep.subr.bf16.mxu0 %v9381_v51 }
  0x58   : > { %8755 = vmatmul.mubr.msk.bf16.gmra.mrb[28].mxu1 %vm1519_vm4, %v9369_v24 }
  0x59   : > { %8758 = vmatprep.mubr.msk.bf16.mxu1 %vm1519_vm4, %v9370_v25  ;;  %v9742_v24 = vmul.u32.u64.low 2863311531, %v9717_v12  ;;  %v9743_v25 = vmul.u32.u64.high 2863311531, %v9717_v12, %v9742_v24 }
  0x5a   : > { %8781 = vmatpush3.bf16.msra.mxu0 %v9381_v51 }
  0x5b   : > { %v533_v53 = vshrl.u32 %v9743_v25, 4  ;;  %v522_v25 = vshrl.u32 %v9818_v58, 4 }
  0x5d   : > { %v534_v4 = vmul.u32 24, %v533_v53 }
  0x5f   : > { %v9877_v23 = vsub.s32 %v9717_v12, %v534_v4  ;;  %v577_v12 = vshrl.u32 %v9826_v60, 4 }
  0x60   : > { %8759 = vmatmul.mubr.msk.bf16.gmra.mrb[32].mxu1 %vm1519_vm4, %v9371_v26 }
  0x61   : > { %8762 = vmatprep.mubr.msk.bf16.mxu1 %vm1519_vm4, %v9372_v27  ;;  %v9748_v26 = vmul.u32.u64.low 2863311531, %v9722_v14  ;;  %v9749_v27 = vmul.u32.u64.high 2863311531, %v9722_v14, %v9748_v26  ;;  %vm955_vm7 = vcmp.ne.s32.totalorder %v9877_v23, 0  ;;  %vm1003_vm8 = vcmp.lt.s32.totalorder %v9877_v23, 0 }
  0x62   : > { %v9883_v26 = vadd.s32 144, %v9625_v19  ;;  %v578_v39 = vmul.u32 24, %v577_v12  ;;  %v1099_v51 = vadd.s32 24, %v9877_v23 }
  0x63   : > { %v511_v55 = vshrl.u32 %v9749_v27, 4 }
  0x64   : > { %v9965_v58 = vsub.s32 %v9802_v47, %v578_v39  ;;  %v9982_v63 = vmul.u32.u64.low 2863311531, %v9929_v43  ;;  %v9983_v47 = vmul.u32.u64.high 2863311531, %v9929_v43, %v9982_v63 }
  0x65   : > { %v512_v13 = vmul.u32 24, %v511_v55  ;;  %v9382_v55 = vld [vmem:[%s14033_s4] sm:$0xff]  }
  0x66   : > { %8830 = vmatprep.subr.bf16.mxu0 %v9382_v55 }
  0x68   : > { %8763 = vmatmul.mubr.msk.bf16.gmra.mrb[36].mxu1 %vm1519_vm4, %v9373_v28  ;;  %v1137_v28 = vsel %vm9728_vm12, %v1089_v16, %v425_v2  ;;  %vm9832_vm12 = vmand %vm1000_vm10, %vm952_vm9  ;;  %v14040_v2 = vmov 0.0   ;;  %v9864_v16 = vmul.u32.u64.low 2863311531, %v9838_v1  ;;  %v9865_v17 = vmul.u32.u64.high 2863311531, %v9838_v1, %v9864_v16 }
  0x69   : > { %8766 = vmatprep.mubr.msk.bf16.mxu1 %vm1519_vm4, %v9374_v29  ;;  %vm9788_vm6 = vcmp.lt.s32.totalorder %v1137_v28, 16  ;;  %v9843_v3 = vsel %vm9784_vm5, 1.0, %v14040_v2  ;;  %v1144_v10 = vsel %vm9832_vm12, %v1096_v54, %v502_v41  ;;  %v9891_v28 = vsub.s32 %v9722_v14, %v512_v13  ;;  %v10011_v13 = vld [vmem:[#allocation2 + $0x1] sm:$0xff] }
  0x6a   : > { %14178 = vst [vmem:[#allocation11_spill] sm:$0xff] %v9843_v3  ;;  %vm1192_vm5 = vcmp.lt.s32.totalorder %v1144_v10, 16  ;;  %v555_v29 = vshrl.u32 %v9830_v62, 4  ;;  %v9923_v41 = vadd.s32 152, %v9625_v19  ;;  %v588_v42 = vshrl.u32 %v9865_v17, 4 }
  0x6b   : > { %vm953_vm9 = vcmp.ne.s32.totalorder %v9891_v28, 0  ;;  %vm1001_vm10 = vcmp.lt.s32.totalorder %v9891_v28, 0  ;;  %v566_v62 = vshrl.u32 %v9903_v33, 4 }
  0x6c   : > { %v556_v40 = vmul.u32 24, %v555_v29  ;;  %v589_v61 = vmul.u32 24, %v588_v42  ;;  %v1103_v29 = vadd.s32 24, %v9965_v58 }
  0x6d   : > { %v567_v17 = vmul.u32 24, %v566_v62 }
  0x6e   : > { %v9968_v59 = vsub.s32 %v9805_v48, %v556_v40  ;;  %v590_v16 = vsub.s32 %v9838_v1, %v589_v61  ;;  %v610_v40 = vshrl.u32 %v9983_v47, 4 }
  0x6f   : > { %v10060_v39 = vsub.s32 %v9868_v18, %v567_v17 }
  0x70   : > { %8767 = vmatmul.mubr.msk.bf16.gmra.mrb[40].mxu1 %vm1519_vm4, %v9375_v30  ;;  %v1092_v30 = vadd.s32 24, %v9702_v5 }
  0x71   : > { %8770 = vmatprep.mubr.msk.bf16.mxu1 %vm1519_vm4, %v9376_v31  ;;  %v1090_v31 = vadd.s32 24, %v9709_v8  ;;  %v1102_v62 = vadd.s32 24, %v10060_v39 }
  0x72   : > { %v1140_v45 = vsel %vm9757_vm1, %v1092_v30, %v9702_v5  ;;  %v1141_v5 = vsel %vm9820_vm11, %v1093_v52, %v469_v34  ;;  %vm9852_vm1 = vcmp.lt.s32.totalorder %v1143_v49, 16  ;;  %v9906_v34 = vsel %vm1192_vm5, 1.0, %v14040_v2 }
  0x73   : > { %v1138_v46 = vsel %vm9766_vm2, %v1090_v31, %v9709_v8  ;;  %vm1188_vm15 = vcmp.lt.s32.totalorder %v1140_v45, 16  ;;  %v9850_v8 = vsel %vm9788_vm6, 1.0, %v14040_v2  ;;  %vm9859_vm2 = vmand %vm998_vm14, %vm950_vm13  ;;  %vm1189_vm3 = vcmp.lt.s32.totalorder %v1141_v5, 16  ;;  %14188 = vst [vmem:[#allocation17_spill] sm:$0xff] %v9906_v34 }
  0x74   : > { %vm1186_vm0 = vcmp.lt.s32.totalorder %v1138_v46, 16  ;;  %14179 = vst [vmem:[#allocation12_spill] sm:$0xff] %v9850_v8  ;;  %v9871_v20 = vsel %vm1188_vm15, 1.0, %v14040_v2  ;;  %v1142_v24 = vsel %vm9859_vm2, %v1094_v7, %v480_v50  ;;  %v9888_v27 = vsel %vm9852_vm1, 1.0, %v14040_v2  ;;  %vm9943_vm13 = vmand %vm1003_vm8, %vm955_vm7 }
  0x75   : > { %14184 = vst [vmem:[#allocation13_spill] sm:$0xff] %v9871_v20  ;;  %v9874_v22 = vsel %vm1186_vm0, 1.0, %v14040_v2  ;;  %14186 = vst [vmem:[#allocation15_spill] sm:$0xff] %v9888_v27  ;;  %v9896_v30 = vsel %vm1189_vm3, 1.0, %v14040_v2  ;;  %vm9908_vm6 = vcmp.lt.s32.totalorder %v1142_v24, 16  ;;  %v9937_v49 = vadd.s32 176, %v9625_v19 }
  0x76   : > { %14185 = vst [vmem:[#allocation14_spill] sm:$0xff] %v9874_v22  ;;  %14187 = vst [vmem:[#allocation16_spill] sm:$0xff] %v9896_v30  ;;  %v9933_v45 = vmul.u32.u64.low 2863311531, %v9914_v35  ;;  %v9934_v46 = vmul.u32.u64.high 2863311531, %v9914_v35, %v9933_v45  ;;  %v1097_v52 = vadd.s32 24, %v9891_v28  ;;  %v9988_v48 = vsel %vm9908_vm6, 1.0, %v14040_v2 }
  0x77   : > { %vm9960_vm14 = vmand %vm1001_vm10, %vm953_vm9  ;;  %14197 = vst [vmem:[#allocation18_spill] sm:$0xff] %v9988_v48  ;;  %v9995_v5 = vadd.s32 160, %v9625_v19  ;;  %v1147_v7 = vsel %vm9943_vm13, %v1099_v51, %v9877_v23  ;;  %vm959_vm2 = vcmp.ne.s32.totalorder %v9965_v58, 0  ;;  %vm1007_vm3 = vcmp.lt.s32.totalorder %v9965_v58, 0 }
  0x78   : > { %8771 = vmatmul.mubr.msk.bf16.gmra.mrb[44].mxu1 %vm1519_vm4, %v9377_v37  ;;  %v9771_v37 = vmul.u32.u64.low 2863311531, %v9735_v21  ;;  %v9772_v38 = vmul.u32.u64.high 2863311531, %v9735_v21, %v9771_v37  ;;  %v1145_v10 = vsel %vm9960_vm14, %v1097_v52, %v9891_v28  ;;  %vm957_vm5 = vcmp.ne.s32.totalorder %v9968_v59, 0  ;;  %vm10034_vm9 = vmand %vm1007_vm3, %vm959_vm2 }
  0x79   : > { %vm1005_vm6 = vcmp.lt.s32.totalorder %v9968_v59, 0  ;;  %v10027_v28 = vmul.u32.u64.low 2863311531, %v9995_v5  ;;  %v10028_v12 = vmul.u32.u64.high 2863311531, %v9995_v5, %v10027_v28  ;;  %vm1195_vm8 = vcmp.lt.s32.totalorder %v1147_v7, 16 }
  0x7a   : > { %v544_v0 = vshrl.u32 %v9772_v38, 4  ;;  %v9918_v37 = vmul.u32.u64.low 2863311531, %v9883_v26  ;;  %v9919_v38 = vmul.u32.u64.high 2863311531, %v9883_v26, %v9918_v37  ;;  %vm10040_vm10 = vcmp.lt.s32.totalorder %v1145_v10, 16 }
  0x7b   : > { %vm960_vm13 = vcmp.ne.s32.totalorder %v590_v16, 0  ;;  %vm1008_vm14 = vcmp.lt.s32.totalorder %v590_v16, 0  ;;  %v10064_v42 = vsel %vm1195_vm8, 1.0, %v14040_v2  ;;  %v1151_v51 = vsel %vm10034_vm9, %v1103_v29, %v9965_v58 }
  0x7c   : > { %v545_v15 = vmul.u32 24, %v544_v0  ;;  %v9991_v0 = vmul.u32.u64.low 2863311531, %v9937_v49  ;;  %v9992_v4 = vmul.u32.u64.high 2863311531, %v9937_v49, %v9991_v0  ;;  %v621_v9 = vshrl.u32 %v9919_v38, 4 }
  0x7d   : > { %v1104_v52 = vadd.s32 24, %v590_v16  ;;  %v10082_v55 = vsel %vm10040_vm10, 1.0, %v14040_v2  ;;  %vm1006_vm2 = vcmp.lt.s32.totalorder %v10060_v39, 0  ;;  %vm10106_vm3 = vcmp.lt.s32.totalorder %v1151_v51, 16 }
  0x7e   : > { %v9899_v31 = vsub.s32 %v9735_v21, %v545_v15  ;;  %v523_v21 = vmul.u32 24, %v522_v25  ;;  %v10013_v15 = vld [vmem:[#allocation2 + $0x9] sm:$0xff]  ;;  %v599_v25 = vshrl.u32 %v9934_v46, 4  ;;  %v622_v32 = vmul.u32 24, %v621_v9 }
  0x7f   : > { %v665_v50 = vshrl.u32 %v9992_v4, 4  ;;  %v643_v0 = vshrl.u32 %v10028_v12, 4  ;;  %v10122_v7 = vadd.s32 208, %v9625_v19 }
  0x80   : > { %vm956_vm11 = vcmp.ne.s32.totalorder %v9899_v31, 0  ;;  %vm1004_vm12 = vcmp.lt.s32.totalorder %v9899_v31, 0  ;;  %v1100_v53 = vadd.s32 24, %v9899_v31  ;;  %v9951_v54 = vsub.s32 %v9793_v44, %v523_v21 }
  0x81   : > { %v9971_v44 = vmul.u32.u64.low 2863311531, %v9923_v41  ;;  %v9972_v56 = vmul.u32.u64.high 2863311531, %v9923_v41, %v9971_v44  ;;  %vm9976_vm15 = vmand %vm1004_vm12, %vm956_vm11  ;;  %v600_v46 = vmul.u32 24, %v599_v25 }
  0x82   : > { %vm954_vm0 = vcmp.ne.s32.totalorder %v9951_v54, 0  ;;  %vm1002_vm1 = vcmp.lt.s32.totalorder %v9951_v54, 0  ;;  %v1148_v11 = vsel %vm9976_vm15, %v1100_v53, %v9899_v31  ;;  %v1098_v24 = vadd.s32 24, %v9951_v54  ;;  %vm10054_vm12 = vmand %vm1005_vm6, %vm957_vm5 }
  0x83   : > { %vm10020_vm7 = vmand %vm1002_vm1, %vm954_vm0  ;;  %v1101_v31 = vadd.s32 24, %v9968_v59  ;;  %vm10044_vm11 = vcmp.lt.s32.totalorder %v1148_v11, 16  ;;  %v632_v38 = vshrl.u32 %v9972_v56, 4  ;;  %v10077_v53 = vsub.s32 %v9883_v26, %v622_v32 }
  0x84   : > { %v1146_v45 = vsel %vm10020_vm7, %v1098_v24, %v9951_v54  ;;  %v10087_v54 = vsel %vm10044_vm11, 1.0, %v14040_v2  ;;  %vm10090_vm15 = vmand %vm1008_vm14, %vm960_vm13  ;;  %vm958_vm1 = vcmp.ne.s32.totalorder %v10060_v39, 0  ;;  %v611_v44 = vmul.u32 24, %v610_v40 }
  0x85   : > { %v1149_v18 = vsel %vm10054_vm12, %v1101_v31, %v9968_v59  ;;  %14208 = vst [vmem:[#allocation19_spill] sm:$0xff] %v10087_v54  ;;  %v633_v58 = vmul.u32 24, %v632_v38  ;;  %v10095_v59 = vadd.s32 184, %v9625_v19  ;;  %vm10097_vm0 = vcmp.lt.s32.totalorder %v1146_v45, 16  ;;  %vm10136_vm8 = vmand %vm1006_vm2, %vm958_vm1 }
  0x86   : > { %v10104_v56 = vadd.s32 168, %v9625_v19  ;;  %vm10110_vm5 = vcmp.lt.s32.totalorder %v1149_v18, 16  ;;  %v601_v63 = vsub.s32 %v9914_v35, %v600_v46  ;;  %v666_v47 = vmul.u32 24, %v665_v50 }
  0x87   : > { %v1152_v4 = vsel %vm10090_vm15, %v1104_v52, %v590_v16  ;;  %vm963_vm6 = vcmp.ne.s32.totalorder %v10077_v53, 0  ;;  %vm1011_vm7 = vcmp.lt.s32.totalorder %v10077_v53, 0  ;;  %v1107_v9 = vadd.s32 24, %v10077_v53 }
  0x88   : > { %v10126_v10 = vsub.s32 %v9923_v41, %v633_v58  ;;  %v10129_v35 = vmul.u32.u64.low 2863311531, %v10095_v59  ;;  %v10130_v11 = vmul.u32.u64.high 2863311531, %v10095_v59, %v10129_v35  ;;  %v612_v17 = vsub.s32 %v9929_v43, %v611_v44  ;;  %vm10155_vm12 = vmand %vm1011_vm7, %vm963_vm6 }
  0x89   : > { %v10142_v23 = vmul.u32.u64.low 2863311531, %v10104_v56  ;;  %v10143_v24 = vmul.u32.u64.high 2863311531, %v10104_v56, %v10142_v23  ;;  %v10146_v41 = vadd.s32 192, %v9625_v19  ;;  %vm961_vm9 = vcmp.ne.s32.totalorder %v601_v63, 0 }
  0x8a   : > { %vm1009_vm10 = vcmp.lt.s32.totalorder %v601_v63, 0  ;;  %v667_v25 = vsub.s32 %v9937_v49, %v666_v47  ;;  %v644_v28 = vmul.u32 24, %v643_v0  ;;  %vm10149_vm11 = vcmp.lt.s32.totalorder %v1152_v4, 16 }
  0x8b   : > { %v10160_v1 = vmul.u32.u64.low 2863311531, %v10122_v7  ;;  %v10161_v29 = vmul.u32.u64.high 2863311531, %v10122_v7, %v10160_v1  ;;  %v10164_v31 = vadd.s32 216, %v9625_v19  ;;  %v1150_v49 = vsel %vm10136_vm8, %v1102_v62, %v10060_v39  ;;  %vm10171_vm15 = vmand %vm1009_vm10, %vm961_vm9 }
  0x8c   : > { %v1105_v32 = vadd.s32 24, %v601_v63  ;;  %vm964_vm13 = vcmp.ne.s32.totalorder %v10126_v10, 0  ;;  %vm1012_vm14 = vcmp.lt.s32.totalorder %v10126_v10, 0  ;;  %vm962_vm1 = vcmp.ne.s32.totalorder %v612_v17, 0 }
  0x8d   : > { %vm1010_vm2 = vcmp.lt.s32.totalorder %v612_v17, 0  ;;  %v10176_v14 = vmul.u32.u64.low 2863311531, %v10146_v41  ;;  %v10177_v37 = vmul.u32.u64.high 2863311531, %v10146_v41, %v10176_v14  ;;  %v1155_v38 = vsel %vm10155_vm12, %v1107_v9, %v10077_v53  ;;  %vm10183_vm8 = vmand %vm1012_vm14, %vm964_vm13 }
  0x8e   : > { %vm967_vm6 = vcmp.ne.s32.totalorder %v667_v25, 0  ;;  %vm1015_vm7 = vcmp.lt.s32.totalorder %v667_v25, 0  ;;  %v645_v39 = vsub.s32 %v9995_v5, %v644_v28  ;;  %v1108_v45 = vadd.s32 24, %v10126_v10  ;;  %vm10200_vm9 = vmand %vm1010_vm2, %vm962_vm1 }
  0x8f   : > { %v1106_v46 = vadd.s32 24, %v612_v17  ;;  %v10189_v50 = vmul.u32.u64.low 2863311531, %v10164_v31  ;;  %v10190_v51 = vmul.u32.u64.high 2863311531, %v10164_v31, %v10189_v50  ;;  %v10195_v18 = vsel %vm10097_vm0, 1.0, %v14040_v2  ;;  %vm10222_vm0 = vmand %vm1015_vm7, %vm967_vm6 }
  0x90   : > { %14227 = vst [vmem:[#allocation20_spill] sm:$0xff] %v10195_v18  ;;  %v1153_v52 = vsel %vm10171_vm15, %v1105_v32, %v601_v63  ;;  %v1111_v53 = vadd.s32 24, %v667_v25  ;;  %v676_v57 = vshrl.u32 %v10130_v11, 4  ;;  %v10208_v58 = vsel %vm10106_vm3, 1.0, %v14040_v2 }
  0x91   : > { %v10213_v26 = vsel %vm10110_vm5, 1.0, %v14040_v2  ;;  %v10218_v44 = vsel %vm10149_vm11, 1.0, %v14040_v2  ;;  %v654_v60 = vshrl.u32 %v10143_v24, 4  ;;  %vm1198_vm3 = vcmp.lt.s32.totalorder %v1150_v49, 16 }
  0x92   : > { %vm10227_vm10 = vcmp.lt.s32.totalorder %v1155_v38, 16  ;;  %vm965_vm5 = vcmp.ne.s32.totalorder %v645_v39, 0  ;;  %vm1013_vm12 = vcmp.lt.s32.totalorder %v645_v39, 0  ;;  %vm1201_vm13 = vcmp.lt.s32.totalorder %v1153_v52, 16 }
  0x93   : > { %v1156_v61 = vsel %vm10183_vm8, %v1108_v45, %v10126_v10  ;;  %v1154_v47 = vsel %vm10200_vm9, %v1106_v46, %v612_v17  ;;  %v709_v0 = vshrl.u32 %v10161_v29, 4  ;;  %v1159_v4 = vsel %vm10222_vm0, %v1111_v53, %v667_v25  ;;  %vm10245_vm11 = vmand %vm1013_vm12, %vm965_vm5 }
  0x94   : > { %v1109_v9 = vadd.s32 24, %v645_v39  ;;  %v677_v35 = vmul.u32 24, %v676_v57  ;;  %v10240_v11 = vadd.s32 200, %v9625_v19  ;;  %v10243_v16 = vsel %vm1198_vm3, 1.0, %v14040_v2 }
  0x95   : > { %v655_v10 = vmul.u32 24, %v654_v60  ;;  %v687_v17 = vshrl.u32 %v10177_v37, 4  ;;  %v10251_v24 = vadd.s32 240, %v9625_v19  ;;  %v10256_v25 = vsel %vm10227_vm10, 1.0, %v14040_v2 }
  0x96   : > { %v10259_v28 = vsel %vm1201_vm13, 1.0, %v14040_v2  ;;  %vm1204_vm14 = vcmp.lt.s32.totalorder %v1156_v61, 16  ;;  %vm1202_vm15 = vcmp.lt.s32.totalorder %v1154_v47, 16  ;;  %vm1207_vm1 = vcmp.lt.s32.totalorder %v1159_v4, 16 }
  0x97   : > { %v710_v12 = vmul.u32 24, %v709_v0  ;;  %v720_v43 = vshrl.u32 %v10190_v51, 4  ;;  %v10263_v1 = vadd.s32 224, %v9625_v19  ;;  %v1157_v29 = vsel %vm10245_vm11, %v1109_v9, %v645_v39 }
  0x98   : > { %v10268_v49 = vsub.s32 %v10095_v59, %v677_v35  ;;  %v10271_v32 = vmul.u32.u64.low 2863311531, %v10240_v11  ;;  %v10272_v33 = vmul.u32.u64.high 2863311531, %v10240_v11, %v10271_v32  ;;  %v10275_v14 = vsub.s32 %v10104_v56, %v655_v10 }
  0x99   : > { %v688_v37 = vmul.u32 24, %v687_v17  ;;  %v10278_v38 = vmul.u32.u64.low 2863311531, %v10251_v24  ;;  %v10279_v40 = vmul.u32.u64.high 2863311531, %v10251_v24, %v10278_v38  ;;  %v10282_v45 = vsel %vm1204_vm14, 1.0, %v14040_v2 }
  0x9a   : > { %v10285_v39 = vsel %vm1202_vm15, 1.0, %v14040_v2  ;;  %v10288_v59 = vsel %vm1207_vm1, 1.0, %v14040_v2  ;;  %v10291_v46 = vadd.s32 248, %v9625_v19  ;;  %v711_v56 = vsub.s32 %v10122_v7, %v710_v12 }
  0x9b   : > { %v721_v50 = vmul.u32 24, %v720_v43  ;;  %v10295_v51 = vmul.u32.u64.low 2863311531, %v10263_v1  ;;  %v10296_v52 = vmul.u32.u64.high 2863311531, %v10263_v1, %v10295_v51  ;;  %vm10298_vm2 = vcmp.lt.s32.totalorder %v1157_v29, 16 }
  0x9c   : > { %vm968_vm6 = vcmp.ne.s32.totalorder %v10268_v49, 0  ;;  %vm1016_vm7 = vcmp.lt.s32.totalorder %v10268_v49, 0  ;;  %v10305_v53 = vadd.s32 232, %v9625_v19  ;;  %v1112_v57 = vadd.s32 24, %v10268_v49 }
  0x9d   : > { %vm966_vm8 = vcmp.ne.s32.totalorder %v10275_v14, 0  ;;  %v10310_v7 = vsub.s32 %v10146_v41, %v688_v37  ;;  %v10313_v62 = vadd.s32 272, %v9625_v19  ;;  %vm1014_vm9 = vcmp.lt.s32.totalorder %v10275_v14, 0  ;;  %vm10329_vm10 = vmand %vm1016_vm7, %vm968_vm6 }
  0x9e   : > { %v10317_v60 = vmul.u32.u64.low 2863311531, %v10291_v46  ;;  %v10318_v63 = vmul.u32.u64.high 2863311531, %v10291_v46, %v10317_v60  ;;  %v10321_v61 = vadd.s32 256, %v9625_v19  ;;  %v1110_v47 = vadd.s32 24, %v10275_v14  ;;  %vm10340_vm5 = vmand %vm1014_vm9, %vm966_vm8 }
  0x9f   : > { %vm971_vm0 = vcmp.ne.s32.totalorder %v711_v56, 0  ;;  %vm1019_vm3 = vcmp.lt.s32.totalorder %v711_v56, 0  ;;  %v722_v0 = vsub.s32 %v10164_v31, %v721_v50  ;;  %v1115_v4 = vadd.s32 24, %v711_v56 }
  0xa0   : > { %v698_v9 = vshrl.u32 %v10272_v33, 4  ;;  %v10335_v35 = vmul.u32.u64.low 2863311531, %v10305_v53  ;;  %v10336_v23 = vmul.u32.u64.high 2863311531, %v10305_v53, %v10335_v35  ;;  %vm969_vm12 = vcmp.ne.s32.totalorder %v10310_v7, 0  ;;  %vm10350_vm13 = vmand %vm1019_vm3, %vm971_vm0 }
  0xa1   : > { %v753_v31 = vshrl.u32 %v10279_v40, 4  ;;  %v10347_v17 = vmul.u32.u64.low 2863311531, %v10313_v62  ;;  %v10348_v12 = vmul.u32.u64.high 2863311531, %v10313_v62, %v10347_v17  ;;  %vm1017_vm11 = vcmp.lt.s32.totalorder %v10310_v7, 0  ;;  %v10716_v35 = vld [vmem:[%s14034_s5] ss:$0 sm:$0xff] }
  0xa2   : > { %v10356_v29 = vmul.u32.u64.low 2863311531, %v10321_v61  ;;  %v10357_v32 = vmul.u32.u64.high 2863311531, %v10321_v61, %v10356_v29  ;;  %v10360_v33 = vadd.s32 280, %v9625_v19  ;;  %vm972_vm14 = vcmp.ne.s32.totalorder %v722_v0, 0  ;;  %vm10381_vm1 = vmand %vm1017_vm11, %vm969_vm12 }
  0xa3   : > { %vm1020_vm15 = vcmp.lt.s32.totalorder %v722_v0, 0  ;;  %v731_v37 = vshrl.u32 %v10296_v52, 4  ;;  %v10364_v38 = vadd.s32 264, %v9625_v19  ;;  %v10369_v40 = vsel %vm10298_vm2, 1.0, %v14040_v2 }
  0xa4   : > { %v1160_v50 = vsel %vm10329_vm10, %v1112_v57, %v10268_v49  ;;  %v1158_v51 = vsel %vm10340_vm5, %v1110_v47, %v10275_v14  ;;  %v699_v60 = vmul.u32 24, %v698_v9  ;;  %v1163_v52 = vsel %vm10350_vm13, %v1115_v4, %v711_v56  ;;  %vm10387_vm2 = vmand %vm1020_vm15, %vm972_vm14 }
  0xa5   : > { %v1113_v5 = vadd.s32 24, %v10310_v7  ;;  %v1116_v17 = vadd.s32 24, %v722_v0  ;;  %v754_v29 = vmul.u32 24, %v753_v31  ;;  %v764_v14 = vshrl.u32 %v10318_v63, 4 }
  0xa6   : > { %v10393_v57 = vmul.u32.u64.low 2863311531, %v10360_v33  ;;  %v10394_v56 = vmul.u32.u64.high 2863311531, %v10360_v33, %v10393_v57  ;;  %v10397_v47 = vadd.s32 304, %v9625_v19  ;;  %vm1208_vm6 = vcmp.lt.s32.totalorder %v1160_v50, 16 }
  0xa7   : > { %v732_v41 = vmul.u32 24, %v731_v37  ;;  %v10400_v4 = vmul.u32.u64.low 2863311531, %v10364_v38  ;;  %v10401_v9 = vmul.u32.u64.high 2863311531, %v10364_v38, %v10400_v4  ;;  %vm1206_vm7 = vcmp.lt.s32.totalorder %v1158_v51, 16 }
  0xa8   : > { %vm1211_vm8 = vcmp.lt.s32.totalorder %v1163_v52, 16  ;;  %v10404_v10 = vsub.s32 %v10240_v11, %v699_v60  ;;  %v742_v63 = vshrl.u32 %v10336_v23, 4  ;;  %v1161_v31 = vsel %vm10381_vm1, %v1113_v5, %v10310_v7 }
  0xa9   : > { %v1164_v43 = vsel %vm10387_vm2, %v1116_v17, %v722_v0  ;;  %v10413_v37 = vsub.s32 %v10251_v24, %v754_v29  ;;  %v797_v50 = vshrl.u32 %v10348_v12, 4  ;;  %v765_v57 = vmul.u32 24, %v764_v14 }
  0xaa   : > { %v775_v51 = vshrl.u32 %v10357_v32, 4  ;;  %v10418_v11 = vmul.u32.u64.low 2863311531, %v10397_v47  ;;  %v10419_v60 = vmul.u32.u64.high 2863311531, %v10397_v47, %v10418_v11  ;;  %v10422_v23 = vsel %vm1208_vm6, 1.0, %v14040_v2 }
  0xab   : > { %v10425_v7 = vsel %vm1206_vm7, 1.0, %v14040_v2  ;;  %v10428_v0 = vsel %vm1211_vm8, 1.0, %v14040_v2  ;;  %v10431_v24 = vsub.s32 %v10263_v1, %v732_v41  ;;  %vm10433_vm9 = vcmp.lt.s32.totalorder %v1161_v31, 16 }
  0xac   : > { %14248 = vst [vmem:[#allocation21_spill] sm:$0xff] %v10428_v0  ;;  %vm970_vm0 = vcmp.ne.s32.totalorder %v10404_v10, 0  ;;  %vm1018_vm3 = vcmp.lt.s32.totalorder %v10404_v10, 0  ;;  %v743_v32 = vmul.u32 24, %v742_v63  ;;  %v10440_v52 = vadd.s32 288, %v9625_v19 }
  0xad   : > { %vm10442_vm10 = vcmp.lt.s32.totalorder %v1164_v43, 16  ;;  %v1114_v5 = vadd.s32 24, %v10404_v10  ;;  %vm975_vm5 = vcmp.ne.s32.totalorder %v10413_v37, 0  ;;  %v798_v1 = vmul.u32 24, %v797_v50  ;;  %vm10476_vm14 = vmand %vm1018_vm3, %vm970_vm0 }
  0xae   : > { %v10449_v17 = vadd.s32 312, %v9625_v19  ;;  %vm1023_vm12 = vcmp.lt.s32.totalorder %v10413_v37, 0  ;;  %v10453_v29 = vsub.s32 %v10291_v46, %v765_v57  ;;  %v776_v49 = vmul.u32 24, %v775_v51 }
  0xaf   : > { %v808_v14 = vshrl.u32 %v10394_v56, 4  ;;  %v10457_v41 = vadd.s32 24, %v10413_v37  ;;  %vm973_vm13 = vcmp.ne.s32.totalorder %v10431_v24, 0  ;;  %v786_v4 = vshrl.u32 %v10401_v9, 4  ;;  %vm10507_vm2 = vmand %vm1023_vm12, %vm975_vm5 }
  0xb0   : > { %v10462_v63 = vadd.s32 296, %v9625_v19  ;;  %vm1021_vm11 = vcmp.lt.s32.totalorder %v10431_v24, 0  ;;  %v10466_v31 = vsub.s32 %v10305_v53, %v743_v32  ;;  %v10481_v9 = vsub.s32 %v10313_v62, %v798_v1 }
  0xb1   : > { %v10469_v46 = vmul.u32.u64.low 2863311531, %v10440_v52  ;;  %v10470_v43 = vmul.u32.u64.high 2863311531, %v10440_v52, %v10469_v46  ;;  %v10484_v50 = vmul.u32.u64.low 2863311531, %v10449_v17  ;;  %v10485_v57 = vmul.u32.u64.high 2863311531, %v10449_v17, %v10484_v50  ;;  %vm10520_vm8 = vmand %vm1021_vm11, %vm973_vm13 }
  0xb2   : > { %v10488_v53 = vadd.s32 336, %v9625_v19  ;;  %vm976_vm15 = vcmp.ne.s32.totalorder %v10453_v29, 0  ;;  %v10492_v51 = vsub.s32 %v10321_v61, %v776_v49  ;;  %v809_v11 = vmul.u32 24, %v808_v14  ;;  %v9383_v14 = vld [vmem:[%s14035_s6] sm:$0xff]  }
  0xb3   : > { %v841_v32 = vshrl.u32 %v10419_v60, 4  ;;  %vm1024_vm1 = vcmp.lt.s32.totalorder %v10453_v29, 0  ;;  %v787_v46 = vmul.u32 24, %v786_v4  ;;  %v1162_v50 = vsel %vm10476_vm14, %v1114_v5, %v10404_v10 }
  0xb4   : > { %v10497_v62 = vmul.u32.u64.low 2863311531, %v10462_v63  ;;  %v10498_v1 = vmul.u32.u64.high 2863311531, %v10462_v63, %v10497_v62  ;;  %v10512_v60 = vadd.s32 24, %v10431_v24  ;;  %vm974_vm6 = vcmp.ne.s32.totalorder %v10466_v31, 0  ;;  %vm10537_vm5 = vmand %vm1024_vm1, %vm976_vm15 }
  0xb5   : > { %vm1022_vm7 = vcmp.lt.s32.totalorder %v10466_v31, 0  ;;  %vm979_vm0 = vcmp.ne.s32.totalorder %v10481_v9, 0  ;;  %vm1027_vm3 = vcmp.lt.s32.totalorder %v10481_v9, 0  ;;  %vm977_vm12 = vcmp.ne.s32.totalorder %v10492_v51, 0 }
  0xb6   : > { %v10527_v5 = vmul.u32.u64.low 2863311531, %v10488_v53  ;;  %v10528_v49 = vmul.u32.u64.high 2863311531, %v10488_v53, %v10527_v5  ;;  %vm1025_vm13 = vcmp.lt.s32.totalorder %v10492_v51, 0  ;;  %v10544_v56 = vsub.s32 %v10360_v33, %v809_v11  ;;  %vm10556_vm14 = vmand %vm1022_vm7, %vm974_vm6 }
  0xb7   : > { %v842_v62 = vmul.u32 24, %v841_v32  ;;  %vm1920_vm11 = vcmask 523264   ;;  %v10549_v5 = vsel %vm10433_vm9, 1.0, %v14040_v2  ;;  %v1120_v21 = vadd.s32 24, %v10453_v29  ;;  %vm10573_vm9 = vmand %vm1027_vm3, %vm979_vm0 }
  0xb8   : > { %14261 = vst [vmem:[#allocation22_spill] sm:$0xff] %v10549_v5  ;;  %v10561_v33 = vsub.s32 %v10364_v38, %v787_v46  ;;  %v10566_v11 = vsel %vm10442_vm10, 1.0, %v14040_v2  ;;  %v1118_v12 = vadd.s32 24, %v10466_v31  ;;  %v1123_v5 = vadd.s32 24, %v10481_v9  ;;  %vm10592_vm10 = vmand %vm1025_vm13, %vm977_vm12 }
  0xb9   : > { %14264 = vst [vmem:[#allocation23_spill] sm:$0xff] %v10566_v11  ;;  %v1121_v38 = vadd.s32 24, %v10492_v51  ;;  %v14044_v46 = vmov 0   ;;  %vm10580_vm15 = vcmp.lt.s32.totalorder %v1162_v50, 16  ;;  %v1167_v2 = vsel %vm10507_vm2, %v10457_v41, %v10413_v37 }
  0xba   : > { %3705 = vmatprep.subr.bf16.mxu1 %v14044_v46  ;;  %v819_v0 = vshrl.u32 %v10470_v43, 4  ;;  %v852_v50 = vshrl.u32 %v10485_v57, 4  ;;  %v9385_v46 = vld [vmem:[%s14035_s6 + $0x8] sm:$0xff]   ;;  %v1165_v37 = vsel %vm10520_vm8, %v10512_v60, %v10431_v24  ;;  %vm980_vm1 = vcmp.ne.s32.totalorder %v10544_v56, 0 }
  0xbb   : > { %3706 = vmatpush1.bf16.msra.mxu1 %v9383_v14  ;;  %vm1028_vm2 = vcmp.lt.s32.totalorder %v10544_v56, 0  ;;  %v10608_v41 = vsub.s32 %v10397_v47, %v842_v62  ;;  %v14271_v43 = vmov 0   ;;  %v1168_v57 = vsel %vm10537_vm5, %v1120_v21, %v10453_v29  ;;  %v3168_v24 = vld [vmem:[#allocation2 + $0x1a2] sm:$0xff]  ;;  %v3169_v60 = vld [vmem:[#allocation2 + $0x1aa] sm:$0xff] }
  0xbc   : > { %3707 = vmatprep.subr.bf16.mxu1 %v14271_v43  ;;  %vm978_vm6 = vcmp.ne.s32.totalorder %v10561_v33, 0  ;;  %vm1026_vm7 = vcmp.lt.s32.totalorder %v10561_v33, 0  ;;  %v830_v61 = vshrl.u32 %v10498_v1, 4  ;;  %v1166_v10 = vsel %vm10556_vm14, %v1118_v12, %v10466_v31  ;;  %vm10627_vm8 = vmand %vm1028_vm2, %vm980_vm1  ;;  %v9386_v31 = vld [vmem:[%s14035_s6 + $0x10] sm:$0xff]  }
  0xbd   : > { %v1171_v47 = vsel %vm10573_vm9, %v1123_v5, %v10481_v9  ;;  %v1169_v21 = vsel %vm10592_vm10, %v1121_v38, %v10492_v51  ;;  %v1124_v29 = vadd.s32 24, %v10544_v56  ;;  %v1122_v1 = vadd.s32 24, %v10561_v33  ;;  %vm10644_vm3 = vmand %vm1026_vm7, %vm978_vm6  ;;  %v9388_v9 = vld [vmem:[%s14035_s6 + $0x20] sm:$0xff]  }
  0xbe   : > { %v820_v4 = vmul.u32 24, %v819_v0  ;;  %v853_v62 = vmul.u32 24, %v852_v50  ;;  %v885_v36 = vshrl.u32 %v10528_v49, 4  ;;  %vm10636_vm0 = vcmp.lt.s32.totalorder %v1167_v2, 16 }
  0xbf   : > { %3708 = vmatpush1.bf16.msra.mxu1 %v9385_v46  ;;  %vm983_vm5 = vcmp.ne.s32.totalorder %v10608_v41, 0  ;;  %vm1031_vm12 = vcmp.lt.s32.totalorder %v10608_v41, 0  ;;  %v3193_v0 = vpack.c.bf16 %v3169_v60, %v3168_v24  ;;  %vm10651_vm13 = vcmp.lt.s32.totalorder %v1165_v37, 16  ;;  %v9387_v24 = vld [vmem:[%s14035_s6 + $0x18] sm:$0xff]  }
  0xc0   : > { %3709 = vmatprep.subr.bf16.mxu1 %v14271_v43  ;;  %vm10655_vm14 = vcmp.lt.s32.totalorder %v1168_v57, 16  ;;  %vm10659_vm9 = vcmp.lt.s32.totalorder %v1166_v10, 16  ;;  %v831_v11 = vmul.u32 24, %v830_v61  ;;  %vm10663_vm10 = vcmp.lt.s32.totalorder %v1171_v47, 16  ;;  %vm10681_vm2 = vmand %vm1031_vm12, %vm983_vm5 }
  0xc1   : > { %vm10667_vm1 = vcmp.lt.s32.totalorder %v1169_v21, 16  ;;  %v1172_v38 = vsel %vm10627_vm8, %v1124_v29, %v10544_v56  ;;  %v10675_v46 = vadd.s32 24, %v10608_v41  ;;  %3217 = vst.msk [vmem:[#allocation3 + $0x3b8] sm:$0xff] %vm1920_vm11, %v3193_v0  ;;  %v1170_v50 = vsel %vm10644_vm3, %v1122_v1, %v10561_v33 }
  0xc2   : > { %v10686_v57 = vsub.s32 %v10440_v52, %v820_v4  ;;  %v10689_v61 = vsub.s32 %v10449_v17, %v853_v62  ;;  %v886_v56 = vmul.u32 24, %v885_v36  ;;  %v14290_v60 = vmov 0.0  }
  0xc3   : > { %3710 = vmatpush1.bf16.msra.mxu1 %v9386_v31  ;;  %v10697_v33 = vsel %vm10580_vm15, 1.0, %v14290_v60  ;;  %v10702_v10 = vsel %vm10636_vm0, 1.0, %v14290_v60  ;;  %v10707_v52 = vsel %vm10651_vm13, 1.0, %v14290_v60  ;;  %v10710_v17 = vadd.s32 320, %v9625_v19 }
  0xc4   : > { %14291 = vst [vmem:[#allocation24_spill] sm:$0xff] %v10697_v33  ;;  %14292 = vst [vmem:[#allocation25_spill] sm:$0xff] %v10707_v52  ;;  %3711 = vmatprep.subr.bf16.mxu1 %v14271_v43  ;;  %v10721_v47 = vsel %vm10655_vm14, 1.0, %v14290_v60  ;;  %v10726_v21 = vsel %vm10659_vm9, 1.0, %v14290_v60  ;;  %v10731_v29 = vsel %vm10663_vm10, 1.0, %v14290_v60  ;;  %v10734_v14 = vsub.s32 %v10462_v63, %v831_v11 }
  0xc5   : > { %14293 = vst [vmem:[#allocation26_spill] sm:$0xff] %v10721_v47  ;;  %14294 = vst [vmem:[#allocation27_spill] sm:$0xff] %v10726_v21  ;;  %v10739_v1 = vsel %vm10667_vm1, 1.0, %v14290_v60  ;;  %vm10741_vm15 = vcmp.lt.s32.totalorder %v1172_v38, 16  ;;  %vm10745_vm6 = vcmp.lt.s32.totalorder %v1170_v50, 16  ;;  %v1175_v36 = vsel %vm10681_vm2, %v10675_v46, %v10608_v41 }
  0xc6   : > { %14295 = vst [vmem:[#allocation28_spill] sm:$0xff] %v10731_v29  ;;  %14296 = vst [vmem:[#allocation29_spill] sm:$0xff] %v10739_v1  ;;  %vm981_vm7 = vcmp.ne.s32.totalorder %v10686_v57, 0  ;;  %vm1029_vm8 = vcmp.lt.s32.totalorder %v10686_v57, 0  ;;  %vm984_vm0 = vcmp.ne.s32.totalorder %v10689_v61, 0  ;;  %v10757_v31 = vsub.s32 %v10488_v53, %v886_v56 }
  0xc7   : > { %3712 = vmatpush1.bf16.msra.mxu1 %v9387_v24  ;;  %vm1032_vm3 = vcmp.lt.s32.totalorder %v10689_v61, 0  ;;  %v10765_v41 = vmul.u32.u64.low 2863311531, %v10710_v17  ;;  %v10766_v49 = vmul.u32.u64.high 2863311531, %v10710_v17, %v10765_v41  ;;  %v1125_v11 = vadd.s32 24, %v10686_v57  ;;  %vm10780_vm13 = vmand %vm1029_vm8, %vm981_vm7 }
  0xc8   : > { %3713 = vmatprep.subr.bf16.mxu1 %v14271_v43  ;;  %vm982_vm5 = vcmp.ne.s32.totalorder %v10734_v14, 0  ;;  %vm1030_vm12 = vcmp.lt.s32.totalorder %v10734_v14, 0  ;;  %v10773_v12 = vld [vmem:[#allocation3 + $0x3b8] sm:$0xff]  ;;  %v1128_v37 = vadd.s32 24, %v10689_v61  ;;  %v1126_v56 = vadd.s32 24, %v10734_v14  ;;  %vm10792_vm14 = vmand %vm1032_vm3, %vm984_vm0 }
  0xc9   : > { %14301 = vst [vmem:[#allocation30_spill] sm:$0xff] %v10773_v12  ;;  %6471 = vst.msk [vmem:[#allocation3 + $0x3b8] sm:$0xff] %vm1920_vm11, %v3193_v0  ;;  %vm987_vm9 = vcmp.ne.s32.totalorder %v10757_v31, 0  ;;  %vm1035_vm10 = vcmp.lt.s32.totalorder %v10757_v31, 0  ;;  %v9389_v0 = vld [vmem:[%s14035_s6 + $0x28] sm:$0xff]   ;;  %vm10820_vm2 = vcmp.lt.s32.totalorder %v1175_v36, 16  ;;  %v1173_v36 = vsel %vm10780_vm13, %v1125_v11, %v10686_v57 }
  0xca   : > { %vm10811_vm1 = vmand %vm1030_vm12, %vm982_vm5  ;;  %v2259_v12 = vld [vmem:[#allocation2 + $0xa] sm:$0xff]  ;;  %v10830_v1 = vsel %vm10745_vm6, 1.0, %v14290_v60  ;;  %v10852_v11 = vadd.s32 328, %v9625_v19  ;;  %vm10871_vm6 = vcmp.lt.s32.totalorder %v1173_v36, 16 }
  0xcb   : > { %3714 = vmatpush1.bf16.msra.mxu1 %v9388_v9  ;;  %v10816_v9 = vadd.s32 344, %v9625_v19  ;;  %14311 = vst [vmem:[#allocation32_spill] sm:$0xff] %v10830_v1  ;;  %v1174_v57 = vsel %vm10811_vm1, %v1126_v56, %v10734_v14 }
  0xcc   : > { %3715 = vmatprep.subr.bf16.mxu1 %v14271_v43  ;;  %vm10885_vm8 = vcmp.lt.s32.totalorder %v1174_v57, 16  ;;  %v1969_v57 = vld [vmem:[#allocation2] sm:$0xff] }
  0xcd   : > { %v10865_v14 = vmul.u32.u64.low 2863311531, %v10816_v9  ;;  %v10866_v56 = vmul.u32.u64.high 2863311531, %v10816_v9, %v10865_v14 }
  0xce   : > { %v1971_v14 = vld [vmem:[#allocation2 + $0x10] sm:$0xff] }
  0xcf   : > { %3716 = vmatpush1.bf16.msra.mxu1 %v9389_v0 }
  0xd0   : > { %3717 = vmatprep.subr.bf16.mxu1 %v14271_v43 }
  0xf3   : > { %v8728_v63 = vpop.f32.mrb[0].mxu1 }
  0xf4   : > { %v1642_v51 = vadd.f32 %v8728_v63, %v10716_v35  ;;  %v1633_v2 = vpop.f32.mrb[1].mxu1 }
  0xf5   : > { %v1634_v5 = vadd.f32 %v10716_v35, %v1633_v2  ;;  %v8729_v53 = vpop.f32.mrb[2].mxu1 }
  0xf6   : > { %v1826_v32 = vmax.f32 %v1642_v51, 0.0  ;;  %v1645_v38 = vadd.f32 %v8729_v53, %v10716_v35  ;;  %v1636_v46 = vpop.f32.mrb[3].mxu1  ;;  %v863_v53 = vshrl.u32 %v10766_v49, 4 }
  0xf7   : > { %v1824_v24 = vmax.f32 %v1634_v5, 0.0  ;;  %v1637_v63 = vadd.f32 %v10716_v35, %v1636_v46  ;;  %v10805_v5 = vsel %vm10741_vm15, 1.0, %v14290_v60  ;;  %v1131_v46 = vadd.s32 24, %v10757_v31  ;;  %vm10842_vm15 = vmand %vm1035_vm10, %vm987_vm9 }
  0xf8   : > { %v1874_v2 = vmul.f32 %v9843_v3, %v1826_v32  ;;  %v1827_v41 = vmax.f32 %v1645_v38, 0.0  ;;  %14306 = vst [vmem:[#allocation31_spill] sm:$0xff] %v10805_v5  ;;  %v2258_v3 = vld [vmem:[#allocation2 + $0x2] sm:$0xff] }
  0xf9   : > { %v1872_v32 = vmul.f32 %v9850_v8, %v1824_v24  ;;  %v1825_v38 = vmax.f32 %v1637_v63, 0.0  ;;  %v1176_v24 = vsel %vm10792_vm14, %v1128_v37, %v10689_v61  ;;  %v9390_v61 = vld [vmem:[%s14035_s6 + $0x30] sm:$0xff]   ;;  %v2306_v50 = vpack.c.bf16 %v2259_v12, %v2258_v3 }
  0xfa   : > { %1923 = vst.msk [vmem:[#allocation2 + $0x29] sm:$0xff] %vm1920_vm11, %v1874_v2  ;;  %v1875_v5 = vmul.f32 %v9871_v20, %v1827_v41  ;;  %v10862_v41 = vsel %vm10820_vm2, 1.0, %v14290_v60  ;;  %vm10881_vm7 = vcmp.lt.s32.totalorder %v1176_v24, 16  ;;  %3718 = vmatpush1.bf16.msra.mxu1 %v9390_v61  ;;  %v9391_v24 = vld [vmem:[%s14035_s6 + $0x38] sm:$0xff]  }
  0xfb   : > { %1921 = vst.msk [vmem:[#allocation2 + $0x19] sm:$0xff] %vm1920_vm11, %v1872_v32  ;;  %v1873_v62 = vmul.f32 %v9874_v22, %v1825_v38  ;;  %v8732_v2 = vpop.f32.mrb[4].mxu1  ;;  %14314 = vst [vmem:[#allocation33_spill] sm:$0xff] %v10862_v41  ;;  %3719 = vmatprep.subr.bf16.mxu1 %v14271_v43  ;;  %v2067_v22 = vld [vmem:[#allocation2 + $0x11] sm:$0xff] }
  0xfc   : > { %1924 = vst.msk [vmem:[#allocation2 + $0x31] sm:$0xff] %vm1920_vm11, %v1875_v5  ;;  %v1658_v37 = vadd.f32 %v8732_v2, %v10716_v35  ;;  %v1649_v51 = vpop.f32.mrb[5].mxu1  ;;  %v1179_v5 = vsel %vm10842_vm15, %v1131_v46, %v10757_v31  ;;  %2330 = vst.msk [vmem:[#allocation3 + $0x8] sm:$0xff] %vm1920_vm11, %v2306_v50  ;;  %v9384_v31 = vld [vmem:[%s14033_s4 + $0x8] sm:$0x3f]  }
  0xfd   : > { %1922 = vst.msk [vmem:[#allocation2 + $0x21] sm:$0xff] %vm1920_vm11, %v1873_v62  ;;  %v1650_v3 = vadd.f32 %v10716_v35, %v1649_v51  ;;  %v8733_v12 = vpop.f32.mrb[6].mxu1  ;;  %v10894_v63 = vmul.u32.u64.low 2863311531, %v10852_v11  ;;  %v10895_v2 = vmul.u32.u64.high 2863311531, %v10852_v11, %v10894_v63  ;;  %v1970_v50 = vld [vmem:[#allocation2 + $0x8] sm:$0xff]  ;;  %vm10901_vm0 = vcmp.lt.s32.totalorder %v1179_v5, 16 }
  0xfe   : > { %v1830_v32 = vmax.f32 %v1658_v37, 0.0  ;;  %v1661_v38 = vadd.f32 %v8733_v12, %v10716_v35  ;;  %v1652_v4 = vpop.f32.mrb[7].mxu1  ;;  %v10910_v63 = vadd.s32 368, %v9625_v19  ;;  %v10917_v5 = vsel %vm10871_vm6, 1.0, %v14290_v60  ;;  %3720 = vmatpush1.bf16.msra.mxu1 %v9391_v24 }
  0xff   : > { %v1828_v46 = vmax.f32 %v1650_v3, 0.0  ;;  %v1653_v49 = vadd.f32 %v10716_v35, %v1652_v4  ;;  %v10906_v3 = vpack.c.bf16 %v1970_v50, %v1969_v57  ;;  %v864_v4 = vmul.u32 24, %v863_v53  ;;  %14324 = vst [vmem:[#allocation35_spill] sm:$0xff] %v10917_v5  ;;  %3721 = vmatprep.subr.bf16.mxu1 %v14271_v43 }
 0x100   : > { %v1878_v37 = vmul.f32 %v9888_v27, %v1830_v32  ;;  %v1831_v51 = vmax.f32 %v1661_v38, 0.0  ;;  %v10922_v38 = vsel %vm10881_vm7, 1.0, %v14290_v60  ;;  %v10927_v53 = vsel %vm10885_vm8, 1.0, %v14290_v60 }
 0x101   : > { %14323 = vst [vmem:[#allocation34_spill] sm:$0xff] %v10906_v3  ;;  %v1876_v12 = vmul.f32 %v9896_v30, %v1828_v46  ;;  %v1829_v61 = vmax.f32 %v1653_v49, 0.0  ;;  %14325 = vst [vmem:[#allocation36_spill] sm:$0xff] %v10922_v38  ;;  %v9392_v46 = vld [vmem:[%s14035_s6 + $0x40] sm:$0xff]   ;;  %v10934_v0 = vld [vmem:[#allocation2 + $0x29] sm:$0xff]  ;;  %v10945_v50 = vsel %vm10901_vm0, 1.0, %v14290_v60 }
 0x102   : > { %1927 = vst.msk [vmem:[#allocation2 + $0x49] sm:$0xff] %vm1920_vm11, %v1878_v37  ;;  %v1879_v32 = vmul.f32 %v9906_v34, %v1831_v51  ;;  %14326 = vst [vmem:[#allocation37_spill] sm:$0xff] %v10927_v53  ;;  %v10948_v37 = vand.u32 %v9384_v31, %v9603_v6  ;;  %v10951_v51 = vadd.s32 352, %v9625_v19  ;;  %v2354_v30 = vld [vmem:[#allocation2 + $0x18] sm:$0xff]  ;;  %3722 = vmatpush1.bf16.msra.mxu1 %v9392_v46 }
 0x103   : > { %2041 = vst.msk [vmem:[#allocation3] sm:$0xff] %vm1920_vm11, %v10906_v3  ;;  %v10936_v49 = vld [vmem:[#allocation2 + $0x31] sm:$0xff]  ;;  %1925 = vst.msk [vmem:[#allocation2 + $0x39] sm:$0xff] %vm1920_vm11, %v1876_v12  ;;  %v1877_v62 = vmul.f32 %v9988_v48, %v1829_v61  ;;  %v8736_v36 = vpop.f32.mrb[8].mxu1  ;;  %v10957_v48 = vadd.s32 376, %v9625_v19  ;;  %v10962_v31 = vld [vmem:[#allocation2 + $0x19] sm:$0xff]  ;;  %v10967_v61 = vsub.s32 %v10710_v17, %v864_v4  ;;  %3723 = vmatprep.subr.bf16.mxu1 %v14271_v43 }
 0x104   : > { %v10938_v57 = vld [vmem:[#allocation2 + $0x30] sm:$0xff]  ;;  %14327 = vst [vmem:[#allocation38_spill] sm:$0xff] %v10945_v50  ;;  %14328 = vst [vmem:[#allocation39_spill] sm:$0xff] %v10951_v51  ;;  %v1674_v34 = vadd.f32 %v8736_v36, %v10716_v35  ;;  %v1665_v12 = vpop.f32.mrb[9].mxu1  ;;  %v2595_v6 = vpack.c.bf16 %v10936_v49, %v10934_v0  ;;  %v2356_v36 = vld [vmem:[#allocation2 + $0x28] sm:$0xff] }
 0x105   : > { %1928 = vst.msk [vmem:[#allocation2 + $0x51] sm:$0xff] %vm1920_vm11, %v1879_v32  ;;  %1926 = vst.msk [vmem:[#allocation2 + $0x41] sm:$0xff] %vm1920_vm11, %v1877_v62  ;;  %v1666_v24 = vadd.f32 %v10716_v35, %v1665_v12  ;;  %v8737_v32 = vpop.f32.mrb[10].mxu1  ;;  %v2355_v27 = vld [vmem:[#allocation2 + $0x20] sm:$0xff]  ;;  %v10970_v20 = vmul.u32.u64.low 2863311531, %v10910_v63  ;;  %v10971_v8 = vmul.u32.u64.high 2863311531, %v10910_v63, %v10970_v20  ;;  %v2403_v5 = vpack.c.bf16 %v10938_v57, %v2356_v36 }
 0x106   : > { %v9393_v3 = vld [vmem:[%s14035_s6 + $0x48] sm:$0xff]   ;;  %v2260_v50 = vld [vmem:[#allocation2 + $0x12] sm:$0xff]  ;;  %v2261_v62 = vld [vmem:[#allocation2 + $0x1a] sm:$0xff]  ;;  %v1834_v53 = vmax.f32 %v1674_v34, 0.0  ;;  %v1677_v12 = vadd.f32 %v8737_v32, %v10716_v35  ;;  %v1668_v38 = vpop.f32.mrb[11].mxu1  ;;  %v2402_v41 = vpack.c.bf16 %v2355_v27, %v2354_v30  ;;  %2619 = vst.msk [vmem:[#allocation3 + $0x38] sm:$0xff] %vm1920_vm11, %v2595_v6 }
 0x107   : > { %v1972_v17 = vld [vmem:[#allocation2 + $0x18] sm:$0xff]  ;;  %v2263_v4 = vld [vmem:[#allocation2 + $0x2a] sm:$0xff]  ;;  %v2262_v1 = vld [vmem:[#allocation2 + $0x22] sm:$0xff]  ;;  %v1832_v20 = vmax.f32 %v1666_v24, 0.0  ;;  %v1669_v21 = vadd.f32 %v10716_v35, %v1668_v38  ;;  %v10984_v47 = vmul.u32.u64.low 2863311531, %v10951_v51  ;;  %v10985_v52 = vmul.u32.u64.high 2863311531, %v10951_v51, %v10984_v47  ;;  %2452 = vrot.lane.b32.xlu1 %v2403_v5, %s9516_s29  ;;  %3724 = vmatpush1.bf16.msra.mxu1 %v9393_v3 }
 0x108   : > { %v10980_v29 = vld [vmem:[#allocation2 + $0x21] sm:$0xff]  ;;  %v1882_v27 = vmul.f32 %v10064_v42, %v1834_v53  ;;  %v1835_v30 = vmax.f32 %v1677_v12, 0.0  ;;  %2450 = vrot.lane.b32.xlu0 %v2402_v41, %s9516_s29  ;;  %v2307_v24 = vpack.c.bf16 %v2261_v62, %v2260_v50  ;;  %v2018_v47 = vpack.c.bf16 %v1972_v17, %v1971_v14  ;;  %v9394_v41 = vld [vmem:[%s14035_s6 + $0x50] sm:$0xff]   ;;  %3725 = vmatprep.subr.bf16.mxu1 %v14271_v43 }
 0x109   : > { %v1973_v34 = vld [vmem:[#allocation2 + $0x20] sm:$0xff]  ;;  %v1974_v32 = vld [vmem:[#allocation2 + $0x28] sm:$0xff]  ;;  %v1880_v38 = vmul.f32 %v10082_v55, %v1832_v20  ;;  %v1833_v36 = vmax.f32 %v1669_v21, 0.0  ;;  %v2308_v46 = vpack.c.bf16 %v2263_v4, %v2262_v1  ;;  %v2114_v5 = vpack.c.bf16 %v10962_v31, %v2067_v22 }
 0x10a   : > { %v10994_v51 = vld [vmem:[#allocation2 + $0x38] sm:$0xff]  ;;  %1931 = vst.msk [vmem:[#allocation2 + $0x69] sm:$0xff] %vm1920_vm11, %v1882_v27  ;;  %v1883_v53 = vmul.f32 %v10087_v54, %v1835_v30  ;;  %2331 = vst.msk [vmem:[#allocation3 + $0x30] sm:$0xff] %vm1920_vm11, %v2307_v24  ;;  %v2019_v50 = vpack.c.bf16 %v1974_v32, %v1973_v34  ;;  %v2594_v21 = vpack.c.bf16 %v10980_v29, %v10962_v31  ;;  %vm985_vm3 = vcmp.ne.s32.totalorder %v10967_v61, 0  ;;  %v1975_v24 = vld [vmem:[#allocation2 + $0x30] sm:$0xff] }
 0x10b   : > { %v11005_v14 = vld [vmem:[#allocation2 + $0x32] sm:$0xff]  ;;  %1929 = vst.msk [vmem:[#allocation2 + $0x59] sm:$0xff] %vm1920_vm11, %v1880_v38  ;;  %v1881_v62 = vmul.f32 %v10195_v18, %v1833_v36  ;;  %v8740_v12 = vpop.f32.mrb[12].mxu1  ;;  %vm1033_vm5 = vcmp.lt.s32.totalorder %v10967_v61, 0  ;;  %v11014_v22 = vadd.s32 24, %v10967_v61  ;;  %2042 = vst.msk [vmem:[#allocation3 + $0x28] sm:$0xff] %vm1920_vm11, %v2018_v47  ;;  %2163 = vrot.lane.b32.xlu1 %v2114_v5, %s9516_s29  ;;  %v14333_v3 = vpack.c.bf16 %v10013_v15, %v10011_v13 }
 0x10c   : > { %14329 = vst [vmem:[#allocation40_spill] sm:$0xff] %v11005_v14  ;;  %v11007_v1 = vld [vmem:[#allocation2 + $0x4a] sm:$0xff]  ;;  %2332 = vst.msk [vmem:[#allocation3 + $0x58] sm:$0xff] %vm1920_vm11, %v2308_v46  ;;  %v11018_v31 = vld [vmem:[#allocation2 + $0x39] sm:$0xff]  ;;  %v1690_v34 = vadd.f32 %v8740_v12, %v10716_v35  ;;  %v1681_v32 = vpop.f32.mrb[13].mxu1  ;;  %v2882_v38 = vpack.c.bf16 %v10994_v51, %v10938_v57  ;;  %v14334_v57 = vshrl.u32 %v10866_v56, 4  ;;  %3726 = vmatpush1.bf16.msra.mxu1 %v9394_v41 }
 0x10d   : > { %14330 = vst [vmem:[#allocation41_spill] sm:$0xff] %v11007_v1  ;;  %v11020_v17 = vld [vmem:[#allocation2 + $0x50] sm:$0xff]  ;;  %v11022_v4 = vld [vmem:[#allocation2 + $0x3a] sm:$0xff]  ;;  %v11024_v20 = vld [vmem:[#allocation2 + $0x42] sm:$0xff]  ;;  %2161 = vrot.lane.b32.xlu0 %v14333_v3, %s9516_s29  ;;  %v11034_v27 = vmul.u32.u64.low 2863311531, %v10957_v48  ;;  %v11035_v30 = vmul.u32.u64.high 2863311531, %v10957_v48, %v11034_v27  ;;  %v1682_v46 = vadd.f32 %v10716_v35, %v1681_v32  ;;  %3727 = vmatprep.subr.bf16.mxu1 %v14271_v43 }
 0x10e   : > { %14331 = vst [vmem:[#allocation42_spill] sm:$0xff] %v11022_v4  ;;  %14332 = vst [vmem:[#allocation43_spill] sm:$0xff] %v11024_v20  ;;  %v11042_v36 = vld [vmem:[#allocation2 + $0x51] sm:$0xff]  ;;  %v11044_v47 = vld [vmem:[#allocation2 + $0x41] sm:$0xff]  ;;  %v3170_v5 = vpack.c.bf16 %v11022_v4, %v11005_v14 }
 0x10f   : > { %1932 = vst.msk [vmem:[#allocation2 + $0x71] sm:$0xff] %vm1920_vm11, %v1883_v53  ;;  %2043 = vst.msk [vmem:[#allocation3 + $0x50] sm:$0xff] %vm1920_vm11, %v2019_v50  ;;  %v11046_v13 = vld [vmem:[#allocation2 + $0x40] sm:$0xff]  ;;  %v11048_v15 = vld [vmem:[#allocation2 + $0x48] sm:$0xff]  ;;  %v8741_v53 = vpop.f32.mrb[14].mxu1  ;;  %v3171_v50 = vpack.c.bf16 %v11007_v1, %v11024_v20  ;;  %v2115_v1 = vpack.c.bf16 %v10934_v0, %v10980_v29  ;;  %v1836_v4 = vmax.f32 %v1682_v46, 0.0 }
 0x110   : > { %2618 = vst.msk [vmem:[#allocation3 + $0x10] sm:$0xff] %vm1920_vm11, %v2594_v21  ;;  %1930 = vst.msk [vmem:[#allocation2 + $0x61] sm:$0xff] %vm1920_vm11, %v1881_v62  ;;  %v897_v21 = vmul.u32 24, %v14334_v57  ;;  %v9395_v12 = vld [vmem:[%s14035_s6 + $0x58] sm:$0xff]   ;;  %v1838_v62 = vmax.f32 %v1690_v34, 0.0  ;;  %v1693_v32 = vadd.f32 %v8741_v53, %v10716_v35  ;;  %v1684_v27 = vpop.f32.mrb[15].mxu1  ;;  %v2404_v6 = vpack.c.bf16 %v11046_v13, %v10994_v51 }
 0x111   : > { %v2264_v3 = vld [vmem:[#allocation2 + $0x32] sm:$0xff]  ;;  %v2265_v20 = vld [vmem:[#allocation2 + $0x3a] sm:$0xff]  ;;  %v2266_v57 = vld [vmem:[#allocation2 + $0x42] sm:$0xff]  ;;  %2906 = vst.msk [vmem:[#allocation3 + $0x18] sm:$0xff] %vm1920_vm11, %v2882_v38  ;;  %v1685_v14 = vadd.f32 %v10716_v35, %v1684_v27  ;;  %2165 = vrot.lane.b32.xlu1 %v2115_v1, %s9516_s29  ;;  %v1884_v46 = vmul.f32 %v10213_v26, %v1836_v4  ;;  %3728 = vmatpush1.bf16.msra.mxu1 %v9395_v12 }
 0x112   : > { %v1976_v56 = vld [vmem:[#allocation2 + $0x38] sm:$0xff]  ;;  %3194 = vst.msk [vmem:[#allocation3 + $0x20] sm:$0xff] %vm1920_vm11, %v3170_v5  ;;  %3195 = vst.msk [vmem:[#allocation3 + $0x48] sm:$0xff] %vm1920_vm11, %v3171_v50  ;;  %v2309_v34 = vpack.c.bf16 %v2265_v20, %v2264_v3  ;;  %v2267_v18 = vld [vmem:[#allocation2 + $0x4a] sm:$0xff]  ;;  %v1886_v29 = vmul.f32 %v10208_v58, %v1838_v62  ;;  %v1839_v0 = vmax.f32 %v1693_v32, 0.0  ;;  %2454 = vrot.lane.b32.xlu0 %v2404_v6, %s9516_s29  ;;  %3729 = vmatprep.subr.bf16.mxu1 %v14271_v43 }
 0x113   : > { %v2020_v53 = vpack.c.bf16 %v1976_v56, %v1975_v24  ;;  %v1977_v51 = vld [vmem:[#allocation2 + $0x40] sm:$0xff]  ;;  %v1978_v54 = vld [vmem:[#allocation2 + $0x48] sm:$0xff]  ;;  %vm11078_vm12 = vmand %vm1033_vm5, %vm985_vm3  ;;  %v2310_v41 = vpack.c.bf16 %v2267_v18, %v2266_v57  ;;  %v1837_v5 = vmax.f32 %v1685_v14, 0.0  ;;  %v2405_v50 = vpack.c.bf16 %v11020_v17, %v11048_v15  ;;  %1933 = vst.msk [vmem:[#allocation2 + $0x79] sm:$0xff] %vm1920_vm11, %v1884_v46  ;;  %v8744_v56 = vpop.f32.mrb[16].mxu1 }
 0x114   : > { %v2021_v20 = vpack.c.bf16 %v1978_v54, %v1977_v51  ;;  %v2552_v24 = vld [vmem:[#allocation2 + $0x49] sm:$0xff]  ;;  %v11087_v6 = vpack.c.bf16 %v11018_v31, %v10936_v49  ;;  %2333 = vst.msk [vmem:[#allocation3 + $0x80] sm:$0xff] %vm1920_vm11, %v2309_v34  ;;  %v11092_v1 = vld [vmem:[#allocation2 + $0x58] sm:$0xff]  ;;  %1935 = vst.msk [vmem:[#allocation2 + $0x89] sm:$0xff] %vm1920_vm11, %v1886_v29  ;;  %v1887_v54 = vmul.f32 %v10218_v44, %v1839_v0 }
 0x115   : > { %2044 = vst.msk [vmem:[#allocation3 + $0x78] sm:$0xff] %vm1920_vm11, %v2020_v53  ;;  %v9396_v18 = vld [vmem:[%s14035_s6 + $0x60] sm:$0xff]   ;;  %2334 = vst.msk [vmem:[#allocation3 + $0xa8] sm:$0xff] %vm1920_vm11, %v2310_v41  ;;  %v2596_v49 = vpack.c.bf16 %v11044_v47, %v11018_v31  ;;  %v2883_v14 = vpack.c.bf16 %v11048_v15, %v11046_v13  ;;  %v2597_v4 = vpack.c.bf16 %v11042_v36, %v2552_v24  ;;  %v11106_v3 = vld [vmem:[#allocation2 + $0x69] sm:$0xff]  ;;  %v11122_v15 = vadd.s32 360, %v9625_v19 }
 0x116   : > { %14337 = vst [vmem:[#allocation44_spill] sm:$0xff] %v11087_v6  ;;  %2045 = vst.msk [vmem:[#allocation3 + $0xa0] sm:$0xff] %vm1920_vm11, %v2021_v20  ;;  %v11108_v62 = vld [vmem:[#allocation2 + $0x71] sm:$0xff]  ;;  %v1885_v27 = vmul.f32 %v10243_v16, %v1837_v5  ;;  %v1177_v31 = vsel %vm11078_vm12, %v11014_v22, %v10967_v61  ;;  %v11119_v13 = vsub.s32 %v10816_v9, %v897_v21  ;;  %v11124_v57 = vld [vmem:[#allocation2 + $0x59] sm:$0xff]  ;;  %2456 = vrot.lane.b32.xlu0 %v2405_v50, %s9516_s29  ;;  %v1697_v9 = vpop.f32.mrb[17].mxu1 }
 0x117   : > { %v11110_v32 = vld [vmem:[#allocation2 + $0x6a] sm:$0xff]  ;;  %v11126_v34 = vld [vmem:[#allocation2 + $0x52] sm:$0xff]  ;;  %v11128_v53 = vld [vmem:[#allocation2 + $0x5a] sm:$0xff]  ;;  %1936 = vst.msk [vmem:[#allocation2 + $0x91] sm:$0xff] %vm1920_vm11, %v1887_v54  ;;  %v1706_v29 = vadd.f32 %v8744_v56, %v10716_v35  ;;  %2167 = vrot.lane.b32.xlu1 %v11087_v6, %s9516_s29  ;;  %v14342_v61 = vshrl.u32 %v10895_v2, 4  ;;  %v2884_v21 = vpack.c.bf16 %v11092_v1, %v11020_v17  ;;  %v2599_v12 = vpack.c.bf16 %v11108_v62, %v11106_v3  ;;  %v8745_v46 = vpop.f32.mrb[18].mxu1 }
 0x118   : > { %14338 = vst [vmem:[#allocation45_spill] sm:$0xff] %v11110_v32  ;;  %14339 = vst [vmem:[#allocation46_spill] sm:$0xff] %v11126_v34  ;;  %v11130_v51 = vld [vmem:[#allocation2 + $0x62] sm:$0xff]  ;;  %v11148_v0 = vld [vmem:[#allocation2 + $0x70] sm:$0xff]  ;;  %v1698_v20 = vadd.f32 %v10716_v35, %v1697_v9  ;;  %v3172_v5 = vpack.c.bf16 %v11128_v53, %v11126_v34  ;;  %v1700_v56 = vpop.f32.mrb[19].mxu1  ;;  %v11171_v19 = vpack.c.bf16 %v2552_v24, %v11044_v47  ;;  %vm11179_vm13 = vcmp.lt.s32.totalorder %v1177_v31, 16 }
 0x119   : > { %14340 = vst [vmem:[#allocation47_spill] sm:$0xff] %v11128_v53  ;;  %14341 = vst [vmem:[#allocation48_spill] sm:$0xff] %v11130_v51  ;;  %v11139_v22 = vmul.u32 24, %v14342_v61  ;;  %v11150_v38 = vld [vmem:[#allocation2 + $0x61] sm:$0xff]  ;;  %v3173_v17 = vpack.c.bf16 %v11110_v32, %v11130_v51  ;;  %v3227_v50 = vld [vmem:[#allocation3 + $0x48] sm:$0xff]  ;;  %v1701_v53 = vadd.f32 %v10716_v35, %v1700_v56  ;;  %3730 = vmatpush1.bf16.msra.mxu1 %v9396_v18  ;;  %vm988_vm14 = vcmp.ne.s32.totalorder %v11119_v13, 0 }
 0x11a   : > { %2620 = vst.msk [vmem:[#allocation3 + $0x60] sm:$0xff] %vm1920_vm11, %v2596_v49  ;;  %2907 = vst.msk [vmem:[#allocation3 + $0x40] sm:$0xff] %vm1920_vm11, %v2883_v14  ;;  %v11152_v41 = vld [vmem:[#allocation2 + $0x60] sm:$0xff]  ;;  %v11154_v2 = vld [vmem:[#allocation2 + $0x68] sm:$0xff]  ;;  %v1840_v51 = vmax.f32 %v1698_v20, 0.0  ;;  %v11191_v18 = vpack.c.bf16 %v11124_v57, %v11042_v36  ;;  %3731 = vmatprep.subr.bf16.mxu1 %v14271_v43  ;;  %vm1036_vm9 = vcmp.lt.s32.totalorder %v11119_v13, 0 }
 0x11b   : > { %2621 = vst.msk [vmem:[#allocation3 + $0x88] sm:$0xff] %vm1920_vm11, %v2597_v4  ;;  %1934 = vst.msk [vmem:[#allocation2 + $0x81] sm:$0xff] %vm1920_vm11, %v1885_v27  ;;  %v9399_v54 = vld [vmem:[%s14035_s6 + $0x68] sm:$0xff]   ;;  %v2268_v49 = vld [vmem:[#allocation2 + $0x52] sm:$0xff]  ;;  %v1842_v4 = vmax.f32 %v1706_v29, 0.0  ;;  %v1709_v27 = vadd.f32 %v8745_v46, %v10716_v35  ;;  %v2406_v61 = vpack.c.bf16 %v11152_v41, %v11092_v1  ;;  %2169 = vrot.lane.b32.xlu1 %v11171_v19, %s9516_s29 }
 0x11c   : > { %v1979_v14 = vld [vmem:[#allocation2 + $0x50] sm:$0xff]  ;;  %v3222_v9 = vld [vmem:[#allocation3 + $0x20] sm:$0xff]  ;;  %14343 = vst [vmem:[#allocation49_spill] sm:$0xff] %v11171_v19  ;;  %v2269_v32 = vld [vmem:[#allocation2 + $0x5a] sm:$0xff]  ;;  %v1888_v56 = vmul.f32 %v10259_v28, %v1840_v51  ;;  %v2407_v36 = vpack.c.bf16 %v11148_v0, %v11154_v2 }
 0x11d   : > { %2908 = vst.msk [vmem:[#allocation3 + $0x68] sm:$0xff] %vm1920_vm11, %v2884_v21  ;;  %2623 = vst.msk [vmem:[#allocation3 + $0xd8] sm:$0xff] %vm1920_vm11, %v2599_v12  ;;  %8782 = vmatprep.mubr.msk.bf16.mxu0 %vm1920_vm11, %v3222_v9  ;;  %v2311_v47 = vpack.c.bf16 %v2269_v32, %v2268_v49  ;;  %v1980_v24 = vld [vmem:[#allocation2 + $0x58] sm:$0xff]  ;;  %v2270_v29 = vld [vmem:[#allocation2 + $0x62] sm:$0xff]  ;;  %v1890_v12 = vmul.f32 %v10256_v25, %v1842_v4  ;;  %v1843_v20 = vmax.f32 %v1709_v27, 0.0  ;;  %2458 = vrot.lane.b32.xlu0 %v2406_v61, %s9516_s29 }
 0x11e   : > { %3196 = vst.msk [vmem:[#allocation3 + $0x70] sm:$0xff] %vm1920_vm11, %v3172_v5  ;;  %3197 = vst.msk [vmem:[#allocation3 + $0x98] sm:$0xff] %vm1920_vm11, %v3173_v17  ;;  %v2271_v21 = vld [vmem:[#allocation2 + $0x6a] sm:$0xff]  ;;  %v2022_v46 = vpack.c.bf16 %v1980_v24, %v1979_v14  ;;  %v1981_v17 = vld [vmem:[#allocation2 + $0x60] sm:$0xff]  ;;  %v1841_v9 = vmax.f32 %v1701_v53, 0.0  ;;  %8783 = vmatmul.mubr.msk.bf16.vlgmr.msra.gmra.mrb[0].mxu0 %vm1920_vm11, %v3227_v50  ;;  %v2598_v50 = vpack.c.bf16 %v11150_v38, %v11124_v57  ;;  %3732 = vmatpush1.bf16.msra.mxu1 %v9399_v54 }
 0x11f   : > { %v2312_v5 = vpack.c.bf16 %v2271_v21, %v2270_v29  ;;  %v1982_v31 = vld [vmem:[#allocation2 + $0x68] sm:$0xff]  ;;  %14346 = vst [vmem:[#allocation50_spill] sm:$0xff] %v11191_v18  ;;  %2335 = vst.msk [vmem:[#allocation3 + $0xd0] sm:$0xff] %vm1920_vm11, %v2311_v47  ;;  %v11195_v49 = vld [vmem:[#allocation2 + $0x78] sm:$0xff]  ;;  %v1891_v14 = vmul.f32 %v10282_v45, %v1843_v20  ;;  %v2885_v4 = vpack.c.bf16 %v11154_v2, %v11152_v41  ;;  %v8748_v29 = vpop.f32.mrb[20].mxu1  ;;  %v11224_v21 = vsel %vm11179_vm13, 1.0, %v14290_v60 }
 0x120   : > { %v2023_v32 = vpack.c.bf16 %v1982_v31, %v1981_v17  ;;  %1939 = vst.msk [vmem:[#allocation2 + $0xa9] sm:$0xff] %vm1920_vm11, %v1890_v12  ;;  %v9476_v53 = vld [vmem:[%s14033_s4] sm:$0xff]   ;;  %v9400_v51 = vld [vmem:[%s14035_s6 + $0x70] sm:$0xff]   ;;  %2046 = vst.msk [vmem:[#allocation3 + $0xc8] sm:$0xff] %vm1920_vm11, %v2022_v46  ;;  %v1889_v24 = vmul.f32 %v10285_v39, %v1841_v9  ;;  %v11228_v57 = vsub.s32 %v10852_v11, %v11139_v22  ;;  %2171 = vrot.lane.b32.xlu1 %v11191_v18, %s9516_s29  ;;  %v1713_v11 = vpop.f32.mrb[21].mxu1 }
 0x121   : > { %8831 = vmatpush3.bf16.msra.mxu0 %v9476_v53  ;;  %2336 = vst.msk [vmem:[#allocation3 + $0xf8] sm:$0xff] %vm1920_vm11, %v2312_v5  ;;  %v11213_v27 = vld [vmem:[#allocation2 + $0x79] sm:$0xff]  ;;  %v11217_v47 = vld [vmem:[#allocation2 + $0x8a] sm:$0xff]  ;;  %1937 = vst.msk [vmem:[#allocation2 + $0x99] sm:$0xff] %vm1920_vm11, %v1888_v56  ;;  %v1722_v1 = vadd.f32 %v8748_v29, %v10716_v35  ;;  %2460 = vrot.lane.b32.xlu0 %v2407_v36, %s9516_s29  ;;  %v2886_v22 = vpack.c.bf16 %v11195_v49, %v11148_v0  ;;  %v8749_v56 = vpop.f32.mrb[22].mxu1  ;;  %v11265_v0 = vadd.s32 24, %v11119_v13 }
 0x122   : > { %v11215_v61 = vld [vmem:[#allocation2 + $0x72] sm:$0xff]  ;;  %14348 = vst [vmem:[#allocation52_spill] sm:$0xff] %v11217_v47  ;;  %8832 = vmatprep.subr.bf16.mxu0 %v10948_v37  ;;  %2047 = vst.msk [vmem:[#allocation3 + $0xf0] sm:$0xff] %vm1920_vm11, %v2023_v32  ;;  %v11235_v12 = vld [vmem:[#allocation2 + $0x7a] sm:$0xff]  ;;  %v1714_v31 = vadd.f32 %v10716_v35, %v1713_v11  ;;  %3733 = vmatprep.subr.bf16.mxu1 %v14271_v43  ;;  %v11276_v41 = vpack.c.bf16 %v11106_v3, %v11150_v38  ;;  %vm986_vm10 = vcmp.ne.s32.totalorder %v11228_v57, 0 }
 0x123   : > { %14347 = vst [vmem:[#allocation51_spill] sm:$0xff] %v11215_v61  ;;  %v11233_v2 = vld [vmem:[#allocation2 + $0x90] sm:$0xff]  ;;  %14349 = vst [vmem:[#allocation53_spill] sm:$0xff] %v11235_v12  ;;  %v11237_v20 = vld [vmem:[#allocation2 + $0x82] sm:$0xff]  ;;  %v3174_v9 = vpack.c.bf16 %v11235_v12, %v11215_v61  ;;  %3734 = vmatpush1.bf16.msra.mxu1 %v9400_v51  ;;  %vm1034_vm2 = vcmp.lt.s32.totalorder %v11228_v57, 0 }
 0x124   : > { %14350 = vst [vmem:[#allocation54_spill] sm:$0xff] %v11237_v20  ;;  %1940 = vst.msk [vmem:[#allocation2 + $0xb1] sm:$0xff] %vm1920_vm11, %v1891_v14  ;;  %v11250_v54 = vld [vmem:[#allocation2 + $0x91] sm:$0xff]  ;;  %v11252_v46 = vld [vmem:[#allocation2 + $0x81] sm:$0xff]  ;;  %v3175_v32 = vpack.c.bf16 %v11217_v47, %v11237_v20  ;;  %v1844_v12 = vmax.f32 %v1714_v31, 0.0  ;;  %2173 = vrot.lane.b32.xlu1 %v11276_v41, %s9516_s29  ;;  %3735 = vmatprep.subr.bf16.mxu1 %v14271_v43 }
 0x125   : > { %2622 = vst.msk [vmem:[#allocation3 + $0xb0] sm:$0xff] %vm1920_vm11, %v2598_v50  ;;  %2909 = vst.msk [vmem:[#allocation3 + $0x90] sm:$0xff] %vm1920_vm11, %v2885_v4  ;;  %v11254_v5 = vld [vmem:[#allocation2 + $0x80] sm:$0xff]  ;;  %v11256_v17 = vld [vmem:[#allocation2 + $0x88] sm:$0xff]  ;;  %v1846_v50 = vmax.f32 %v1722_v1, 0.0  ;;  %v1725_v4 = vadd.f32 %v8749_v56, %v10716_v35  ;;  %8833 = vmatpush3.bf16.msra.mxu0 %v10948_v37  ;;  %v11284_v56 = vpack.c.bf16 %v11213_v27, %v11108_v62 }
 0x126   : > { %1938 = vst.msk [vmem:[#allocation2 + $0xa1] sm:$0xff] %vm1920_vm11, %v1889_v24  ;;  %v9403_v14 = vld [vmem:[%s14035_s6 + $0x78] sm:$0xff]   ;;  %v1983_v36 = vld [vmem:[#allocation2 + $0x70] sm:$0xff]  ;;  %v1716_v24 = vpop.f32.mrb[23].mxu1  ;;  %v2408_v11 = vpack.c.bf16 %v11254_v5, %v11195_v49  ;;  %14351 = vst [vmem:[#allocation55_spill] sm:$0xff] %v11276_v41  ;;  %6959 = vmatprep.subr.bf16.mxu0 %v14271_v43 }
 0x127   : > { %v2272_v53 = vld [vmem:[#allocation2 + $0x72] sm:$0xff]  ;;  %v3237_v47 = vld [vmem:[#allocation3 + $0x98] sm:$0xff]  ;;  %2910 = vst.msk [vmem:[#allocation3 + $0xb8] sm:$0xff] %vm1920_vm11, %v2886_v22  ;;  %v1717_v1 = vadd.f32 %v10716_v35, %v1716_v24  ;;  %14352 = vst [vmem:[#allocation56_spill] sm:$0xff] %v11284_v56  ;;  %v1894_v22 = vmul.f32 %v10288_v59, %v1846_v50  ;;  %v1847_v31 = vmax.f32 %v1725_v4, 0.0  ;;  %v1892_v50 = vmul.f32 %v10369_v40, %v1844_v12 }
 0x128   : > { %v3232_v29 = vld [vmem:[#allocation3 + $0x70] sm:$0xff]  ;;  %3198 = vst.msk [vmem:[#allocation3 + $0xc0] sm:$0xff] %vm1920_vm11, %v3174_v9  ;;  %3199 = vst.msk [vmem:[#allocation3 + $0xe8] sm:$0xff] %vm1920_vm11, %v3175_v32  ;;  %v2274_v38 = vld [vmem:[#allocation2 + $0x82] sm:$0xff]  ;;  %2462 = vrot.lane.b32.xlu0 %v2408_v11, %s9516_s29  ;;  %v2409_v24 = vpack.c.bf16 %v11233_v2, %v11256_v17  ;;  %v2887_v12 = vpack.c.bf16 %v11256_v17, %v11254_v5  ;;  %v11333_v5 = vadd.s32 24, %v11228_v57  ;;  %3736 = vmatpush1.bf16.msra.mxu1 %v9403_v14 }
 0x129   : > { %v2273_v20 = vld [vmem:[#allocation2 + $0x7a] sm:$0xff]  ;;  %8786 = vmatprep.mubr.msk.bf16.mxu0 %vm1920_vm11, %v3232_v29  ;;  %v2275_v49 = vld [vmem:[#allocation2 + $0x8a] sm:$0xff]  ;;  %vm11297_vm1 = vmand %vm1036_vm9, %vm988_vm14  ;;  %v1845_v4 = vmax.f32 %v1717_v1, 0.0  ;;  %1943 = vst.msk [vmem:[#allocation2 + $0xc9] sm:$0xff] %vm1920_vm11, %v1894_v22  ;;  %v8752_v22 = vpop.f32.mrb[24].mxu1  ;;  %2175 = vrot.lane.b32.xlu1 %v11284_v56, %s9516_s29 }
 0x12a   : > { %v2313_v37 = vpack.c.bf16 %v2273_v20, %v2272_v53  ;;  %v1984_v3 = vld [vmem:[#allocation2 + $0x78] sm:$0xff]  ;;  %v2314_v20 = vpack.c.bf16 %v2275_v49, %v2274_v38  ;;  %v1985_v9 = vld [vmem:[#allocation2 + $0x80] sm:$0xff]  ;;  %v1986_v32 = vld [vmem:[#allocation2 + $0x88] sm:$0xff]  ;;  %8787 = vmatmul.mubr.msk.bf16.gmra.mrb[4].mxu0 %vm1920_vm11, %v3237_v47  ;;  %v2600_v47 = vpack.c.bf16 %v11252_v46, %v11213_v27  ;;  %1941 = vst.msk [vmem:[#allocation2 + $0xb9] sm:$0xff] %vm1920_vm11, %v1892_v50  ;;  %v1729_v14 = vpop.f32.mrb[25].mxu1 }
 0x12b   : > { %v2024_v51 = vpack.c.bf16 %v1984_v3, %v1983_v36  ;;  %v2560_v53 = vld [vmem:[#allocation2 + $0x89] sm:$0xff]  ;;  %v2025_v29 = vpack.c.bf16 %v1986_v32, %v1985_v9  ;;  %v11307_v11 = vld [vmem:[#allocation2 + $0x98] sm:$0xff]  ;;  %v1895_v36 = vmul.f32 %v10422_v23, %v1847_v31  ;;  %v1893_v49 = vmul.f32 %v10425_v7, %v1845_v4  ;;  %2911 = vst.msk [vmem:[#allocation3 + $0xe0] sm:$0xff] %vm1920_vm11, %v2887_v12  ;;  %v8753_v12 = vpop.f32.mrb[26].mxu1  ;;  %vm11419_vm15 = vmand %vm1034_vm2, %vm986_vm10 }
 0x12c   : > { %2337 = vst.msk [vmem:[#allocation3 + $0x120] sm:$0xff] %vm1920_vm11, %v2313_v37  ;;  %2338 = vst.msk [vmem:[#allocation3 + $0x148] sm:$0xff] %vm1920_vm11, %v2314_v20  ;;  %v2601_v1 = vpack.c.bf16 %v11250_v54, %v2560_v53  ;;  %v11319_v37 = vld [vmem:[#allocation2 + $0xa9] sm:$0xff]  ;;  %v11321_v3 = vld [vmem:[#allocation2 + $0xb1] sm:$0xff]  ;;  %v1738_v9 = vadd.f32 %v8752_v22, %v10716_v35  ;;  %2464 = vrot.lane.b32.xlu0 %v2409_v24, %s9516_s29  ;;  %v14359_v32 = vshrl.u32 %v10971_v8, 4  ;;  %3930 = vmatprep.subr.bf16.mxu1 %v14271_v43  ;;  %v1732_v18 = vpop.f32.mrb[27].mxu1 }
 0x12d   : > { %2048 = vst.msk [vmem:[#allocation3 + $0x118] sm:$0xff] %vm1920_vm11, %v2024_v51  ;;  %v11323_v38 = vld [vmem:[#allocation2 + $0xaa] sm:$0xff]  ;;  %2049 = vst.msk [vmem:[#allocation3 + $0x140] sm:$0xff] %vm1920_vm11, %v2025_v29  ;;  %v11336_v17 = vld [vmem:[#allocation2 + $0x99] sm:$0xff]  ;;  %v2888_v4 = vpack.c.bf16 %v11307_v11, %v11233_v2  ;;  %v2603_v24 = vpack.c.bf16 %v11321_v3, %v11319_v37 }
 0x12e   : > { %14355 = vst [vmem:[#allocation57_spill] sm:$0xff] %v11323_v38  ;;  %v11338_v31 = vld [vmem:[#allocation2 + $0x92] sm:$0xff]  ;;  %v11340_v51 = vld [vmem:[#allocation2 + $0x9a] sm:$0xff]  ;;  %v11342_v20 = vld [vmem:[#allocation2 + $0xa2] sm:$0xff]  ;;  %v11351_v50 = vmul.u32 24, %v14359_v32  ;;  %v14360_v32 = vshrl.u32 %v10985_v52, 4 }
 0x12f   : > { %14356 = vst [vmem:[#allocation58_spill] sm:$0xff] %v11338_v31  ;;  %14357 = vst [vmem:[#allocation59_spill] sm:$0xff] %v11340_v51  ;;  %v11360_v29 = vld [vmem:[#allocation2 + $0xb0] sm:$0xff]  ;;  %v11364_v22 = vld [vmem:[#allocation2 + $0xa0] sm:$0xff]  ;;  %v3177_v2 = vpack.c.bf16 %v11323_v38, %v11342_v20  ;;  %v1850_v41 = vmax.f32 %v1738_v9, 0.0  ;;  %v1733_v9 = vadd.f32 %v10716_v35, %v1732_v18 }
 0x130   : > { %14358 = vst [vmem:[#allocation60_spill] sm:$0xff] %v11342_v20  ;;  %1944 = vst.msk [vmem:[#allocation2 + $0xd1] sm:$0xff] %vm1920_vm11, %v1895_v36  ;;  %v11362_v36 = vld [vmem:[#allocation2 + $0xa1] sm:$0xff]  ;;  %v11376_v27 = vmul.u32 24, %v14360_v32  ;;  %v2276_v56 = vld [vmem:[#allocation2 + $0x92] sm:$0xff]  ;;  %v2410_v34 = vpack.c.bf16 %v11364_v22, %v11307_v11 }
 0x131   : > { %2624 = vst.msk [vmem:[#allocation3 + $0x100] sm:$0xff] %vm1920_vm11, %v2600_v47  ;;  %2625 = vst.msk [vmem:[#allocation3 + $0x128] sm:$0xff] %vm1920_vm11, %v2601_v1  ;;  %v11366_v8 = vld [vmem:[#allocation2 + $0xa8] sm:$0xff]  ;;  %v1730_v47 = vadd.f32 %v10716_v35, %v1729_v14  ;;  %v3176_v1 = vpack.c.bf16 %v11340_v51, %v11338_v31  ;;  %v1987_v61 = vld [vmem:[#allocation2 + $0x90] sm:$0xff]  ;;  %v11383_v51 = vpack.c.bf16 %v2560_v53, %v11252_v46 }
 0x132   : > { %1942 = vst.msk [vmem:[#allocation2 + $0xc1] sm:$0xff] %vm1920_vm11, %v1893_v49  ;;  %v1741_v49 = vadd.f32 %v8753_v12, %v10716_v35  ;;  %v3242_v14 = vld [vmem:[#allocation3 + $0xc0] sm:$0xff]  ;;  %v3247_v38 = vld [vmem:[#allocation3 + $0xe8] sm:$0xff]  ;;  %v2277_v52 = vld [vmem:[#allocation2 + $0x9a] sm:$0xff]  ;;  %2466 = vrot.lane.b32.xlu0 %v2410_v34, %s9516_s29 }
 0x133   : > { %14361 = vst [vmem:[#allocation61_spill] sm:$0xff] %v11383_v51  ;;  %v11385_v20 = vld [vmem:[#allocation2 + $0x1] sm:$0xff]  ;;  %2912 = vst.msk [vmem:[#allocation3 + $0x108] sm:$0xff] %vm1920_vm11, %v2888_v4  ;;  %v1848_v32 = vmax.f32 %v1730_v47, 0.0  ;;  %8790 = vmatprep.mubr.msk.bf16.mxu0 %vm1920_vm11, %v3242_v14  ;;  %v2315_v53 = vpack.c.bf16 %v2277_v52, %v2276_v56  ;;  %v1988_v11 = vld [vmem:[#allocation2 + $0x98] sm:$0xff]  ;;  %2177 = vrot.lane.b32.xlu1 %v11383_v51, %s9516_s29  ;;  %v1849_v56 = vmax.f32 %v1733_v9, 0.0 }
 0x134   : > { %2627 = vst.msk [vmem:[#allocation3 + $0x178] sm:$0xff] %vm1920_vm11, %v2603_v24  ;;  %3200 = vst.msk [vmem:[#allocation3 + $0x110] sm:$0xff] %vm1920_vm11, %v3176_v1  ;;  %v2278_v12 = vld [vmem:[#allocation2 + $0xa2] sm:$0xff]  ;;  %v2279_v31 = vld [vmem:[#allocation2 + $0xaa] sm:$0xff]  ;;  %v1851_v4 = vmax.f32 %v1741_v49, 0.0  ;;  %v2026_v18 = vpack.c.bf16 %v1988_v11, %v1987_v61  ;;  %8791 = vmatmul.mubr.msk.bf16.gmra.mrb[8].mxu0 %vm1920_vm11, %v3247_v38  ;;  %v2889_v38 = vpack.c.bf16 %v11366_v8, %v11364_v22 }
 0x135   : > { %3201 = vst.msk [vmem:[#allocation3 + $0x138] sm:$0xff] %vm1920_vm11, %v3177_v2  ;;  %v14362_v19 = vld [vmem:[#allocation21_spill] sm:$0xff]  ;;  %v2316_v24 = vpack.c.bf16 %v2279_v31, %v2278_v12  ;;  %v1989_v47 = vld [vmem:[#allocation2 + $0xa0] sm:$0xff]  ;;  %v14363_v2 = vld [vmem:[#allocation22_spill] sm:$0xff]  ;;  %v1897_v12 = vmul.f32 %v10697_v33, %v1849_v56 }
 0x136   : > { %v1898_v6 = vmul.f32 %v14362_v19, %v1850_v41  ;;  %v11398_v35 = vld [vmem:[#allocation2 + $0x9] sm:$0xff]  ;;  %v1896_v14 = vmul.f32 %v14363_v2, %v1848_v32  ;;  %v11404_v41 = vpack.c.bf16 %v11336_v17, %v11250_v54  ;;  %2339 = vst.msk [vmem:[#allocation3 + $0x170] sm:$0xff] %vm1920_vm11, %v2315_v53  ;;  %v11409_v52 = vld [vmem:[#allocation2 + $0xb8] sm:$0xff]  ;;  %v2411_v32 = vpack.c.bf16 %v11360_v29, %v11366_v8 }
 0x137   : > { %v1990_v1 = vld [vmem:[#allocation2 + $0xa8] sm:$0xff]  ;;  %v14365_v61 = vld [vmem:[#allocation23_spill] sm:$0xff]  ;;  %2050 = vst.msk [vmem:[#allocation3 + $0x168] sm:$0xff] %vm1920_vm11, %v2026_v18  ;;  %2340 = vst.msk [vmem:[#allocation3 + $0x198] sm:$0xff] %vm1920_vm11, %v2316_v24 }
 0x138   : > { %14364 = vst [vmem:[#allocation21_spill] sm:$0xff] %v11404_v41  ;;  %v2027_v34 = vpack.c.bf16 %v1990_v1, %v1989_v47  ;;  %v11407_v49 = vld [vmem:[#allocation2 + $0xc9] sm:$0xff]  ;;  %1947 = vst.msk [vmem:[#allocation2 + $0xe9] sm:$0xff] %vm1920_vm11, %v1898_v6  ;;  %v1899_v31 = vmul.f32 %v14365_v61, %v1851_v4  ;;  %v2602_v6 = vpack.c.bf16 %v11362_v36, %v11336_v17  ;;  %v11429_v9 = vld [vmem:[#allocation2 + $0xb9] sm:$0xff]  ;;  %v8756_v4 = vpop.f32.mrb[28].mxu1  ;;  %2468 = vrot.lane.b32.xlu0 %v2411_v32, %s9516_s29 }
 0x139   : > { %v11431_v53 = vld [vmem:[#allocation2 + $0xd1] sm:$0xff]  ;;  %1945 = vst.msk [vmem:[#allocation2 + $0xd9] sm:$0xff] %vm1920_vm11, %v1896_v14  ;;  %v11440_v24 = vmul.u32.u64.low 2863311531, %v11122_v15  ;;  %v11441_v17 = vmul.u32.u64.high 2863311531, %v11122_v15, %v11440_v24  ;;  %v11446_v8 = vld [vmem:[#allocation2 + $0xba] sm:$0xff]  ;;  %v11448_v47 = vld [vmem:[#allocation2 + $0xc2] sm:$0xff]  ;;  %2179 = vrot.lane.b32.xlu1 %v11404_v41, %s9516_s29  ;;  %v2890_v32 = vpack.c.bf16 %v11409_v52, %v11360_v29 }
 0x13a   : > { %14368 = vst [vmem:[#allocation62_spill] sm:$0xff] %v11431_v53  ;;  %v11433_v11 = vld [vmem:[#allocation2 + $0xca] sm:$0xff]  ;;  %2051 = vst.msk [vmem:[#allocation3 + $0x190] sm:$0xff] %vm1920_vm11, %v2027_v34  ;;  %v11444_v22 = vld [vmem:[#allocation2 + $0xb2] sm:$0xff]  ;;  %v1745_v56 = vpop.f32.mrb[29].mxu1  ;;  %v14373_v34 = vsel %vm11297_vm1, %v11265_v0, %v11119_v13 }
 0x13b   : > { %14369 = vst [vmem:[#allocation63_spill] sm:$0xff] %v11433_v11  ;;  %14370 = vst [vmem:[#allocation64_spill] sm:$0xff] %v11444_v22  ;;  %v11454_v1 = vld [vmem:[%s14034_s5] ss:$0 sm:$0xff]  ;;  %vm11465_vm6 = vcmp.lt.s32.totalorder %v14373_v34, 16  ;;  %v11475_v24 = vld [vmem:[#allocation2 + $0xd0] sm:$0xff]  ;;  %v3179_v29 = vpack.c.bf16 %v11433_v11, %v11448_v47 }
 0x13c   : > { %14371 = vst [vmem:[#allocation65_spill] sm:$0xff] %v11446_v8  ;;  %14372 = vst [vmem:[#allocation66_spill] sm:$0xff] %v11448_v47  ;;  %v1754_v14 = vadd.f32 %v11454_v1, %v8756_v4  ;;  %v2605_v4 = vpack.c.bf16 %v11431_v53, %v11407_v49  ;;  %v11477_v62 = vld [vmem:[#allocation2 + $0xc1] sm:$0xff]  ;;  %v1746_v0 = vadd.f32 %v11454_v1, %v1745_v56  ;;  %v1991_v46 = vld [vmem:[#allocation2 + $0xb0] sm:$0xff] }
 0x13d   : > { %1948 = vst.msk [vmem:[#allocation2 + $0xf1] sm:$0xff] %vm1920_vm11, %v1899_v31  ;;  %2626 = vst.msk [vmem:[#allocation3 + $0x150] sm:$0xff] %vm1920_vm11, %v2602_v6  ;;  %v11479_v18 = vld [vmem:[#allocation2 + $0xc0] sm:$0xff]  ;;  %v11481_v13 = vld [vmem:[#allocation2 + $0xc8] sm:$0xff]  ;;  %v8757_v6 = vpop.f32.mrb[30].mxu1 }
 0x13e   : > { %2913 = vst.msk [vmem:[#allocation3 + $0x130] sm:$0xff] %vm1920_vm11, %v2889_v38  ;;  %1946 = vst.msk [vmem:[#allocation2 + $0xe1] sm:$0xff] %vm1920_vm11, %v1897_v12  ;;  %v3178_v38 = vpack.c.bf16 %v11446_v8, %v11444_v22  ;;  %v1854_v53 = vmax.f32 %v1754_v14, 0.0  ;;  %v1757_v41 = vadd.f32 %v11454_v1, %v8757_v6  ;;  %v1748_v51 = vpop.f32.mrb[31].mxu1  ;;  %v3252_v12 = vld [vmem:[#allocation3 + $0x110] sm:$0xff]  ;;  %v2412_v56 = vpack.c.bf16 %v11479_v18, %v11409_v52  ;;  %v3257_v22 = vld [vmem:[#allocation3 + $0x138] sm:$0xff] }
 0x13f   : > { %v11498_v8 = vpack.c.bf16 %v11319_v37, %v11362_v36  ;;  %v2280_v11 = vld [vmem:[#allocation2 + $0xb2] sm:$0xff]  ;;  %2914 = vst.msk [vmem:[#allocation3 + $0x158] sm:$0xff] %vm1920_vm11, %v2890_v32  ;;  %2629 = vst.msk [vmem:[#allocation3 + $0x1c8] sm:$0xff] %vm1920_vm11, %v2605_v4  ;;  %v1852_v34 = vmax.f32 %v1746_v0, 0.0  ;;  %v1749_v14 = vadd.f32 %v11454_v1, %v1748_v51  ;;  %8794 = vmatprep.mubr.msk.bf16.mxu0 %vm1920_vm11, %v3252_v12  ;;  %v2281_v36 = vld [vmem:[#allocation2 + $0xba] sm:$0xff] }
 0x140   : > { %v11506_v6 = vpack.c.bf16 %v11429_v9, %v11321_v3  ;;  %3202 = vst.msk [vmem:[#allocation3 + $0x160] sm:$0xff] %vm1920_vm11, %v3178_v38  ;;  %3203 = vst.msk [vmem:[#allocation3 + $0x188] sm:$0xff] %vm1920_vm11, %v3179_v29  ;;  %v11512_v37 = vsub.s32 %v10910_v63, %v11351_v50  ;;  %v1992_v52 = vld [vmem:[#allocation2 + $0xb8] sm:$0xff]  ;;  %v2282_v32 = vld [vmem:[#allocation2 + $0xc2] sm:$0xff]  ;;  %v1902_v4 = vmul.f32 %v10702_v10, %v1854_v53  ;;  %v1855_v51 = vmax.f32 %v1757_v41, 0.0 }
 0x141   : > { %2470 = vrot.lane.b32.xlu0 %v2412_v56, %s9516_s29  ;;  %2181 = vrot.lane.b32.xlu1 %v11498_v8, %s9516_s29  ;;  %v2317_v3 = vpack.c.bf16 %v2281_v36, %v2280_v11  ;;  %v2028_v0 = vpack.c.bf16 %v1992_v52, %v1991_v46  ;;  %v2283_v38 = vld [vmem:[#allocation2 + $0xca] sm:$0xff]  ;;  %v1993_v12 = vld [vmem:[#allocation2 + $0xc0] sm:$0xff]  ;;  %v1853_v63 = vmax.f32 %v1749_v14, 0.0  ;;  %v2855_v41 = vld [vmem:[#allocation2 + $0xd8] sm:$0xff]  ;;  %v2413_v46 = vpack.c.bf16 %v11475_v24, %v11481_v13 }
 0x142   : > { %14376 = vst [vmem:[#allocation67_spill] sm:$0xff] %v11506_v6  ;;  %v1994_v29 = vld [vmem:[#allocation2 + $0xc8] sm:$0xff]  ;;  %8795 = vmatmul.mubr.msk.bf16.gmra.mrb[12].mxu0 %vm1920_vm11, %v3257_v22  ;;  %v2318_v50 = vpack.c.bf16 %v2283_v38, %v2282_v32  ;;  %1951 = vst.msk [vmem:[#allocation2 + $0x109] sm:$0xff] %vm1920_vm11, %v1902_v4  ;;  %v14379_v53 = vld [vmem:[#allocation26_spill] sm:$0xff]  ;;  %v2604_v11 = vpack.c.bf16 %v11477_v62, %v11429_v9  ;;  %v2891_v22 = vpack.c.bf16 %v11481_v13, %v11479_v18  ;;  %v8760_v4 = vpop.f32.mrb[32].mxu1 }
 0x143   : > { %v14377_v47 = vld [vmem:[#allocation25_spill] sm:$0xff]  ;;  %v2029_v61 = vpack.c.bf16 %v1994_v29, %v1993_v12  ;;  %v1903_v56 = vmul.f32 %v14379_v53, %v1855_v51  ;;  %2341 = vst.msk [vmem:[#allocation3 + $0x1c0] sm:$0xff] %vm1920_vm11, %v2317_v3  ;;  %2052 = vst.msk [vmem:[#allocation3 + $0x1b8] sm:$0xff] %vm1920_vm11, %v2028_v0  ;;  %v14383_v52 = vld [vmem:[#allocation27_spill] sm:$0xff]  ;;  %v11542_v51 = vpack.c.bf16 %v11407_v49, %v11477_v62  ;;  %v11547_v9 = vsel %vm11465_vm6, 1.0, %v14290_v60  ;;  %v1761_v31 = vpop.f32.mrb[33].mxu1 }
 0x144   : > { %v1900_v33 = vmul.f32 %v14377_v47, %v1852_v34  ;;  %v11520_v2 = vld [vmem:[#allocation2 + $0xe9] sm:$0xff]  ;;  %v11532_v34 = vld [vmem:[#allocation2 + $0xd2] sm:$0xff]  ;;  %v1901_v32 = vmul.f32 %v14383_v52, %v1853_v63  ;;  %2342 = vst.msk [vmem:[#allocation3 + $0x1e8] sm:$0xff] %vm1920_vm11, %v2318_v50  ;;  %v1770_v49 = vadd.f32 %v11454_v1, %v8760_v4  ;;  %2628 = vst.msk [vmem:[#allocation3 + $0x1a0] sm:$0xff] %vm1920_vm11, %v2604_v11  ;;  %v8761_v29 = vpop.f32.mrb[34].mxu1  ;;  %vm991_vm7 = vcmp.ne.s32.totalorder %v11512_v37, 0 }
 0x145   : > { %14378 = vst [vmem:[#allocation25_spill] sm:$0xff] %v11520_v2  ;;  %14380 = vst [vmem:[#allocation26_spill] sm:$0xff] %v11532_v34  ;;  %v11534_v14 = vld [vmem:[#allocation2 + $0xea] sm:$0xff]  ;;  %v14385_v18 = vld [vmem:[#allocation39_spill] sm:$0xff]  ;;  %2472 = vrot.lane.b32.xlu0 %v2413_v46, %s9516_s29  ;;  %2183 = vrot.lane.b32.xlu1 %v11506_v6, %s9516_s29  ;;  %v1762_v12 = vadd.f32 %v11454_v1, %v1761_v31  ;;  %vm1039_vm8 = vcmp.lt.s32.totalorder %v11512_v37, 0 }
 0x146   : > { %14381 = vst [vmem:[#allocation68_spill] sm:$0xff] %v11534_v14  ;;  %v11536_v36 = vld [vmem:[#allocation2 + $0xf1] sm:$0xff]  ;;  %1949 = vst.msk [vmem:[#allocation2 + $0xf9] sm:$0xff] %vm1920_vm11, %v1900_v33  ;;  %v11551_v13 = vsub.s32 %v14385_v18, %v11376_v27  ;;  %v1997_v33 = vld [vmem:[#allocation2 + $0xe0] sm:$0xff]  ;;  %v918_v27 = vshrl.u32 %v11441_v17, 4  ;;  %v1858_v11 = vmax.f32 %v1770_v49, 0.0 }
 0x147   : > { %14382 = vst [vmem:[#allocation69_spill] sm:$0xff] %v11536_v36  ;;  %14384 = vst [vmem:[#allocation27_spill] sm:$0xff] %v11542_v51  ;;  %v1998_v3 = vld [vmem:[#allocation2 + $0xe8] sm:$0xff]  ;;  %v11555_v0 = vld [vmem:[#allocation2 + $0xda] sm:$0xff]  ;;  %v2607_v62 = vpack.c.bf16 %v11536_v36, %v11520_v2  ;;  %v2414_v63 = vpack.c.bf16 %v1997_v33, %v2855_v41  ;;  %v1856_v31 = vmax.f32 %v1762_v12, 0.0 }
 0x148   : > { %2053 = vst.msk [vmem:[#allocation3 + $0x1e0] sm:$0xff] %vm1920_vm11, %v2029_v61  ;;  %14386 = vst [vmem:[#allocation39_spill] sm:$0xff] %v11555_v0  ;;  %v2892_v61 = vpack.c.bf16 %v2855_v41, %v11475_v24  ;;  %v11568_v38 = vld [vmem:[#allocation2 + $0xe2] sm:$0xff]  ;;  %v3180_v17 = vpack.c.bf16 %v11555_v0, %v11532_v34  ;;  %v1995_v50 = vld [vmem:[#allocation2 + $0xd0] sm:$0xff]  ;;  %v2031_v46 = vpack.c.bf16 %v1998_v3, %v1997_v33  ;;  %vm989_vm0 = vcmp.ne.s32.totalorder %v11551_v13, 0 }
 0x149   : > { %1952 = vst.msk [vmem:[#allocation2 + $0x111] sm:$0xff] %vm1920_vm11, %v1903_v56  ;;  %2915 = vst.msk [vmem:[#allocation3 + $0x180] sm:$0xff] %vm1920_vm11, %v2891_v22  ;;  %v1996_v56 = vld [vmem:[#allocation2 + $0xd8] sm:$0xff]  ;;  %v1773_v24 = vadd.f32 %v11454_v1, %v8761_v29  ;;  %v1764_v22 = vpop.f32.mrb[35].mxu1  ;;  %v3262_v4 = vld [vmem:[#allocation3 + $0x160] sm:$0xff]  ;;  %v3181_v36 = vpack.c.bf16 %v11534_v14, %v11568_v38  ;;  %2474 = vrot.lane.b32.xlu0 %v2414_v63, %s9516_s29  ;;  %2185 = vrot.lane.b32.xlu1 %v11542_v51, %s9516_s29  ;;  %v11600_v63 = vadd.s32 24, %v11512_v37 }
 0x14a   : > { %14387 = vst [vmem:[#allocation70_spill] sm:$0xff] %v11568_v38  ;;  %1950 = vst.msk [vmem:[#allocation2 + $0x101] sm:$0xff] %vm1920_vm11, %v1901_v32  ;;  %v3267_v18 = vld [vmem:[#allocation3 + $0x188] sm:$0xff]  ;;  %v2030_v32 = vpack.c.bf16 %v1996_v56, %v1995_v50  ;;  %v11579_v41 = vld [vmem:[#allocation2 + $0xe1] sm:$0xff]  ;;  %v1765_v2 = vadd.f32 %v11454_v1, %v1764_v22  ;;  %8798 = vmatprep.mubr.msk.bf16.mxu0 %vm1920_vm11, %v3262_v4  ;;  %vm1037_vm5 = vcmp.lt.s32.totalorder %v11551_v13, 0  ;;  %v919_v14 = vmul.u32 24, %v918_v27 }
 0x14b   : > { %2916 = vst.msk [vmem:[#allocation3 + $0x1a8] sm:$0xff] %vm1920_vm11, %v2892_v61  ;;  %2631 = vst.msk [vmem:[#allocation3 + $0x218] sm:$0xff] %vm1920_vm11, %v2607_v62  ;;  %v14389_v33 = vld [vmem:[#allocation28_spill] sm:$0xff]  ;;  %v1859_v49 = vmax.f32 %v1773_v24, 0.0  ;;  %v14390_v61 = vshrl.u32 %v11035_v30, 4  ;;  %v14392_v29 = vld [vmem:[#allocation29_spill] sm:$0xff]  ;;  %8799 = vmatmul.mubr.msk.bf16.gmra.mrb[16].mxu0 %vm1920_vm11, %v3267_v18 }
 0x14c   : > { %14388 = vst [vmem:[#allocation71_spill] sm:$0xff] %v11579_v41  ;;  %3204 = vst.msk [vmem:[#allocation3 + $0x1b0] sm:$0xff] %vm1920_vm11, %v3180_v17  ;;  %v1906_v3 = vmul.f32 %v14389_v33, %v1858_v11  ;;  %v11594_v12 = vld [vmem:[#allocation2 + $0xd9] sm:$0xff]  ;;  %v1904_v50 = vmul.f32 %v14392_v29, %v1856_v31  ;;  %v1857_v56 = vmax.f32 %v1765_v2, 0.0  ;;  %v1999_v30 = vld [vmem:[#allocation2 + $0xf0] sm:$0xff] }
 0x14d   : > { %2055 = vst.msk [vmem:[#allocation3 + $0x230] sm:$0xff] %vm1920_vm11, %v2031_v46  ;;  %3205 = vst.msk [vmem:[#allocation3 + $0x1d8] sm:$0xff] %vm1920_vm11, %v3181_v36  ;;  %v941_v62 = vmul.u32 24, %v14390_v61  ;;  %v11604_v11 = vld [vmem:[#allocation2 + $0x109] sm:$0xff]  ;;  %v2000_v24 = vld [vmem:[#allocation2 + $0xf8] sm:$0xff]  ;;  %v2606_v2 = vpack.c.bf16 %v11579_v41, %v11594_v12  ;;  %v8764_v61 = vpop.f32.mrb[36].mxu1 }
 0x14e   : > { %2054 = vst.msk [vmem:[#allocation3 + $0x208] sm:$0xff] %vm1920_vm11, %v2030_v32  ;;  %14391 = vst [vmem:[#allocation28_spill] sm:$0xff] %v11594_v12  ;;  %v14394_v22 = vld [vmem:[#allocation31_spill] sm:$0xff]  ;;  %v2032_v41 = vpack.c.bf16 %v2000_v24, %v1999_v30  ;;  %v2381_v51 = vld [vmem:[#allocation2 + $0xf0] sm:$0xff] }
 0x14f   : > { %2343 = vst.msk [vmem:[#allocation3 + $0x210] sm:$0xff] %vm1920_vm11, %v3180_v17  ;;  %2344 = vst.msk [vmem:[#allocation3 + $0x238] sm:$0xff] %vm1920_vm11, %v3181_v36  ;;  %v1907_v4 = vmul.f32 %v14394_v22, %v1859_v49  ;;  %v11611_v18 = vld [vmem:[#allocation2 + $0xf2] sm:$0xff]  ;;  %v14398_v36 = vld [vmem:[#allocation32_spill] sm:$0xff]  ;;  %v11638_v54 = vsub.s32 %v10957_v48, %v941_v62 }
 0x150   : > { %14393 = vst [vmem:[#allocation29_spill] sm:$0xff] %v11604_v11  ;;  %1955 = vst.msk [vmem:[#allocation2 + $0x129] sm:$0xff] %vm1920_vm11, %v1906_v3  ;;  %v11613_v32 = vld [vmem:[#allocation2 + $0x10a] sm:$0xff]  ;;  %v1905_v31 = vmul.f32 %v14398_v36, %v1857_v56  ;;  %v14399_v3 = vsel %vm11419_vm15, %v11333_v5, %v11228_v57  ;;  %v14403_v57 = vpack.c.bf16 %v11398_v35, %v11385_v20  ;;  %v1777_v5 = vpop.f32.mrb[37].mxu1  ;;  %v14414_v48 = vld [vmem:[#allocation36_spill] sm:$0xff] }
 0x151   : > { %14395 = vst [vmem:[#allocation31_spill] sm:$0xff] %v11611_v18  ;;  %14396 = vst [vmem:[#allocation72_spill] sm:$0xff] %v11613_v32  ;;  %v11615_v17 = vld [vmem:[#allocation2 + $0x111] sm:$0xff]  ;;  %vm11624_vm3 = vcmp.lt.s32.totalorder %v14399_v3, 16  ;;  %v2001_v38 = vld [vmem:[#allocation2 + $0x100] sm:$0xff]  ;;  %v1778_v30 = vadd.f32 %v11454_v1, %v1777_v5  ;;  %v8765_v24 = vpop.f32.mrb[38].mxu1 }
 0x152   : > { %14397 = vst [vmem:[#allocation73_spill] sm:$0xff] %v11615_v17  ;;  %1953 = vst.msk [vmem:[#allocation2 + $0x119] sm:$0xff] %vm1920_vm11, %v1904_v50  ;;  %v2002_v0 = vld [vmem:[#allocation2 + $0x108] sm:$0xff]  ;;  %v11629_v34 = vld [vmem:[#allocation2 + $0xfa] sm:$0xff]  ;;  %v1786_v50 = vadd.f32 %v11454_v1, %v8764_v61  ;;  %5416 = vrot.lane.b32.xlu1 %v14403_v57, %s9516_s29  ;;  %v2609_v27 = vpack.c.bf16 %v11615_v17, %v11604_v11  ;;  %vm992_vm14 = vcmp.ne.s32.totalorder %v11638_v54, 0  ;;  %vm1040_vm9 = vcmp.lt.s32.totalorder %v11638_v54, 0 }
 0x153   : > { %14402 = vst [vmem:[#allocation32_spill] sm:$0xff] %v11629_v34  ;;  %1956 = vst.msk [vmem:[#allocation2 + $0x131] sm:$0xff] %vm1920_vm11, %v1907_v4  ;;  %v11644_v56 = vld [vmem:[#allocation2 + $0x102] sm:$0xff]  ;;  %v2091_v20 = vld [vmem:[#allocation2 + $0xd1] sm:$0xff]  ;;  %v3182_v35 = vpack.c.bf16 %v11629_v34, %v11611_v18  ;;  %v1789_v4 = vadd.f32 %v11454_v1, %v8765_v24  ;;  %v1860_v5 = vmax.f32 %v1778_v30, 0.0  ;;  %v11683_v24 = vadd.s32 24, %v11551_v13 }
 0x154   : > { %2630 = vst.msk [vmem:[#allocation3 + $0x1f0] sm:$0xff] %vm1920_vm11, %v2606_v2  ;;  %2917 = vst.msk [vmem:[#allocation3 + $0x1d0] sm:$0xff] %vm1920_vm11, %v2031_v46  ;;  %v2033_v46 = vpack.c.bf16 %v2002_v0, %v2001_v38  ;;  %v1862_v62 = vmax.f32 %v1786_v50, 0.0  ;;  %v1780_v2 = vpop.f32.mrb[39].mxu1  ;;  %v2126_v61 = vpack.c.bf16 %v11594_v12, %v2091_v20  ;;  %v3183_v3 = vpack.c.bf16 %v11613_v32, %v11644_v56  ;;  %v11665_v57 = vld [vmem:[#allocation2 + $0x101] sm:$0xff] }
 0x155   : > { %14404 = vst [vmem:[#allocation74_spill] sm:$0xff] %v11644_v56  ;;  %1954 = vst.msk [vmem:[#allocation2 + $0x121] sm:$0xff] %vm1920_vm11, %v1905_v31  ;;  %v3272_v31 = vld [vmem:[#allocation3 + $0x1b0] sm:$0xff]  ;;  %v1781_v17 = vadd.f32 %v11454_v1, %v1780_v2  ;;  %v3277_v0 = vld [vmem:[#allocation3 + $0x1d8] sm:$0xff]  ;;  %v11671_v38 = vsub.s32 %v11122_v15, %v919_v14  ;;  %v11705_v2 = vadd.s32 24, %v11638_v54  ;;  %v8768_v11 = vpop.f32.mrb[40].mxu1 }
 0x156   : > { %vm11654_vm12 = vmand %vm1039_vm8, %vm991_vm7  ;;  %2056 = vst.msk [vmem:[#allocation3 + $0x258] sm:$0xff] %vm1920_vm11, %v2032_v41  ;;  %8802 = vmatprep.mubr.msk.bf16.mxu0 %vm1920_vm11, %v3272_v31  ;;  %2187 = vrot.lane.b32.xlu1 %v2126_v61, %s9516_s29  ;;  %v11685_v15 = vld [vmem:[#allocation2 + $0xf9] sm:$0xff] }
 0x157   : > { %2918 = vst.msk [vmem:[#allocation3 + $0x1f8] sm:$0xff] %vm1920_vm11, %v2032_v41  ;;  %2633 = vst.msk [vmem:[#allocation3 + $0x268] sm:$0xff] %vm1920_vm11, %v2609_v27  ;;  %v14408_v41 = vld [vmem:[#allocation33_spill] sm:$0xff]  ;;  %v1863_v27 = vmax.f32 %v1789_v4, 0.0  ;;  %v1183_v30 = vsel %vm11654_vm12, %v11600_v63, %v11512_v37  ;;  %v14410_v14 = vld [vmem:[#allocation35_spill] sm:$0xff]  ;;  %8803 = vmatmul.mubr.msk.bf16.gmra.mrb[20].mxu0 %vm1920_vm11, %v3277_v0  ;;  %v2608_v31 = vpack.c.bf16 %v11665_v57, %v11685_v15  ;;  %vm990_vm10 = vcmp.ne.s32.totalorder %v11671_v38, 0 }
 0x158   : > { %14407 = vst [vmem:[#allocation75_spill] sm:$0xff] %v11665_v57  ;;  %3206 = vst.msk [vmem:[#allocation3 + $0x200] sm:$0xff] %vm1920_vm11, %v3182_v35  ;;  %v1910_v50 = vmul.f32 %v14408_v41, %v1862_v62  ;;  %v1908_v20 = vmul.f32 %v14410_v14, %v1860_v5  ;;  %v2003_v37 = vld [vmem:[#allocation2 + $0x110] sm:$0xff]  ;;  %vm1038_vm1 = vcmp.lt.s32.totalorder %v11671_v38, 0  ;;  %v1802_v57 = vadd.f32 %v11454_v1, %v8768_v11 }
 0x159   : > { %2057 = vst.msk [vmem:[#allocation3 + $0x280] sm:$0xff] %vm1920_vm11, %v2033_v46  ;;  %2345 = vst.msk [vmem:[#allocation3 + $0x260] sm:$0xff] %vm1920_vm11, %v3182_v35  ;;  %v1861_v35 = vmax.f32 %v1781_v17, 0.0  ;;  %v11700_v63 = vld [vmem:[#allocation2 + $0x129] sm:$0xff]  ;;  %v2004_v17 = vld [vmem:[#allocation2 + $0x118] sm:$0xff]  ;;  %v1911_v4 = vmul.f32 %v14414_v48, %v1863_v27  ;;  %v11724_v18 = vadd.s32 24, %v11671_v38 }
 0x15a   : > { %3207 = vst.msk [vmem:[#allocation3 + $0x228] sm:$0xff] %vm1920_vm11, %v3183_v3  ;;  %14409 = vst [vmem:[#allocation33_spill] sm:$0xff] %v11685_v15  ;;  %v11709_v61 = vld [vmem:[#allocation2 + $0x112] sm:$0xff]  ;;  %v11711_v5 = vld [vmem:[#allocation2 + $0x12a] sm:$0xff]  ;;  %v1793_v15 = vpop.f32.mrb[41].mxu1  ;;  %vm11767_vm6 = vcmp.lt.s32.totalorder %v1183_v30, 16 }
 0x15b   : > { %vm11693_vm13 = vmand %vm1037_vm5, %vm989_vm0  ;;  %2346 = vst.msk [vmem:[#allocation3 + $0x288] sm:$0xff] %vm1920_vm11, %v3183_v3  ;;  %v11713_v0 = vld [vmem:[#allocation2 + $0x131] sm:$0xff]  ;;  %v14418_v3 = vld [vmem:[#allocation37_spill] sm:$0xff]  ;;  %v11800_v11 = vsel %vm11767_vm6, 1.0, %v14290_v60  ;;  %vm4567_vm5 = vcmask 522240   ;;  %vm8181_vm12 = vcmask 1040384  }
 0x15c   : > { %14413 = vst [vmem:[#allocation35_spill] sm:$0xff] %v11700_v63  ;;  %1959 = vst.msk [vmem:[#allocation2 + $0x149] sm:$0xff] %vm1920_vm11, %v1910_v50  ;;  %v1909_v32 = vmul.f32 %v14418_v3, %v1861_v35  ;;  %v2034_v50 = vpack.c.bf16 %v2004_v17, %v2003_v37  ;;  %v2005_v27 = vld [vmem:[#allocation2 + $0x120] sm:$0xff]  ;;  %v2006_v56 = vld [vmem:[#allocation2 + $0x128] sm:$0xff]  ;;  %v1794_v37 = vadd.f32 %v11454_v1, %v1793_v15  ;;  %v8769_v17 = vpop.f32.mrb[42].mxu1  ;;  %v11749_v15 = vsel %vm11624_vm3, 1.0, %v14290_v60 }
 0x15d   : > { %14415 = vst [vmem:[#allocation36_spill] sm:$0xff] %v11709_v61  ;;  %14416 = vst [vmem:[#allocation76_spill] sm:$0xff] %v11711_v5  ;;  %v11719_v34 = vld [vmem:[#allocation2 + $0x11a] sm:$0xff]  ;;  %v11730_v35 = vld [vmem:[#allocation2 + $0x122] sm:$0xff]  ;;  %vm2233_vm3 = vcmask 1048064  }
 0x15e   : > { %14417 = vst [vmem:[#allocation77_spill] sm:$0xff] %v11713_v0  ;;  %1957 = vst.msk [vmem:[#allocation2 + $0x139] sm:$0xff] %vm1920_vm11, %v1908_v20  ;;  %v2611_v20 = vpack.c.bf16 %v11713_v0, %v11700_v63  ;;  %v1796_v0 = vpop.f32.mrb[43].mxu1  ;;  %v11763_v49 = vld [vmem:[#allocation2 + $0x121] sm:$0xff] }
 0x15f   : > { %14419 = vst [vmem:[#allocation37_spill] sm:$0xff] %v11719_v34  ;;  %1960 = vst.msk [vmem:[#allocation2 + $0x151] sm:$0xff] %vm1920_vm11, %v1911_v4  ;;  %v2035_v4 = vpack.c.bf16 %v2006_v56, %v2005_v27  ;;  %v3282_v63 = vld [vmem:[#allocation3 + $0x200] sm:$0xff]  ;;  %v3185_v56 = vpack.c.bf16 %v11711_v5, %v11730_v35  ;;  %v1797_v27 = vadd.f32 %v11454_v1, %v1796_v0 }
 0x160   : > { %2632 = vst.msk [vmem:[#allocation3 + $0x240] sm:$0xff] %vm1920_vm11, %v2608_v31  ;;  %2919 = vst.msk [vmem:[#allocation3 + $0x220] sm:$0xff] %vm1920_vm11, %v2033_v46  ;;  %v3184_v46 = vpack.c.bf16 %v11719_v34, %v11709_v61  ;;  %v1866_v31 = vmax.f32 %v1802_v57, 0.0  ;;  %v1864_v57 = vmax.f32 %v1794_v37, 0.0  ;;  %8806 = vmatprep.mubr.msk.bf16.mxu0 %vm1920_vm11, %v3282_v63  ;;  %v1181_v0 = vsel %vm11693_vm13, %v11683_v24, %v11551_v13  ;;  %v11784_v63 = vld [vmem:[#allocation2 + $0x119] sm:$0xff]  ;;  %v2007_v13 = vld [vmem:[#allocation2 + $0x130] sm:$0xff] }
 0x161   : > { %14420 = vst [vmem:[#allocation78_spill] sm:$0xff] %v11730_v35  ;;  %1958 = vst.msk [vmem:[#allocation2 + $0x141] sm:$0xff] %vm1920_vm11, %v1909_v32  ;;  %v1805_v32 = vadd.f32 %v11454_v1, %v8769_v17  ;;  %v3287_v17 = vld [vmem:[#allocation3 + $0x228] sm:$0xff]  ;;  %vm11812_vm7 = vcmp.lt.s32.totalorder %v1181_v0, 16 }
 0x162   : > { %vm11738_vm2 = vmand %vm1040_vm9, %vm992_vm14  ;;  %2058 = vst.msk [vmem:[#allocation3 + $0x2a8] sm:$0xff] %vm1920_vm11, %v2034_v50  ;;  %v1912_v37 = vmul.f32 %v11224_v21, %v1864_v57  ;;  %8807 = vmatmul.mubr.msk.bf16.gmra.mrb[24].mxu0 %vm1920_vm11, %v3287_v17 }
 0x163   : > { %vm11755_vm15 = vmand %vm1038_vm1, %vm990_vm10  ;;  %2920 = vst.msk [vmem:[#allocation3 + $0x248] sm:$0xff] %vm1920_vm11, %v2034_v50  ;;  %v14428_v50 = vld [vmem:[#allocation38_spill] sm:$0xff]  ;;  %v1867_v5 = vmax.f32 %v1805_v32, 0.0  ;;  %v1184_v30 = vsel %vm11738_vm2, %v11705_v2, %v11638_v54 }
 0x164   : > { %2635 = vst.msk [vmem:[#allocation3 + $0x2b8] sm:$0xff] %vm1920_vm11, %v2611_v20  ;;  %14425 = vst [vmem:[#allocation79_spill] sm:$0xff] %v11763_v49  ;;  %v1914_v20 = vmul.f32 %v14428_v50, %v1866_v31  ;;  %v1182_v62 = vsel %vm11755_vm15, %v11724_v18, %v11671_v38  ;;  %v11793_v24 = vld [vmem:[#allocation2 + $0x149] sm:$0xff]  ;;  %v2610_v31 = vpack.c.bf16 %v11763_v49, %v11784_v63  ;;  %vm11816_vm8 = vcmp.lt.s32.totalorder %v1184_v30, 16 }
 0x165   : > { %3208 = vst.msk [vmem:[#allocation3 + $0x250] sm:$0xff] %vm1920_vm11, %v3184_v46  ;;  %2059 = vst.msk [vmem:[#allocation3 + $0x2d0] sm:$0xff] %vm1920_vm11, %v2035_v4  ;;  %v2008_v54 = vld [vmem:[#allocation2 + $0x138] sm:$0xff]  ;;  %v1915_v2 = vmul.f32 %v11547_v9, %v1867_v5  ;;  %vm11824_vm0 = vcmp.lt.s32.totalorder %v1182_v62, 16  ;;  %v11854_v5 = vsel %vm11816_vm8, 1.0, %v14290_v60 }
 0x166   : > { %2347 = vst.msk [vmem:[#allocation3 + $0x2b0] sm:$0xff] %vm1920_vm11, %v3184_v46  ;;  %3209 = vst.msk [vmem:[#allocation3 + $0x278] sm:$0xff] %vm1920_vm11, %v3185_v56  ;;  %v1865_v46 = vmax.f32 %v1797_v27, 0.0  ;;  %v11804_v12 = vld [vmem:[#allocation2 + $0x132] sm:$0xff]  ;;  %v11806_v18 = vld [vmem:[#allocation2 + $0x14a] sm:$0xff]  ;;  %v2036_v57 = vpack.c.bf16 %v2008_v54, %v2007_v13  ;;  %v11865_v34 = vsel %vm11824_vm0, 1.0, %v14290_v60 }
 0x167   : > { %14429 = vst [vmem:[#allocation38_spill] sm:$0xff] %v11784_v63  ;;  %2348 = vst.msk [vmem:[#allocation3 + $0x2d8] sm:$0xff] %vm1920_vm11, %v3185_v56  ;;  %v11808_v38 = vld [vmem:[#allocation2 + $0x151] sm:$0xff]  ;;  %v8772_v56 = vpop.f32.mrb[44].mxu1 }
 0x168   : > { %14430 = vst [vmem:[#allocation80_spill] sm:$0xff] %v11793_v24  ;;  %1963 = vst.msk [vmem:[#allocation2 + $0x169] sm:$0xff] %vm1920_vm11, %v1914_v20  ;;  %v1913_v32 = vmul.f32 %v11749_v15, %v1865_v46  ;;  %v2009_v27 = vld [vmem:[#allocation2 + $0x140] sm:$0xff]  ;;  %v2010_v17 = vld [vmem:[#allocation2 + $0x148] sm:$0xff]  ;;  %v1809_v49 = vpop.f32.mrb[45].mxu1  ;;  %v2613_v0 = vpack.c.bf16 %v11808_v38, %v11793_v24 }
 0x169   : > { %14431 = vst [vmem:[#allocation81_spill] sm:$0xff] %v11804_v12  ;;  %14432 = vst [vmem:[#allocation82_spill] sm:$0xff] %v11806_v18  ;;  %v11820_v20 = vld [vmem:[#allocation2 + $0x13a] sm:$0xff]  ;;  %v11832_v30 = vld [vmem:[#allocation2 + $0x142] sm:$0xff]  ;;  %v1810_v13 = vadd.f32 %v11454_v1, %v1809_v49  ;;  %v8773_v54 = vpop.f32.mrb[46].mxu1 }
 0x16a   : > { %14433 = vst [vmem:[#allocation83_spill] sm:$0xff] %v11808_v38  ;;  %1961 = vst.msk [vmem:[#allocation2 + $0x159] sm:$0xff] %vm1920_vm11, %v1912_v37  ;;  %v1818_v37 = vadd.f32 %v11454_v1, %v8772_v56  ;;  %v3186_v62 = vpack.c.bf16 %v11820_v20, %v11804_v12  ;;  %v1812_v38 = vpop.f32.mrb[47].mxu1  ;;  %v3187_v49 = vpack.c.bf16 %v11806_v18, %v11832_v30 }
 0x16b   : > { %14438 = vst [vmem:[#allocation84_spill] sm:$0xff] %v11820_v20  ;;  %1964 = vst.msk [vmem:[#allocation2 + $0x171] sm:$0xff] %vm1920_vm11, %v1915_v2  ;;  %v2037_v2 = vpack.c.bf16 %v2010_v17, %v2009_v27  ;;  %v1868_v27 = vmax.f32 %v1810_v13, 0.0  ;;  %v1813_v17 = vadd.f32 %v11454_v1, %v1812_v38  ;;  %v2011_v13 = vld [vmem:[#allocation2 + $0x150] sm:$0xff] }
 0x16c   : > { %2634 = vst.msk [vmem:[#allocation3 + $0x290] sm:$0xff] %vm1920_vm11, %v2610_v31  ;;  %2921 = vst.msk [vmem:[#allocation3 + $0x270] sm:$0xff] %vm1920_vm11, %v2035_v4  ;;  %v1870_v56 = vmax.f32 %v1818_v37, 0.0  ;;  %v11842_v4 = vsel %vm11812_vm7, 1.0, %v14290_v60  ;;  %v1821_v31 = vadd.f32 %v11454_v1, %v8773_v54  ;;  %v3292_v24 = vld [vmem:[#allocation3 + $0x250] sm:$0xff] }
 0x16d   : > { %14441 = vst [vmem:[#allocation85_spill] sm:$0xff] %v11832_v30  ;;  %1962 = vst.msk [vmem:[#allocation2 + $0x161] sm:$0xff] %vm1920_vm11, %v1913_v32  ;;  %v11849_v32 = vld [vmem:[#allocation2 + $0x141] sm:$0xff]  ;;  %8810 = vmatprep.mubr.msk.bf16.mxu0 %vm1920_vm11, %v3292_v24  ;;  %v11868_v1 = vld [vmem:[#allocation2 + $0x139] sm:$0xff]  ;;  %v1916_v24 = vmul.f32 %v11842_v4, %v1868_v27  ;;  %v1869_v38 = vmax.f32 %v1813_v17, 0.0 }
 0x16e   : > { %2060 = vst.msk [vmem:[#allocation3 + $0x2f8] sm:$0xff] %vm1920_vm11, %v2036_v57  ;;  %2922 = vst.msk [vmem:[#allocation3 + $0x298] sm:$0xff] %vm1920_vm11, %v2036_v57  ;;  %v3297_v37 = vld [vmem:[#allocation3 + $0x278] sm:$0xff]  ;;  %v1918_v57 = vmul.f32 %v11800_v11, %v1870_v56  ;;  %v2612_v56 = vpack.c.bf16 %v11849_v32, %v11868_v1 }
 0x16f   : > { %2637 = vst.msk [vmem:[#allocation3 + $0x308] sm:$0xff] %vm1920_vm11, %v2613_v0  ;;  %14442 = vst [vmem:[#allocation86_spill] sm:$0xff] %v11849_v32  ;;  %v1871_v0 = vmax.f32 %v1821_v31, 0.0  ;;  %8811 = vmatmul.mubr.msk.bf16.gmra.mrb[28].mxu0 %vm1920_vm11, %v3297_v37  ;;  %v11873_v54 = vld [vmem:[#allocation2 + $0x169] sm:$0xff] }
 0x170   : > { %3210 = vst.msk [vmem:[#allocation3 + $0x2a0] sm:$0xff] %vm1920_vm11, %v3186_v62  ;;  %2061 = vst.msk [vmem:[#allocation3 + $0x320] sm:$0xff] %vm1920_vm11, %v2037_v2 }
 0x171   : > { %2349 = vst.msk [vmem:[#allocation3 + $0x300] sm:$0xff] %vm1920_vm11, %v3186_v62  ;;  %3211 = vst.msk [vmem:[#allocation3 + $0x2c8] sm:$0xff] %vm1920_vm11, %v3187_v49  ;;  %v2012_v62 = vld [vmem:[#allocation2 + $0x158] sm:$0xff]  ;;  %v1919_v46 = vmul.f32 %v11854_v5, %v1871_v0 }
 0x172   : > { %14443 = vst [vmem:[#allocation87_spill] sm:$0xff] %v11868_v1  ;;  %2350 = vst.msk [vmem:[#allocation3 + $0x328] sm:$0xff] %vm1920_vm11, %v3187_v49  ;;  %v11879_v31 = vld [vmem:[#allocation2 + $0x152] sm:$0xff]  ;;  %v11881_v60 = vld [vmem:[#allocation2 + $0x16a] sm:$0xff]  ;;  %v1917_v49 = vmul.f32 %v11865_v34, %v1869_v38  ;;  %v2038_v17 = vpack.c.bf16 %v2012_v62, %v2011_v13 }
 0x173   : > { %14444 = vst [vmem:[#allocation88_spill] sm:$0xff] %v11873_v54  ;;  %1967 = vst.msk [vmem:[#allocation2 + $0x189] sm:$0xff] %vm1920_vm11, %v1918_v57  ;;  %v11883_v27 = vld [vmem:[#allocation2 + $0x171] sm:$0xff]  ;;  %v11902_v13 = vld [vmem:[#allocation2 + $0x159] sm:$0xff] }
 0x174   : > { %14445 = vst [vmem:[#allocation89_spill] sm:$0xff] %v11879_v31  ;;  %14446 = vst [vmem:[#allocation90_spill] sm:$0xff] %v11881_v60  ;;  %v2013_v37 = vld [vmem:[#allocation2 + $0x160] sm:$0xff]  ;;  %v2014_v18 = vld [vmem:[#allocation2 + $0x168] sm:$0xff]  ;;  %v2615_v57 = vpack.c.bf16 %v11883_v27, %v11873_v54 }
 0x175   : > { %14447 = vst [vmem:[#allocation91_spill] sm:$0xff] %v11883_v27  ;;  %1965 = vst.msk [vmem:[#allocation2 + $0x179] sm:$0xff] %vm1920_vm11, %v1916_v24  ;;  %v11887_v30 = vld [vmem:[#allocation2 + $0x15a] sm:$0xff]  ;;  %v11894_v0 = vld [vmem:[#allocation2 + $0x162] sm:$0xff]  ;;  %v2039_v38 = vpack.c.bf16 %v2014_v18, %v2013_v37 }
 0x176   : > { %14448 = vst [vmem:[#allocation92_spill] sm:$0xff] %v11887_v30  ;;  %1968 = vst.msk [vmem:[#allocation2 + $0x191] sm:$0xff] %vm1920_vm11, %v1919_v46  ;;  %v11896_v32 = vld [vmem:[#allocation2 + $0x161] sm:$0xff]  ;;  %v3188_v24 = vpack.c.bf16 %v11887_v30, %v11879_v31 }
 0x177   : > { %2636 = vst.msk [vmem:[#allocation3 + $0x2e0] sm:$0xff] %vm1920_vm11, %v2612_v56  ;;  %2923 = vst.msk [vmem:[#allocation3 + $0x2c0] sm:$0xff] %vm1920_vm11, %v2037_v2  ;;  %v3302_v62 = vld [vmem:[#allocation3 + $0x2a0] sm:$0xff]  ;;  %v3189_v2 = vpack.c.bf16 %v11881_v60, %v11894_v0  ;;  %v2614_v18 = vpack.c.bf16 %v11896_v32, %v11902_v13  ;;  %v2015_v56 = vld [vmem:[#allocation2 + $0x170] sm:$0xff] }
 0x178   : > { %14449 = vst [vmem:[#allocation93_spill] sm:$0xff] %v11894_v0  ;;  %14450 = vst [vmem:[#allocation94_spill] sm:$0xff] %v11896_v32  ;;  %8814 = vmatprep.mubr.msk.bf16.mxu0 %vm1920_vm11, %v3302_v62  ;;  %v3307_v46 = vld [vmem:[#allocation3 + $0x2c8] sm:$0xff]  ;;  %v14516_v1 = vld [vmem:[#allocation16_spill] sm:$0xff] }
 0x179   : > { %1966 = vst.msk [vmem:[#allocation2 + $0x181] sm:$0xff] %vm1920_vm11, %v1917_v49  ;;  %2062 = vst.msk [vmem:[#allocation3 + $0x348] sm:$0xff] %vm1920_vm11, %v2038_v17  ;;  %8815 = vmatmul.mubr.msk.bf16.gmra.mrb[32].mxu0 %vm1920_vm11, %v3307_v46  ;;  %v3167_v49 = vld [vmem:[#allocation2 + $0x19a] sm:$0xff] }
 0x17a   : > { %14451 = vst [vmem:[#allocation95_spill] sm:$0xff] %v11902_v13  ;;  %2924 = vst.msk [vmem:[#allocation3 + $0x2e8] sm:$0xff] %vm1920_vm11, %v2038_v17  ;;  %v11919_v17 = vld [vmem:[#allocation2 + $0x189] sm:$0xff] }
 0x17b   : > { %2639 = vst.msk [vmem:[#allocation3 + $0x358] sm:$0xff] %vm1920_vm11, %v2615_v57  ;;  %3212 = vst.msk [vmem:[#allocation3 + $0x2f0] sm:$0xff] %vm1920_vm11, %v3188_v24 }
 0x17c   : > { %2063 = vst.msk [vmem:[#allocation3 + $0x370] sm:$0xff] %vm1920_vm11, %v2039_v38  ;;  %2351 = vst.msk [vmem:[#allocation3 + $0x350] sm:$0xff] %vm1920_vm11, %v3188_v24  ;;  %v2016_v37 = vld [vmem:[#allocation2 + $0x178] sm:$0xff] }
 0x17d   : > { %2925 = vst.msk [vmem:[#allocation3 + $0x310] sm:$0xff] %vm1920_vm11, %v2039_v38  ;;  %3213 = vst.msk [vmem:[#allocation3 + $0x318] sm:$0xff] %vm1920_vm11, %v3189_v2  ;;  %v11921_v57 = vld [vmem:[#allocation2 + $0x172] sm:$0xff]  ;;  %v11927_v38 = vld [vmem:[#allocation2 + $0x18a] sm:$0xff] }
 0x17e   : > { %2352 = vst.msk [vmem:[#allocation3 + $0x378] sm:$0xff] %vm1920_vm11, %v3189_v2  ;;  %2638 = vst.msk [vmem:[#allocation3 + $0x330] sm:$0xff] %vm1920_vm11, %v2614_v18  ;;  %v11923_v24 = vld [vmem:[#allocation2 + $0x179] sm:$0xff]  ;;  %v11925_v62 = vld [vmem:[#allocation2 + $0x191] sm:$0xff]  ;;  %v2040_v2 = vpack.c.bf16 %v2016_v37, %v2015_v56 }
 0x17f   : > { %14452 = vst [vmem:[#allocation96_spill] sm:$0xff] %v11919_v17  ;;  %14453 = vst [vmem:[#allocation97_spill] sm:$0xff] %v11921_v57  ;;  %v11929_v27 = vld [vmem:[#allocation2 + $0x192] sm:$0xff]  ;;  %v2617_v32 = vpack.c.bf16 %v11925_v62, %v11919_v17  ;;  %v5512_v17 = vld [vmem:[#allocation2 + $0x2] sm:$0xff] }
 0x180   : > { %14454 = vst [vmem:[#allocation98_spill] sm:$0xff] %v11923_v24  ;;  %14455 = vst [vmem:[#allocation99_spill] sm:$0xff] %v11925_v62  ;;  %v2878_v60 = vld [vmem:[#allocation2 + $0x190] sm:$0xff]  ;;  %v2879_v54 = vld [vmem:[#allocation2 + $0x198] sm:$0xff]  ;;  %v3192_v18 = vpack.c.bf16 %v3167_v49, %v11929_v27 }
 0x181   : > { %14456 = vst [vmem:[#allocation100_spill] sm:$0xff] %v11927_v38  ;;  %14457 = vst [vmem:[#allocation101_spill] sm:$0xff] %v11929_v27  ;;  %v11931_v46 = vld [vmem:[#allocation2 + $0x17a] sm:$0xff]  ;;  %v11938_v30 = vld [vmem:[#allocation2 + $0x182] sm:$0xff]  ;;  %v2904_v56 = vpack.c.bf16 %v2879_v54, %v2878_v60 }
 0x182   : > { %14458 = vst [vmem:[#allocation102_spill] sm:$0xff] %v11931_v46  ;;  %v11936_v0 = vld [vmem:[#allocation2 + $0x181] sm:$0xff]  ;;  %14460 = vst [vmem:[#allocation104_spill] sm:$0xff] %v11938_v30  ;;  %v3190_v31 = vpack.c.bf16 %v11931_v46, %v11921_v57  ;;  %v3312_v20 = vld [vmem:[#allocation3 + $0x2f0] sm:$0xff]  ;;  %v3191_v49 = vpack.c.bf16 %v11927_v38, %v11938_v30 }
 0x183   : > { %14459 = vst [vmem:[#allocation103_spill] sm:$0xff] %v11936_v0  ;;  %v2876_v13 = vld [vmem:[#allocation2 + $0x180] sm:$0xff]  ;;  %2064 = vst.msk [vmem:[#allocation3 + $0x398] sm:$0xff] %vm1920_vm11, %v2040_v2  ;;  %v2877_v37 = vld [vmem:[#allocation2 + $0x188] sm:$0xff]  ;;  %v2616_v62 = vpack.c.bf16 %v11936_v0, %v11923_v24  ;;  %8818 = vmatprep.mubr.msk.bf16.mxu0 %vm1920_vm11, %v3312_v20 }
 0x184   : > { %2926 = vst.msk [vmem:[#allocation3 + $0x338] sm:$0xff] %vm1920_vm11, %v2040_v2  ;;  %3216 = vst.msk [vmem:[#allocation3 + $0x390] sm:$0xff] %vm1920_vm11, %v3192_v18  ;;  %v3317_v27 = vld [vmem:[#allocation3 + $0x318] sm:$0xff]  ;;  %v2903_v60 = vpack.c.bf16 %v2877_v37, %v2876_v13  ;;  %v14461_v13 = vld [vmem:[#allocation30_spill] sm:$0xff]  ;;  %v2453_v2 = vpop.permute.xlu1 %2452  ;;  %v2451_v18 = vpop.permute.xlu0 %2450 }
 0x185   : > { %2641 = vst.msk [vmem:[#allocation3 + $0x3a8] sm:$0xff] %vm1920_vm11, %v2617_v32  ;;  %3214 = vst.msk [vmem:[#allocation3 + $0x340] sm:$0xff] %vm1920_vm11, %v3190_v31  ;;  %8819 = vmatmul.mubr.msk.bf16.gmra.mrb[36].mxu0 %vm1920_vm11, %v3317_v27  ;;  %v9398_v27 = vld [vmem:[%s9583_s15 + $0x8] sm:$0xff]  }
 0x186   : > { %2353 = vst.msk [vmem:[#allocation3 + $0x3a0] sm:$0xff] %vm1920_vm11, %v3190_v31  ;;  %2928 = vst.msk [vmem:[#allocation3 + $0x388] sm:$0xff] %vm1920_vm11, %v2904_v56  ;;  %v9397_v31 = vld [vmem:[%s9583_s15] sm:$0xff]   ;;  %v9402_v56 = vld [vmem:[%s9583_s15 + $0x18] sm:$0xff]  }
 0x187   : > { %3215 = vst.msk [vmem:[#allocation3 + $0x368] sm:$0xff] %vm1920_vm11, %v3191_v49  ;;  %2640 = vst.msk [vmem:[#allocation3 + $0x380] sm:$0xff] %vm1920_vm11, %v2616_v62  ;;  %v9401_v62 = vld [vmem:[%s9583_s15 + $0x10] sm:$0xff]  }
 0x188   : > { %2927 = vst.msk [vmem:[#allocation3 + $0x360] sm:$0xff] %vm1920_vm11, %v2903_v60  ;;  %v2164_v37 = vpop.permute.xlu1 %2163  ;;  %v2162_v49 = vpop.permute.xlu0 %2161  ;;  %v9404_v60 = vld [vmem:[%s9583_s15 + $0x20] sm:$0xff]   ;;  %v5513_v0 = vld [vmem:[#allocation2 + $0xa] sm:$0xff] }
 0x189   : > { %2523 = vst.msk [vmem:[#allocation3 + $0x30] sm:$0xff] %vm2233_vm3, %v2453_v2  ;;  %2522 = vst.msk [vmem:[#allocation3 + $0x8] sm:$0xff] %vm2233_vm3, %v2451_v18  ;;  %v9406_v2 = vld [vmem:[%s9583_s15 + $0x30] sm:$0xff]   ;;  %v5560_v24 = vpack.c.bf16 %v5513_v0, %v5512_v17  ;;  %v9447_v0 = vld [vmem:[%s14035_s6 + $0x78] sm:$0xff]  }
 0x18a   : > { %2235 = vst.msk [vmem:[#allocation3 + $0x28] sm:$0xff] %vm2233_vm3, %v2164_v37  ;;  %2234 = vst.msk [vmem:[#allocation3] sm:$0xff] %vm2233_vm3, %v2162_v49  ;;  %v12239_v30 = vld [vmem:[#allocation2 + $0x2a] sm:$0xff] }
 0x18b   : > { %v3332_v54 = vld [vmem:[#allocation3 + $0x390] sm:$0xff] }
 0x18c   : > { %v3322_v20 = vld [vmem:[#allocation3 + $0x340] sm:$0xff] }
 0x18d   : > { %8822 = vmatprep.mubr.msk.bf16.mxu0 %vm1920_vm11, %v3322_v20  ;;  %v2455_v20 = vpop.permute.xlu0 %2454 }
 0x18e   : > { %v3327_v32 = vld [vmem:[#allocation3 + $0x368] sm:$0xff]  ;;  %2524 = vst.msk [vmem:[#allocation3 + $0x58] sm:$0xff] %vm2233_vm3, %v2455_v20 }
 0x18f   : > { %8823 = vmatmul.mubr.msk.bf16.gmra.mrb[40].mxu0 %vm1920_vm11, %v3327_v32  ;;  %v2166_v32 = vpop.permute.xlu1 %2165 }
 0x190   : > { %8826 = vmatprep.mubr.msk.bf16.mxu0 %vm1920_vm11, %v3332_v54  ;;  %v3219_v54 = vld [vmem:[#allocation3 + $0x8] sm:$0xff]  ;;  %2236 = vst.msk [vmem:[#allocation3 + $0x50] sm:$0xff] %vm2233_vm3, %v2166_v32  ;;  %v3224_v18 = vld [vmem:[#allocation3 + $0x30] sm:$0xff] }
 0x191   : > { %3737 = vmatprep.mubr.bf16.mxu1 %v3219_v54  ;;  %v3223_v54 = vld [vmem:[#allocation3 + $0x28] sm:$0xff]  ;;  %5584 = vst.msk [vmem:[#allocation3 + $0x8] sm:$0xff] %vm1920_vm11, %v5560_v24 }
 0x197   : > { %8827 = vmatmul.mubr.msk.bf16.gmra.mrb[44].mxu0 %vm1920_vm11, %v14461_v13  ;;  %v2457_v13 = vpop.permute.xlu0 %2456 }
 0x198   : > { %8834 = vmatprep.mubr.msk.bf16.mxu0 %vm1519_vm4, %v9397_v31  ;;  %v9405_v31 = vld [vmem:[%s9583_s15 + $0x28] sm:$0xff]   ;;  %2525 = vst.msk [vmem:[#allocation3 + $0x80] sm:$0xff] %vm2233_vm3, %v2457_v13  ;;  %v9408_v13 = vld [vmem:[%s9583_s15 + $0x40] sm:$0xff]  }
 0x19b   : > { %v2459_v37 = vpop.permute.xlu0 %2458 }
 0x19c   : > { %2526 = vst.msk [vmem:[#allocation3 + $0xa8] sm:$0xff] %vm2233_vm3, %v2459_v37  ;;  %v3228_v37 = vld [vmem:[#allocation3 + $0x50] sm:$0xff] }
 0x19f   : > { %8835 = vmatmul.mubr.msk.bf16.vlgmr.msra.gmra.mrb[48].mxu0 %vm1519_vm4, %v9398_v27  ;;  %v2168_v27 = vpop.permute.xlu1 %2167  ;;  %v2461_v20 = vpop.permute.xlu0 %2460 }
 0x1a0   : > { %8838 = vmatprep.mubr.msk.bf16.mxu0 %vm1519_vm4, %v9401_v62  ;;  %v3218_v62 = vld [vmem:[#allocation3] sm:$0xff]  ;;  %2237 = vst.msk [vmem:[#allocation3 + $0x78] sm:$0xff] %vm2233_vm3, %v2168_v27  ;;  %2527 = vst.msk [vmem:[#allocation3 + $0xd0] sm:$0xff] %vm2233_vm3, %v2461_v20 }
 0x1a1   : > { %3738 = vmatmul.mubr.bf16.vlgmr.msra.gmra.mrb[48].mxu1 %v3218_v62 }
 0x1a2   : > { %3745 = vmatprep.mubr.bf16.mxu1 %v3224_v18 }
 0x1a3   : > { %v2170_v49 = vpop.permute.xlu1 %2169  ;;  %v2463_v27 = vpop.permute.xlu0 %2462 }
 0x1a4   : > { %2238 = vst.msk [vmem:[#allocation3 + $0xa0] sm:$0xff] %vm2233_vm3, %v2170_v49  ;;  %2528 = vst.msk [vmem:[#allocation3 + $0xf8] sm:$0xff] %vm2233_vm3, %v2463_v27  ;;  %v9410_v49 = vld [vmem:[%s9583_s15 + $0x50] sm:$0xff]  }
 0x1a7   : > { %8839 = vmatmul.mubr.msk.bf16.gmra.mrb[52].mxu0 %vm1519_vm4, %v9402_v56  ;;  %v14462_v56 = vld [vmem:[#allocation34_spill] sm:$0xff]  ;;  %v2172_v32 = vpop.permute.xlu1 %2171  ;;  %v2465_v18 = vpop.permute.xlu0 %2464  ;;  %v3233_v27 = vld [vmem:[#allocation3 + $0x78] sm:$0xff] }
 0x1a8   : > { %8842 = vmatprep.mubr.msk.bf16.mxu0 %vm1519_vm4, %v9404_v60  ;;  %5296 = vst.msk [vmem:[#allocation3] sm:$0xff] %vm1920_vm11, %v14462_v56  ;;  %v9407_v60 = vld [vmem:[%s9583_s15 + $0x38] sm:$0xff]  }
 0x1a9   : > { %2239 = vst.msk [vmem:[#allocation3 + $0xc8] sm:$0xff] %vm2233_vm3, %v2172_v32  ;;  %3746 = vmatmul.mubr.bf16.gmra.mrb[52].mxu1 %v3223_v54  ;;  %2529 = vst.msk [vmem:[#allocation3 + $0x120] sm:$0xff] %vm2233_vm3, %v2465_v18  ;;  %v9411_v54 = vld [vmem:[%s9583_s15 + $0x58] sm:$0xff]  }
 0x1ab   : > { %v2174_v62 = vpop.permute.xlu1 %2173  ;;  %v2467_v20 = vpop.permute.xlu0 %2466 }
 0x1ac   : > { %2240 = vst.msk [vmem:[#allocation3 + $0xf0] sm:$0xff] %vm2233_vm3, %v2174_v62  ;;  %2530 = vst.msk [vmem:[#allocation3 + $0x148] sm:$0xff] %vm2233_vm3, %v2467_v20  ;;  %v9412_v62 = vld [vmem:[%s9583_s15 + $0x60] sm:$0xff]   ;;  %v3238_v20 = vld [vmem:[#allocation3 + $0xa0] sm:$0xff] }
 0x1af   : > { %8843 = vmatmul.mubr.msk.bf16.gmra.mrb[56].mxu0 %vm1519_vm4, %v9405_v31  ;;  %v3229_v31 = vld [vmem:[#allocation3 + $0x58] sm:$0xff]  ;;  %v2176_v56 = vpop.permute.xlu1 %2175 }
 0x1b0   : > { %8846 = vmatprep.mubr.msk.bf16.mxu0 %vm1519_vm4, %v9406_v2  ;;  %3753 = vmatprep.mubr.bf16.mxu1 %v3229_v31  ;;  %v9409_v2 = vld [vmem:[%s9583_s15 + $0x48] sm:$0xff]   ;;  %2241 = vst.msk [vmem:[#allocation3 + $0x118] sm:$0xff] %vm2233_vm3, %v2176_v56 }
 0x1b1   : > { %3754 = vmatmul.mubr.bf16.gmra.mrb[56].mxu1 %v3228_v37  ;;  %v9413_v37 = vld [vmem:[%s9583_s15 + $0x68] sm:$0xff]  }
 0x1b3   : > { %v2178_v32 = vpop.permute.xlu1 %2177 }
 0x1b4   : > { %2242 = vst.msk [vmem:[#allocation3 + $0x140] sm:$0xff] %vm2233_vm3, %v2178_v32  ;;  %v9414_v32 = vld [vmem:[%s9583_s15 + $0x70] sm:$0xff]  }
 0x1b7   : > { %8847 = vmatmul.mubr.msk.bf16.gmra.mrb[60].mxu0 %vm1519_vm4, %v9407_v60  ;;  %v3234_v60 = vld [vmem:[#allocation3 + $0x80] sm:$0xff]  ;;  %v2180_v31 = vpop.permute.xlu1 %2179 }
 0x1b8   : > { %8850 = vmatprep.mubr.msk.bf16.mxu0 %vm1519_vm4, %v9408_v13  ;;  %3761 = vmatprep.mubr.bf16.mxu1 %v3234_v60  ;;  %v2469_v13 = vpop.permute.xlu0 %2468  ;;  %2243 = vst.msk [vmem:[#allocation3 + $0x168] sm:$0xff] %vm2233_vm3, %v2180_v31 }
 0x1b9   : > { %2531 = vst.msk [vmem:[#allocation3 + $0x170] sm:$0xff] %vm2233_vm3, %v2469_v13  ;;  %3762 = vmatmul.mubr.bf16.gmra.mrb[60].mxu1 %v3233_v27  ;;  %v9415_v27 = vld [vmem:[%s9583_s15 + $0x78] sm:$0xff]  }
 0x1bb   : > { %v2182_v56 = vpop.permute.xlu1 %2181 }
 0x1bc   : > { %v2471_v18 = vpop.permute.xlu0 %2470  ;;  %2244 = vst.msk [vmem:[#allocation3 + $0x190] sm:$0xff] %vm2233_vm3, %v2182_v56  ;;  %v3249_v56 = vld [vmem:[#allocation3 + $0xf8] sm:$0xff] }
 0x1bd   : > { %2532 = vst.msk [vmem:[#allocation3 + $0x198] sm:$0xff] %vm2233_vm3, %v2471_v18  ;;  %v9416_v18 = vld [vmem:[%s9583_s15 + $0x80] sm:$0xff]  }
 0x1bf   : > { %8851 = vmatmul.mubr.msk.bf16.gmra.mrb[64].mxu0 %vm1519_vm4, %v9409_v2  ;;  %v3239_v2 = vld [vmem:[#allocation3 + $0xa8] sm:$0xff]  ;;  %v2184_v60 = vpop.permute.xlu1 %2183 }
 0x1c0   : > { %8854 = vmatprep.mubr.msk.bf16.mxu0 %vm1519_vm4, %v9410_v49  ;;  %3769 = vmatprep.mubr.bf16.mxu1 %v3239_v2  ;;  %v2473_v49 = vpop.permute.xlu0 %2472  ;;  %2245 = vst.msk [vmem:[#allocation3 + $0x1b8] sm:$0xff] %vm2233_vm3, %v2184_v60  ;;  %v3243_v2 = vld [vmem:[#allocation3 + $0xc8] sm:$0xff]  ;;  %v3248_v60 = vld [vmem:[#allocation3 + $0xf0] sm:$0xff] }
 0x1c1   : > { %2533 = vst.msk [vmem:[#allocation3 + $0x1c0] sm:$0xff] %vm2233_vm3, %v2473_v49  ;;  %3770 = vmatmul.mubr.bf16.gmra.mrb[64].mxu1 %v3238_v20  ;;  %v9417_v49 = vld [vmem:[%s9583_s15 + $0x88] sm:$0xff]   ;;  %v9418_v20 = vld [vmem:[%s9583_s15 + $0x90] sm:$0xff]  }
 0x1c3   : > { %v2186_v31 = vpop.permute.xlu1 %2185 }
 0x1c4   : > { %v2475_v13 = vpop.permute.xlu0 %2474  ;;  %2246 = vst.msk [vmem:[#allocation3 + $0x1e0] sm:$0xff] %vm2233_vm3, %v2186_v31  ;;  %v9420_v31 = vld [vmem:[%s9583_s15 + $0xa0] sm:$0xff]  }
 0x1c5   : > { %2534 = vst.msk [vmem:[#allocation3 + $0x1e8] sm:$0xff] %vm2233_vm3, %v2475_v13  ;;  %v3253_v13 = vld [vmem:[#allocation3 + $0x118] sm:$0xff] }
 0x1c7   : > { %8855 = vmatmul.mubr.msk.bf16.gmra.mrb[68].mxu0 %vm1519_vm4, %v9411_v54  ;;  %v3244_v54 = vld [vmem:[#allocation3 + $0xd0] sm:$0xff] }
 0x1c8   : > { %8858 = vmatprep.mubr.msk.bf16.mxu0 %vm1519_vm4, %v9412_v62  ;;  %3777 = vmatprep.mubr.bf16.mxu1 %v3244_v54  ;;  %v5417_v62 = vpop.permute.xlu1 %5416  ;;  %v9419_v54 = vld [vmem:[%s9583_s15 + $0x98] sm:$0xff]  }
 0x1c9   : > { %5488 = vst.msk [vmem:[#allocation3] sm:$0xff] %vm2233_vm3, %v5417_v62  ;;  %3778 = vmatmul.mubr.bf16.gmra.mrb[68].mxu1 %v3243_v2  ;;  %v9421_v62 = vld [vmem:[%s9583_s15 + $0xa8] sm:$0xff]  }
 0x1ca   : > { %3785 = vmatprep.mubr.bf16.mxu1 %v3249_v56  ;;  %v3258_v2 = vld [vmem:[#allocation3 + $0x140] sm:$0xff]  ;;  %v3264_v56 = vld [vmem:[#allocation3 + $0x170] sm:$0xff] }
 0x1cf   : > { %8859 = vmatmul.mubr.msk.bf16.gmra.mrb[72].mxu0 %vm1519_vm4, %v9413_v37  ;;  %v2188_v37 = vpop.permute.xlu1 %2187 }
 0x1d0   : > { %8862 = vmatprep.mubr.msk.bf16.mxu0 %vm1519_vm4, %v9414_v32  ;;  %2247 = vst.msk [vmem:[#allocation3 + $0x208] sm:$0xff] %vm2233_vm3, %v2188_v37  ;;  %v3254_v32 = vld [vmem:[#allocation3 + $0x120] sm:$0xff]  ;;  %v9423_v37 = vld [vmem:[%s9583_s15 + $0xb8] sm:$0xff]  }
 0x1d1   : > { %3786 = vmatmul.mubr.bf16.gmra.mrb[72].mxu1 %v3248_v60  ;;  %v3269_v60 = vld [vmem:[#allocation3 + $0x198] sm:$0xff] }
 0x1d2   : > { %3793 = vmatprep.mubr.bf16.mxu1 %v3254_v32  ;;  %v3274_v32 = vld [vmem:[#allocation3 + $0x1c0] sm:$0xff] }
 0x1d7   : > { %8863 = vmatmul.mubr.msk.bf16.gmra.mrb[76].mxu0 %vm1519_vm4, %v9415_v27  ;;  %v3259_v27 = vld [vmem:[#allocation3 + $0x148] sm:$0xff] }
 0x1d8   : > { %8866 = vmatprep.mubr.msk.bf16.mxu0 %vm1519_vm4, %v9416_v18  ;;  %v9422_v18 = vld [vmem:[%s9583_s15 + $0xb0] sm:$0xff]  }
 0x1d9   : > { %3794 = vmatmul.mubr.bf16.gmra.mrb[76].mxu1 %v3253_v13  ;;  %v3279_v13 = vld [vmem:[#allocation3 + $0x1e8] sm:$0xff] }
 0x1da   : > { %3801 = vmatprep.mubr.bf16.mxu1 %v3259_v27 }
 0x1df   : > { %8867 = vmatmul.mubr.msk.bf16.gmra.mrb[80].mxu0 %vm1519_vm4, %v9417_v49  ;;  %v3263_v49 = vld [vmem:[#allocation3 + $0x168] sm:$0xff] }
 0x1e0   : > { %8870 = vmatprep.mubr.msk.bf16.mxu0 %vm1519_vm4, %v9418_v20  ;;  %v3268_v20 = vld [vmem:[#allocation3 + $0x190] sm:$0xff] }
 0x1e1   : > { %3802 = vmatmul.mubr.bf16.gmra.mrb[80].mxu1 %v3258_v2 }
 0x1e2   : > { %3809 = vmatprep.mubr.bf16.mxu1 %v3264_v56 }
 0x1e7   : > { %8871 = vmatmul.mubr.msk.bf16.gmra.mrb[84].mxu0 %vm1519_vm4, %v9419_v54  ;;  %v3273_v54 = vld [vmem:[#allocation3 + $0x1b8] sm:$0xff] }
 0x1e8   : > { %8874 = vmatprep.mubr.msk.bf16.mxu0 %vm1519_vm4, %v9420_v31  ;;  %v3278_v31 = vld [vmem:[#allocation3 + $0x1e0] sm:$0xff] }
 0x1e9   : > { %3810 = vmatmul.mubr.bf16.gmra.mrb[84].mxu1 %v3263_v49 }
 0x1ea   : > { %3817 = vmatprep.mubr.bf16.mxu1 %v3269_v60 }
 0x1ef   : > { %8875 = vmatmul.mubr.msk.bf16.gmra.mrb[88].mxu0 %vm1519_vm4, %v9421_v62 }
 0x1f0   : > { %8878 = vmatprep.mubr.msk.bf16.mxu0 %vm1519_vm4, %v9422_v18 }
 0x1f1   : > { %3818 = vmatmul.mubr.bf16.gmra.mrb[88].mxu1 %v3268_v20  ;;  %v12041_v27 = vpop.f32.mrb[0].mxu0  ;;  %v9424_v20 = vld [vmem:[%s14035_s6 + $0x80] sm:$0xff]  }
 0x1f2   : > { %3825 = vmatprep.mubr.bf16.mxu1 %v3274_v32  ;;  %14463 = vst [vmem:[#allocation30_spill] sm:$0xff] %v12041_v27  ;;  %v12043_v62 = vpop.f32.mrb[1].mxu0  ;;  %v9425_v32 = vld [vmem:[%s14035_s6] sm:$0xff]   ;;  %3931 = vmatpush1.bf16.msra.mxu1 %v9424_v20 }
 0x1f3   : > { %14464 = vst [vmem:[#allocation34_spill] sm:$0xff] %v12043_v62  ;;  %v12045_v2 = vpop.f32.mrb[2].mxu0  ;;  %6960 = vmatpush1.bf16.msra.mxu0 %v9425_v32  ;;  %3932 = vmatprep.subr.bf16.mxu1 %v14271_v43 }
 0x1f4   : > { %14465 = vst [vmem:[#allocation105_spill] sm:$0xff] %v12045_v2  ;;  %v12047_v18 = vpop.f32.mrb[3].mxu0  ;;  %6961 = vmatprep.subr.bf16.mxu0 %v14271_v43 }
 0x1f5   : > { %14466 = vst [vmem:[#allocation106_spill] sm:$0xff] %v12047_v18 }
 0x1f7   : > { %8879 = vmatmul.mubr.msk.bf16.gmra.mrb[92].mxu0 %vm1519_vm4, %v9423_v37  ;;  %vm4476_vm4 = vcmask 1046528  }
 0x1f9   : > { %3826 = vmatmul.mubr.bf16.gmra.mrb[92].mxu1 %v3273_v54 }
 0x1fa   : > { %3833 = vmatprep.mubr.bf16.mxu1 %v3279_v13 }
 0x1fd   : > { %v12049_v56 = vpop.f32.mrb[4].mxu0 }
 0x1fe   : > { %14467 = vst [vmem:[#allocation107_spill] sm:$0xff] %v12049_v56  ;;  %v12051_v37 = vpop.f32.mrb[5].mxu0  ;;  %v9426_v56 = vld [vmem:[%s14035_s6 + $0x8] sm:$0xff]  }
 0x1ff   : > { %14468 = vst [vmem:[#allocation108_spill] sm:$0xff] %v12051_v37  ;;  %v12053_v49 = vpop.f32.mrb[6].mxu0  ;;  %6962 = vmatpush1.bf16.msra.mxu0 %v9426_v56  ;;  %v9446_v37 = vld [vmem:[%s14035_s6 + $0x70] sm:$0xff]  }
 0x200   : > { %14469 = vst [vmem:[#allocation109_spill] sm:$0xff] %v12053_v49  ;;  %v12055_v60 = vpop.f32.mrb[7].mxu0  ;;  %6963 = vmatprep.subr.bf16.mxu0 %v14271_v43 }
 0x201   : > { %3834 = vmatmul.mubr.bf16.gmra.mrb[96].mxu1 %v3278_v31  ;;  %14470 = vst [vmem:[#allocation110_spill] sm:$0xff] %v12055_v60 }
 0x207   : > { %v12063_v54 = vpop.f32.mrb[8].mxu0 }
 0x208   : > { %14471 = vst [vmem:[#allocation111_spill] sm:$0xff] %v12063_v54  ;;  %v12065_v13 = vpop.f32.mrb[9].mxu0 }
 0x209   : > { %14472 = vst [vmem:[#allocation112_spill] sm:$0xff] %v12065_v13  ;;  %v12069_v31 = vpop.f32.mrb[10].mxu0  ;;  %v9427_v13 = vld [vmem:[%s14035_s6 + $0x88] sm:$0xff]  }
 0x20a   : > { %14473 = vst [vmem:[#allocation113_spill] sm:$0xff] %v12069_v31  ;;  %v12071_v49 = vpop.f32.mrb[11].mxu0  ;;  %v9428_v31 = vld [vmem:[%s14035_s6 + $0x10] sm:$0xff]   ;;  %3933 = vmatpush1.bf16.msra.mxu1 %v9427_v13 }
 0x20b   : > { %14474 = vst [vmem:[#allocation114_spill] sm:$0xff] %v12071_v49  ;;  %6964 = vmatpush1.bf16.msra.mxu0 %v9428_v31  ;;  %3934 = vmatprep.subr.bf16.mxu1 %v14271_v43  ;;  %v9430_v13 = vld [vmem:[%s14035_s6 + $0x90] sm:$0xff]   ;;  %v9431_v31 = vld [vmem:[%s14035_s6 + $0x20] sm:$0xff]  }
 0x20c   : > { %6965 = vmatprep.subr.bf16.mxu0 %v14271_v43 }
 0x20e   : > { %3935 = vmatpush1.bf16.msra.mxu1 %v9430_v13 }
 0x20f   : > { %3936 = vmatprep.subr.bf16.mxu1 %v14271_v43 }
 0x215   : > { %v12077_v54 = vpop.f32.mrb[12].mxu0 }
 0x216   : > { %14475 = vst [vmem:[#allocation115_spill] sm:$0xff] %v12077_v54  ;;  %v12079_v20 = vpop.f32.mrb[13].mxu0 }
 0x217   : > { %14476 = vst [vmem:[#allocation116_spill] sm:$0xff] %v12079_v20  ;;  %v12081_v32 = vpop.f32.mrb[14].mxu0 }
 0x218   : > { %14477 = vst [vmem:[#allocation117_spill] sm:$0xff] %v12081_v32  ;;  %v12089_v49 = vpop.f32.mrb[15].mxu0  ;;  %v9429_v32 = vld [vmem:[%s14035_s6 + $0x18] sm:$0xff]  }
 0x219   : > { %14478 = vst [vmem:[#allocation118_spill] sm:$0xff] %v12089_v49  ;;  %6966 = vmatpush1.bf16.msra.mxu0 %v9429_v32 }
 0x21a   : > { %6967 = vmatprep.subr.bf16.mxu0 %v14271_v43 }
 0x21d   : > { %6968 = vmatpush1.bf16.msra.mxu0 %v9431_v31 }
 0x21e   : > { %v12093_v56 = vpop.f32.mrb[16].mxu0  ;;  %6969 = vmatprep.subr.bf16.mxu0 %v14271_v43 }
 0x21f   : > { %14479 = vst [vmem:[#allocation119_spill] sm:$0xff] %v12093_v56  ;;  %v12098_v54 = vpop.f32.mrb[17].mxu0 }
 0x220   : > { %14480 = vst [vmem:[#allocation120_spill] sm:$0xff] %v12098_v54  ;;  %v12100_v20 = vpop.f32.mrb[18].mxu0 }
 0x221   : > { %14481 = vst [vmem:[#allocation121_spill] sm:$0xff] %v12100_v20  ;;  %v12102_v60 = vpop.f32.mrb[19].mxu0 }
 0x222   : > { %14482 = vst [vmem:[#allocation122_spill] sm:$0xff] %v12102_v60  ;;  %v9432_v60 = vld [vmem:[%s14035_s6 + $0x28] sm:$0xff]  }
 0x223   : > { %6970 = vmatpush1.bf16.msra.mxu0 %v9432_v60 }
 0x224   : > { %6971 = vmatprep.subr.bf16.mxu0 %v14271_v43 }
 0x22a   : > { %v12111_v56 = vpop.f32.mrb[20].mxu0 }
 0x22b   : > { %14483 = vst [vmem:[#allocation123_spill] sm:$0xff] %v12111_v56  ;;  %v12113_v54 = vpop.f32.mrb[21].mxu0 }
 0x22c   : > { %14484 = vst [vmem:[#allocation124_spill] sm:$0xff] %v12113_v54  ;;  %v12117_v32 = vpop.f32.mrb[22].mxu0  ;;  %v9433_v54 = vld [vmem:[%s14035_s6 + $0x98] sm:$0xff]  }
 0x22d   : > { %14485 = vst [vmem:[#allocation125_spill] sm:$0xff] %v12117_v32  ;;  %v12119_v20 = vpop.f32.mrb[23].mxu0  ;;  %v9434_v32 = vld [vmem:[%s14035_s6 + $0x30] sm:$0xff]   ;;  %3937 = vmatpush1.bf16.msra.mxu1 %v9433_v54  ;;  %v9436_v54 = vld [vmem:[%s14035_s6 + $0xa0] sm:$0xff]  }
 0x22e   : > { %14486 = vst [vmem:[#allocation126_spill] sm:$0xff] %v12119_v20  ;;  %6972 = vmatpush1.bf16.msra.mxu0 %v9434_v32  ;;  %3938 = vmatprep.subr.bf16.mxu1 %v14271_v43  ;;  %v9437_v32 = vld [vmem:[%s14035_s6 + $0x40] sm:$0xff]  }
 0x22f   : > { %6973 = vmatprep.subr.bf16.mxu0 %v14271_v43 }
 0x231   : > { %3939 = vmatpush1.bf16.msra.mxu1 %v9436_v54 }
 0x232   : > { %3940 = vmatprep.subr.bf16.mxu1 %v14271_v43 }
 0x235   : > { %v12125_v56 = vpop.f32.mrb[24].mxu0 }
 0x236   : > { %14487 = vst [vmem:[#allocation127_spill] sm:$0xff] %v12125_v56  ;;  %v12127_v13 = vpop.f32.mrb[25].mxu0 }
 0x237   : > { %14488 = vst [vmem:[#allocation128_spill] sm:$0xff] %v12127_v13  ;;  %v12129_v31 = vpop.f32.mrb[26].mxu0 }
 0x238   : > { %14489 = vst [vmem:[#allocation129_spill] sm:$0xff] %v12129_v31  ;;  %v12137_v20 = vpop.f32.mrb[27].mxu0  ;;  %v9435_v31 = vld [vmem:[%s14035_s6 + $0x38] sm:$0xff]  }
 0x239   : > { %14490 = vst [vmem:[#allocation130_spill] sm:$0xff] %v12137_v20  ;;  %6974 = vmatpush1.bf16.msra.mxu0 %v9435_v31 }
 0x23a   : > { %6975 = vmatprep.subr.bf16.mxu0 %v14271_v43 }
 0x23d   : > { %6976 = vmatpush1.bf16.msra.mxu0 %v9437_v32 }
 0x23e   : > { %6977 = vmatprep.subr.bf16.mxu0 %v14271_v43 }
 0x242   : > { %v12141_v60 = vpop.f32.mrb[28].mxu0 }
 0x243   : > { %14491 = vst [vmem:[#allocation131_spill] sm:$0xff] %v12141_v60  ;;  %v12146_v56 = vpop.f32.mrb[29].mxu0 }
 0x244   : > { %14492 = vst [vmem:[#allocation132_spill] sm:$0xff] %v12146_v56  ;;  %v12148_v13 = vpop.f32.mrb[30].mxu0 }
 0x245   : > { %14493 = vst [vmem:[#allocation133_spill] sm:$0xff] %v12148_v13  ;;  %v12150_v49 = vpop.f32.mrb[31].mxu0 }
 0x246   : > { %14494 = vst [vmem:[#allocation134_spill] sm:$0xff] %v12150_v49  ;;  %v9438_v49 = vld [vmem:[%s14035_s6 + $0x48] sm:$0xff]  }
 0x247   : > { %6978 = vmatpush1.bf16.msra.mxu0 %v9438_v49 }
 0x248   : > { %6979 = vmatprep.subr.bf16.mxu0 %v14271_v43 }
 0x24c   : > { %v12159_v60 = vpop.f32.mrb[32].mxu0 }
 0x24d   : > { %14495 = vst [vmem:[#allocation135_spill] sm:$0xff] %v12159_v60  ;;  %v12161_v56 = vpop.f32.mrb[33].mxu0 }
 0x24e   : > { %14496 = vst [vmem:[#allocation136_spill] sm:$0xff] %v12161_v56  ;;  %v12165_v31 = vpop.f32.mrb[34].mxu0  ;;  %v9439_v56 = vld [vmem:[%s14035_s6 + $0xa8] sm:$0xff]  }
 0x24f   : > { %14497 = vst [vmem:[#allocation137_spill] sm:$0xff] %v12165_v31  ;;  %v12167_v13 = vpop.f32.mrb[35].mxu0  ;;  %v9440_v31 = vld [vmem:[%s14035_s6 + $0x50] sm:$0xff]   ;;  %3941 = vmatpush1.bf16.msra.mxu1 %v9439_v56 }
 0x250   : > { %14498 = vst [vmem:[#allocation138_spill] sm:$0xff] %v12167_v13  ;;  %6980 = vmatpush1.bf16.msra.mxu0 %v9440_v31  ;;  %3942 = vmatprep.subr.bf16.mxu1 %v14271_v43  ;;  %v9442_v56 = vld [vmem:[%s14035_s6 + $0xb0] sm:$0xff]   ;;  %v9443_v31 = vld [vmem:[%s14035_s6 + $0x60] sm:$0xff]  }
 0x251   : > { %6981 = vmatprep.subr.bf16.mxu0 %v14271_v43 }
 0x253   : > { %3943 = vmatpush1.bf16.msra.mxu1 %v9442_v56 }
 0x254   : > { %3944 = vmatprep.subr.bf16.mxu1 %v14271_v43 }
 0x258   : > { %v12173_v60 = vpop.f32.mrb[36].mxu0 }
 0x259   : > { %14499 = vst [vmem:[#allocation139_spill] sm:$0xff] %v12173_v60  ;;  %v12175_v54 = vpop.f32.mrb[37].mxu0 }
 0x25a   : > { %14500 = vst [vmem:[#allocation140_spill] sm:$0xff] %v12175_v54  ;;  %v12177_v32 = vpop.f32.mrb[38].mxu0 }
 0x25b   : > { %14501 = vst [vmem:[#allocation141_spill] sm:$0xff] %v12177_v32  ;;  %v12185_v13 = vpop.f32.mrb[39].mxu0  ;;  %v9441_v32 = vld [vmem:[%s14035_s6 + $0x58] sm:$0xff]  }
 0x25c   : > { %14502 = vst [vmem:[#allocation142_spill] sm:$0xff] %v12185_v13  ;;  %6982 = vmatpush1.bf16.msra.mxu0 %v9441_v32 }
 0x25d   : > { %6983 = vmatprep.subr.bf16.mxu0 %v14271_v43 }
 0x260   : > { %6984 = vmatpush1.bf16.msra.mxu0 %v9443_v31 }
 0x261   : > { %6985 = vmatprep.subr.bf16.mxu0 %v14271_v43 }
 0x262   : > { %v12189_v49 = vpop.f32.mrb[40].mxu0 }
 0x263   : > { %14503 = vst [vmem:[#allocation143_spill] sm:$0xff] %v12189_v49  ;;  %v12194_v60 = vpop.f32.mrb[41].mxu0 }
 0x264   : > { %14504 = vst [vmem:[#allocation144_spill] sm:$0xff] %v12194_v60  ;;  %v12196_v54 = vpop.f32.mrb[42].mxu0 }
 0x265   : > { %14505 = vst [vmem:[#allocation145_spill] sm:$0xff] %v12196_v54  ;;  %v12198_v20 = vpop.f32.mrb[43].mxu0 }
 0x266   : > { %14506 = vst [vmem:[#allocation146_spill] sm:$0xff] %v12198_v20  ;;  %v9444_v20 = vld [vmem:[%s14035_s6 + $0x68] sm:$0xff]  }
 0x267   : > { %6986 = vmatpush1.bf16.msra.mxu0 %v9444_v20 }
 0x268   : > { %6987 = vmatprep.subr.bf16.mxu0 %v14271_v43 }
 0x26a   : > { %v12207_v49 = vpop.f32.mrb[44].mxu0 }
 0x26b   : > { %14507 = vst [vmem:[#allocation147_spill] sm:$0xff] %v12207_v49  ;;  %v12209_v60 = vpop.f32.mrb[45].mxu0  ;;  %v12223_v49 = vld [vmem:[%s14034_s5] ss:$0 sm:$0xff]  ;;  %6988 = vmatpush1.bf16.msra.mxu0 %v9446_v37 }
 0x26c   : > { %14508 = vst [vmem:[#allocation148_spill] sm:$0xff] %v12209_v60  ;;  %v12213_v32 = vpop.f32.mrb[46].mxu0  ;;  %6989 = vmatprep.subr.bf16.mxu0 %v14271_v43 }
 0x26d   : > { %14509 = vst [vmem:[#allocation149_spill] sm:$0xff] %v12213_v32  ;;  %v12215_v54 = vpop.f32.mrb[47].mxu0 }
 0x26e   : > { %14510 = vst [vmem:[#allocation150_spill] sm:$0xff] %v12215_v54  ;;  %v9445_v54 = vld [vmem:[%s14035_s6 + $0xb8] sm:$0xff]  }
 0x26f   : > { %3945 = vmatpush1.bf16.msra.mxu1 %v9445_v54  ;;  %v14514_v54 = vld [vmem:[#allocation14_spill] sm:$0xff]  ;;  %6990 = vmatpush1.bf16.msra.mxu0 %v9447_v0  ;;  %v2093_v0 = vld [vmem:[#allocation2 + $0xe1] sm:$0xff] }
 0x270   : > { %3946 = vmatprep.subr.bf16.mxu1 %v14271_v43  ;;  %7184 = vmatprep.subr.bf16.mxu0 %v14271_v43 }
 0x272   : > { %v8836_v56 = vpop.f32.mrb[48].mxu0 }
 0x273   : > { %v4898_v31 = vadd.f32 %v8836_v56, %v12223_v49  ;;  %v4889_v60 = vpop.f32.mrb[49].mxu0  ;;  %v14511_v56 = vld [vmem:[#allocation11_spill] sm:$0xff] }
 0x274   : > { %v4890_v32 = vadd.f32 %v12223_v49, %v4889_v60  ;;  %v8837_v13 = vpop.f32.mrb[50].mxu0 }
 0x275   : > { %v5082_v2 = vmax.f32 %v4898_v31, 0.0  ;;  %v4901_v20 = vadd.f32 %v8837_v13, %v12223_v49  ;;  %v4892_v27 = vpop.f32.mrb[51].mxu0  ;;  %v12241_v31 = vld [vmem:[#allocation2 + $0x22] sm:$0xff] }
 0x276   : > { %v5080_v18 = vmax.f32 %v4890_v32, 0.0  ;;  %v4893_v62 = vadd.f32 %v12223_v49, %v4892_v27  ;;  %v14512_v13 = vld [vmem:[#allocation12_spill] sm:$0xff] }
 0x277   : > { %v5130_v60 = vmul.f32 %v14511_v56, %v5082_v2  ;;  %v5083_v38 = vmax.f32 %v4901_v20, 0.0  ;;  %v12244_v27 = vld [vmem:[#allocation2 + $0x1a] sm:$0xff]  ;;  %v14513_v2 = vld [vmem:[#allocation13_spill] sm:$0xff] }
 0x278   : > { %v5128_v46 = vmul.f32 %v14512_v13, %v5080_v18  ;;  %v5081_v32 = vmax.f32 %v4893_v62, 0.0 }
 0x279   : > { %5178 = vst.msk [vmem:[#allocation2 + $0x29] sm:$0xff] %vm1920_vm11, %v5130_v60  ;;  %v5131_v37 = vmul.f32 %v14513_v2, %v5083_v38 }
 0x27a   : > { %5176 = vst.msk [vmem:[#allocation2 + $0x19] sm:$0xff] %vm1920_vm11, %v5128_v46  ;;  %v5129_v20 = vmul.f32 %v14514_v54, %v5081_v32  ;;  %v8840_v56 = vpop.f32.mrb[52].mxu0  ;;  %v14515_v32 = vld [vmem:[#allocation15_spill] sm:$0xff] }
 0x27b   : > { %5179 = vst.msk [vmem:[#allocation2 + $0x31] sm:$0xff] %vm1920_vm11, %v5131_v37  ;;  %v4914_v57 = vadd.f32 %v8840_v56, %v12223_v49  ;;  %v4905_v18 = vpop.f32.mrb[53].mxu0  ;;  %v5322_v54 = vld [vmem:[#allocation2 + $0x11] sm:$0xff] }
 0x27c   : > { %5177 = vst.msk [vmem:[#allocation2 + $0x21] sm:$0xff] %vm1920_vm11, %v5129_v20  ;;  %v4906_v17 = vadd.f32 %v12223_v49, %v4905_v18  ;;  %v8841_v38 = vpop.f32.mrb[54].mxu0  ;;  %v5226_v56 = vld [vmem:[#allocation2 + $0x10] sm:$0xff] }
 0x27d   : > { %v5086_v46 = vmax.f32 %v4914_v57, 0.0  ;;  %v4917_v62 = vadd.f32 %v8841_v38, %v12223_v49  ;;  %v4908_v60 = vpop.f32.mrb[55].mxu0  ;;  %v14517_v57 = vld [vmem:[#allocation17_spill] sm:$0xff] }
 0x27e   : > { %v5084_v24 = vmax.f32 %v4906_v17, 0.0  ;;  %v4909_v13 = vadd.f32 %v12223_v49, %v4908_v60  ;;  %v14518_v17 = vld [vmem:[#allocation18_spill] sm:$0xff] }
 0x27f   : > { %v5134_v2 = vmul.f32 %v14515_v32, %v5086_v46  ;;  %v5087_v37 = vmax.f32 %v4917_v62, 0.0  ;;  %v9448_v62 = vld [vmem:[%s14035_s6 + $0xc0] sm:$0xff]   ;;  %v2094_v32 = vld [vmem:[#allocation2 + $0xe9] sm:$0xff] }
 0x280   : > { %v5132_v20 = vmul.f32 %v14516_v1, %v5084_v24  ;;  %v5085_v12 = vmax.f32 %v4909_v13, 0.0  ;;  %3947 = vmatpush1.bf16.msra.mxu1 %v9448_v62 }
 0x281   : > { %5182 = vst.msk [vmem:[#allocation2 + $0x49] sm:$0xff] %vm1920_vm11, %v5134_v2  ;;  %v5135_v18 = vmul.f32 %v14517_v57, %v5087_v37  ;;  %v5323_v38 = vld [vmem:[#allocation2 + $0x19] sm:$0xff]  ;;  %3948 = vmatprep.subr.bf16.mxu1 %v14271_v43 }
 0x282   : > { %v5608_v35 = vld [vmem:[#allocation2 + $0x18] sm:$0xff]  ;;  %5180 = vst.msk [vmem:[#allocation2 + $0x39] sm:$0xff] %vm1920_vm11, %v5132_v20  ;;  %v5133_v60 = vmul.f32 %v14518_v17, %v5085_v12  ;;  %v8844_v63 = vpop.f32.mrb[56].mxu0  ;;  %v5369_v61 = vpack.c.bf16 %v5323_v38, %v5322_v54  ;;  %v2380_v20 = vld [vmem:[#allocation2 + $0xe8] sm:$0xff] }
 0x283   : > { %v5273_v46 = vpack.c.bf16 %v5608_v35, %v5226_v56  ;;  %5183 = vst.msk [vmem:[#allocation2 + $0x51] sm:$0xff] %vm1920_vm11, %v5135_v18  ;;  %v4930_v1 = vadd.f32 %v8844_v63, %v12223_v49  ;;  %v4921_v24 = vpop.f32.mrb[57].mxu0  ;;  %v5609_v13 = vld [vmem:[#allocation2 + $0x20] sm:$0xff]  ;;  %v12272_v2 = vld [vmem:[#allocation2 + $0x28] sm:$0xff]  ;;  %v2127_v56 = vpack.c.bf16 %v2094_v32, %v2093_v0  ;;  %v5514_v57 = vld [vmem:[#allocation2 + $0x12] sm:$0xff] }
 0x284   : > { %5181 = vst.msk [vmem:[#allocation2 + $0x41] sm:$0xff] %vm1920_vm11, %v5133_v60  ;;  %v4922_v12 = vadd.f32 %v12223_v49, %v4921_v24  ;;  %v8845_v37 = vpop.f32.mrb[58].mxu0  ;;  %5418 = vrot.lane.b32.xlu1 %v5369_v61, %s9516_s29  ;;  %v5656_v54 = vpack.c.bf16 %v5609_v13, %v5608_v35  ;;  %v12278_v18 = vld [vmem:[#allocation2 + $0x1a] sm:$0xff]  ;;  %v5274_v60 = vpack.c.bf16 %v12272_v2, %v5609_v13  ;;  %v12283_v6 = vld [vmem:[#allocation2 + $0x22] sm:$0xff]  ;;  %v12285_v61 = vld [vmem:[#allocation2 + $0x2a] sm:$0xff] }
 0x285   : > { %5297 = vst.msk [vmem:[#allocation3 + $0x28] sm:$0xff] %vm1920_vm11, %v5273_v46  ;;  %v5090_v63 = vmax.f32 %v4930_v1, 0.0  ;;  %v4933_v38 = vadd.f32 %v8845_v37, %v12223_v49  ;;  %v4924_v17 = vpop.f32.mrb[59].mxu0  ;;  %v5561_v24 = vpack.c.bf16 %v12278_v18, %v5514_v57  ;;  %14519 = vst [vmem:[#allocation11_spill] sm:$0xff] %v12285_v61  ;;  %v5562_v46 = vpack.c.bf16 %v12285_v61, %v12283_v6  ;;  %v5324_v32 = vld [vmem:[#allocation2 + $0x21] sm:$0xff]  ;;  %v5325_v57 = vld [vmem:[#allocation2 + $0x29] sm:$0xff] }
 0x286   : > { %v5088_v35 = vmax.f32 %v4922_v12, 0.0  ;;  %v4925_v0 = vadd.f32 %v12223_v49, %v4924_v17  ;;  %5704 = vrot.lane.b32.xlu0 %v5656_v54, %s9516_s29  ;;  %5298 = vst.msk [vmem:[#allocation3 + $0x50] sm:$0xff] %vm1920_vm11, %v5274_v60  ;;  %v2415_v54 = vpack.c.bf16 %v2381_v51, %v2380_v20  ;;  %v14520_v17 = vld [vmem:[#allocation19_spill] sm:$0xff]  ;;  %v14521_v60 = vld [vmem:[#allocation20_spill] sm:$0xff] }
 0x287   : > { %v5138_v13 = vmul.f32 %v10064_v42, %v5090_v63  ;;  %v5091_v62 = vmax.f32 %v4933_v38, 0.0  ;;  %5585 = vst.msk [vmem:[#allocation3 + $0x30] sm:$0xff] %vm1920_vm11, %v5561_v24  ;;  %5586 = vst.msk [vmem:[#allocation3 + $0x58] sm:$0xff] %vm1920_vm11, %v5562_v46  ;;  %v5611_v42 = vld [vmem:[#allocation2 + $0x30] sm:$0xff] }
 0x288   : > { %v5136_v12 = vmul.f32 %v10082_v55, %v5088_v35  ;;  %v5089_v37 = vmax.f32 %v4925_v0, 0.0  ;;  %2189 = vrot.lane.b32.xlu1 %v2127_v56, %s9516_s29  ;;  %v5230_v63 = vld [vmem:[#allocation2 + $0x30] sm:$0xff]  ;;  %v5370_v55 = vpack.c.bf16 %v5325_v57, %v5324_v32  ;;  %v5657_v32 = vpack.c.bf16 %v5611_v42, %v12272_v2 }
 0x289   : > { %5186 = vst.msk [vmem:[#allocation2 + $0x69] sm:$0xff] %vm1920_vm11, %v5138_v13  ;;  %v5139_v1 = vmul.f32 %v14520_v17, %v5091_v62  ;;  %v5231_v38 = vld [vmem:[#allocation2 + $0x38] sm:$0xff] }
 0x28a   : > { %5184 = vst.msk [vmem:[#allocation2 + $0x59] sm:$0xff] %vm1920_vm11, %v5136_v12  ;;  %v5137_v24 = vmul.f32 %v14521_v60, %v5089_v37  ;;  %2476 = vrot.lane.b32.xlu0 %v2415_v54, %s9516_s29  ;;  %v8848_v35 = vpop.f32.mrb[60].mxu0  ;;  %v5275_v56 = vpack.c.bf16 %v5231_v38, %v5230_v63  ;;  %v12305_v51 = vld [vmem:[#allocation2 + $0x32] sm:$0xff]  ;;  %v2383_v60 = vld [vmem:[#allocation2 + $0x100] sm:$0xff] }
 0x28b   : > { %5187 = vst.msk [vmem:[#allocation2 + $0x71] sm:$0xff] %vm1920_vm11, %v5139_v1  ;;  %v4946_v20 = vadd.f32 %v8848_v35, %v12223_v49  ;;  %v4937_v0 = vpop.f32.mrb[61].mxu0  ;;  %v2095_v46 = vld [vmem:[#allocation2 + $0xf1] sm:$0xff]  ;;  %v2096_v13 = vld [vmem:[#allocation2 + $0xf9] sm:$0xff]  ;;  %v5233_v54 = vld [vmem:[#allocation2 + $0x48] sm:$0xff] }
 0x28c   : > { %5185 = vst.msk [vmem:[#allocation2 + $0x61] sm:$0xff] %vm1920_vm11, %v5137_v24  ;;  %5420 = vrot.lane.b32.xlu1 %v5370_v55, %s9516_s29  ;;  %v4938_v12 = vadd.f32 %v12223_v49, %v4937_v0  ;;  %v8849_v37 = vpop.f32.mrb[62].mxu0  ;;  %5299 = vst.msk [vmem:[#allocation3 + $0x78] sm:$0xff] %vm1920_vm11, %v5275_v56  ;;  %v5232_v1 = vld [vmem:[#allocation2 + $0x40] sm:$0xff]  ;;  %v9450_v24 = vld [vmem:[%s14035_s6 + $0xc8] sm:$0xff]   ;;  %v2128_v56 = vpack.c.bf16 %v2096_v13, %v2095_v46 }
 0x28d   : > { %v12316_v57 = vld [vmem:[#allocation2 + $0x3a] sm:$0xff]  ;;  %v5094_v17 = vmax.f32 %v4946_v20, 0.0  ;;  %v4949_v63 = vadd.f32 %v8849_v37, %v12223_v49  ;;  %v4940_v38 = vpop.f32.mrb[63].mxu0  ;;  %v5276_v55 = vpack.c.bf16 %v5233_v54, %v5232_v1  ;;  %v12324_v42 = vld [vmem:[#allocation2 + $0x42] sm:$0xff]  ;;  %v12328_v0 = vld [vmem:[#allocation2 + $0x4a] sm:$0xff]  ;;  %3949 = vmatpush1.bf16.msra.mxu1 %v9450_v24 }
 0x28e   : > { %v5563_v2 = vpack.c.bf16 %v12316_v57, %v12305_v51  ;;  %5706 = vrot.lane.b32.xlu0 %v5657_v32, %s9516_s29  ;;  %v5092_v35 = vmax.f32 %v4938_v12, 0.0  ;;  %v4941_v20 = vadd.f32 %v12223_v49, %v4940_v38  ;;  %14522 = vst [vmem:[#allocation12_spill] sm:$0xff] %v12328_v0  ;;  %v2382_v1 = vld [vmem:[#allocation2 + $0xf8] sm:$0xff]  ;;  %v5234_v32 = vld [vmem:[#allocation2 + $0x50] sm:$0xff]  ;;  %v5564_v46 = vpack.c.bf16 %v12328_v0, %v12324_v42  ;;  %v2097_v37 = vld [vmem:[#allocation2 + $0x101] sm:$0xff] }
 0x28f   : > { %v5142_v62 = vmul.f32 %v10208_v58, %v5094_v17  ;;  %v5095_v61 = vmax.f32 %v4949_v63, 0.0  ;;  %v5327_v54 = vld [vmem:[#allocation2 + $0x39] sm:$0xff]  ;;  %5300 = vst.msk [vmem:[#allocation3 + $0xa0] sm:$0xff] %vm1920_vm11, %v5276_v55  ;;  %v2416_v38 = vpack.c.bf16 %v2383_v60, %v2382_v1  ;;  %3950 = vmatprep.subr.bf16.mxu1 %v14271_v43  ;;  %v5326_v17 = vld [vmem:[#allocation2 + $0x31] sm:$0xff]  ;;  %v5614_v0 = vld [vmem:[#allocation2 + $0x48] sm:$0xff] }
 0x290   : > { %5587 = vst.msk [vmem:[#allocation3 + $0x80] sm:$0xff] %vm1920_vm11, %v5563_v2  ;;  %v5140_v13 = vmul.f32 %v10213_v26, %v5092_v35  ;;  %2191 = vrot.lane.b32.xlu1 %v2128_v56, %s9516_s29  ;;  %v5093_v12 = vmax.f32 %v4941_v20, 0.0  ;;  %v5613_v63 = vld [vmem:[#allocation2 + $0x40] sm:$0xff]  ;;  %5588 = vst.msk [vmem:[#allocation3 + $0xa8] sm:$0xff] %vm1920_vm11, %v5564_v46  ;;  %v5371_v55 = vpack.c.bf16 %v5327_v54, %v5326_v17 }
 0x291   : > { %5190 = vst.msk [vmem:[#allocation2 + $0x89] sm:$0xff] %vm1920_vm11, %v5142_v62  ;;  %v5143_v58 = vmul.f32 %v10218_v44, %v5095_v61  ;;  %v5235_v24 = vld [vmem:[#allocation2 + $0x58] sm:$0xff]  ;;  %v2098_v44 = vld [vmem:[#allocation2 + $0x109] sm:$0xff] }
 0x292   : > { %5188 = vst.msk [vmem:[#allocation2 + $0x79] sm:$0xff] %vm1920_vm11, %v5140_v13  ;;  %v5141_v26 = vmul.f32 %v10243_v16, %v5093_v12  ;;  %2478 = vrot.lane.b32.xlu0 %v2416_v38, %s9516_s29  ;;  %v8852_v60 = vpop.f32.mrb[64].mxu0  ;;  %v5277_v2 = vpack.c.bf16 %v5235_v24, %v5234_v32  ;;  %v12346_v35 = vld [vmem:[#allocation2 + $0x52] sm:$0xff]  ;;  %v2384_v61 = vld [vmem:[#allocation2 + $0x108] sm:$0xff]  ;;  %v2129_v54 = vpack.c.bf16 %v2098_v44, %v2097_v37 }
 0x293   : > { %5191 = vst.msk [vmem:[#allocation2 + $0x91] sm:$0xff] %vm1920_vm11, %v5143_v58  ;;  %v5612_v62 = vld [vmem:[#allocation2 + $0x38] sm:$0xff]  ;;  %v4962_v56 = vadd.f32 %v8852_v60, %v12223_v49  ;;  %v4953_v20 = vpop.f32.mrb[65].mxu0  ;;  %v5236_v13 = vld [vmem:[#allocation2 + $0x60] sm:$0xff]  ;;  %v5237_v12 = vld [vmem:[#allocation2 + $0x68] sm:$0xff] }
 0x294   : > { %5189 = vst.msk [vmem:[#allocation2 + $0x81] sm:$0xff] %vm1920_vm11, %v5141_v26  ;;  %5422 = vrot.lane.b32.xlu1 %v5371_v55, %s9516_s29  ;;  %v5658_v16 = vpack.c.bf16 %v5613_v63, %v5612_v62  ;;  %v4954_v32 = vadd.f32 %v12223_v49, %v4953_v20  ;;  %v8853_v46 = vpop.f32.mrb[66].mxu0  ;;  %5301 = vst.msk [vmem:[#allocation3 + $0xc8] sm:$0xff] %vm1920_vm11, %v5277_v2  ;;  %v12356_v38 = vld [vmem:[#allocation2 + $0x5a] sm:$0xff]  ;;  %v2385_v58 = vld [vmem:[#allocation2 + $0x110] sm:$0xff]  ;;  %v5278_v1 = vpack.c.bf16 %v5237_v12, %v5236_v13 }
 0x295   : > { %v5098_v17 = vmax.f32 %v4962_v56, 0.0  ;;  %v4965_v24 = vadd.f32 %v8853_v46, %v12223_v49  ;;  %v4956_v60 = vpop.f32.mrb[67].mxu0  ;;  %v5565_v26 = vpack.c.bf16 %v12356_v38, %v12346_v35  ;;  %v12361_v63 = vld [vmem:[#allocation2 + $0x62] sm:$0xff]  ;;  %v12363_v37 = vld [vmem:[#allocation2 + $0x6a] sm:$0xff]  ;;  %v2100_v12 = vld [vmem:[#allocation2 + $0x119] sm:$0xff] }
 0x296   : > { %5708 = vrot.lane.b32.xlu0 %v5658_v16, %s9516_s29  ;;  %v5096_v55 = vmax.f32 %v4954_v32, 0.0  ;;  %v4957_v2 = vadd.f32 %v12223_v49, %v4956_v60  ;;  %v5566_v62 = vpack.c.bf16 %v12363_v37, %v12361_v63  ;;  %v5328_v56 = vld [vmem:[#allocation2 + $0x41] sm:$0xff]  ;;  %v5329_v20 = vld [vmem:[#allocation2 + $0x49] sm:$0xff]  ;;  %5302 = vst.msk [vmem:[#allocation3 + $0xf0] sm:$0xff] %vm1920_vm11, %v5278_v1  ;;  %v2417_v16 = vpack.c.bf16 %v2385_v58, %v2384_v61 }
 0x297   : > { %v5146_v46 = vmul.f32 %v10256_v25, %v5098_v17  ;;  %v5099_v13 = vmax.f32 %v4965_v24, 0.0  ;;  %5589 = vst.msk [vmem:[#allocation3 + $0xd0] sm:$0xff] %vm1920_vm11, %v5565_v26  ;;  %v5615_v44 = vld [vmem:[#allocation2 + $0x50] sm:$0xff] }
 0x298   : > { %2193 = vrot.lane.b32.xlu1 %v2129_v54, %s9516_s29  ;;  %v5144_v32 = vmul.f32 %v10259_v28, %v5096_v55  ;;  %v5097_v60 = vmax.f32 %v4957_v2, 0.0  ;;  %5590 = vst.msk [vmem:[#allocation3 + $0xf8] sm:$0xff] %vm1920_vm11, %v5566_v62  ;;  %v9452_v1 = vld [vmem:[%s14035_s6 + $0xd0] sm:$0xff]   ;;  %v5372_v54 = vpack.c.bf16 %v5329_v20, %v5328_v56 }
 0x299   : > { %5194 = vst.msk [vmem:[#allocation2 + $0xa9] sm:$0xff] %vm1920_vm11, %v5146_v46  ;;  %v5147_v25 = vmul.f32 %v10282_v45, %v5099_v13  ;;  %v5238_v58 = vld [vmem:[#allocation2 + $0x70] sm:$0xff]  ;;  %3951 = vmatpush1.bf16.msra.mxu1 %v9452_v1  ;;  %v5659_v45 = vpack.c.bf16 %v5615_v44, %v5614_v0  ;;  %v5239_v56 = vld [vmem:[#allocation2 + $0x78] sm:$0xff]  ;;  %v2387_v46 = vld [vmem:[#allocation2 + $0x120] sm:$0xff] }
 0x29a   : > { %2480 = vrot.lane.b32.xlu0 %v2417_v16, %s9516_s29  ;;  %5192 = vst.msk [vmem:[#allocation2 + $0x99] sm:$0xff] %vm1920_vm11, %v5144_v32  ;;  %v5145_v28 = vmul.f32 %v10285_v39, %v5097_v60  ;;  %v8856_v61 = vpop.f32.mrb[68].mxu0  ;;  %v2099_v17 = vld [vmem:[#allocation2 + $0x111] sm:$0xff]  ;;  %3952 = vmatprep.subr.bf16.mxu1 %v14271_v43  ;;  %v5279_v60 = vpack.c.bf16 %v5239_v56, %v5238_v58  ;;  %v5333_v58 = vld [vmem:[#allocation2 + $0x69] sm:$0xff] }
 0x29b   : > { %5195 = vst.msk [vmem:[#allocation2 + $0xb1] sm:$0xff] %vm1920_vm11, %v5147_v25  ;;  %v4978_v24 = vadd.f32 %v8856_v61, %v12223_v49  ;;  %v4969_v26 = vpop.f32.mrb[69].mxu0  ;;  %v2130_v55 = vpack.c.bf16 %v2100_v12, %v2099_v17  ;;  %v5240_v39 = vld [vmem:[#allocation2 + $0x80] sm:$0xff]  ;;  %v5241_v20 = vld [vmem:[#allocation2 + $0x88] sm:$0xff]  ;;  %v12392_v1 = vld [vmem:[#allocation2 + $0x72] sm:$0xff] }
 0x29c   : > { %5424 = vrot.lane.b32.xlu1 %v5372_v54, %s9516_s29  ;;  %5193 = vst.msk [vmem:[#allocation2 + $0xa1] sm:$0xff] %vm1920_vm11, %v5145_v28  ;;  %v4970_v2 = vadd.f32 %v12223_v49, %v4969_v26  ;;  %v8857_v62 = vpop.f32.mrb[70].mxu0  ;;  %v5280_v25 = vpack.c.bf16 %v5241_v20, %v5240_v39  ;;  %v12394_v0 = vld [vmem:[#allocation2 + $0x7a] sm:$0xff]  ;;  %v12400_v61 = vld [vmem:[#allocation2 + $0x82] sm:$0xff]  ;;  %v12402_v17 = vld [vmem:[#allocation2 + $0x8a] sm:$0xff] }
 0x29d   : > { %v5102_v13 = vmax.f32 %v4978_v24, 0.0  ;;  %v4981_v16 = vadd.f32 %v8857_v62, %v12223_v49  ;;  %v4972_v32 = vpop.f32.mrb[71].mxu0  ;;  %v2386_v44 = vld [vmem:[#allocation2 + $0x118] sm:$0xff]  ;;  %v5567_v28 = vpack.c.bf16 %v12394_v0, %v12392_v1  ;;  %5303 = vst.msk [vmem:[#allocation3 + $0x118] sm:$0xff] %vm1920_vm11, %v5279_v60 }
 0x29e   : > { %5710 = vrot.lane.b32.xlu0 %v5659_v45, %s9516_s29  ;;  %v5100_v12 = vmax.f32 %v4970_v2, 0.0  ;;  %v4973_v54 = vadd.f32 %v12223_v49, %v4972_v32  ;;  %v5330_v24 = vld [vmem:[#allocation2 + $0x51] sm:$0xff]  ;;  %v5331_v26 = vld [vmem:[#allocation2 + $0x59] sm:$0xff]  ;;  %5304 = vst.msk [vmem:[#allocation3 + $0x140] sm:$0xff] %vm1920_vm11, %v5280_v25  ;;  %v5568_v2 = vpack.c.bf16 %v12402_v17, %v12400_v61  ;;  %v2418_v39 = vpack.c.bf16 %v2387_v46, %v2386_v44 }
 0x29f   : > { %v5150_v62 = vmul.f32 %v10288_v59, %v5102_v13  ;;  %v5103_v56 = vmax.f32 %v4981_v16, 0.0  ;;  %v5242_v45 = vld [vmem:[#allocation2 + $0x90] sm:$0xff]  ;;  %5591 = vst.msk [vmem:[#allocation3 + $0x120] sm:$0xff] %vm1920_vm11, %v5567_v28  ;;  %v5617_v13 = vld [vmem:[#allocation2 + $0x60] sm:$0xff] }
 0x2a0   : > { %2195 = vrot.lane.b32.xlu1 %v2130_v55, %s9516_s29  ;;  %v5148_v20 = vmul.f32 %v10369_v40, %v5100_v12  ;;  %v5101_v32 = vmax.f32 %v4973_v54, 0.0  ;;  %5592 = vst.msk [vmem:[#allocation3 + $0x148] sm:$0xff] %vm1920_vm11, %v5568_v2  ;;  %v5373_v55 = vpack.c.bf16 %v5331_v26, %v5330_v24  ;;  %v5616_v12 = vld [vmem:[#allocation2 + $0x58] sm:$0xff]  ;;  %v2101_v54 = vld [vmem:[#allocation2 + $0x121] sm:$0xff]  ;;  %v2102_v28 = vld [vmem:[#allocation2 + $0x129] sm:$0xff] }
 0x2a1   : > { %5198 = vst.msk [vmem:[#allocation2 + $0xc9] sm:$0xff] %vm1920_vm11, %v5150_v62  ;;  %v5151_v16 = vmul.f32 %v10422_v23, %v5103_v56  ;;  %v5243_v60 = vld [vmem:[#allocation2 + $0x98] sm:$0xff]  ;;  %v2388_v62 = vld [vmem:[#allocation2 + $0x128] sm:$0xff]  ;;  %v5660_v26 = vpack.c.bf16 %v5617_v13, %v5616_v12 }
 0x2a2   : > { %2482 = vrot.lane.b32.xlu0 %v2418_v39, %s9516_s29  ;;  %5196 = vst.msk [vmem:[#allocation2 + $0xb9] sm:$0xff] %vm1920_vm11, %v5148_v20  ;;  %v5149_v40 = vmul.f32 %v10425_v7, %v5101_v32  ;;  %v8860_v46 = vpop.f32.mrb[72].mxu0  ;;  %v5281_v25 = vpack.c.bf16 %v5243_v60, %v5242_v45  ;;  %v12422_v44 = vld [vmem:[#allocation2 + $0x92] sm:$0xff]  ;;  %v5332_v59 = vld [vmem:[#allocation2 + $0x61] sm:$0xff] }
 0x2a3   : > { %5199 = vst.msk [vmem:[#allocation2 + $0xd1] sm:$0xff] %vm1920_vm11, %v5151_v16  ;;  %v4994_v23 = vadd.f32 %v8860_v46, %v12223_v49  ;;  %v4985_v56 = vpop.f32.mrb[73].mxu0  ;;  %v5244_v2 = vld [vmem:[#allocation2 + $0xa0] sm:$0xff]  ;;  %v5245_v39 = vld [vmem:[#allocation2 + $0xa8] sm:$0xff]  ;;  %v2389_v32 = vld [vmem:[#allocation2 + $0x130] sm:$0xff] }
 0x2a4   : > { %5426 = vrot.lane.b32.xlu1 %v5373_v55, %s9516_s29  ;;  %5197 = vst.msk [vmem:[#allocation2 + $0xc1] sm:$0xff] %vm1920_vm11, %v5149_v40  ;;  %v4986_v7 = vadd.f32 %v12223_v49, %v4985_v56  ;;  %v8861_v45 = vpop.f32.mrb[74].mxu0  ;;  %5305 = vst.msk [vmem:[#allocation3 + $0x168] sm:$0xff] %vm1920_vm11, %v5281_v25  ;;  %v12432_v20 = vld [vmem:[#allocation2 + $0x9a] sm:$0xff]  ;;  %v5282_v55 = vpack.c.bf16 %v5245_v39, %v5244_v2  ;;  %v12440_v12 = vld [vmem:[#allocation2 + $0xa2] sm:$0xff]  ;;  %v2131_v25 = vpack.c.bf16 %v2102_v28, %v2101_v54 }
 0x2a5   : > { %14523 = vst [vmem:[#allocation13_spill] sm:$0xff] %v12432_v20  ;;  %v5106_v16 = vmax.f32 %v4994_v23, 0.0  ;;  %v4997_v60 = vadd.f32 %v8861_v45, %v12223_v49  ;;  %v4988_v46 = vpop.f32.mrb[75].mxu0  ;;  %v9454_v13 = vld [vmem:[%s14035_s6 + $0xd8] sm:$0xff]   ;;  %v5569_v40 = vpack.c.bf16 %v12432_v20, %v12422_v44  ;;  %v12444_v23 = vld [vmem:[#allocation2 + $0xaa] sm:$0xff]  ;;  %v2419_v28 = vpack.c.bf16 %v2389_v32, %v2388_v62  ;;  %v14527_v62 = vld [vmem:[#allocation24_spill] sm:$0xff] }
 0x2a6   : > { %5712 = vrot.lane.b32.xlu0 %v5660_v26, %s9516_s29  ;;  %v5104_v56 = vmax.f32 %v4986_v7, 0.0  ;;  %v4989_v24 = vadd.f32 %v12223_v49, %v4988_v46  ;;  %14524 = vst [vmem:[#allocation14_spill] sm:$0xff] %v12444_v23  ;;  %3953 = vmatpush1.bf16.msra.mxu1 %v9454_v13  ;;  %5306 = vst.msk [vmem:[#allocation3 + $0x190] sm:$0xff] %vm1920_vm11, %v5282_v55  ;;  %v5246_v26 = vld [vmem:[#allocation2 + $0xb0] sm:$0xff]  ;;  %v5570_v54 = vpack.c.bf16 %v12444_v23, %v12440_v12  ;;  %v2104_v7 = vld [vmem:[#allocation2 + $0x139] sm:$0xff] }
 0x2a7   : > { %v5154_v2 = vmul.f32 %v14362_v19, %v5106_v16  ;;  %v5107_v39 = vmax.f32 %v4997_v60, 0.0  ;;  %5593 = vst.msk [vmem:[#allocation3 + $0x170] sm:$0xff] %vm1920_vm11, %v5569_v40  ;;  %v14525_v46 = vld [vmem:[#allocation22_spill] sm:$0xff]  ;;  %3954 = vmatprep.subr.bf16.mxu1 %v14271_v43  ;;  %v5618_v19 = vld [vmem:[#allocation2 + $0x68] sm:$0xff]  ;;  %v14526_v60 = vld [vmem:[#allocation23_spill] sm:$0xff]  ;;  %v5374_v40 = vpack.c.bf16 %v5333_v58, %v5332_v59 }
 0x2a8   : > { %2197 = vrot.lane.b32.xlu1 %v2131_v25, %s9516_s29  ;;  %v5152_v45 = vmul.f32 %v14525_v46, %v5104_v56  ;;  %v5105_v20 = vmax.f32 %v4989_v24, 0.0  ;;  %v5619_v16 = vld [vmem:[#allocation2 + $0x70] sm:$0xff]  ;;  %5594 = vst.msk [vmem:[#allocation3 + $0x198] sm:$0xff] %vm1920_vm11, %v5570_v54  ;;  %v5620_v23 = vld [vmem:[#allocation2 + $0x78] sm:$0xff] }
 0x2a9   : > { %5202 = vst.msk [vmem:[#allocation2 + $0xe9] sm:$0xff] %vm1920_vm11, %v5154_v2  ;;  %v5155_v13 = vmul.f32 %v14526_v60, %v5107_v39  ;;  %v5247_v55 = vld [vmem:[#allocation2 + $0xb8] sm:$0xff]  ;;  %v5661_v58 = vpack.c.bf16 %v5619_v16, %v5618_v19 }
 0x2aa   : > { %2484 = vrot.lane.b32.xlu0 %v2419_v28, %s9516_s29  ;;  %5200 = vst.msk [vmem:[#allocation2 + $0xd9] sm:$0xff] %vm1920_vm11, %v5152_v45  ;;  %v5153_v32 = vmul.f32 %v14527_v62, %v5105_v20  ;;  %v8864_v25 = vpop.f32.mrb[76].mxu0  ;;  %v5283_v24 = vpack.c.bf16 %v5247_v55, %v5246_v26  ;;  %v12462_v56 = vld [vmem:[#allocation2 + $0xb2] sm:$0xff]  ;;  %v12479_v16 = vld [vmem:[#allocation2 + $0xca] sm:$0xff] }
 0x2ab   : > { %v2103_v46 = vld [vmem:[#allocation2 + $0x131] sm:$0xff]  ;;  %5203 = vst.msk [vmem:[#allocation2 + $0xf1] sm:$0xff] %vm1920_vm11, %v5155_v13  ;;  %v5010_v2 = vadd.f32 %v8864_v25, %v12223_v49  ;;  %v5001_v39 = vpop.f32.mrb[77].mxu0  ;;  %v5248_v26 = vld [vmem:[#allocation2 + $0xc0] sm:$0xff]  ;;  %v5249_v28 = vld [vmem:[#allocation2 + $0xc8] sm:$0xff] }
 0x2ac   : > { %5428 = vrot.lane.b32.xlu1 %v5374_v40, %s9516_s29  ;;  %v2132_v59 = vpack.c.bf16 %v2104_v7, %v2103_v46  ;;  %5201 = vst.msk [vmem:[#allocation2 + $0xe1] sm:$0xff] %vm1920_vm11, %v5153_v32  ;;  %v5002_v20 = vadd.f32 %v12223_v49, %v5001_v39  ;;  %v8865_v45 = vpop.f32.mrb[78].mxu0  ;;  %5307 = vst.msk [vmem:[#allocation3 + $0x1b8] sm:$0xff] %vm1920_vm11, %v5283_v24  ;;  %v12472_v60 = vld [vmem:[#allocation2 + $0xba] sm:$0xff]  ;;  %v5284_v54 = vpack.c.bf16 %v5249_v28, %v5248_v26  ;;  %v12477_v19 = vld [vmem:[#allocation2 + $0xc2] sm:$0xff] }
 0x2ad   : > { %14528 = vst [vmem:[#allocation15_spill] sm:$0xff] %v12472_v60  ;;  %v2391_v13 = vld [vmem:[#allocation2 + $0x140] sm:$0xff]  ;;  %v5110_v55 = vmax.f32 %v5010_v2, 0.0  ;;  %v5013_v62 = vadd.f32 %v8865_v45, %v12223_v49  ;;  %v5004_v25 = vpop.f32.mrb[79].mxu0  ;;  %v5571_v7 = vpack.c.bf16 %v12472_v60, %v12462_v56  ;;  %v5572_v24 = vpack.c.bf16 %v12479_v16, %v12477_v19  ;;  %v2390_v2 = vld [vmem:[#allocation2 + $0x138] sm:$0xff] }
 0x2ae   : > { %5714 = vrot.lane.b32.xlu0 %v5661_v58, %s9516_s29  ;;  %v5108_v40 = vmax.f32 %v5002_v20, 0.0  ;;  %v5005_v32 = vadd.f32 %v12223_v49, %v5004_v25  ;;  %v5334_v39 = vld [vmem:[#allocation2 + $0x71] sm:$0xff]  ;;  %v5335_v45 = vld [vmem:[#allocation2 + $0x79] sm:$0xff]  ;;  %5308 = vst.msk [vmem:[#allocation3 + $0x1e0] sm:$0xff] %vm1920_vm11, %v5284_v54  ;;  %v2420_v58 = vpack.c.bf16 %v2391_v13, %v2390_v2 }
 0x2af   : > { %v5158_v26 = vmul.f32 %v10702_v10, %v5110_v55  ;;  %v5111_v28 = vmax.f32 %v5013_v62, 0.0  ;;  %5595 = vst.msk [vmem:[#allocation3 + $0x1c0] sm:$0xff] %vm1920_vm11, %v5571_v7  ;;  %5596 = vst.msk [vmem:[#allocation3 + $0x1e8] sm:$0xff] %vm1920_vm11, %v5572_v24  ;;  %v5621_v46 = vld [vmem:[#allocation2 + $0x80] sm:$0xff]  ;;  %v5375_v54 = vpack.c.bf16 %v5335_v45, %v5334_v39  ;;  %v5250_v13 = vld [vmem:[#allocation2 + $0xd0] sm:$0xff] }
 0x2b0   : > { %2199 = vrot.lane.b32.xlu1 %v2132_v59, %s9516_s29  ;;  %v5156_v20 = vmul.f32 %v14377_v47, %v5108_v40  ;;  %v5109_v25 = vmax.f32 %v5005_v32, 0.0  ;;  %v9456_v10 = vld [vmem:[%s14035_s6 + $0xe0] sm:$0xff]   ;;  %v2106_v40 = vld [vmem:[#allocation2 + $0x149] sm:$0xff] }
 0x2b1   : > { %5206 = vst.msk [vmem:[#allocation2 + $0x109] sm:$0xff] %vm1920_vm11, %v5158_v26  ;;  %v5159_v60 = vmul.f32 %v14379_v53, %v5111_v28  ;;  %v2105_v55 = vld [vmem:[#allocation2 + $0x141] sm:$0xff]  ;;  %3955 = vmatpush1.bf16.msra.mxu1 %v9456_v10  ;;  %v5662_v53 = vpack.c.bf16 %v5621_v46, %v5620_v23  ;;  %v5251_v2 = vld [vmem:[#allocation2 + $0xd8] sm:$0xff]  ;;  %v2393_v39 = vld [vmem:[#allocation2 + $0x150] sm:$0xff] }
 0x2b2   : > { %2486 = vrot.lane.b32.xlu0 %v2420_v58, %s9516_s29  ;;  %5204 = vst.msk [vmem:[#allocation2 + $0xf9] sm:$0xff] %vm1920_vm11, %v5156_v20  ;;  %v5157_v47 = vmul.f32 %v14383_v52, %v5109_v25  ;;  %v8868_v59 = vpop.f32.mrb[80].mxu0  ;;  %v2392_v52 = vld [vmem:[#allocation2 + $0x148] sm:$0xff]  ;;  %3956 = vmatprep.subr.bf16.mxu1 %v14271_v43  ;;  %v5285_v28 = vpack.c.bf16 %v5251_v2, %v5250_v13  ;;  %v12508_v58 = vld [vmem:[#allocation2 + $0xd2] sm:$0xff] }
 0x2b3   : > { %5207 = vst.msk [vmem:[#allocation2 + $0x111] sm:$0xff] %vm1920_vm11, %v5159_v60  ;;  %v5026_v62 = vadd.f32 %v8868_v59, %v12223_v49  ;;  %v5017_v7 = vpop.f32.mrb[81].mxu0  ;;  %v2133_v23 = vpack.c.bf16 %v2106_v40, %v2105_v55  ;;  %v12512_v25 = vld [vmem:[#allocation3 + $0x208] sm:$0xff]  ;;  %v12514_v10 = vld [vmem:[#allocation2 + $0xe2] sm:$0xff]  ;;  %v2421_v55 = vpack.c.bf16 %v2393_v39, %v2392_v52 }
 0x2b4   : > { %5430 = vrot.lane.b32.xlu1 %v5375_v54, %s9516_s29  ;;  %5205 = vst.msk [vmem:[#allocation2 + $0x101] sm:$0xff] %vm1920_vm11, %v5157_v47  ;;  %v5018_v32 = vadd.f32 %v12223_v49, %v5017_v7  ;;  %v8869_v24 = vpop.f32.mrb[82].mxu0  ;;  %v5336_v47 = vld [vmem:[#allocation2 + $0x81] sm:$0xff]  ;;  %v5337_v59 = vld [vmem:[#allocation2 + $0x89] sm:$0xff]  ;;  %5309 = vst.msk [vmem:[#allocation3 + $0x208] sm:$0xff] %vm1920_vm11, %v5285_v28 }
 0x2b5   : > { %v5114_v45 = vmax.f32 %v5026_v62, 0.0  ;;  %v5029_v26 = vadd.f32 %v8869_v24, %v12223_v49  ;;  %v5020_v60 = vpop.f32.mrb[83].mxu0  ;;  %v12520_v7 = vld [vmem:[#allocation2 + $0xda] sm:$0xff]  ;;  %v5622_v2 = vld [vmem:[#allocation2 + $0x88] sm:$0xff] }
 0x2b6   : > { %5716 = vrot.lane.b32.xlu0 %v5662_v53, %s9516_s29  ;;  %v5112_v46 = vmax.f32 %v5018_v32, 0.0  ;;  %v5021_v20 = vadd.f32 %v12223_v49, %v5020_v60  ;;  %v12524_v32 = vld [vmem:[#allocation2 + $0xea] sm:$0xff] }
 0x2b7   : > { %v5162_v62 = vmul.f32 %v14389_v33, %v5114_v45  ;;  %v5115_v13 = vmax.f32 %v5029_v26, 0.0  ;;  %v5623_v60 = vld [vmem:[#allocation2 + $0x90] sm:$0xff]  ;;  %v5376_v45 = vpack.c.bf16 %v5337_v59, %v5336_v47  ;;  %v2108_v26 = vld [vmem:[#allocation2 + $0x159] sm:$0xff] }
 0x2b8   : > { %2201 = vrot.lane.b32.xlu1 %v2133_v23, %s9516_s29  ;;  %v5160_v53 = vmul.f32 %v14392_v29, %v5112_v46  ;;  %v5113_v40 = vmax.f32 %v5021_v20, 0.0  ;;  %v2107_v20 = vld [vmem:[#allocation2 + $0x151] sm:$0xff]  ;;  %v2395_v47 = vld [vmem:[#allocation2 + $0x160] sm:$0xff] }
 0x2b9   : > { %5210 = vst.msk [vmem:[#allocation2 + $0x129] sm:$0xff] %vm1920_vm11, %v5162_v62  ;;  %v5163_v33 = vmul.f32 %v14394_v22, %v5115_v13  ;;  %v12533_v39 = vld [vmem:[#allocation2 + $0xf2] sm:$0xff]  ;;  %v5663_v22 = vpack.c.bf16 %v5623_v60, %v5622_v2  ;;  %v2134_v2 = vpack.c.bf16 %v2108_v26, %v2107_v20 }
 0x2ba   : > { %2488 = vrot.lane.b32.xlu0 %v2421_v55, %s9516_s29  ;;  %5208 = vst.msk [vmem:[#allocation2 + $0x119] sm:$0xff] %vm1920_vm11, %v5160_v53  ;;  %v5161_v52 = vmul.f32 %v14398_v36, %v5113_v40  ;;  %v8872_v29 = vpop.f32.mrb[84].mxu0  ;;  %v9458_v53 = vld [vmem:[%s14035_s6 + $0xe8] sm:$0xff]   ;;  %v5624_v20 = vld [vmem:[#allocation2 + $0x98] sm:$0xff] }
 0x2bb   : > { %5211 = vst.msk [vmem:[#allocation2 + $0x131] sm:$0xff] %vm1920_vm11, %v5163_v33  ;;  %v5042_v28 = vadd.f32 %v8872_v29, %v12223_v49  ;;  %v5033_v23 = vpop.f32.mrb[85].mxu0  ;;  %v12546_v40 = vld [vmem:[#allocation2 + $0xfa] sm:$0xff]  ;;  %v12548_v33 = vld [vmem:[#allocation2 + $0x102] sm:$0xff]  ;;  %3957 = vmatpush1.bf16.msra.mxu1 %v9458_v53  ;;  %v12558_v26 = vld [vmem:[#allocation2 + $0x10a] sm:$0xff] }
 0x2bc   : > { %5432 = vrot.lane.b32.xlu1 %v5376_v45, %s9516_s29  ;;  %5209 = vst.msk [vmem:[#allocation2 + $0x121] sm:$0xff] %vm1920_vm11, %v5161_v52  ;;  %v5034_v36 = vadd.f32 %v12223_v49, %v5033_v23  ;;  %v8873_v59 = vpop.f32.mrb[86].mxu0  ;;  %v2394_v29 = vld [vmem:[#allocation2 + $0x158] sm:$0xff]  ;;  %3958 = vmatprep.subr.bf16.mxu1 %v14271_v43 }
 0x2bd   : > { %v5118_v62 = vmax.f32 %v5042_v28, 0.0  ;;  %v5045_v13 = vadd.f32 %v8873_v59, %v12223_v49  ;;  %v5036_v55 = vpop.f32.mrb[87].mxu0  ;;  %v5338_v28 = vld [vmem:[#allocation2 + $0x91] sm:$0xff]  ;;  %v5339_v23 = vld [vmem:[#allocation2 + $0x99] sm:$0xff]  ;;  %v2422_v24 = vpack.c.bf16 %v2395_v47, %v2394_v29 }
 0x2be   : > { %5718 = vrot.lane.b32.xlu0 %v5663_v22, %s9516_s29  ;;  %v5116_v60 = vmax.f32 %v5034_v36, 0.0  ;;  %v5037_v45 = vadd.f32 %v12223_v49, %v5036_v55  ;;  %v5625_v36 = vld [vmem:[#allocation2 + $0xa0] sm:$0xff] }
 0x2bf   : > { %v5166_v59 = vmul.f32 %v14408_v41, %v5118_v62  ;;  %v5119_v46 = vmax.f32 %v5045_v13, 0.0  ;;  %v5377_v41 = vpack.c.bf16 %v5339_v23, %v5338_v28  ;;  %v2109_v13 = vld [vmem:[#allocation2 + $0x161] sm:$0xff] }
 0x2c0   : > { %2203 = vrot.lane.b32.xlu1 %v2134_v2, %s9516_s29  ;;  %v5164_v54 = vmul.f32 %v14410_v14, %v5116_v60  ;;  %v5117_v22 = vmax.f32 %v5037_v45, 0.0  ;;  %v2397_v45 = vld [vmem:[#allocation2 + $0x170] sm:$0xff]  ;;  %v5628_v60 = vld [vmem:[#allocation2 + $0xb8] sm:$0xff] }
 0x2c1   : > { %5214 = vst.msk [vmem:[#allocation2 + $0x149] sm:$0xff] %vm1920_vm11, %v5166_v59  ;;  %v5167_v55 = vmul.f32 %v14414_v48, %v5119_v46  ;;  %v12565_v14 = vld [vmem:[#allocation2 + $0x112] sm:$0xff]  ;;  %v5664_v48 = vpack.c.bf16 %v5625_v36, %v5624_v20  ;;  %v2396_v46 = vld [vmem:[#allocation2 + $0x168] sm:$0xff]  ;;  %v9478_v36 = vld [vmem:[%s14034_s5] ss:$0 sm:$0xff] }
 0x2c2   : > { %2490 = vrot.lane.b32.xlu0 %v2422_v24, %s9516_s29  ;;  %5212 = vst.msk [vmem:[#allocation2 + $0x139] sm:$0xff] %vm1920_vm11, %v5164_v54  ;;  %v5165_v47 = vmul.f32 %v14418_v3, %v5117_v22  ;;  %v8876_v62 = vpop.f32.mrb[88].mxu0  ;;  %v2110_v24 = vld [vmem:[#allocation2 + $0x169] sm:$0xff] }
 0x2c3   : > { %5215 = vst.msk [vmem:[#allocation2 + $0x151] sm:$0xff] %vm1920_vm11, %v5167_v55  ;;  %v5058_v53 = vadd.f32 %v8876_v62, %v12223_v49  ;;  %v5049_v2 = vpop.f32.mrb[89].mxu0  ;;  %v12575_v59 = vld [vmem:[#allocation2 + $0x11a] sm:$0xff]  ;;  %v12577_v22 = vld [vmem:[#allocation2 + $0x122] sm:$0xff]  ;;  %v2135_v55 = vpack.c.bf16 %v2110_v24, %v2109_v13 }
 0x2c4   : > { %5434 = vrot.lane.b32.xlu1 %v5377_v41, %s9516_s29  ;;  %5213 = vst.msk [vmem:[#allocation2 + $0x141] sm:$0xff] %vm1920_vm11, %v5165_v47  ;;  %v5050_v3 = vadd.f32 %v12223_v49, %v5049_v2  ;;  %v8877_v54 = vpop.f32.mrb[90].mxu0  ;;  %v5340_v62 = vld [vmem:[#allocation2 + $0xa1] sm:$0xff]  ;;  %v9460_v47 = vld [vmem:[%s14035_s6 + $0xf0] sm:$0xff]  }
 0x2c5   : > { %v5122_v29 = vmax.f32 %v5058_v53, 0.0  ;;  %v5061_v28 = vadd.f32 %v8877_v54, %v12223_v49  ;;  %v5052_v23 = vpop.f32.mrb[91].mxu0  ;;  %v5341_v53 = vld [vmem:[#allocation2 + $0xa9] sm:$0xff]  ;;  %v2423_v54 = vpack.c.bf16 %v2397_v45, %v2396_v46  ;;  %v2112_v45 = vld [vmem:[#allocation2 + $0x179] sm:$0xff]  ;;  %3959 = vmatpush1.bf16.msra.mxu1 %v9460_v47 }
 0x2c6   : > { %5720 = vrot.lane.b32.xlu0 %v5664_v48, %s9516_s29  ;;  %v5120_v20 = vmax.f32 %v5050_v3, 0.0  ;;  %v5053_v41 = vadd.f32 %v9478_v36, %v5052_v23  ;;  %v5626_v24 = vld [vmem:[#allocation2 + $0xa8] sm:$0xff]  ;;  %v5627_v3 = vld [vmem:[#allocation2 + $0xb0] sm:$0xff]  ;;  %3960 = vmatprep.subr.bf16.mxu1 %v14271_v43  ;;  %v6405_v52 = vld [vmem:[#allocation2 + $0x11a] sm:$0xff] }
 0x2c7   : > { %v5170_v49 = vmul.f32 %v14428_v50, %v5122_v29  ;;  %v5123_v2 = vmax.f32 %v5061_v28, 0.0  ;;  %v5378_v50 = vpack.c.bf16 %v5341_v53, %v5340_v62  ;;  %v2111_v29 = vld [vmem:[#allocation2 + $0x171] sm:$0xff] }
 0x2c8   : > { %2205 = vrot.lane.b32.xlu1 %v2135_v55, %s9516_s29  ;;  %v5168_v48 = vmul.f32 %v11224_v21, %v5120_v20  ;;  %v5121_v13 = vmax.f32 %v5053_v41, 0.0  ;;  %v2398_v28 = vld [vmem:[#allocation2 + $0x178] sm:$0xff]  ;;  %v5665_v41 = vpack.c.bf16 %v5627_v3, %v5626_v24  ;;  %v2136_v47 = vpack.c.bf16 %v2112_v45, %v2111_v29  ;;  %v2400_v45 = vld [vmem:[#allocation2 + $0x188] sm:$0xff]  ;;  %v5629_v3 = vld [vmem:[#allocation2 + $0xc0] sm:$0xff] }
 0x2c9   : > { %5218 = vst.msk [vmem:[#allocation2 + $0x169] sm:$0xff] %vm1920_vm11, %v5170_v49  ;;  %v5171_v23 = vmul.f32 %v11547_v9, %v5123_v2  ;;  %v12597_v9 = vld [vmem:[#allocation2 + $0x12a] sm:$0xff]  ;;  %v2399_v49 = vld [vmem:[#allocation2 + $0x180] sm:$0xff] }
 0x2ca   : > { %2492 = vrot.lane.b32.xlu0 %v2423_v54, %s9516_s29  ;;  %5216 = vst.msk [vmem:[#allocation2 + $0x159] sm:$0xff] %vm1920_vm11, %v5168_v48  ;;  %v5169_v21 = vmul.f32 %v11749_v15, %v5121_v13  ;;  %v8880_v46 = vpop.f32.mrb[92].mxu0  ;;  %v12602_v48 = vld [vmem:[#allocation2 + $0x132] sm:$0xff]  ;;  %v2424_v29 = vpack.c.bf16 %v2399_v49, %v2398_v28 }
 0x2cb   : > { %5219 = vst.msk [vmem:[#allocation2 + $0x171] sm:$0xff] %vm1920_vm11, %v5171_v23  ;;  %v5074_v55 = vadd.f32 %v9478_v36, %v8880_v46  ;;  %v5065_v20 = vpop.f32.mrb[93].mxu0  ;;  %v12605_v46 = vld [vmem:[#allocation2 + $0x13a] sm:$0xff]  ;;  %v12607_v24 = vld [vmem:[#allocation2 + $0x142] sm:$0xff] }
 0x2cc   : > { %5436 = vrot.lane.b32.xlu1 %v5378_v50, %s9516_s29  ;;  %5217 = vst.msk [vmem:[#allocation2 + $0x161] sm:$0xff] %vm1920_vm11, %v5169_v21  ;;  %v5066_v62 = vadd.f32 %v9478_v36, %v5065_v20  ;;  %v8881_v53 = vpop.f32.mrb[94].mxu0  ;;  %v5342_v50 = vld [vmem:[#allocation2 + $0xb1] sm:$0xff]  ;;  %v5343_v21 = vld [vmem:[#allocation2 + $0xb9] sm:$0xff] }
 0x2cd   : > { %v5126_v2 = vmax.f32 %v5074_v55, 0.0  ;;  %v5077_v54 = vadd.f32 %v9478_v36, %v8881_v53  ;;  %v5068_v15 = vpop.f32.mrb[95].mxu0  ;;  %v6403_v53 = vld [vmem:[#allocation2 + $0x10a] sm:$0xff] }
 0x2ce   : > { %5722 = vrot.lane.b32.xlu0 %v5665_v41, %s9516_s29  ;;  %v5124_v13 = vmax.f32 %v5066_v62, 0.0  ;;  %v5069_v23 = vadd.f32 %v9478_v36, %v5068_v15  ;;  %v2401_v36 = vld [vmem:[#allocation2 + $0x190] sm:$0xff] }
 0x2cf   : > { %v5174_v55 = vmul.f32 %v11800_v11, %v5126_v2  ;;  %v5127_v20 = vmax.f32 %v5077_v54, 0.0  ;;  %v12616_v15 = vld [vmem:[#allocation2 + $0x14a] sm:$0xff]  ;;  %v5379_v2 = vpack.c.bf16 %v5343_v21, %v5342_v50  ;;  %v5666_v54 = vpack.c.bf16 %v5629_v3, %v5628_v60 }
 0x2d0   : > { %2207 = vrot.lane.b32.xlu1 %v2136_v47, %s9516_s29  ;;  %v5172_v41 = vmul.f32 %v11842_v4, %v5124_v13  ;;  %v5125_v62 = vmax.f32 %v5069_v23, 0.0  ;;  %v5344_v23 = vld [vmem:[#allocation2 + $0xc1] sm:$0xff]  ;;  %v5345_v50 = vld [vmem:[#allocation2 + $0xc9] sm:$0xff]  ;;  %v2425_v3 = vpack.c.bf16 %v2401_v36, %v2400_v45  ;;  %v5346_v36 = vld [vmem:[#allocation2 + $0xd1] sm:$0xff] }
 0x2d1   : > { %5222 = vst.msk [vmem:[#allocation2 + $0x189] sm:$0xff] %vm1920_vm11, %v5174_v55  ;;  %v5175_v11 = vmul.f32 %v11854_v5, %v5127_v20  ;;  %v12623_v49 = vld [vmem:[#allocation2 + $0x152] sm:$0xff]  ;;  %v5630_v55 = vld [vmem:[#allocation2 + $0xc8] sm:$0xff] }
 0x2d2   : > { %2494 = vrot.lane.b32.xlu0 %v2424_v29, %s9516_s29  ;;  %5220 = vst.msk [vmem:[#allocation2 + $0x179] sm:$0xff] %vm1920_vm11, %v5172_v41  ;;  %v5173_v28 = vmul.f32 %v11865_v34, %v5125_v62  ;;  %v9462_v5 = vld [vmem:[%s14035_s6 + $0xf8] sm:$0xff]   ;;  %v2690_v34 = vpack.c.bf16 %v12241_v31, %v12244_v27  ;;  %v12643_v21 = vld [vmem:[#allocation2 + $0x16a] sm:$0xff]  ;;  %v5380_v31 = vpack.c.bf16 %v5345_v50, %v5344_v23  ;;  %v14529_v62 = vld [vmem:[#allocation40_spill] sm:$0xff] }
 0x2d3   : > { %5223 = vst.msk [vmem:[#allocation2 + $0x191] sm:$0xff] %vm1920_vm11, %v5175_v11  ;;  %v12636_v47 = vld [vmem:[#allocation2 + $0x15a] sm:$0xff]  ;;  %v12638_v13 = vld [vmem:[#allocation2 + $0x162] sm:$0xff]  ;;  %3961 = vmatpush1.bf16.msra.mxu1 %v9462_v5  ;;  %v5631_v20 = vld [vmem:[#allocation2 + $0xd0] sm:$0xff]  ;;  %v2691_v45 = vpack.c.bf16 %v14529_v62, %v12239_v30 }
 0x2d4   : > { %5438 = vrot.lane.b32.xlu1 %v5379_v2, %s9516_s29  ;;  %5221 = vst.msk [vmem:[#allocation2 + $0x181] sm:$0xff] %vm1920_vm11, %v5173_v28  ;;  %v5667_v41 = vpack.c.bf16 %v5631_v20, %v5630_v55  ;;  %v5347_v11 = vld [vmem:[#allocation2 + $0xd9] sm:$0xff]  ;;  %v14531_v55 = vld [vmem:[#allocation42_spill] sm:$0xff]  ;;  %v6378_v62 = vld [vmem:[#allocation2 + $0x42] sm:$0xff] }
 0x2d5   : > { %v9464_v2 = vld [vmem:[%s14035_s6 + $0x100] sm:$0xff]   ;;  %v5632_v28 = vld [vmem:[#allocation2 + $0xd8] sm:$0xff] }
 0x2d6   : > { %5724 = vrot.lane.b32.xlu0 %v5666_v54, %s9516_s29  ;;  %v5633_v54 = vld [vmem:[#allocation2 + $0xe0] sm:$0xff]  ;;  %8882 = vmatprep.subr.bf16.mxu1 %v9464_v2  ;;  %v6376_v50 = vld [vmem:[#allocation2 + $0x32] sm:$0xff] }
 0x2d7   : > { %v14530_v5 = vld [vmem:[#allocation44_spill] sm:$0xff]  ;;  %v5668_v23 = vpack.c.bf16 %v5633_v54, %v5632_v28  ;;  %v14532_v20 = vld [vmem:[#allocation43_spill] sm:$0xff]  ;;  %v5635_v28 = vld [vmem:[#allocation2 + $0xf0] sm:$0xff] }
 0x2d8   : > { %2738 = vrot.lane.b32.xlu1 %v2690_v34, %s9516_s29  ;;  %v5381_v34 = vpack.c.bf16 %v5347_v11, %v5346_v36  ;;  %v6377_v30 = vld [vmem:[#allocation2 + $0x3a] sm:$0xff]  ;;  %v5634_v11 = vld [vmem:[#allocation2 + $0xe8] sm:$0xff]  ;;  %v5350_v4 = vld [vmem:[#allocation2 + $0xf1] sm:$0xff] }
 0x2d9   : > { %v12646_v27 = vld [vmem:[#allocation2 + $0x172] sm:$0xff]  ;;  %v5348_v29 = vld [vmem:[#allocation2 + $0xe1] sm:$0xff] }
 0x2da   : > { %2496 = vrot.lane.b32.xlu0 %v2425_v3, %s9516_s29  ;;  %v6424_v3 = vpack.c.bf16 %v6377_v30, %v6376_v50  ;;  %v6381_v36 = vld [vmem:[#allocation2 + $0x5a] sm:$0xff]  ;;  %v6384_v50 = vld [vmem:[#allocation2 + $0x72] sm:$0xff]  ;;  %v14533_v30 = vld [vmem:[#allocation49_spill] sm:$0xff] }
 0x2dc   : > { %5440 = vrot.lane.b32.xlu1 %v5380_v31, %s9516_s29  ;;  %v2692_v31 = vpack.c.bf16 %v14532_v20, %v14531_v55  ;;  %6448 = vst.msk [vmem:[#allocation3 + $0x20] sm:$0xff] %vm1920_vm11, %v6424_v3  ;;  %v6385_v20 = vld [vmem:[#allocation2 + $0x7a] sm:$0xff] }
 0x2dd   : > { %v6428_v60 = vpack.c.bf16 %v6385_v20, %v6384_v50  ;;  %v6394_v20 = vld [vmem:[#allocation2 + $0xc2] sm:$0xff] }
 0x2de   : > { %5726 = vrot.lane.b32.xlu0 %v5667_v41, %s9516_s29  ;;  %v5349_v41 = vld [vmem:[#allocation2 + $0xe9] sm:$0xff] }
 0x2df   : > { %v5382_v55 = vpack.c.bf16 %v5349_v41, %v5348_v29  ;;  %6452 = vst.msk [vmem:[#allocation3 + $0xc0] sm:$0xff] %vm1920_vm11, %v6428_v60  ;;  %v6390_v41 = vld [vmem:[#allocation2 + $0xa2] sm:$0xff]  ;;  %v6396_v60 = vld [vmem:[#allocation2 + $0xd2] sm:$0xff] }
 0x2e0   : > { %2740 = vrot.lane.b32.xlu1 %v2691_v45, %s9516_s29  ;;  %v6379_v45 = vld [vmem:[#allocation2 + $0x4a] sm:$0xff] }
 0x2e1   : > { %v6425_v2 = vpack.c.bf16 %v6379_v45, %v6378_v62  ;;  %v6386_v62 = vld [vmem:[#allocation2 + $0x82] sm:$0xff]  ;;  %v6387_v45 = vld [vmem:[#allocation2 + $0x8a] sm:$0xff] }
 0x2e2   : > { %3026 = vrot.lane.b32.xlu0 %v14530_v5, %s9516_s29  ;;  %v6380_v5 = vld [vmem:[#allocation2 + $0x52] sm:$0xff] }
 0x2e3   : > { %v6426_v54 = vpack.c.bf16 %v6381_v36, %v6380_v5  ;;  %6449 = vst.msk [vmem:[#allocation3 + $0x48] sm:$0xff] %vm1920_vm11, %v6425_v2  ;;  %v5669_v5 = vpack.c.bf16 %v5635_v28, %v5634_v11  ;;  %v6388_v2 = vld [vmem:[#allocation2 + $0x92] sm:$0xff]  ;;  %v6389_v36 = vld [vmem:[#allocation2 + $0x9a] sm:$0xff] }
 0x2e4   : > { %5442 = vrot.lane.b32.xlu1 %v5381_v34, %s9516_s29  ;;  %v6382_v34 = vld [vmem:[#allocation2 + $0x62] sm:$0xff]  ;;  %v6430_v29 = vpack.c.bf16 %v6389_v36, %v6388_v2  ;;  %v6392_v11 = vld [vmem:[#allocation2 + $0xb2] sm:$0xff]  ;;  %v6393_v28 = vld [vmem:[#allocation2 + $0xba] sm:$0xff] }
 0x2e5   : > { %6450 = vst.msk [vmem:[#allocation3 + $0x70] sm:$0xff] %vm1920_vm11, %v6426_v54  ;;  %v6391_v54 = vld [vmem:[#allocation2 + $0xaa] sm:$0xff]  ;;  %v6398_v2 = vld [vmem:[#allocation2 + $0xe2] sm:$0xff] }
 0x2e6   : > { %5728 = vrot.lane.b32.xlu0 %v5668_v23, %s9516_s29  ;;  %v6383_v23 = vld [vmem:[#allocation2 + $0x6a] sm:$0xff]  ;;  %6454 = vst.msk [vmem:[#allocation3 + $0x110] sm:$0xff] %vm1920_vm11, %v6430_v29  ;;  %v5637_v36 = vld [vmem:[#allocation2 + $0x100] sm:$0xff] }
 0x2e7   : > { %v6427_v3 = vpack.c.bf16 %v6383_v23, %v6382_v34  ;;  %v14534_v34 = vld [vmem:[#allocation41_spill] sm:$0xff]  ;;  %v14535_v23 = vld [vmem:[#allocation46_spill] sm:$0xff] }
 0x2e8   : > { %2742 = vrot.lane.b32.xlu1 %v2692_v31, %s9516_s29  ;;  %v6429_v31 = vpack.c.bf16 %v6387_v45, %v6386_v62  ;;  %v2693_v50 = vpack.c.bf16 %v14535_v23, %v14534_v34  ;;  %v6395_v62 = vld [vmem:[#allocation2 + $0xca] sm:$0xff]  ;;  %v5636_v45 = vld [vmem:[#allocation2 + $0xf8] sm:$0xff] }
 0x2e9   : > { %6451 = vst.msk [vmem:[#allocation3 + $0x98] sm:$0xff] %vm1920_vm11, %v6427_v3  ;;  %v6432_v3 = vpack.c.bf16 %v6393_v28, %v6392_v11  ;;  %v6400_v34 = vld [vmem:[#allocation2 + $0xf2] sm:$0xff]  ;;  %v6402_v28 = vld [vmem:[#allocation2 + $0x102] sm:$0xff] }
 0x2ea   : > { %3028 = vrot.lane.b32.xlu0 %v14533_v30, %s9516_s29  ;;  %6453 = vst.msk [vmem:[#allocation3 + $0xe8] sm:$0xff] %vm1920_vm11, %v6429_v31  ;;  %v5351_v30 = vld [vmem:[#allocation2 + $0xf9] sm:$0xff]  ;;  %v6433_v31 = vpack.c.bf16 %v6395_v62, %v6394_v20  ;;  %v14536_v29 = vld [vmem:[#allocation50_spill] sm:$0xff]  ;;  %v6437_v20 = vpack.c.bf16 %v6403_v53, %v6402_v28 }
 0x2eb   : > { %6456 = vst.msk [vmem:[#allocation3 + $0x160] sm:$0xff] %vm1920_vm11, %v6432_v3  ;;  %v5383_v23 = vpack.c.bf16 %v5351_v30, %v5350_v4  ;;  %v6404_v62 = vld [vmem:[#allocation2 + $0x112] sm:$0xff]  ;;  %v5670_v3 = vpack.c.bf16 %v5637_v36, %v5636_v45  ;;  %v6407_v4 = vld [vmem:[#allocation2 + $0x12a] sm:$0xff]  ;;  %v6413_v28 = vld [vmem:[#allocation2 + $0x15a] sm:$0xff] }
 0x2ec   : > { %5444 = vrot.lane.b32.xlu1 %v5382_v55, %s9516_s29  ;;  %v6431_v55 = vpack.c.bf16 %v6391_v54, %v6390_v41  ;;  %v6399_v54 = vld [vmem:[#allocation2 + $0xea] sm:$0xff]  ;;  %6457 = vst.msk [vmem:[#allocation3 + $0x188] sm:$0xff] %vm1920_vm11, %v6433_v31  ;;  %6461 = vst.msk [vmem:[#allocation3 + $0x228] sm:$0xff] %vm1920_vm11, %v6437_v20  ;;  %v6408_v30 = vld [vmem:[#allocation2 + $0x132] sm:$0xff] }
 0x2ed   : > { %v6435_v11 = vpack.c.bf16 %v6399_v54, %v6398_v2  ;;  %v6409_v31 = vld [vmem:[#allocation2 + $0x13a] sm:$0xff] }
 0x2ee   : > { %5730 = vrot.lane.b32.xlu0 %v5669_v5, %s9516_s29  ;;  %6455 = vst.msk [vmem:[#allocation3 + $0x138] sm:$0xff] %vm1920_vm11, %v6431_v55  ;;  %v6397_v5 = vld [vmem:[#allocation2 + $0xda] sm:$0xff]  ;;  %v6440_v36 = vpack.c.bf16 %v6409_v31, %v6408_v30 }
 0x2ef   : > { %v6434_v41 = vpack.c.bf16 %v6397_v5, %v6396_v60  ;;  %6459 = vst.msk [vmem:[#allocation3 + $0x1d8] sm:$0xff] %vm1920_vm11, %v6435_v11  ;;  %v6438_v60 = vpack.c.bf16 %v6405_v52, %v6404_v62  ;;  %v6406_v5 = vld [vmem:[#allocation2 + $0x122] sm:$0xff]  ;;  %v14537_v53 = vld [vmem:[#allocation47_spill] sm:$0xff] }
 0x2f0   : > { %2744 = vrot.lane.b32.xlu1 %v2693_v50, %s9516_s29  ;;  %v6401_v50 = vld [vmem:[#allocation2 + $0xfa] sm:$0xff]  ;;  %v6439_v45 = vpack.c.bf16 %v6407_v4, %v6406_v5  ;;  %v6410_v52 = vld [vmem:[#allocation2 + $0x142] sm:$0xff]  ;;  %6464 = vst.msk [vmem:[#allocation3 + $0x2a0] sm:$0xff] %vm1920_vm11, %v6440_v36 }
 0x2f1   : > { %6458 = vst.msk [vmem:[#allocation3 + $0x1b0] sm:$0xff] %vm1920_vm11, %v6434_v41  ;;  %v6436_v55 = vpack.c.bf16 %v6401_v50, %v6400_v34  ;;  %v14538_v41 = vld [vmem:[#allocation48_spill] sm:$0xff]  ;;  %v5353_v34 = vld [vmem:[#allocation2 + $0x109] sm:$0xff]  ;;  %6462 = vst.msk [vmem:[#allocation3 + $0x250] sm:$0xff] %vm1920_vm11, %v6438_v60 }
 0x2f2   : > { %3030 = vrot.lane.b32.xlu0 %v14536_v29, %s9516_s29  ;;  %v2694_v54 = vpack.c.bf16 %v14538_v41, %v14537_v53  ;;  %v6411_v29 = vld [vmem:[#allocation2 + $0x14a] sm:$0xff]  ;;  %v6412_v50 = vld [vmem:[#allocation2 + $0x152] sm:$0xff]  ;;  %6463 = vst.msk [vmem:[#allocation3 + $0x278] sm:$0xff] %vm1920_vm11, %v6439_v45  ;;  %v9449_v53 = vld [vmem:[%s14035_s6 + $0x80] sm:$0xff]  }
 0x2f3   : > { %6460 = vst.msk [vmem:[#allocation3 + $0x200] sm:$0xff] %vm1920_vm11, %v6436_v55  ;;  %v6441_v11 = vpack.c.bf16 %v6411_v29, %v6410_v52  ;;  %v6442_v20 = vpack.c.bf16 %v6413_v28, %v6412_v50  ;;  %v5638_v62 = vld [vmem:[#allocation2 + $0x108] sm:$0xff]  ;;  %v14539_v60 = vld [vmem:[#allocation55_spill] sm:$0xff]  ;;  %v5252_v41 = vld [vmem:[#allocation2 + $0xe0] sm:$0xff] }
 0x2f4   : > { %5446 = vrot.lane.b32.xlu1 %v5383_v23, %s9516_s29  ;;  %v5352_v23 = vld [vmem:[#allocation2 + $0x101] sm:$0xff]  ;;  %v14541_v36 = vld [vmem:[#allocation51_spill] sm:$0xff] }
 0x2f5   : > { %6465 = vst.msk [vmem:[#allocation3 + $0x2c8] sm:$0xff] %vm1920_vm11, %v6441_v11  ;;  %v5384_v4 = vpack.c.bf16 %v5353_v34, %v5352_v23  ;;  %6466 = vst.msk [vmem:[#allocation3 + $0x2f0] sm:$0xff] %vm1920_vm11, %v6442_v20  ;;  %v14540_v45 = vld [vmem:[#allocation45_spill] sm:$0xff]  ;;  %v6416_v11 = vld [vmem:[#allocation2 + $0x172] sm:$0xff] }
 0x2f6   : > { %5732 = vrot.lane.b32.xlu0 %v5670_v3, %s9516_s29  ;;  %v5419_v2 = vpop.permute.xlu1 %5418  ;;  %v5639_v3 = vld [vmem:[#allocation2 + $0x110] sm:$0xff]  ;;  %v2695_v52 = vpack.c.bf16 %v14541_v36, %v14540_v45  ;;  %v5253_v29 = vld [vmem:[#allocation2 + $0xe8] sm:$0xff]  ;;  %v5355_v28 = vld [vmem:[#allocation2 + $0x119] sm:$0xff] }
 0x2f7   : > { %5489 = vst.msk [vmem:[#allocation3 + $0x28] sm:$0xff] %vm2233_vm3, %v5419_v2  ;;  %v5671_v31 = vpack.c.bf16 %v5639_v3, %v5638_v62  ;;  %v6472_v2 = vld [vmem:[#allocation3] sm:$0xff]  ;;  %v5354_v50 = vld [vmem:[#allocation2 + $0x111] sm:$0xff]  ;;  %v6417_v20 = vld [vmem:[#allocation2 + $0x17a] sm:$0xff] }
 0x2f8   : > { %v5705_v55 = vpop.permute.xlu0 %5704  ;;  %2746 = vrot.lane.b32.xlu1 %v2694_v54, %s9516_s29  ;;  %v6414_v54 = vld [vmem:[#allocation2 + $0x162] sm:$0xff]  ;;  %v6415_v23 = vld [vmem:[#allocation2 + $0x16a] sm:$0xff] }
 0x2f9   : > { %5776 = vst.msk [vmem:[#allocation3 + $0x8] sm:$0xff] %vm2233_vm3, %v5705_v55  ;;  %v6443_v55 = vpack.c.bf16 %v6415_v23, %v6414_v54  ;;  %v5385_v54 = vpack.c.bf16 %v5355_v28, %v5354_v50  ;;  %v9451_v36 = vld [vmem:[%s14035_s6 + $0x88] sm:$0xff]   ;;  %v5254_v28 = vld [vmem:[#allocation2 + $0xf0] sm:$0xff] }
 0x2fa   : > { %3032 = vrot.lane.b32.xlu0 %v14539_v60, %s9516_s29  ;;  %v2190_v5 = vpop.permute.xlu1 %2189  ;;  %v6444_v60 = vpack.c.bf16 %v6417_v20, %v6416_v11  ;;  %v14543_v23 = vld [vmem:[#allocation53_spill] sm:$0xff]  ;;  %v14544_v11 = vld [vmem:[#allocation54_spill] sm:$0xff] }
 0x2fb   : > { %2248 = vst.msk [vmem:[#allocation3 + $0x230] sm:$0xff] %vm2233_vm3, %v2190_v5  ;;  %v5640_v5 = vld [vmem:[#allocation2 + $0x118] sm:$0xff]  ;;  %v2696_v50 = vpack.c.bf16 %v14544_v11, %v14543_v23  ;;  %v5356_v20 = vld [vmem:[#allocation2 + $0x121] sm:$0xff] }
 0x2fc   : > { %v2477_v30 = vpop.permute.xlu0 %2476  ;;  %5448 = vrot.lane.b32.xlu1 %v5384_v4, %s9516_s29  ;;  %v5641_v4 = vld [vmem:[#allocation2 + $0x120] sm:$0xff]  ;;  %6467 = vst.msk [vmem:[#allocation3 + $0x318] sm:$0xff] %vm1920_vm11, %v6443_v55  ;;  %6468 = vst.msk [vmem:[#allocation3 + $0x340] sm:$0xff] %vm1920_vm11, %v6444_v60  ;;  %v5255_v55 = vld [vmem:[#allocation2 + $0xf8] sm:$0xff] }
 0x2fd   : > { %2535 = vst.msk [vmem:[#allocation3 + $0x210] sm:$0xff] %vm2233_vm3, %v2477_v30  ;;  %v5286_v30 = vpack.c.bf16 %v5253_v29, %v5252_v41  ;;  %v5573_v41 = vpack.c.bf16 %v12520_v7, %v12508_v58  ;;  %v5672_v29 = vpack.c.bf16 %v5641_v4, %v5640_v5  ;;  %v5642_v4 = vld [vmem:[#allocation2 + $0x128] sm:$0xff] }
 0x2fe   : > { %5734 = vrot.lane.b32.xlu0 %v5671_v31, %s9516_s29  ;;  %v5421_v34 = vpop.permute.xlu1 %5420  ;;  %v14542_v31 = vld [vmem:[#allocation56_spill] sm:$0xff] }
 0x2ff   : > { %5490 = vst.msk [vmem:[#allocation3 + $0x50] sm:$0xff] %vm2233_vm3, %v5421_v34 }
 0x300   : > { %v5707_v62 = vpop.permute.xlu0 %5706  ;;  %2748 = vrot.lane.b32.xlu1 %v2695_v52, %s9516_s29  ;;  %v6473_v3 = vld [vmem:[#allocation3 + $0x8] sm:$0xff] }
 0x301   : > { %5777 = vst.msk [vmem:[#allocation3 + $0x30] sm:$0xff] %vm2233_vm3, %v5707_v62  ;;  %6991 = vmatprep.mubr.bf16.mxu0 %v6473_v3  ;;  %v5357_v62 = vld [vmem:[#allocation2 + $0x129] sm:$0xff] }
 0x302   : > { %3034 = vrot.lane.b32.xlu0 %v14542_v31, %s9516_s29  ;;  %6992 = vmatmul.mubr.bf16.vlgmr.msra.gmra.mrb[96].mxu0 %v6472_v2  ;;  %v2192_v34 = vpop.permute.xlu1 %2191  ;;  %v3288_v45 = vld [vmem:[#allocation3 + $0x230] sm:$0xff]  ;;  %v9453_v3 = vld [vmem:[%s14035_s6 + $0x90] sm:$0xff]   ;;  %v5287_v31 = vpack.c.bf16 %v5255_v55, %v5254_v28  ;;  %v6418_v55 = vld [vmem:[#allocation2 + $0x182] sm:$0xff] }
 0x303   : > { %7185 = vmatpush1.bf16.msra.mxu0 %v9449_v53  ;;  %2249 = vst.msk [vmem:[#allocation3 + $0x258] sm:$0xff] %vm2233_vm3, %v2192_v34  ;;  %v12740_v34 = vld [vmem:[#allocation2 + $0x189] sm:$0xff] }
 0x304   : > { %5310 = vst.msk [vmem:[#allocation3 + $0x230] sm:$0xff] %vm1920_vm11, %v5286_v30  ;;  %v2479_v52 = vpop.permute.xlu0 %2478  ;;  %5450 = vrot.lane.b32.xlu1 %v5385_v54, %s9516_s29  ;;  %v3284_v2 = vld [vmem:[#allocation3 + $0x210] sm:$0xff]  ;;  %7186 = vmatprep.subr.bf16.mxu0 %v14271_v43  ;;  %v6477_v30 = vld [vmem:[#allocation3 + $0x28] sm:$0xff] }
 0x305   : > { %2536 = vst.msk [vmem:[#allocation3 + $0x238] sm:$0xff] %vm2233_vm3, %v2479_v52  ;;  %3841 = vmatprep.mubr.bf16.mxu1 %v3284_v2  ;;  %v12742_v54 = vld [vmem:[#allocation2 + $0x191] sm:$0xff]  ;;  %v5386_v52 = vpack.c.bf16 %v5357_v62, %v5356_v20 }
 0x306   : > { %5597 = vst.msk [vmem:[#allocation3 + $0x210] sm:$0xff] %vm1920_vm11, %v5573_v41  ;;  %5736 = vrot.lane.b32.xlu0 %v5672_v29, %s9516_s29  ;;  %v5423_v53 = vpop.permute.xlu1 %5422  ;;  %3842 = vmatmul.mubr.bf16.gmra.mrb[100].mxu1 %v12512_v25  ;;  %v5643_v25 = vld [vmem:[#allocation2 + $0x130] sm:$0xff]  ;;  %v9455_v29 = vld [vmem:[%s14035_s6 + $0x98] sm:$0xff]   ;;  %v5871_v28 = vpack.c.bf16 %v12742_v54, %v12740_v34 }
 0x307   : > { %5491 = vst.msk [vmem:[#allocation3 + $0x78] sm:$0xff] %vm2233_vm3, %v5423_v53  ;;  %7187 = vmatpush1.bf16.msra.mxu0 %v9451_v36  ;;  %v14545_v36 = vld [vmem:[#allocation61_spill] sm:$0xff]  ;;  %v5574_v53 = vpack.c.bf16 %v12524_v32, %v12514_v10  ;;  %v6420_v62 = vld [vmem:[#allocation2 + $0x192] sm:$0xff] }
 0x308   : > { %v5709_v60 = vpop.permute.xlu0 %5708  ;;  %2750 = vrot.lane.b32.xlu1 %v2696_v50, %s9516_s29  ;;  %v6478_v5 = vld [vmem:[#allocation3 + $0x30] sm:$0xff]  ;;  %7188 = vmatprep.subr.bf16.mxu0 %v14271_v43  ;;  %v5673_v50 = vpack.c.bf16 %v5643_v25, %v5642_v4  ;;  %v6419_v20 = vld [vmem:[#allocation2 + $0x18a] sm:$0xff] }
 0x309   : > { %5778 = vst.msk [vmem:[#allocation3 + $0x58] sm:$0xff] %vm2233_vm3, %v5709_v60  ;;  %6999 = vmatprep.mubr.bf16.mxu0 %v6478_v5  ;;  %v14546_v5 = vld [vmem:[#allocation52_spill] sm:$0xff]  ;;  %v14547_v4 = vld [vmem:[#allocation58_spill] sm:$0xff] }
 0x30a   : > { %3036 = vrot.lane.b32.xlu0 %v14545_v36, %s9516_s29  ;;  %v2194_v41 = vpop.permute.xlu1 %2193  ;;  %7000 = vmatmul.mubr.bf16.gmra.mrb[100].mxu0 %v6477_v30  ;;  %v12746_v2 = vld [vmem:[#allocation3 + $0x258] sm:$0xff]  ;;  %v2697_v25 = vpack.c.bf16 %v14547_v4, %v14546_v5  ;;  %v6445_v36 = vpack.c.bf16 %v6419_v20, %v6418_v55  ;;  %v5644_v55 = vld [vmem:[#allocation2 + $0x138] sm:$0xff]  ;;  %v9459_v4 = vld [vmem:[%s14035_s6 + $0xa8] sm:$0xff]  }
 0x30b   : > { %2250 = vst.msk [vmem:[#allocation3 + $0x280] sm:$0xff] %vm2233_vm3, %v2194_v41  ;;  %7189 = vmatpush1.bf16.msra.mxu0 %v9453_v3  ;;  %v6421_v3 = vld [vmem:[#allocation2 + $0x19a] sm:$0xff] }
 0x30c   : > { %5311 = vst.msk [vmem:[#allocation3 + $0x258] sm:$0xff] %vm1920_vm11, %v5287_v31  ;;  %v2481_v23 = vpop.permute.xlu0 %2480  ;;  %5452 = vrot.lane.b32.xlu1 %v5386_v52, %s9516_s29  ;;  %v3289_v11 = vld [vmem:[#allocation3 + $0x238] sm:$0xff]  ;;  %7190 = vmatprep.subr.bf16.mxu0 %v14271_v43  ;;  %v5257_v31 = vld [vmem:[#allocation2 + $0x108] sm:$0xff]  ;;  %v6446_v41 = vpack.c.bf16 %v6421_v3, %v6420_v62  ;;  %v5358_v52 = vld [vmem:[#allocation2 + $0x131] sm:$0xff] }
 0x30d   : > { %2537 = vst.msk [vmem:[#allocation3 + $0x260] sm:$0xff] %vm2233_vm3, %v2481_v23  ;;  %3849 = vmatprep.mubr.bf16.mxu1 %v3289_v11  ;;  %v5256_v30 = vld [vmem:[#allocation2 + $0x100] sm:$0xff]  ;;  %v14548_v62 = vld [vmem:[#allocation21_spill] sm:$0xff] }
 0x30e   : > { %5598 = vst.msk [vmem:[#allocation3 + $0x238] sm:$0xff] %vm1920_vm11, %v5574_v53  ;;  %5738 = vrot.lane.b32.xlu0 %v5673_v50, %s9516_s29  ;;  %v5425_v60 = vpop.permute.xlu1 %5424  ;;  %3850 = vmatmul.mubr.bf16.gmra.mrb[104].mxu1 %v3288_v45  ;;  %v5359_v23 = vld [vmem:[#allocation2 + $0x139] sm:$0xff]  ;;  %6469 = vst.msk [vmem:[#allocation3 + $0x368] sm:$0xff] %vm1920_vm11, %v6445_v36  ;;  %v5288_v20 = vpack.c.bf16 %v5257_v31, %v5256_v30 }
 0x30f   : > { %5492 = vst.msk [vmem:[#allocation3 + $0xa0] sm:$0xff] %vm2233_vm3, %v5425_v60  ;;  %7191 = vmatpush1.bf16.msra.mxu0 %v9455_v29  ;;  %v9457_v53 = vld [vmem:[%s14035_s6 + $0xa0] sm:$0xff]   ;;  %v6482_v50 = vld [vmem:[#allocation3 + $0x50] sm:$0xff]  ;;  %v5387_v60 = vpack.c.bf16 %v5359_v23, %v5358_v52 }
 0x310   : > { %v5711_v11 = vpop.permute.xlu0 %5710  ;;  %2752 = vrot.lane.b32.xlu1 %v2697_v25, %s9516_s29  ;;  %v6483_v45 = vld [vmem:[#allocation3 + $0x58] sm:$0xff]  ;;  %7192 = vmatprep.subr.bf16.mxu0 %v14271_v43  ;;  %6470 = vst.msk [vmem:[#allocation3 + $0x390] sm:$0xff] %vm1920_vm11, %v6446_v41  ;;  %v5575_v25 = vpack.c.bf16 %v12546_v40, %v12533_v39  ;;  %v14549_v52 = vld [vmem:[#allocation59_spill] sm:$0xff] }
 0x311   : > { %5779 = vst.msk [vmem:[#allocation3 + $0x80] sm:$0xff] %vm2233_vm3, %v5711_v11  ;;  %7007 = vmatprep.mubr.bf16.mxu0 %v6483_v45  ;;  %v5645_v29 = vld [vmem:[#allocation2 + $0x140] sm:$0xff]  ;;  %v5258_v11 = vld [vmem:[#allocation2 + $0x110] sm:$0xff]  ;;  %v5259_v45 = vld [vmem:[#allocation2 + $0x118] sm:$0xff] }
 0x312   : > { %3038 = vrot.lane.b32.xlu0 %v14548_v62, %s9516_s29  ;;  %v2196_v3 = vpop.permute.xlu1 %2195  ;;  %7008 = vmatmul.mubr.bf16.gmra.mrb[104].mxu0 %v6482_v50  ;;  %v3298_v5 = vld [vmem:[#allocation3 + $0x280] sm:$0xff]  ;;  %v5674_v36 = vpack.c.bf16 %v5645_v29, %v5644_v55  ;;  %v14550_v23 = vld [vmem:[#allocation60_spill] sm:$0xff]  ;;  %v9461_v29 = vld [vmem:[%s14035_s6 + $0xb0] sm:$0xff]  }
 0x313   : > { %2251 = vst.msk [vmem:[#allocation3 + $0x2a8] sm:$0xff] %vm2233_vm3, %v2196_v3  ;;  %7193 = vmatpush1.bf16.msra.mxu0 %v9457_v53  ;;  %v2698_v53 = vpack.c.bf16 %v14550_v23, %v14549_v52  ;;  %v5360_v50 = vld [vmem:[#allocation2 + $0x141] sm:$0xff]  ;;  %v5361_v55 = vld [vmem:[#allocation2 + $0x149] sm:$0xff] }
 0x314   : > { %5312 = vst.msk [vmem:[#allocation3 + $0x280] sm:$0xff] %vm1920_vm11, %v5288_v20  ;;  %v2483_v30 = vpop.permute.xlu0 %2482  ;;  %5454 = vrot.lane.b32.xlu1 %v5387_v60, %s9516_s29  ;;  %v3294_v31 = vld [vmem:[#allocation3 + $0x260] sm:$0xff]  ;;  %7194 = vmatprep.subr.bf16.mxu0 %v14271_v43  ;;  %v5647_v60 = vld [vmem:[#allocation2 + $0x150] sm:$0xff] }
 0x315   : > { %2538 = vst.msk [vmem:[#allocation3 + $0x288] sm:$0xff] %vm2233_vm3, %v2483_v30  ;;  %3857 = vmatprep.mubr.bf16.mxu1 %v3294_v31  ;;  %v5646_v3 = vld [vmem:[#allocation2 + $0x148] sm:$0xff]  ;;  %v5388_v30 = vpack.c.bf16 %v5361_v55, %v5360_v50  ;;  %v5260_v55 = vld [vmem:[#allocation2 + $0x120] sm:$0xff] }
 0x316   : > { %5599 = vst.msk [vmem:[#allocation3 + $0x260] sm:$0xff] %vm1920_vm11, %v5575_v25  ;;  %5740 = vrot.lane.b32.xlu0 %v5674_v36, %s9516_s29  ;;  %v5427_v41 = vpop.permute.xlu1 %5426  ;;  %3858 = vmatmul.mubr.bf16.gmra.mrb[108].mxu1 %v12746_v2  ;;  %v6487_v2 = vld [vmem:[#allocation3 + $0x78] sm:$0xff]  ;;  %v5289_v25 = vpack.c.bf16 %v5259_v45, %v5258_v11  ;;  %v9463_v36 = vld [vmem:[%s14035_s6 + $0xb8] sm:$0xff]   ;;  %v5675_v23 = vpack.c.bf16 %v5647_v60, %v5646_v3  ;;  %v14551_v11 = vld [vmem:[#allocation57_spill] sm:$0xff] }
 0x317   : > { %5493 = vst.msk [vmem:[#allocation3 + $0xc8] sm:$0xff] %vm2233_vm3, %v5427_v41  ;;  %7195 = vmatpush1.bf16.msra.mxu0 %v9459_v4  ;;  %v5576_v41 = vpack.c.bf16 %v12558_v26, %v12548_v33  ;;  %v14552_v45 = vld [vmem:[#allocation64_spill] sm:$0xff] }
 0x318   : > { %v5713_v20 = vpop.permute.xlu0 %5712  ;;  %2754 = vrot.lane.b32.xlu1 %v2698_v53, %s9516_s29  ;;  %v6488_v62 = vld [vmem:[#allocation3 + $0x80] sm:$0xff]  ;;  %7196 = vmatprep.subr.bf16.mxu0 %v14271_v43  ;;  %v2699_v50 = vpack.c.bf16 %v14552_v45, %v14551_v11 }
 0x319   : > { %5780 = vst.msk [vmem:[#allocation3 + $0xa8] sm:$0xff] %vm2233_vm3, %v5713_v20  ;;  %7015 = vmatprep.mubr.bf16.mxu0 %v6488_v62  ;;  %v5362_v20 = vld [vmem:[#allocation2 + $0x151] sm:$0xff]  ;;  %v5363_v62 = vld [vmem:[#allocation2 + $0x159] sm:$0xff] }
 0x31a   : > { %3040 = vrot.lane.b32.xlu0 %v11498_v8, %s9516_s29  ;;  %v2198_v4 = vpop.permute.xlu1 %2197  ;;  %7016 = vmatmul.mubr.bf16.gmra.mrb[108].mxu0 %v6487_v2  ;;  %v3303_v31 = vld [vmem:[#allocation3 + $0x2a8] sm:$0xff]  ;;  %v9465_v2 = vld [vmem:[%s14035_s6 + $0xc0] sm:$0xff]  }
 0x31b   : > { %2252 = vst.msk [vmem:[#allocation3 + $0x2d0] sm:$0xff] %vm2233_vm3, %v2198_v4  ;;  %7197 = vmatpush1.bf16.msra.mxu0 %v9461_v29  ;;  %v5261_v29 = vld [vmem:[#allocation2 + $0x128] sm:$0xff]  ;;  %v5649_v4 = vld [vmem:[#allocation2 + $0x160] sm:$0xff] }
 0x31c   : > { %5313 = vst.msk [vmem:[#allocation3 + $0x2a8] sm:$0xff] %vm1920_vm11, %v5289_v25  ;;  %v2485_v52 = vpop.permute.xlu0 %2484  ;;  %5456 = vrot.lane.b32.xlu1 %v5388_v30, %s9516_s29  ;;  %v3299_v8 = vld [vmem:[#allocation3 + $0x288] sm:$0xff]  ;;  %7198 = vmatprep.subr.bf16.mxu0 %v14271_v43  ;;  %v5648_v25 = vld [vmem:[#allocation2 + $0x158] sm:$0xff]  ;;  %v5290_v30 = vpack.c.bf16 %v5261_v29, %v5260_v55  ;;  %v14554_v29 = vld [vmem:[#allocation65_spill] sm:$0xff] }
 0x31d   : > { %2539 = vst.msk [vmem:[#allocation3 + $0x2b0] sm:$0xff] %vm2233_vm3, %v2485_v52  ;;  %3865 = vmatprep.mubr.bf16.mxu1 %v3299_v8  ;;  %v5389_v52 = vpack.c.bf16 %v5363_v62, %v5362_v20  ;;  %v14555_v20 = vld [vmem:[#allocation66_spill] sm:$0xff] }
 0x31e   : > { %5600 = vst.msk [vmem:[#allocation3 + $0x288] sm:$0xff] %vm1920_vm11, %v5576_v41  ;;  %5742 = vrot.lane.b32.xlu0 %v5675_v23, %s9516_s29  ;;  %v5429_v53 = vpop.permute.xlu1 %5428  ;;  %3866 = vmatmul.mubr.bf16.gmra.mrb[112].mxu1 %v3298_v5  ;;  %v6492_v5 = vld [vmem:[#allocation3 + $0xa0] sm:$0xff]  ;;  %v14553_v41 = vld [vmem:[#allocation67_spill] sm:$0xff]  ;;  %v2700_v62 = vpack.c.bf16 %v14555_v20, %v14554_v29 }
 0x31f   : > { %5494 = vst.msk [vmem:[#allocation3 + $0xf0] sm:$0xff] %vm2233_vm3, %v5429_v53  ;;  %7199 = vmatpush1.bf16.msra.mxu0 %v9463_v36  ;;  %v9466_v23 = vld [vmem:[%s14035_s6 + $0xc8] sm:$0xff]   ;;  %v5577_v53 = vpack.c.bf16 %v12575_v59, %v12565_v14 }
 0x320   : > { %v5715_v3 = vpop.permute.xlu0 %5714  ;;  %2756 = vrot.lane.b32.xlu1 %v2699_v50, %s9516_s29  ;;  %v6493_v60 = vld [vmem:[#allocation3 + $0xa8] sm:$0xff]  ;;  %7200 = vmatprep.subr.bf16.mxu0 %v14271_v43  ;;  %v5676_v50 = vpack.c.bf16 %v5649_v4, %v5648_v25 }
 0x321   : > { %5781 = vst.msk [vmem:[#allocation3 + $0xd0] sm:$0xff] %vm2233_vm3, %v5715_v3  ;;  %7023 = vmatprep.mubr.bf16.mxu0 %v6493_v60  ;;  %v5263_v3 = vld [vmem:[#allocation2 + $0x138] sm:$0xff]  ;;  %v5364_v60 = vld [vmem:[#allocation2 + $0x161] sm:$0xff]  ;;  %v9467_v25 = vld [vmem:[%s14035_s6 + $0xd0] sm:$0xff]  }
 0x322   : > { %3042 = vrot.lane.b32.xlu0 %v14553_v41, %s9516_s29  ;;  %v2200_v36 = vpop.permute.xlu1 %2199  ;;  %7024 = vmatmul.mubr.bf16.gmra.mrb[112].mxu0 %v6492_v5  ;;  %v3308_v8 = vld [vmem:[#allocation3 + $0x2d0] sm:$0xff]  ;;  %v5365_v5 = vld [vmem:[#allocation2 + $0x169] sm:$0xff] }
 0x323   : > { %2253 = vst.msk [vmem:[#allocation3 + $0x2f8] sm:$0xff] %vm2233_vm3, %v2200_v36  ;;  %7201 = vmatpush1.bf16.msra.mxu0 %v9465_v2  ;;  %v5262_v2 = vld [vmem:[#allocation2 + $0x130] sm:$0xff]  ;;  %v5650_v41 = vld [vmem:[#allocation2 + $0x168] sm:$0xff] }
 0x324   : > { %5314 = vst.msk [vmem:[#allocation3 + $0x2d0] sm:$0xff] %vm1920_vm11, %v5290_v30  ;;  %v2487_v11 = vpop.permute.xlu0 %2486  ;;  %5458 = vrot.lane.b32.xlu1 %v5389_v52, %s9516_s29  ;;  %v3304_v45 = vld [vmem:[#allocation3 + $0x2b0] sm:$0xff]  ;;  %7202 = vmatprep.subr.bf16.mxu0 %v14271_v43  ;;  %v5651_v36 = vld [vmem:[#allocation2 + $0x170] sm:$0xff]  ;;  %v5291_v52 = vpack.c.bf16 %v5263_v3, %v5262_v2 }
 0x325   : > { %2540 = vst.msk [vmem:[#allocation3 + $0x2d8] sm:$0xff] %vm2233_vm3, %v2487_v11  ;;  %3873 = vmatprep.mubr.bf16.mxu1 %v3304_v45  ;;  %v5390_v11 = vpack.c.bf16 %v5365_v5, %v5364_v60  ;;  %v14557_v3 = vld [vmem:[#allocation63_spill] sm:$0xff]  ;;  %v14558_v60 = vld [vmem:[#allocation26_spill] sm:$0xff] }
 0x326   : > { %5601 = vst.msk [vmem:[#allocation3 + $0x2b0] sm:$0xff] %vm1920_vm11, %v5577_v53  ;;  %5744 = vrot.lane.b32.xlu0 %v5676_v50, %s9516_s29  ;;  %v5431_v55 = vpop.permute.xlu1 %5430  ;;  %3874 = vmatmul.mubr.bf16.gmra.mrb[116].mxu1 %v3303_v31  ;;  %v6497_v31 = vld [vmem:[#allocation3 + $0xc8] sm:$0xff]  ;;  %v14556_v53 = vld [vmem:[#allocation27_spill] sm:$0xff]  ;;  %v2701_v5 = vpack.c.bf16 %v14558_v60, %v14557_v3  ;;  %v5579_v3 = vpack.c.bf16 %v12605_v46, %v12602_v48  ;;  %v9471_v60 = vld [vmem:[%s14035_s6 + $0xe8] sm:$0xff]  }
 0x327   : > { %5495 = vst.msk [vmem:[#allocation3 + $0x118] sm:$0xff] %vm2233_vm3, %v5431_v55  ;;  %7203 = vmatpush1.bf16.msra.mxu0 %v9466_v23  ;;  %v9468_v50 = vld [vmem:[%s14035_s6 + $0xd8] sm:$0xff]   ;;  %v5578_v55 = vpack.c.bf16 %v12597_v9, %v12577_v22 }
 0x328   : > { %v5717_v4 = vpop.permute.xlu0 %5716  ;;  %2758 = vrot.lane.b32.xlu1 %v2700_v62, %s9516_s29  ;;  %v6498_v30 = vld [vmem:[#allocation3 + $0xd0] sm:$0xff]  ;;  %7204 = vmatprep.subr.bf16.mxu0 %v14271_v43  ;;  %v5677_v62 = vpack.c.bf16 %v5651_v36, %v5650_v41  ;;  %v9470_v41 = vld [vmem:[%s14035_s6 + $0xe0] sm:$0xff]  }
 0x329   : > { %5782 = vst.msk [vmem:[#allocation3 + $0xf8] sm:$0xff] %vm2233_vm3, %v5717_v4  ;;  %7031 = vmatprep.mubr.bf16.mxu0 %v6498_v30  ;;  %v5265_v4 = vld [vmem:[#allocation2 + $0x148] sm:$0xff]  ;;  %v5366_v30 = vld [vmem:[#allocation2 + $0x171] sm:$0xff] }
 0x32a   : > { %3044 = vrot.lane.b32.xlu0 %v14556_v53, %s9516_s29  ;;  %v2202_v23 = vpop.permute.xlu1 %2201  ;;  %7032 = vmatmul.mubr.bf16.gmra.mrb[116].mxu0 %v6497_v31  ;;  %v3313_v45 = vld [vmem:[#allocation3 + $0x2f8] sm:$0xff]  ;;  %v14559_v53 = vld [vmem:[#allocation62_spill] sm:$0xff] }
 0x32b   : > { %2254 = vst.msk [vmem:[#allocation3 + $0x320] sm:$0xff] %vm2233_vm3, %v2202_v23  ;;  %7205 = vmatpush1.bf16.msra.mxu0 %v9467_v25  ;;  %v5264_v25 = vld [vmem:[#allocation2 + $0x140] sm:$0xff] }
 0x32c   : > { %5315 = vst.msk [vmem:[#allocation3 + $0x2f8] sm:$0xff] %vm1920_vm11, %v5291_v52  ;;  %v2489_v29 = vpop.permute.xlu0 %2488  ;;  %5460 = vrot.lane.b32.xlu1 %v5390_v11, %s9516_s29  ;;  %v3309_v20 = vld [vmem:[#allocation3 + $0x2d8] sm:$0xff]  ;;  %7206 = vmatprep.subr.bf16.mxu0 %v14271_v43  ;;  %v6502_v11 = vld [vmem:[#allocation3 + $0xf0] sm:$0xff] }
 0x32d   : > { %2541 = vst.msk [vmem:[#allocation3 + $0x300] sm:$0xff] %vm2233_vm3, %v2489_v29  ;;  %3881 = vmatprep.mubr.bf16.mxu1 %v3309_v20  ;;  %v5367_v31 = vld [vmem:[#allocation2 + $0x179] sm:$0xff] }
 0x32e   : > { %5602 = vst.msk [vmem:[#allocation3 + $0x2d8] sm:$0xff] %vm1920_vm11, %v5578_v55  ;;  %5746 = vrot.lane.b32.xlu0 %v5677_v62, %s9516_s29  ;;  %v5433_v2 = vpop.permute.xlu1 %5432  ;;  %3882 = vmatmul.mubr.bf16.gmra.mrb[120].mxu1 %v3308_v8  ;;  %v14560_v8 = vld [vmem:[#allocation28_spill] sm:$0xff]  ;;  %v5652_v55 = vld [vmem:[#allocation2 + $0x178] sm:$0xff]  ;;  %v5391_v62 = vpack.c.bf16 %v5367_v31, %v5366_v30 }
 0x32f   : > { %5496 = vst.msk [vmem:[#allocation3 + $0x140] sm:$0xff] %vm2233_vm3, %v5433_v2  ;;  %7207 = vmatpush1.bf16.msra.mxu0 %v9468_v50  ;;  %v2988_v23 = vpack.c.bf16 %v14560_v8, %v14559_v53  ;;  %v5653_v29 = vld [vmem:[#allocation2 + $0x180] sm:$0xff]  ;;  %v5292_v50 = vpack.c.bf16 %v5265_v4, %v5264_v25  ;;  %v14561_v31 = vld [vmem:[#allocation39_spill] sm:$0xff]  ;;  %v9472_v8 = vld [vmem:[%s14035_s6 + $0xf0] sm:$0xff]  }
 0x330   : > { %v5719_v36 = vpop.permute.xlu0 %5718  ;;  %2760 = vrot.lane.b32.xlu1 %v2701_v5, %s9516_s29  ;;  %v6503_v52 = vld [vmem:[#allocation3 + $0xf8] sm:$0xff]  ;;  %7208 = vmatprep.subr.bf16.mxu0 %v14271_v43  ;;  %v5678_v4 = vpack.c.bf16 %v5653_v29, %v5652_v55  ;;  %v5267_v53 = vld [vmem:[#allocation2 + $0x158] sm:$0xff]  ;;  %v14564_v29 = vld [vmem:[#allocation25_spill] sm:$0xff] }
 0x331   : > { %5783 = vst.msk [vmem:[#allocation3 + $0x120] sm:$0xff] %vm2233_vm3, %v5719_v36  ;;  %7039 = vmatprep.mubr.bf16.mxu0 %v6503_v52  ;;  %v5266_v52 = vld [vmem:[#allocation2 + $0x150] sm:$0xff]  ;;  %v14563_v55 = vld [vmem:[#allocation71_spill] sm:$0xff] }
 0x332   : > { %3046 = vrot.lane.b32.xlu0 %v2988_v23, %s9516_s29  ;;  %v2204_v20 = vpop.permute.xlu1 %2203  ;;  %7040 = vmatmul.mubr.bf16.gmra.mrb[120].mxu0 %v6502_v11  ;;  %v3318_v2 = vld [vmem:[#allocation3 + $0x320] sm:$0xff] }
 0x333   : > { %2255 = vst.msk [vmem:[#allocation3 + $0x348] sm:$0xff] %vm2233_vm3, %v2204_v20  ;;  %7209 = vmatpush1.bf16.msra.mxu0 %v9470_v41  ;;  %v14562_v41 = vld [vmem:[#allocation70_spill] sm:$0xff]  ;;  %v5654_v20 = vld [vmem:[#allocation2 + $0x188] sm:$0xff] }
 0x334   : > { %5316 = vst.msk [vmem:[#allocation3 + $0x320] sm:$0xff] %vm1920_vm11, %v5292_v50  ;;  %v2491_v5 = vpop.permute.xlu0 %2490  ;;  %5462 = vrot.lane.b32.xlu1 %v5391_v62, %s9516_s29  ;;  %v3314_v25 = vld [vmem:[#allocation3 + $0x300] sm:$0xff]  ;;  %7210 = vmatprep.subr.bf16.mxu0 %v14271_v43  ;;  %v2702_v36 = vpack.c.bf16 %v14562_v41, %v14561_v31  ;;  %v2989_v50 = vpack.c.bf16 %v14564_v29, %v14563_v55  ;;  %v5655_v62 = vld [vmem:[#allocation2 + $0x190] sm:$0xff] }
 0x335   : > { %2542 = vst.msk [vmem:[#allocation3 + $0x328] sm:$0xff] %vm2233_vm3, %v2491_v5  ;;  %3889 = vmatprep.mubr.bf16.mxu1 %v3314_v25  ;;  %v5580_v25 = vpack.c.bf16 %v12616_v15, %v12607_v24  ;;  %v14565_v31 = vpack.c.bf16 %v12283_v6, %v12278_v18  ;;  %v5269_v55 = vld [vmem:[#allocation2 + $0x168] sm:$0xff] }
 0x336   : > { %5603 = vst.msk [vmem:[#allocation3 + $0x300] sm:$0xff] %vm1920_vm11, %v5579_v3  ;;  %5748 = vrot.lane.b32.xlu0 %v5678_v4, %s9516_s29  ;;  %v5435_v30 = vpop.permute.xlu1 %5434  ;;  %3890 = vmatmul.mubr.bf16.gmra.mrb[124].mxu1 %v3313_v45  ;;  %v6507_v45 = vld [vmem:[#allocation3 + $0x118] sm:$0xff]  ;;  %v5293_v3 = vpack.c.bf16 %v5267_v53, %v5266_v52  ;;  %v9473_v4 = vld [vmem:[%s14035_s6 + $0xf8] sm:$0xff]   ;;  %v14568_v18 = vld [vmem:[#allocation69_spill] sm:$0xff] }
 0x337   : > { %5497 = vst.msk [vmem:[#allocation3 + $0x168] sm:$0xff] %vm2233_vm3, %v5435_v30  ;;  %7211 = vmatpush1.bf16.msra.mxu0 %v9471_v60  ;;  %v14566_v53 = vld [vmem:[#allocation68_spill] sm:$0xff]  ;;  %v14569_v29 = vld [vmem:[#allocation33_spill] sm:$0xff] }
 0x338   : > { %v5721_v23 = vpop.permute.xlu0 %5720  ;;  %2762 = vrot.lane.b32.xlu1 %v2702_v36, %s9516_s29  ;;  %v6508_v11 = vld [vmem:[#allocation3 + $0x120] sm:$0xff]  ;;  %7212 = vmatprep.subr.bf16.mxu0 %v14271_v43  ;;  %v5679_v36 = vpack.c.bf16 %v5655_v62, %v5654_v20 }
 0x339   : > { %5784 = vst.msk [vmem:[#allocation3 + $0x148] sm:$0xff] %vm2233_vm3, %v5721_v23  ;;  %7047 = vmatprep.mubr.bf16.mxu0 %v6508_v11  ;;  %v5268_v11 = vld [vmem:[#allocation2 + $0x160] sm:$0xff] }
 0x33a   : > { %3048 = vrot.lane.b32.xlu0 %v2989_v50, %s9516_s29  ;;  %v2206_v60 = vpop.permute.xlu1 %2205  ;;  %7048 = vmatmul.mubr.bf16.gmra.mrb[124].mxu0 %v6507_v45  ;;  %v3323_v5 = vld [vmem:[#allocation3 + $0x348] sm:$0xff]  ;;  %v2990_v50 = vpack.c.bf16 %v14569_v29, %v14568_v18  ;;  %v6512_v45 = vld [vmem:[#allocation3 + $0x140] sm:$0xff]  ;;  %v5294_v20 = vpack.c.bf16 %v5269_v55, %v5268_v11  ;;  %v14574_v18 = vld [vmem:[#allocation75_spill] sm:$0xff] }
 0x33b   : > { %2256 = vst.msk [vmem:[#allocation3 + $0x370] sm:$0xff] %vm2233_vm3, %v2206_v60  ;;  %7213 = vmatpush1.bf16.msra.mxu0 %v9472_v8  ;;  %v14567_v8 = vld [vmem:[#allocation31_spill] sm:$0xff]  ;;  %v5270_v55 = vld [vmem:[#allocation2 + $0x170] sm:$0xff]  ;;  %v14575_v29 = vld [vmem:[#allocation29_spill] sm:$0xff] }
 0x33c   : > { %5317 = vst.msk [vmem:[#allocation3 + $0x348] sm:$0xff] %vm1920_vm11, %v5293_v3  ;;  %v2493_v30 = vpop.permute.xlu0 %2492  ;;  %5992 = vrot.lane.b32.xlu1 %v14565_v31, %s9516_s29  ;;  %v3319_v41 = vld [vmem:[#allocation3 + $0x328] sm:$0xff]  ;;  %7214 = vmatprep.subr.bf16.mxu0 %v14271_v43  ;;  %v2703_v23 = vpack.c.bf16 %v14567_v8, %v14566_v53  ;;  %v14570_v31 = vld [vmem:[#allocation11_spill] sm:$0xff]  ;;  %v14572_v8 = vld [vmem:[#allocation32_spill] sm:$0xff] }
 0x33d   : > { %2543 = vst.msk [vmem:[#allocation3 + $0x350] sm:$0xff] %vm2233_vm3, %v2493_v30  ;;  %3897 = vmatprep.mubr.bf16.mxu1 %v3319_v41  ;;  %v6184_v60 = vld [vmem:[#allocation2 + $0x31] sm:$0xff]  ;;  %v14571_v41 = vpack.c.bf16 %v12305_v51, %v14570_v31 }
 0x33e   : > { %5604 = vst.msk [vmem:[#allocation3 + $0x328] sm:$0xff] %vm1920_vm11, %v5580_v25  ;;  %5750 = vrot.lane.b32.xlu0 %v5679_v36, %s9516_s29  ;;  %v5437_v52 = vpop.permute.xlu1 %5436  ;;  %3898 = vmatmul.mubr.bf16.gmra.mrb[128].mxu1 %v3318_v2  ;;  %v6185_v2 = vld [vmem:[#allocation2 + $0x39] sm:$0xff] }
 0x33f   : > { %5498 = vst.msk [vmem:[#allocation3 + $0x190] sm:$0xff] %vm2233_vm3, %v5437_v52  ;;  %7215 = vmatpush1.bf16.msra.mxu0 %v9473_v4  ;;  %v9479_v25 = vld [vmem:[#allocation2 + $0x152] sm:$0xff]  ;;  %v6232_v52 = vpack.c.bf16 %v6185_v2, %v6184_v60  ;;  %v6186_v2 = vld [vmem:[#allocation2 + $0x41] sm:$0xff] }
 0x340   : > { %v5723_v6 = vpop.permute.xlu0 %5722  ;;  %2764 = vrot.lane.b32.xlu1 %v2703_v23, %s9516_s29  ;;  %v6513_v43 = vld [vmem:[#allocation3 + $0x148] sm:$0xff]  ;;  %v5581_v4 = vpack.c.bf16 %v12636_v47, %v9479_v25  ;;  %v9480_v25 = vld [vmem:[#allocation2 + $0x162] sm:$0xff] }
 0x341   : > { %5785 = vst.msk [vmem:[#allocation3 + $0x170] sm:$0xff] %vm2233_vm3, %v5723_v6  ;;  %7055 = vmatprep.mubr.bf16.mxu0 %v6513_v43  ;;  %v14573_v23 = vld [vmem:[#allocation74_spill] sm:$0xff]  ;;  %v5271_v6 = vld [vmem:[#allocation2 + $0x178] sm:$0xff] }
 0x342   : > { %3050 = vrot.lane.b32.xlu0 %v2990_v50, %s9516_s29  ;;  %v2208_v62 = vpop.permute.xlu1 %2207  ;;  %7056 = vmatmul.mubr.bf16.gmra.mrb[128].mxu0 %v6512_v45  ;;  %v3328_v3 = vld [vmem:[#allocation3 + $0x370] sm:$0xff]  ;;  %v2704_v11 = vpack.c.bf16 %v14573_v23, %v14572_v8  ;;  %v2991_v50 = vpack.c.bf16 %v14575_v29, %v14574_v18  ;;  %v6517_v45 = vld [vmem:[#allocation3 + $0x168] sm:$0xff]  ;;  %v14577_v8 = vld [vmem:[#allocation72_spill] sm:$0xff] }
 0x343   : > { %2257 = vst.msk [vmem:[#allocation3 + $0x398] sm:$0xff] %vm2233_vm3, %v2208_v62  ;;  %v14578_v23 = vld [vmem:[#allocation36_spill] sm:$0xff] }
 0x344   : > { %5318 = vst.msk [vmem:[#allocation3 + $0x370] sm:$0xff] %vm1920_vm11, %v5294_v20  ;;  %v2495_v30 = vpop.permute.xlu0 %2494  ;;  %5994 = vrot.lane.b32.xlu1 %v14571_v41, %s9516_s29  ;;  %v3324_v36 = vld [vmem:[#allocation3 + $0x350] sm:$0xff]  ;;  %v5295_v20 = vpack.c.bf16 %v5271_v6, %v5270_v55  ;;  %v14576_v41 = vpack.c.bf16 %v12324_v42, %v12316_v57  ;;  %v5801_v55 = vld [vmem:[#allocation2 + $0x21] sm:$0xff] }
 0x345   : > { %2544 = vst.msk [vmem:[#allocation3 + $0x378] sm:$0xff] %vm2233_vm3, %v2495_v30  ;;  %3905 = vmatprep.mubr.bf16.mxu1 %v3324_v36  ;;  %v14579_v42 = vld [vmem:[#allocation73_spill] sm:$0xff]  ;;  %v5800_v18 = vld [vmem:[#allocation2 + $0x19] sm:$0xff] }
 0x346   : > { %5605 = vst.msk [vmem:[#allocation3 + $0x350] sm:$0xff] %vm1920_vm11, %v5581_v4  ;;  %6280 = vrot.lane.b32.xlu0 %v6232_v52, %s9516_s29  ;;  %v5439_v53 = vpop.permute.xlu1 %5438  ;;  %3906 = vmatmul.mubr.bf16.gmra.mrb[132].mxu1 %v3323_v5  ;;  %v6187_v5 = vld [vmem:[#allocation2 + $0x49] sm:$0xff]  ;;  %v12949_v29 = vld [vmem:[#allocation2 + $0x17a] sm:$0xff] }
 0x347   : > { %5499 = vst.msk [vmem:[#allocation3 + $0x1b8] sm:$0xff] %vm2233_vm3, %v5439_v53  ;;  %v9481_v4 = vld [vmem:[#allocation2 + $0x16a] sm:$0xff]  ;;  %v6233_v52 = vpack.c.bf16 %v6187_v5, %v6186_v2  ;;  %v5848_v2 = vpack.c.bf16 %v5801_v55, %v5800_v18 }
 0x348   : > { %v5725_v51 = vpop.permute.xlu0 %5724  ;;  %2766 = vrot.lane.b32.xlu1 %v2704_v11, %s9516_s29  ;;  %v6518_v43 = vld [vmem:[#allocation3 + $0x170] sm:$0xff]  ;;  %v5582_v30 = vpack.c.bf16 %v9481_v4, %v9480_v25  ;;  %v2705_v11 = vpack.c.bf16 %v14578_v23, %v14577_v8  ;;  %v14584_v8 = vld [vmem:[#allocation78_spill] sm:$0xff] }
 0x349   : > { %5786 = vst.msk [vmem:[#allocation3 + $0x198] sm:$0xff] %vm2233_vm3, %v5725_v51  ;;  %7063 = vmatprep.mubr.bf16.mxu0 %v6518_v43  ;;  %v14580_v51 = vld [vmem:[#allocation38_spill] sm:$0xff] }
 0x34a   : > { %3052 = vrot.lane.b32.xlu0 %v2991_v50, %s9516_s29  ;;  %v2739_v62 = vpop.permute.xlu1 %2738  ;;  %7064 = vmatmul.mubr.bf16.gmra.mrb[132].mxu0 %v6517_v45  ;;  %v3333_v60 = vld [vmem:[#allocation3 + $0x398] sm:$0xff]  ;;  %v2992_v43 = vpack.c.bf16 %v14580_v51, %v14579_v42  ;;  %v6188_v50 = vld [vmem:[#allocation2 + $0x51] sm:$0xff]  ;;  %v5802_v51 = vld [vmem:[#allocation2 + $0x29] sm:$0xff] }
 0x34b   : > { %2810 = vst.msk [vmem:[#allocation3 + $0x10] sm:$0xff] %vm2233_vm3, %v2739_v62  ;;  %v6189_v45 = vld [vmem:[#allocation2 + $0x59] sm:$0xff] }
 0x34c   : > { %5319 = vst.msk [vmem:[#allocation3 + $0x398] sm:$0xff] %vm1920_vm11, %v5295_v20  ;;  %v2497_v31 = vpop.permute.xlu0 %2496  ;;  %5996 = vrot.lane.b32.xlu1 %v14576_v41, %s9516_s29  ;;  %v3329_v36 = vld [vmem:[#allocation3 + $0x378] sm:$0xff]  ;;  %v9482_v62 = vld [vmem:[#allocation2 + $0x172] sm:$0xff] }
 0x34d   : > { %2545 = vst.msk [vmem:[#allocation3 + $0x3a0] sm:$0xff] %vm2233_vm3, %v2497_v31  ;;  %3913 = vmatprep.mubr.bf16.mxu1 %v3329_v36  ;;  %v5583_v25 = vpack.c.bf16 %v12949_v29, %v9482_v62  ;;  %v6234_v36 = vpack.c.bf16 %v6189_v45, %v6188_v50 }
 0x34e   : > { %5606 = vst.msk [vmem:[#allocation3 + $0x378] sm:$0xff] %vm1920_vm11, %v5582_v30  ;;  %6282 = vrot.lane.b32.xlu0 %v6233_v52, %s9516_s29  ;;  %v5441_v53 = vpop.permute.xlu1 %5440  ;;  %3914 = vmatmul.mubr.bf16.gmra.mrb[136].mxu1 %v3328_v3  ;;  %v6522_v3 = vld [vmem:[#allocation3 + $0x190] sm:$0xff]  ;;  %v14581_v30 = vld [vmem:[#allocation12_spill] sm:$0xff] }
 0x34f   : > { %5500 = vst.msk [vmem:[#allocation3 + $0x1e0] sm:$0xff] %vm2233_vm3, %v5441_v53  ;;  %v14582_v31 = vpack.c.bf16 %v12346_v35, %v14581_v30  ;;  %v14583_v53 = vld [vmem:[#allocation37_spill] sm:$0xff]  ;;  %v6527_v18 = vld [vmem:[#allocation3 + $0x1b8] sm:$0xff] }
 0x350   : > { %v5727_v6 = vpop.permute.xlu0 %5726  ;;  %2768 = vrot.lane.b32.xlu1 %v2705_v11, %s9516_s29  ;;  %v6523_v57 = vld [vmem:[#allocation3 + $0x198] sm:$0xff]  ;;  %v2706_v23 = vpack.c.bf16 %v14584_v8, %v14583_v53  ;;  %v5803_v11 = vld [vmem:[#allocation2 + $0x31] sm:$0xff]  ;;  %v14589_v53 = vld [vmem:[#allocation81_spill] sm:$0xff] }
 0x351   : > { %5787 = vst.msk [vmem:[#allocation3 + $0x1c0] sm:$0xff] %vm2233_vm3, %v5727_v6  ;;  %7071 = vmatprep.mubr.bf16.mxu0 %v6523_v57  ;;  %v14585_v6 = vld [vmem:[#allocation79_spill] sm:$0xff]  ;;  %v5849_v50 = vpack.c.bf16 %v5803_v11, %v5802_v51  ;;  %v6090_v11 = vld [vmem:[#allocation2 + $0x40] sm:$0xff]  ;;  %v9474_v51 = vld [vmem:[%s14035_s6 + $0x110] sm:$0xff]  }
 0x352   : > { %3054 = vrot.lane.b32.xlu0 %v2992_v43, %s9516_s29  ;;  %v2741_v5 = vpop.permute.xlu1 %2740  ;;  %7072 = vmatmul.mubr.bf16.gmra.mrb[136].mxu0 %v6522_v3  ;;  %v3220_v20 = vld [vmem:[#allocation3 + $0x10] sm:$0xff]  ;;  %v6191_v3 = vld [vmem:[#allocation2 + $0x69] sm:$0xff] }
 0x353   : > { %2811 = vst.msk [vmem:[#allocation3 + $0x38] sm:$0xff] %vm2233_vm3, %v2741_v5  ;;  %v14586_v57 = vld [vmem:[#allocation35_spill] sm:$0xff]  ;;  %v6088_v5 = vld [vmem:[#allocation2 + $0x30] sm:$0xff] }
 0x354   : > { %5872 = vst.msk [vmem:[#allocation3 + $0x10] sm:$0xff] %vm1920_vm11, %v5848_v2  ;;  %v3027_v4 = vpop.permute.xlu0 %3026  ;;  %5998 = vrot.lane.b32.xlu1 %v14582_v31, %s9516_s29  ;;  %v3334_v41 = vld [vmem:[#allocation3 + $0x3a0] sm:$0xff]  ;;  %v2993_v42 = vpack.c.bf16 %v14586_v57, %v14585_v6  ;;  %v6089_v43 = vld [vmem:[#allocation2 + $0x38] sm:$0xff] }
 0x355   : > { %3098 = vst.msk [vmem:[#allocation3 + $0x18] sm:$0xff] %vm2233_vm3, %v3027_v4  ;;  %3921 = vmatprep.mubr.bf16.mxu1 %v3334_v41  ;;  %v6136_v62 = vpack.c.bf16 %v6089_v43, %v6088_v5  ;;  %v14587_v4 = vpack.c.bf16 %v12361_v63, %v12356_v38  ;;  %v9469_v41 = vld [vmem:[%s14035_s6 + $0x108] sm:$0xff]   ;;  %v5804_v38 = vld [vmem:[#allocation2 + $0x39] sm:$0xff] }
 0x356   : > { %5607 = vst.msk [vmem:[#allocation3 + $0x3a0] sm:$0xff] %vm1920_vm11, %v5583_v25  ;;  %6284 = vrot.lane.b32.xlu0 %v6234_v36, %s9516_s29  ;;  %v5443_v52 = vpop.permute.xlu1 %5442  ;;  %3922 = vmatmul.mubr.bf16.gmra.mrb[140].mxu1 %v3333_v60  ;;  %v6190_v60 = vld [vmem:[#allocation2 + $0x61] sm:$0xff]  ;;  %v14591_v57 = vld [vmem:[#allocation87_spill] sm:$0xff] }
 0x357   : > { %5501 = vst.msk [vmem:[#allocation3 + $0x208] sm:$0xff] %vm2233_vm3, %v5443_v52  ;;  %v6235_v31 = vpack.c.bf16 %v6191_v3, %v6190_v60  ;;  %v14588_v52 = vld [vmem:[#allocation76_spill] sm:$0xff]  ;;  %v14590_v6 = vld [vmem:[#allocation77_spill] sm:$0xff] }
 0x358   : > { %v5729_v55 = vpop.permute.xlu0 %5728  ;;  %2770 = vrot.lane.b32.xlu1 %v2706_v23, %s9516_s29  ;;  %v6528_v35 = vld [vmem:[#allocation3 + $0x1c0] sm:$0xff]  ;;  %v2707_v8 = vpack.c.bf16 %v14589_v53, %v14588_v52  ;;  %v9483_v23 = vld [vmem:[%s14035_s6 + $0x100] sm:$0xff]  }
 0x359   : > { %5788 = vst.msk [vmem:[#allocation3 + $0x1e8] sm:$0xff] %vm2233_vm3, %v5729_v55  ;;  %7079 = vmatprep.mubr.bf16.mxu0 %v6528_v35  ;;  %v5805_v63 = vld [vmem:[#allocation2 + $0x41] sm:$0xff]  ;;  %v6193_v60 = vld [vmem:[#allocation2 + $0x79] sm:$0xff]  ;;  %v5806_v53 = vld [vmem:[#allocation2 + $0x49] sm:$0xff] }
 0x35a   : > { %3056 = vrot.lane.b32.xlu0 %v2993_v42, %s9516_s29  ;;  %v2743_v45 = vpop.permute.xlu1 %2742  ;;  %7080 = vmatmul.mubr.bf16.gmra.mrb[140].mxu0 %v6527_v18  ;;  %v3225_v2 = vld [vmem:[#allocation3 + $0x38] sm:$0xff]  ;;  %v6091_v42 = vld [vmem:[#allocation2 + $0x48] sm:$0xff]  ;;  %v6192_v18 = vld [vmem:[#allocation2 + $0x71] sm:$0xff]  ;;  %v5850_v3 = vpack.c.bf16 %v5805_v63, %v5804_v38 }
 0x35b   : > { %2812 = vst.msk [vmem:[#allocation3 + $0x60] sm:$0xff] %vm2233_vm3, %v2743_v45  ;;  %v6532_v43 = vld [vmem:[#allocation3 + $0x1e0] sm:$0xff]  ;;  %v6137_v5 = vpack.c.bf16 %v6091_v42, %v6090_v11  ;;  %v14595_v38 = vld [vmem:[#allocation86_spill] sm:$0xff]  ;;  %v14596_v63 = vld [vmem:[#allocation80_spill] sm:$0xff] }
 0x35c   : > { %5873 = vst.msk [vmem:[#allocation3 + $0x38] sm:$0xff] %vm1920_vm11, %v5849_v50  ;;  %v3029_v25 = vpop.permute.xlu0 %3028  ;;  %6000 = vrot.lane.b32.xlu1 %v14587_v4, %s9516_s29  ;;  %v3221_v30 = vld [vmem:[#allocation3 + $0x18] sm:$0xff]  ;;  %v6092_v11 = vld [vmem:[#allocation2 + $0x50] sm:$0xff] }
 0x35d   : > { %3099 = vst.msk [vmem:[#allocation3 + $0x40] sm:$0xff] %vm2233_vm3, %v3029_v25  ;;  %3962 = vmatprep.mubr.bf16.mxu1 %v3221_v30  ;;  %v14592_v25 = vpack.c.bf16 %v12392_v1, %v12363_v37  ;;  %v6236_v30 = vpack.c.bf16 %v6193_v60, %v6192_v18  ;;  %v14597_v18 = vpack.c.bf16 %v12400_v61, %v12394_v0  ;;  %v6196_v0 = vld [vmem:[#allocation2 + $0x91] sm:$0xff] }
 0x35e   : > { %6160 = vst.msk [vmem:[#allocation3 + $0x18] sm:$0xff] %vm1920_vm11, %v6136_v62  ;;  %6286 = vrot.lane.b32.xlu0 %v6235_v31, %s9516_s29  ;;  %v5445_v36 = vpop.permute.xlu1 %5444  ;;  %3963 = vmatmul.mubr.bf16.vlgmr.msra.gmra.mrb[48].mxu1 %v3220_v20  ;;  %v2994_v20 = vpack.c.bf16 %v14591_v57, %v14590_v6  ;;  %v6195_v6 = vld [vmem:[#allocation2 + $0x89] sm:$0xff] }
 0x35f   : > { %5502 = vst.msk [vmem:[#allocation3 + $0x230] sm:$0xff] %vm2233_vm3, %v5445_v36  ;;  %8883 = vmatpush3.bf16.msra.mxu1 %v9483_v23  ;;  %v14594_v36 = vld [vmem:[#allocation85_spill] sm:$0xff]  ;;  %v2995_v23 = vpack.c.bf16 %v14596_v63, %v14595_v38  ;;  %v9475_v38 = vld [vmem:[%s14035_s6 + $0x118] sm:$0xff]  }
 0x360   : > { %v5731_v55 = vpop.permute.xlu0 %5730  ;;  %2772 = vrot.lane.b32.xlu1 %v2707_v8, %s9516_s29  ;;  %v6533_v35 = vld [vmem:[#allocation3 + $0x1e8] sm:$0xff]  ;;  %8884 = vmatprep.subr.bf16.mxu1 %v9469_v41 }
 0x361   : > { %5789 = vst.msk [vmem:[#allocation3 + $0x210] sm:$0xff] %vm2233_vm3, %v5731_v55  ;;  %7087 = vmatprep.mubr.bf16.mxu0 %v6533_v35  ;;  %v5807_v8 = vld [vmem:[#allocation2 + $0x51] sm:$0xff]  ;;  %v6194_v35 = vld [vmem:[#allocation2 + $0x81] sm:$0xff] }
 0x362   : > { %3058 = vrot.lane.b32.xlu0 %v2994_v20, %s9516_s29  ;;  %v2745_v50 = vpop.permute.xlu1 %2744  ;;  %7088 = vmatmul.mubr.bf16.gmra.mrb[144].mxu0 %v6532_v43  ;;  %v3230_v45 = vld [vmem:[#allocation3 + $0x60] sm:$0xff]  ;;  %v6093_v55 = vld [vmem:[#allocation2 + $0x58] sm:$0xff]  ;;  %v5851_v57 = vpack.c.bf16 %v5807_v8, %v5806_v53  ;;  %v6094_v53 = vld [vmem:[#allocation2 + $0x60] sm:$0xff] }
 0x363   : > { %2813 = vst.msk [vmem:[#allocation3 + $0x88] sm:$0xff] %vm2233_vm3, %v2745_v50  ;;  %8885 = vmatpush3.bf16.msra.mxu1 %v9469_v41  ;;  %v14593_v41 = vld [vmem:[#allocation84_spill] sm:$0xff]  ;;  %v6095_v8 = vld [vmem:[#allocation2 + $0x68] sm:$0xff] }
 0x364   : > { %5874 = vst.msk [vmem:[#allocation3 + $0x60] sm:$0xff] %vm1920_vm11, %v5850_v3  ;;  %v3031_v62 = vpop.permute.xlu0 %3030  ;;  %6002 = vrot.lane.b32.xlu1 %v14592_v25, %s9516_s29  ;;  %v3226_v4 = vld [vmem:[#allocation3 + $0x40] sm:$0xff]  ;;  %8886 = vmatprep.subr.bf16.mxu1 %v9474_v51  ;;  %v2708_v52 = vpack.c.bf16 %v14594_v36, %v14593_v41  ;;  %v6237_v3 = vpack.c.bf16 %v6195_v6, %v6194_v35  ;;  %v14600_v41 = vld [vmem:[#allocation83_spill] sm:$0xff] }
 0x365   : > { %3100 = vst.msk [vmem:[#allocation3 + $0x68] sm:$0xff] %vm2233_vm3, %v3031_v62  ;;  %3970 = vmatprep.mubr.bf16.mxu1 %v3226_v4  ;;  %v14599_v62 = vld [vmem:[#allocation89_spill] sm:$0xff]  ;;  %v5808_v4 = vld [vmem:[#allocation2 + $0x59] sm:$0xff] }
 0x366   : > { %6161 = vst.msk [vmem:[#allocation3 + $0x40] sm:$0xff] %vm1920_vm11, %v6137_v5  ;;  %6288 = vrot.lane.b32.xlu0 %v6236_v30, %s9516_s29  ;;  %v5447_v31 = vpop.permute.xlu1 %5446  ;;  %3971 = vmatmul.mubr.bf16.gmra.mrb[52].mxu1 %v3225_v2  ;;  %v6537_v2 = vld [vmem:[#allocation3 + $0x208] sm:$0xff]  ;;  %v5809_v30 = vld [vmem:[#allocation2 + $0x61] sm:$0xff]  ;;  %v14601_v36 = vld [vmem:[#allocation95_spill] sm:$0xff] }
 0x367   : > { %5503 = vst.msk [vmem:[#allocation3 + $0x258] sm:$0xff] %vm2233_vm3, %v5447_v31  ;;  %8887 = vmatpush3.bf16.msra.mxu1 %v9474_v51  ;;  %v6138_v51 = vpack.c.bf16 %v6093_v55, %v6092_v11  ;;  %v14598_v5 = vld [vmem:[#allocation82_spill] sm:$0xff]  ;;  %v6139_v11 = vpack.c.bf16 %v6095_v8, %v6094_v53 }
 0x368   : > { %v5733_v37 = vpop.permute.xlu0 %5732  ;;  %2774 = vrot.lane.b32.xlu1 %v2708_v52, %s9516_s29  ;;  %v6538_v1 = vld [vmem:[#allocation3 + $0x210] sm:$0xff]  ;;  %v2709_v25 = vpack.c.bf16 %v14599_v62, %v14598_v5  ;;  %v2996_v52 = vpack.c.bf16 %v14601_v36, %v14600_v41  ;;  %8888 = vmatprep.subr.bf16.mxu1 %v9475_v38  ;;  %v6096_v62 = vld [vmem:[#allocation2 + $0x70] sm:$0xff] }
 0x369   : > { %5790 = vst.msk [vmem:[#allocation3 + $0x238] sm:$0xff] %vm2233_vm3, %v5733_v37  ;;  %7095 = vmatprep.mubr.bf16.mxu0 %v6538_v1  ;;  %v6197_v37 = vld [vmem:[#allocation2 + $0x99] sm:$0xff]  ;;  %v5852_v1 = vpack.c.bf16 %v5809_v30, %v5808_v4  ;;  %v6198_v4 = vld [vmem:[#allocation2 + $0xa1] sm:$0xff]  ;;  %v6199_v30 = vld [vmem:[#allocation2 + $0xa9] sm:$0xff] }
 0x36a   : > { %3060 = vrot.lane.b32.xlu0 %v2995_v23, %s9516_s29  ;;  %v2747_v20 = vpop.permute.xlu1 %2746  ;;  %7096 = vmatmul.mubr.bf16.gmra.mrb[148].mxu0 %v6537_v2  ;;  %v3235_v42 = vld [vmem:[#allocation3 + $0x88] sm:$0xff]  ;;  %v14602_v2 = vpack.c.bf16 %v12422_v44, %v12402_v17  ;;  %v6238_v6 = vpack.c.bf16 %v6197_v37, %v6196_v0 }
 0x36b   : > { %2814 = vst.msk [vmem:[#allocation3 + $0xb0] sm:$0xff] %vm2233_vm3, %v2747_v20  ;;  %8889 = vmatpush3.bf16.msra.mxu1 %v9475_v38  ;;  %v14603_v20 = vld [vmem:[#allocation92_spill] sm:$0xff]  ;;  %v14610_v38 = vld [vmem:[#allocation97_spill] sm:$0xff] }
 0x36c   : > { %5875 = vst.msk [vmem:[#allocation3 + $0x88] sm:$0xff] %vm1920_vm11, %v5851_v57  ;;  %v3033_v43 = vpop.permute.xlu0 %3032  ;;  %6004 = vrot.lane.b32.xlu1 %v14597_v18, %s9516_s29  ;;  %v3231_v60 = vld [vmem:[#allocation3 + $0x68] sm:$0xff] }
 0x36d   : > { %3101 = vst.msk [vmem:[#allocation3 + $0x90] sm:$0xff] %vm2233_vm3, %v3033_v43  ;;  %3978 = vmatprep.mubr.bf16.mxu1 %v3231_v60  ;;  %v5810_v18 = vld [vmem:[#allocation2 + $0x69] sm:$0xff]  ;;  %v5811_v60 = vld [vmem:[#allocation2 + $0x71] sm:$0xff] }
 0x36e   : > { %6162 = vst.msk [vmem:[#allocation3 + $0x68] sm:$0xff] %vm1920_vm11, %v6138_v51  ;;  %6290 = vrot.lane.b32.xlu0 %v6237_v3, %s9516_s29  ;;  %v5449_v50 = vpop.permute.xlu1 %5448  ;;  %3979 = vmatmul.mubr.bf16.gmra.mrb[56].mxu1 %v3230_v45  ;;  %v6542_v45 = vld [vmem:[#allocation3 + $0x230] sm:$0xff]  ;;  %v14604_v51 = vld [vmem:[#allocation93_spill] sm:$0xff]  ;;  %v14605_v3 = vld [vmem:[#allocation94_spill] sm:$0xff]  ;;  %v5853_v0 = vpack.c.bf16 %v5811_v60, %v5810_v18 }
 0x36f   : > { %5504 = vst.msk [vmem:[#allocation3 + $0x280] sm:$0xff] %vm2233_vm3, %v5449_v50  ;;  %v2710_v43 = vpack.c.bf16 %v14604_v51, %v14603_v20  ;;  %v14606_v50 = vld [vmem:[#allocation88_spill] sm:$0xff]  ;;  %v6099_v51 = vld [vmem:[#allocation2 + $0x88] sm:$0xff] }
 0x370   : > { %v5735_v61 = vpop.permute.xlu0 %5734  ;;  %2776 = vrot.lane.b32.xlu1 %v2709_v25, %s9516_s29  ;;  %v6543_v31 = vld [vmem:[#allocation3 + $0x238] sm:$0xff]  ;;  %v2997_v5 = vpack.c.bf16 %v14606_v50, %v14605_v3  ;;  %v6097_v25 = vld [vmem:[#allocation2 + $0x78] sm:$0xff] }
 0x371   : > { %5791 = vst.msk [vmem:[#allocation3 + $0x260] sm:$0xff] %vm2233_vm3, %v5735_v61  ;;  %7103 = vmatprep.mubr.bf16.mxu0 %v6543_v31  ;;  %v6140_v41 = vpack.c.bf16 %v6097_v25, %v6096_v62  ;;  %v6098_v20 = vld [vmem:[#allocation2 + $0x80] sm:$0xff] }
 0x372   : > { %3062 = vrot.lane.b32.xlu0 %v2996_v52, %s9516_s29  ;;  %v2749_v63 = vpop.permute.xlu1 %2748  ;;  %7104 = vmatmul.mubr.bf16.gmra.mrb[152].mxu0 %v6542_v45  ;;  %v3240_v23 = vld [vmem:[#allocation3 + $0xb0] sm:$0xff]  ;;  %v14607_v52 = vld [vmem:[#allocation13_spill] sm:$0xff]  ;;  %v6239_v45 = vpack.c.bf16 %v6199_v30, %v6198_v4  ;;  %v6141_v3 = vpack.c.bf16 %v6099_v51, %v6098_v20  ;;  %v14615_v30 = vld [vmem:[#allocation102_spill] sm:$0xff] }
 0x373   : > { %2815 = vst.msk [vmem:[#allocation3 + $0xd8] sm:$0xff] %vm2233_vm3, %v2749_v63  ;;  %v14608_v53 = vpack.c.bf16 %v12440_v12, %v14607_v52  ;;  %v6201_v18 = vld [vmem:[#allocation2 + $0xb9] sm:$0xff] }
 0x374   : > { %5876 = vst.msk [vmem:[#allocation3 + $0xb0] sm:$0xff] %vm1920_vm11, %v5852_v1  ;;  %v3035_v55 = vpop.permute.xlu0 %3034  ;;  %6006 = vrot.lane.b32.xlu1 %v14602_v2, %s9516_s29  ;;  %v3236_v35 = vld [vmem:[#allocation3 + $0x90] sm:$0xff]  ;;  %v14609_v1 = vld [vmem:[#allocation90_spill] sm:$0xff] }
 0x375   : > { %3102 = vst.msk [vmem:[#allocation3 + $0xb8] sm:$0xff] %vm2233_vm3, %v3035_v55  ;;  %3986 = vmatprep.mubr.bf16.mxu1 %v3236_v35  ;;  %v2711_v63 = vpack.c.bf16 %v14610_v38, %v14609_v1  ;;  %v5813_v55 = vld [vmem:[#allocation2 + $0x81] sm:$0xff]  ;;  %v14611_v35 = vld [vmem:[#allocation91_spill] sm:$0xff] }
 0x376   : > { %6163 = vst.msk [vmem:[#allocation3 + $0x90] sm:$0xff] %vm1920_vm11, %v6139_v11  ;;  %6292 = vrot.lane.b32.xlu0 %v6238_v6, %s9516_s29  ;;  %v5451_v57 = vpop.permute.xlu1 %5450  ;;  %3987 = vmatmul.mubr.bf16.gmra.mrb[60].mxu1 %v3235_v42  ;;  %v6547_v42 = vld [vmem:[#allocation3 + $0x258] sm:$0xff]  ;;  %v14612_v6 = vld [vmem:[#allocation98_spill] sm:$0xff]  ;;  %v6101_v1 = vld [vmem:[#allocation2 + $0x98] sm:$0xff] }
 0x377   : > { %5505 = vst.msk [vmem:[#allocation3 + $0x2a8] sm:$0xff] %vm2233_vm3, %v5451_v57  ;;  %v5812_v11 = vld [vmem:[#allocation2 + $0x79] sm:$0xff]  ;;  %v2998_v57 = vpack.c.bf16 %v14612_v6, %v14611_v35  ;;  %v6202_v38 = vld [vmem:[#allocation2 + $0xc1] sm:$0xff] }
 0x378   : > { %v5737_v17 = vpop.permute.xlu0 %5736  ;;  %2778 = vrot.lane.b32.xlu1 %v2710_v43, %s9516_s29  ;;  %v6548_v44 = vld [vmem:[#allocation3 + $0x260] sm:$0xff]  ;;  %v6200_v43 = vld [vmem:[#allocation2 + $0xb1] sm:$0xff]  ;;  %v5854_v60 = vpack.c.bf16 %v5813_v55, %v5812_v11  ;;  %v2880_v35 = vld [vmem:[#allocation2 + $0x1a0] sm:$0xff] }
 0x379   : > { %5792 = vst.msk [vmem:[#allocation3 + $0x288] sm:$0xff] %vm2233_vm3, %v5737_v17  ;;  %7111 = vmatprep.mubr.bf16.mxu0 %v6548_v44  ;;  %v2881_v6 = vld [vmem:[#allocation2 + $0x1a8] sm:$0xff]  ;;  %v14619_v20 = vld [vmem:[#allocation15_spill] sm:$0xff] }
 0x37a   : > { %3064 = vrot.lane.b32.xlu0 %v2997_v5, %s9516_s29  ;;  %v2751_v61 = vpop.permute.xlu1 %2750  ;;  %7112 = vmatmul.mubr.bf16.gmra.mrb[156].mxu0 %v6547_v42  ;;  %v3245_v31 = vld [vmem:[#allocation3 + $0xd8] sm:$0xff]  ;;  %v14613_v5 = vld [vmem:[#allocation14_spill] sm:$0xff]  ;;  %v6240_v42 = vpack.c.bf16 %v6201_v18, %v6200_v43  ;;  %v14620_v51 = vpack.c.bf16 %v12477_v19, %v14619_v20  ;;  %v13091_v18 = vpack.c.bf16 %v2881_v6, %v2880_v35  ;;  %v6105_v20 = vld [vmem:[#allocation2 + $0xb8] sm:$0xff] }
 0x37b   : > { %2816 = vst.msk [vmem:[#allocation3 + $0x100] sm:$0xff] %vm2233_vm3, %v2751_v61  ;;  %v14614_v62 = vpack.c.bf16 %v12462_v56, %v14613_v5  ;;  %v5816_v19 = vld [vmem:[#allocation2 + $0x99] sm:$0xff]  ;;  %v5819_v35 = vld [vmem:[#allocation2 + $0xb1] sm:$0xff] }
 0x37c   : > { %5877 = vst.msk [vmem:[#allocation3 + $0xd8] sm:$0xff] %vm1920_vm11, %v5853_v0  ;;  %v3037_v36 = vpop.permute.xlu0 %3036  ;;  %6008 = vrot.lane.b32.xlu1 %v14608_v53, %s9516_s29  ;;  %v3241_v8 = vld [vmem:[#allocation3 + $0xb8] sm:$0xff]  ;;  %v14617_v53 = vld [vmem:[#allocation103_spill] sm:$0xff]  ;;  %2929 = vst.msk [vmem:[#allocation3 + $0x3b0] sm:$0xff] %vm1920_vm11, %v13091_v18 }
 0x37d   : > { %3103 = vst.msk [vmem:[#allocation3 + $0xe0] sm:$0xff] %vm2233_vm3, %v3037_v36  ;;  %3994 = vmatprep.mubr.bf16.mxu1 %v3241_v8  ;;  %v14616_v0 = vld [vmem:[#allocation104_spill] sm:$0xff]  ;;  %v5815_v36 = vld [vmem:[#allocation2 + $0x91] sm:$0xff] }
 0x37e   : > { %6164 = vst.msk [vmem:[#allocation3 + $0xb8] sm:$0xff] %vm1920_vm11, %v6140_v41  ;;  %6294 = vrot.lane.b32.xlu0 %v6239_v45, %s9516_s29  ;;  %v5453_v37 = vpop.permute.xlu1 %5452  ;;  %3995 = vmatmul.mubr.bf16.gmra.mrb[64].mxu1 %v3240_v23  ;;  %v6552_v23 = vld [vmem:[#allocation3 + $0x280] sm:$0xff]  ;;  %v2712_v61 = vpack.c.bf16 %v14616_v0, %v14615_v30  ;;  %v14618_v8 = vld [vmem:[#allocation96_spill] sm:$0xff] }
 0x37f   : > { %5506 = vst.msk [vmem:[#allocation3 + $0x2d0] sm:$0xff] %vm2233_vm3, %v5453_v37  ;;  %v5814_v41 = vld [vmem:[#allocation2 + $0x89] sm:$0xff]  ;;  %v2999_v45 = vpack.c.bf16 %v14618_v8, %v14617_v53  ;;  %v6102_v0 = vld [vmem:[#allocation2 + $0xa0] sm:$0xff] }
 0x380   : > { %v5739_v12 = vpop.permute.xlu0 %5738  ;;  %2780 = vrot.lane.b32.xlu1 %v2711_v63, %s9516_s29  ;;  %v6553_v2 = vld [vmem:[#allocation3 + $0x288] sm:$0xff]  ;;  %v5855_v11 = vpack.c.bf16 %v5815_v36, %v5814_v41  ;;  %v6205_v36 = vld [vmem:[#allocation2 + $0xd9] sm:$0xff]  ;;  %v2976_v8 = vld [vmem:[#allocation2 + $0x1a1] sm:$0xff] }
 0x381   : > { %5793 = vst.msk [vmem:[#allocation3 + $0x2b0] sm:$0xff] %vm2233_vm3, %v5739_v12  ;;  %7119 = vmatprep.mubr.bf16.mxu0 %v6553_v2  ;;  %v6100_v37 = vld [vmem:[#allocation2 + $0x90] sm:$0xff] }
 0x382   : > { %3066 = vrot.lane.b32.xlu0 %v2998_v57, %s9516_s29  ;;  %v2753_v17 = vpop.permute.xlu1 %2752  ;;  %7120 = vmatmul.mubr.bf16.gmra.mrb[160].mxu0 %v6552_v23  ;;  %v3250_v44 = vld [vmem:[#allocation3 + $0x100] sm:$0xff]  ;;  %v6142_v2 = vpack.c.bf16 %v6101_v1, %v6100_v37  ;;  %v6204_v41 = vld [vmem:[#allocation2 + $0xd1] sm:$0xff] }
 0x383   : > { %2817 = vst.msk [vmem:[#allocation3 + $0x128] sm:$0xff] %vm2233_vm3, %v2753_v17  ;;  %v6203_v63 = vld [vmem:[#allocation2 + $0xc9] sm:$0xff] }
 0x384   : > { %5878 = vst.msk [vmem:[#allocation3 + $0x100] sm:$0xff] %vm1920_vm11, %v5854_v60  ;;  %v3039_v50 = vpop.permute.xlu0 %3038  ;;  %6010 = vrot.lane.b32.xlu1 %v14614_v62, %s9516_s29  ;;  %v3246_v25 = vld [vmem:[#allocation3 + $0xe0] sm:$0xff]  ;;  %v6241_v43 = vpack.c.bf16 %v6203_v63, %v6202_v38  ;;  %v13094_v60 = vld [vmem:[#allocation2 + $0x199] sm:$0xff]  ;;  %v6242_v63 = vpack.c.bf16 %v6205_v36, %v6204_v41 }
 0x385   : > { %3104 = vst.msk [vmem:[#allocation3 + $0x108] sm:$0xff] %vm2233_vm3, %v3039_v50  ;;  %4002 = vmatprep.mubr.bf16.mxu1 %v3246_v25  ;;  %v14622_v50 = vld [vmem:[#allocation101_spill] sm:$0xff] }
 0x386   : > { %6165 = vst.msk [vmem:[#allocation3 + $0xe0] sm:$0xff] %vm1920_vm11, %v6141_v3  ;;  %6296 = vrot.lane.b32.xlu0 %v6240_v42, %s9516_s29  ;;  %v5455_v4 = vpop.permute.xlu1 %5454  ;;  %4003 = vmatmul.mubr.bf16.gmra.mrb[68].mxu1 %v3245_v31  ;;  %v6557_v31 = vld [vmem:[#allocation3 + $0x2a8] sm:$0xff]  ;;  %v14621_v3 = vld [vmem:[#allocation100_spill] sm:$0xff]  ;;  %v6107_v41 = vld [vmem:[#allocation2 + $0xc8] sm:$0xff] }
 0x387   : > { %5507 = vst.msk [vmem:[#allocation3 + $0x2f8] sm:$0xff] %vm2233_vm3, %v5455_v4  ;;  %v2713_v5 = vpack.c.bf16 %v14622_v50, %v14621_v3  ;;  %v5817_v62 = vld [vmem:[#allocation2 + $0xa1] sm:$0xff]  ;;  %v14623_v4 = vld [vmem:[#allocation99_spill] sm:$0xff]  ;;  %v14626_v50 = vpack.c.bf16 %v12533_v39, %v12524_v32 }
 0x388   : > { %v5741_v56 = vpop.permute.xlu0 %5740  ;;  %2782 = vrot.lane.b32.xlu1 %v2712_v61, %s9516_s29  ;;  %v6558_v52 = vld [vmem:[#allocation3 + $0x2b0] sm:$0xff]  ;;  %v3000_v30 = vpack.c.bf16 %v13094_v60, %v14623_v4  ;;  %v6103_v61 = vld [vmem:[#allocation2 + $0xa8] sm:$0xff] }
 0x389   : > { %5794 = vst.msk [vmem:[#allocation3 + $0x2d8] sm:$0xff] %vm2233_vm3, %v5741_v56  ;;  %7127 = vmatprep.mubr.bf16.mxu0 %v6558_v52  ;;  %v5856_v56 = vpack.c.bf16 %v5817_v62, %v5816_v19  ;;  %v6143_v37 = vpack.c.bf16 %v6103_v61, %v6102_v0  ;;  %v13140_v62 = vld [vmem:[#allocation2 + $0xf1] sm:$0xff]  ;;  %v5820_v4 = vld [vmem:[#allocation2 + $0xb9] sm:$0xff]  ;;  %v5821_v32 = vld [vmem:[#allocation2 + $0xc1] sm:$0xff] }
 0x38a   : > { %3068 = vrot.lane.b32.xlu0 %v2999_v45, %s9516_s29  ;;  %v2755_v55 = vpop.permute.xlu1 %2754  ;;  %7128 = vmatmul.mubr.bf16.gmra.mrb[164].mxu0 %v6557_v31  ;;  %v3255_v12 = vld [vmem:[#allocation3 + $0x128] sm:$0xff]  ;;  %v14624_v31 = vpack.c.bf16 %v12508_v58, %v12479_v16  ;;  %v14625_v16 = vpack.c.bf16 %v12514_v10, %v12520_v7 }
 0x38b   : > { %2818 = vst.msk [vmem:[#allocation3 + $0x150] sm:$0xff] %vm2233_vm3, %v2755_v55  ;;  %v2977_v45 = vld [vmem:[#allocation2 + $0x1a9] sm:$0xff] }
 0x38c   : > { %5879 = vst.msk [vmem:[#allocation3 + $0x128] sm:$0xff] %vm1920_vm11, %v5855_v11  ;;  %v3041_v57 = vpop.permute.xlu0 %3040  ;;  %6012 = vrot.lane.b32.xlu1 %v14620_v51, %s9516_s29  ;;  %v3251_v23 = vld [vmem:[#allocation3 + $0x108] sm:$0xff]  ;;  %v13117_v55 = vpack.c.bf16 %v2977_v45, %v2976_v8 }
 0x38d   : > { %3105 = vst.msk [vmem:[#allocation3 + $0x130] sm:$0xff] %vm2233_vm3, %v3041_v57  ;;  %4010 = vmatprep.mubr.bf16.mxu1 %v3251_v23  ;;  %v6104_v57 = vld [vmem:[#allocation2 + $0xb0] sm:$0xff] }
 0x38e   : > { %6166 = vst.msk [vmem:[#allocation3 + $0x108] sm:$0xff] %vm1920_vm11, %v6142_v2  ;;  %6298 = vrot.lane.b32.xlu0 %v6241_v43, %s9516_s29  ;;  %v5457_v17 = vpop.permute.xlu1 %5456  ;;  %4011 = vmatmul.mubr.bf16.gmra.mrb[72].mxu1 %v3250_v44  ;;  %v6562_v44 = vld [vmem:[#allocation3 + $0x2d0] sm:$0xff]  ;;  %v5818_v2 = vld [vmem:[#allocation2 + $0xa9] sm:$0xff]  ;;  %v6567_v51 = vld [vmem:[#allocation3 + $0x2f8] sm:$0xff]  ;;  %v6144_v10 = vpack.c.bf16 %v6105_v20, %v6104_v57 }
 0x38f   : > { %5508 = vst.msk [vmem:[#allocation3 + $0x320] sm:$0xff] %vm2233_vm3, %v5457_v17  ;;  %v13127_v23 = vld [vmem:[#allocation2 + $0xe9] sm:$0xff]  ;;  %v5857_v43 = vpack.c.bf16 %v5819_v35, %v5818_v2  ;;  %v14629_v35 = vpack.c.bf16 %v12577_v22, %v12575_v59  ;;  %v6109_v57 = vld [vmem:[#allocation2 + $0xd8] sm:$0xff] }
 0x390   : > { %v5743_v25 = vpop.permute.xlu0 %5742  ;;  %2784 = vrot.lane.b32.xlu1 %v2713_v5, %s9516_s29  ;;  %v6563_v42 = vld [vmem:[#allocation3 + $0x2d8] sm:$0xff]  ;;  %v5822_v2 = vld [vmem:[#allocation2 + $0xc9] sm:$0xff] }
 0x391   : > { %5795 = vst.msk [vmem:[#allocation3 + $0x300] sm:$0xff] %vm2233_vm3, %v5743_v25  ;;  %7135 = vmatprep.mubr.bf16.mxu0 %v6563_v42  ;;  %v13142_v25 = vld [vmem:[#allocation2 + $0xf9] sm:$0xff] }
 0x392   : > { %3070 = vrot.lane.b32.xlu0 %v3000_v30, %s9516_s29  ;;  %v2757_v52 = vpop.permute.xlu1 %2756  ;;  %7136 = vmatmul.mubr.bf16.gmra.mrb[168].mxu0 %v6562_v44  ;;  %v3260_v53 = vld [vmem:[#allocation3 + $0x150] sm:$0xff]  ;;  %v14627_v30 = vpack.c.bf16 %v12548_v33, %v12546_v40  ;;  %v6244_v61 = vpack.c.bf16 %v13142_v25, %v13140_v62  ;;  %v6106_v44 = vld [vmem:[#allocation2 + $0xc0] sm:$0xff] }
 0x393   : > { %2819 = vst.msk [vmem:[#allocation3 + $0x178] sm:$0xff] %vm2233_vm3, %v2757_v52  ;;  %v13156_v52 = vld [vmem:[#allocation2 + $0x109] sm:$0xff]  ;;  %v6145_v33 = vpack.c.bf16 %v6107_v41, %v6106_v44  ;;  %v13210_v41 = vld [vmem:[#allocation2 + $0x141] sm:$0xff] }
 0x394   : > { %5880 = vst.msk [vmem:[#allocation3 + $0x150] sm:$0xff] %vm1920_vm11, %v5856_v56  ;;  %v3043_v1 = vpop.permute.xlu0 %3042  ;;  %6014 = vrot.lane.b32.xlu1 %v14624_v31, %s9516_s29  ;;  %v3256_v38 = vld [vmem:[#allocation3 + $0x130] sm:$0xff]  ;;  %v13154_v56 = vld [vmem:[#allocation2 + $0x101] sm:$0xff] }
 0x395   : > { %3106 = vst.msk [vmem:[#allocation3 + $0x158] sm:$0xff] %vm2233_vm3, %v3043_v1  ;;  %4018 = vmatprep.mubr.bf16.mxu1 %v3256_v38  ;;  %v6245_v31 = vpack.c.bf16 %v13156_v52, %v13154_v56  ;;  %v13168_v38 = vld [vmem:[#allocation2 + $0x111] sm:$0xff] }
 0x396   : > { %6167 = vst.msk [vmem:[#allocation3 + $0x130] sm:$0xff] %vm1920_vm11, %v6143_v37  ;;  %6300 = vrot.lane.b32.xlu0 %v6242_v63, %s9516_s29  ;;  %v5459_v11 = vpop.permute.xlu1 %5458  ;;  %4019 = vmatmul.mubr.bf16.gmra.mrb[76].mxu1 %v3255_v12  ;;  %v13125_v12 = vld [vmem:[#allocation2 + $0xe1] sm:$0xff]  ;;  %v14628_v37 = vpack.c.bf16 %v12565_v14, %v12558_v26  ;;  %v13170_v63 = vld [vmem:[#allocation2 + $0x119] sm:$0xff]  ;;  %v5823_v26 = vld [vmem:[#allocation2 + $0xd1] sm:$0xff] }
 0x397   : > { %5509 = vst.msk [vmem:[#allocation3 + $0x348] sm:$0xff] %vm2233_vm3, %v5459_v11  ;;  %v6243_v19 = vpack.c.bf16 %v13127_v23, %v13125_v12  ;;  %v6572_v36 = vld [vmem:[#allocation3 + $0x320] sm:$0xff] }
 0x398   : > { %v5745_v6 = vpop.permute.xlu0 %5744  ;;  %6016 = vrot.lane.b32.xlu1 %v14625_v16, %s9516_s29  ;;  %v6568_v58 = vld [vmem:[#allocation3 + $0x300] sm:$0xff]  ;;  %v6246_v16 = vpack.c.bf16 %v13170_v63, %v13168_v38 }
 0x399   : > { %5796 = vst.msk [vmem:[#allocation3 + $0x328] sm:$0xff] %vm2233_vm3, %v5745_v6  ;;  %7143 = vmatprep.mubr.bf16.mxu0 %v6568_v58  ;;  %v6108_v58 = vld [vmem:[#allocation2 + $0xd0] sm:$0xff] }
 0x39a   : > { %3072 = vrot.lane.b32.xlu0 %v13117_v55, %s9516_s29  ;;  %v2759_v17 = vpop.permute.xlu1 %2758  ;;  %7144 = vmatmul.mubr.bf16.gmra.mrb[172].mxu0 %v6567_v51  ;;  %v3265_v3 = vld [vmem:[#allocation3 + $0x178] sm:$0xff]  ;;  %v6146_v22 = vpack.c.bf16 %v6109_v57, %v6108_v58  ;;  %v5861_v58 = vpack.c.bf16 %v13140_v62, %v13127_v23  ;;  %v13255_v62 = vld [vmem:[#allocation2 + $0x171] sm:$0xff] }
 0x39b   : > { %2820 = vst.msk [vmem:[#allocation3 + $0x1a0] sm:$0xff] %vm2233_vm3, %v2759_v17  ;;  %v13182_v51 = vld [vmem:[#allocation2 + $0x121] sm:$0xff]  ;;  %v5859_v17 = vpack.c.bf16 %v5823_v26, %v5822_v2  ;;  %v6112_v26 = vld [vmem:[#allocation2 + $0xf0] sm:$0xff] }
 0x39c   : > { %5881 = vst.msk [vmem:[#allocation3 + $0x178] sm:$0xff] %vm1920_vm11, %v5857_v43  ;;  %v3045_v7 = vpop.permute.xlu0 %3044  ;;  %6018 = vrot.lane.b32.xlu1 %v14626_v50, %s9516_s29  ;;  %v3261_v5 = vld [vmem:[#allocation3 + $0x158] sm:$0xff]  ;;  %v13184_v43 = vld [vmem:[#allocation2 + $0x129] sm:$0xff] }
 0x39d   : > { %3107 = vst.msk [vmem:[#allocation3 + $0x180] sm:$0xff] %vm2233_vm3, %v3045_v7  ;;  %4026 = vmatprep.mubr.bf16.mxu1 %v3261_v5  ;;  %v14630_v7 = vpack.c.bf16 %v12602_v48, %v12597_v9  ;;  %v6247_v5 = vpack.c.bf16 %v13184_v43, %v13182_v51  ;;  %v14631_v48 = vpack.c.bf16 %v12607_v24, %v12605_v46  ;;  %v5941_v57 = vld [vmem:[#allocation2 + $0x182] sm:$0xff] }
 0x39e   : > { %6168 = vst.msk [vmem:[#allocation3 + $0x158] sm:$0xff] %vm1920_vm11, %v6144_v10  ;;  %6302 = vrot.lane.b32.xlu0 %v6243_v19, %s9516_s29  ;;  %v5461_v42 = vpop.permute.xlu1 %5460  ;;  %4027 = vmatmul.mubr.bf16.gmra.mrb[80].mxu1 %v3260_v53  ;;  %v5858_v53 = vpack.c.bf16 %v5821_v32, %v5820_v4  ;;  %v6577_v20 = vld [vmem:[#allocation3 + $0x348] sm:$0xff]  ;;  %v5824_v32 = vld [vmem:[#allocation2 + $0xd9] sm:$0xff] }
 0x39f   : > { %5510 = vst.msk [vmem:[#allocation3 + $0x370] sm:$0xff] %vm2233_vm3, %v5461_v42  ;;  %v13196_v19 = vld [vmem:[#allocation2 + $0x131] sm:$0xff]  ;;  %v13198_v42 = vld [vmem:[#allocation2 + $0x139] sm:$0xff] }
 0x3a0   : > { %v5747_v39 = vpop.permute.xlu0 %5746  ;;  %6020 = vrot.lane.b32.xlu1 %v14627_v30, %s9516_s29  ;;  %v6573_v0 = vld [vmem:[#allocation3 + $0x328] sm:$0xff]  ;;  %v6248_v30 = vpack.c.bf16 %v13198_v42, %v13196_v19 }
 0x3a1   : > { %5797 = vst.msk [vmem:[#allocation3 + $0x350] sm:$0xff] %vm2233_vm3, %v5747_v39  ;;  %7151 = vmatprep.mubr.bf16.mxu0 %v6573_v0  ;;  %v6110_v0 = vld [vmem:[#allocation2 + $0xe0] sm:$0xff] }
 0x3a2   : > { %6304 = vrot.lane.b32.xlu0 %v6244_v61, %s9516_s29  ;;  %v2761_v8 = vpop.permute.xlu1 %2760  ;;  %7152 = vmatmul.mubr.bf16.gmra.mrb[176].mxu0 %v6572_v36  ;;  %v3270_v40 = vld [vmem:[#allocation3 + $0x1a0] sm:$0xff] }
 0x3a3   : > { %2821 = vst.msk [vmem:[#allocation3 + $0x1c8] sm:$0xff] %vm2233_vm3, %v2761_v8  ;;  %v6111_v61 = vld [vmem:[#allocation2 + $0xe8] sm:$0xff] }
 0x3a4   : > { %5882 = vst.msk [vmem:[#allocation3 + $0x1a0] sm:$0xff] %vm1920_vm11, %v5858_v53  ;;  %v3047_v45 = vpop.permute.xlu0 %3046  ;;  %6022 = vrot.lane.b32.xlu1 %v14628_v37, %s9516_s29  ;;  %v3266_v1 = vld [vmem:[#allocation3 + $0x180] sm:$0xff]  ;;  %v5860_v53 = vpack.c.bf16 %v13125_v12, %v5824_v32  ;;  %v6147_v8 = vpack.c.bf16 %v6111_v61, %v6110_v0  ;;  %v13225_v37 = vld [vmem:[#allocation2 + $0x151] sm:$0xff]  ;;  %v6114_v32 = vld [vmem:[#allocation2 + $0x100] sm:$0xff] }
 0x3a5   : > { %3108 = vst.msk [vmem:[#allocation3 + $0x1a8] sm:$0xff] %vm2233_vm3, %v3047_v45  ;;  %4034 = vmatprep.mubr.bf16.mxu1 %v3266_v1  ;;  %v13212_v36 = vld [vmem:[#allocation2 + $0x149] sm:$0xff]  ;;  %v13227_v1 = vld [vmem:[#allocation2 + $0x159] sm:$0xff] }
 0x3a6   : > { %6169 = vst.msk [vmem:[#allocation3 + $0x180] sm:$0xff] %vm1920_vm11, %v6145_v33  ;;  %6306 = vrot.lane.b32.xlu0 %v6245_v31, %s9516_s29  ;;  %v5463_v11 = vpop.permute.xlu1 %5462  ;;  %4035 = vmatmul.mubr.bf16.gmra.mrb[84].mxu1 %v3265_v3  ;;  %v6582_v44 = vld [vmem:[#allocation3 + $0x370] sm:$0xff]  ;;  %v14632_v33 = vpack.c.bf16 %v12623_v49, %v12616_v15  ;;  %v6249_v12 = vpack.c.bf16 %v13212_v36, %v13210_v41 }
 0x3a7   : > { %5511 = vst.msk [vmem:[#allocation3 + $0x398] sm:$0xff] %vm2233_vm3, %v5463_v11  ;;  %v14633_v49 = vpack.c.bf16 %v12638_v13, %v12636_v47  ;;  %v6250_v2 = vpack.c.bf16 %v13227_v1, %v13225_v37 }
 0x3a8   : > { %v5749_v14 = vpop.permute.xlu0 %5748  ;;  %6024 = vrot.lane.b32.xlu1 %v14629_v35, %s9516_s29  ;;  %v6578_v6 = vld [vmem:[#allocation3 + $0x350] sm:$0xff] }
 0x3a9   : > { %5798 = vst.msk [vmem:[#allocation3 + $0x378] sm:$0xff] %vm2233_vm3, %v5749_v14  ;;  %7159 = vmatprep.mubr.bf16.mxu0 %v6578_v6  ;;  %v6113_v14 = vld [vmem:[#allocation2 + $0xf8] sm:$0xff]  ;;  %v13239_v6 = vld [vmem:[#allocation2 + $0x161] sm:$0xff] }
 0x3aa   : > { %6308 = vrot.lane.b32.xlu0 %v6246_v16, %s9516_s29  ;;  %v2763_v3 = vpop.permute.xlu1 %2762  ;;  %7160 = vmatmul.mubr.bf16.gmra.mrb[180].mxu0 %v6577_v20  ;;  %v3275_v59 = vld [vmem:[#allocation3 + $0x1c8] sm:$0xff]  ;;  %v6148_v20 = vpack.c.bf16 %v6113_v14, %v6112_v26 }
 0x3ab   : > { %2822 = vst.msk [vmem:[#allocation3 + $0x1f0] sm:$0xff] %vm2233_vm3, %v2763_v3  ;;  %v13241_v16 = vld [vmem:[#allocation2 + $0x169] sm:$0xff]  ;;  %v14634_v3 = vpack.c.bf16 %v12646_v27, %v12643_v21  ;;  %v5966_v21 = vpack.c.bf16 %v5941_v57, %v12949_v29  ;;  %v5862_v29 = vpack.c.bf16 %v13154_v56, %v13142_v25  ;;  %v5864_v57 = vpack.c.bf16 %v13182_v51, %v13170_v63 }
 0x3ac   : > { %5883 = vst.msk [vmem:[#allocation3 + $0x1c8] sm:$0xff] %vm1920_vm11, %v5859_v17  ;;  %v3049_v10 = vpop.permute.xlu0 %3048  ;;  %6026 = vrot.lane.b32.xlu1 %v14630_v7, %s9516_s29  ;;  %v3271_v50 = vld [vmem:[#allocation3 + $0x1a8] sm:$0xff]  ;;  %v6251_v23 = vpack.c.bf16 %v13241_v16, %v13239_v6 }
 0x3ad   : > { %3109 = vst.msk [vmem:[#allocation3 + $0x1d0] sm:$0xff] %vm2233_vm3, %v3049_v10  ;;  %4042 = vmatprep.mubr.bf16.mxu1 %v3271_v50  ;;  %v5942_v27 = vld [vmem:[#allocation2 + $0x18a] sm:$0xff]  ;;  %v5943_v7 = vld [vmem:[#allocation2 + $0x192] sm:$0xff] }
 0x3ae   : > { %6170 = vst.msk [vmem:[#allocation3 + $0x1a8] sm:$0xff] %vm1920_vm11, %v6146_v22  ;;  %6310 = vrot.lane.b32.xlu0 %v6247_v5, %s9516_s29  ;;  %v5993_v4 = vpop.permute.xlu1 %5992  ;;  %4043 = vmatmul.mubr.bf16.gmra.mrb[88].mxu1 %v3270_v40  ;;  %v6587_v35 = vld [vmem:[#allocation3 + $0x398] sm:$0xff]  ;;  %v5967_v0 = vpack.c.bf16 %v5943_v7, %v5942_v27  ;;  %v5865_v7 = vpack.c.bf16 %v13196_v19, %v13184_v43 }
 0x3af   : > { %6064 = vst.msk [vmem:[#allocation3 + $0x10] sm:$0xff] %vm2233_vm3, %v5993_v4  ;;  %v13257_v22 = vld [vmem:[#allocation2 + $0x179] sm:$0xff] }
 0x3b0   : > { %v5751_v9 = vpop.permute.xlu0 %5750  ;;  %6028 = vrot.lane.b32.xlu1 %v14631_v48, %s9516_s29  ;;  %v6583_v39 = vld [vmem:[#allocation3 + $0x378] sm:$0xff]  ;;  %v6252_v4 = vpack.c.bf16 %v13257_v22, %v13255_v62 }
 0x3b1   : > { %5799 = vst.msk [vmem:[#allocation3 + $0x3a0] sm:$0xff] %vm2233_vm3, %v5751_v9  ;;  %7167 = vmatprep.mubr.bf16.mxu0 %v6583_v39  ;;  %v6115_v9 = vld [vmem:[#allocation2 + $0x108] sm:$0xff] }
 0x3b2   : > { %6312 = vrot.lane.b32.xlu0 %v6248_v30, %s9516_s29  ;;  %v2765_v46 = vpop.permute.xlu1 %2764  ;;  %7168 = vmatmul.mubr.bf16.gmra.mrb[184].mxu0 %v6582_v44  ;;  %v3280_v24 = vld [vmem:[#allocation3 + $0x1f0] sm:$0xff]  ;;  %v13267_v39 = vld [vmem:[#allocation2 + $0x181] sm:$0xff]  ;;  %v6149_v44 = vpack.c.bf16 %v6115_v9, %v6114_v32 }
 0x3b3   : > { %2823 = vst.msk [vmem:[#allocation3 + $0x218] sm:$0xff] %vm2233_vm3, %v2765_v46 }
 0x3b4   : > { %5884 = vst.msk [vmem:[#allocation3 + $0x1f0] sm:$0xff] %vm1920_vm11, %v5860_v53  ;;  %v3051_v40 = vpop.permute.xlu0 %3050  ;;  %6030 = vrot.lane.b32.xlu1 %v14632_v33, %s9516_s29  ;;  %v3276_v45 = vld [vmem:[#allocation3 + $0x1d0] sm:$0xff] }
 0x3b5   : > { %3110 = vst.msk [vmem:[#allocation3 + $0x1f8] sm:$0xff] %vm2233_vm3, %v3051_v40  ;;  %4050 = vmatprep.mubr.bf16.mxu1 %v3276_v45  ;;  %v9485_v33 = vld [vmem:[#allocation2 + $0x191] sm:$0xff] }
 0x3b6   : > { %6171 = vst.msk [vmem:[#allocation3 + $0x1d0] sm:$0xff] %vm1920_vm11, %v6147_v8  ;;  %6314 = vrot.lane.b32.xlu0 %v6249_v12, %s9516_s29  ;;  %v5995_v31 = vpop.permute.xlu1 %5994  ;;  %4051 = vmatmul.mubr.bf16.gmra.mrb[92].mxu1 %v3275_v59  ;;  %v6474_v48 = vld [vmem:[#allocation3 + $0x10] sm:$0xff]  ;;  %v6254_v45 = vpack.c.bf16 %v13094_v60, %v9485_v33  ;;  %v6116_v12 = vld [vmem:[#allocation2 + $0x110] sm:$0xff] }
 0x3b7   : > { %6065 = vst.msk [vmem:[#allocation3 + $0x38] sm:$0xff] %vm2233_vm3, %v5995_v31  ;;  %v6117_v31 = vld [vmem:[#allocation2 + $0x118] sm:$0xff] }
 0x3b8   : > { %v6281_v15 = vpop.permute.xlu0 %6280  ;;  %6032 = vrot.lane.b32.xlu1 %v14633_v49, %s9516_s29  ;;  %v6588_v11 = vld [vmem:[#allocation3 + $0x3a0] sm:$0xff]  ;;  %v5863_v49 = vpack.c.bf16 %v13168_v38, %v13156_v52  ;;  %v6150_v26 = vpack.c.bf16 %v6117_v31, %v6116_v12 }
 0x3b9   : > { %6352 = vst.msk [vmem:[#allocation3 + $0x18] sm:$0xff] %vm2233_vm3, %v6281_v15  ;;  %7175 = vmatprep.mubr.bf16.mxu0 %v6588_v11 }
 0x3ba   : > { %6316 = vrot.lane.b32.xlu0 %v6250_v2, %s9516_s29  ;;  %v2767_v47 = vpop.permute.xlu1 %2766  ;;  %7176 = vmatmul.mubr.bf16.gmra.mrb[188].mxu0 %v6587_v35  ;;  %v3285_v13 = vld [vmem:[#allocation3 + $0x218] sm:$0xff] }
 0x3bb   : > { %2824 = vst.msk [vmem:[#allocation3 + $0x240] sm:$0xff] %vm2233_vm3, %v2767_v47  ;;  %v6119_v47 = vld [vmem:[#allocation2 + $0x128] sm:$0xff] }
 0x3bc   : > { %5885 = vst.msk [vmem:[#allocation3 + $0x218] sm:$0xff] %vm1920_vm11, %v5861_v58  ;;  %v3053_v17 = vpop.permute.xlu0 %3052  ;;  %6034 = vrot.lane.b32.xlu1 %v14634_v3, %s9516_s29  ;;  %v3281_v59 = vld [vmem:[#allocation3 + $0x1f8] sm:$0xff] }
 0x3bd   : > { %3111 = vst.msk [vmem:[#allocation3 + $0x220] sm:$0xff] %vm2233_vm3, %v3053_v17  ;;  %4058 = vmatprep.mubr.bf16.mxu1 %v3281_v59  ;;  %v6118_v58 = vld [vmem:[#allocation2 + $0x120] sm:$0xff] }
 0x3be   : > { %6172 = vst.msk [vmem:[#allocation3 + $0x1f8] sm:$0xff] %vm1920_vm11, %v6148_v20  ;;  %6318 = vrot.lane.b32.xlu0 %v6251_v23, %s9516_s29  ;;  %v5997_v10 = vpop.permute.xlu1 %5996  ;;  %4059 = vmatmul.mubr.bf16.gmra.mrb[96].mxu1 %v3280_v24  ;;  %v9484_v24 = vld [vmem:[#allocation2 + $0x189] sm:$0xff]  ;;  %v6479_v15 = vld [vmem:[#allocation3 + $0x38] sm:$0xff] }
 0x3bf   : > { %6066 = vst.msk [vmem:[#allocation3 + $0x60] sm:$0xff] %vm2233_vm3, %v5997_v10  ;;  %v6253_v8 = vpack.c.bf16 %v9484_v24, %v13267_v39  ;;  %v6120_v10 = vld [vmem:[#allocation2 + $0x130] sm:$0xff] }
 0x3c0   : > { %v6283_v50 = vpop.permute.xlu0 %6282  ;;  %6036 = vrot.lane.b32.xlu1 %v5966_v21, %s9516_s29  ;;  %v6475_v5 = vld [vmem:[#allocation3 + $0x18] sm:$0xff]  ;;  %v6121_v21 = vld [vmem:[#allocation2 + $0x138] sm:$0xff] }
 0x3c1   : > { %6353 = vst.msk [vmem:[#allocation3 + $0x40] sm:$0xff] %vm2233_vm3, %v6283_v50  ;;  %7216 = vmatprep.mubr.bf16.mxu0 %v6475_v5 }
 0x3c2   : > { %6320 = vrot.lane.b32.xlu0 %v6252_v4, %s9516_s29  ;;  %v2769_v30 = vpop.permute.xlu1 %2768  ;;  %7217 = vmatmul.mubr.bf16.vlgmr.msra.gmra.mrb[96].mxu0 %v6474_v48  ;;  %v3290_v61 = vld [vmem:[#allocation3 + $0x240] sm:$0xff]  ;;  %v6152_v4 = vpack.c.bf16 %v6121_v21, %v6120_v10 }
 0x3c3   : > { %2825 = vst.msk [vmem:[#allocation3 + $0x268] sm:$0xff] %vm2233_vm3, %v2769_v30  ;;  %v6123_v30 = vld [vmem:[#allocation2 + $0x148] sm:$0xff] }
 0x3c4   : > { %5886 = vst.msk [vmem:[#allocation3 + $0x240] sm:$0xff] %vm1920_vm11, %v5862_v29  ;;  %v3055_v53 = vpop.permute.xlu0 %3054  ;;  %6038 = vrot.lane.b32.xlu1 %v5967_v0, %s9516_s29  ;;  %v3286_v46 = vld [vmem:[#allocation3 + $0x220] sm:$0xff]  ;;  %v6122_v29 = vld [vmem:[#allocation2 + $0x140] sm:$0xff] }
 0x3c5   : > { %3112 = vst.msk [vmem:[#allocation3 + $0x248] sm:$0xff] %vm2233_vm3, %v3055_v53  ;;  %4066 = vmatprep.mubr.bf16.mxu1 %v3286_v46  ;;  %v6153_v46 = vpack.c.bf16 %v6123_v30, %v6122_v29  ;;  %v6132_v29 = vld [vmem:[#allocation2 + $0x190] sm:$0xff]  ;;  %v6133_v30 = vld [vmem:[#allocation2 + $0x198] sm:$0xff] }
 0x3c6   : > { %6173 = vst.msk [vmem:[#allocation3 + $0x220] sm:$0xff] %vm1920_vm11, %v6149_v44  ;;  %6322 = vrot.lane.b32.xlu0 %v6253_v8, %s9516_s29  ;;  %v5999_v25 = vpop.permute.xlu1 %5998  ;;  %4067 = vmatmul.mubr.bf16.gmra.mrb[100].mxu1 %v3285_v13  ;;  %v6484_v13 = vld [vmem:[#allocation3 + $0x60] sm:$0xff] }
 0x3c7   : > { %6067 = vst.msk [vmem:[#allocation3 + $0x88] sm:$0xff] %vm2233_vm3, %v5999_v25 }
 0x3c8   : > { %v6285_v56 = vpop.permute.xlu0 %6284  ;;  %v6480_v40 = vld [vmem:[#allocation3 + $0x40] sm:$0xff] }
 0x3c9   : > { %6354 = vst.msk [vmem:[#allocation3 + $0x68] sm:$0xff] %vm2233_vm3, %v6285_v56  ;;  %7224 = vmatprep.mubr.bf16.mxu0 %v6480_v40  ;;  %v6124_v56 = vld [vmem:[#allocation2 + $0x150] sm:$0xff]  ;;  %v6125_v40 = vld [vmem:[#allocation2 + $0x158] sm:$0xff] }
 0x3ca   : > { %6324 = vrot.lane.b32.xlu0 %v6254_v45, %s9516_s29  ;;  %v2771_v11 = vpop.permute.xlu1 %2770  ;;  %7225 = vmatmul.mubr.bf16.gmra.mrb[100].mxu0 %v6479_v15  ;;  %v3295_v2 = vld [vmem:[#allocation3 + $0x268] sm:$0xff]  ;;  %v5867_v45 = vpack.c.bf16 %v13225_v37, %v13212_v36  ;;  %v6154_v15 = vpack.c.bf16 %v6125_v40, %v6124_v56  ;;  %v6476_v40 = vld [vmem:[#allocation3 + $0x20] sm:$0xff] }
 0x3cb   : > { %2826 = vst.msk [vmem:[#allocation3 + $0x290] sm:$0xff] %vm2233_vm3, %v2771_v11 }
 0x3cc   : > { %5887 = vst.msk [vmem:[#allocation3 + $0x268] sm:$0xff] %vm1920_vm11, %v5863_v49  ;;  %v3057_v60 = vpop.permute.xlu0 %3056  ;;  %v3291_v14 = vld [vmem:[#allocation3 + $0x248] sm:$0xff] }
 0x3cd   : > { %3113 = vst.msk [vmem:[#allocation3 + $0x270] sm:$0xff] %vm2233_vm3, %v3057_v60  ;;  %4074 = vmatprep.mubr.bf16.mxu1 %v3291_v14  ;;  %v6127_v60 = vld [vmem:[#allocation2 + $0x168] sm:$0xff] }
 0x3ce   : > { %6174 = vst.msk [vmem:[#allocation3 + $0x248] sm:$0xff] %vm1920_vm11, %v6150_v26  ;;  %v6001_v35 = vpop.permute.xlu1 %6000  ;;  %4075 = vmatmul.mubr.bf16.gmra.mrb[104].mxu1 %v3290_v61  ;;  %6326 = vrot.lane.b32.xlu0 %v13117_v55, %s9516_s29  ;;  %v6151_v55 = vpack.c.bf16 %v6119_v47, %v6118_v58  ;;  %v6489_v27 = vld [vmem:[#allocation3 + $0x88] sm:$0xff]  ;;  %v5866_v61 = vpack.c.bf16 %v13210_v41, %v13198_v42  ;;  %v6126_v26 = vld [vmem:[#allocation2 + $0x160] sm:$0xff] }
 0x3cf   : > { %6068 = vst.msk [vmem:[#allocation3 + $0xb0] sm:$0xff] %vm2233_vm3, %v6001_v35  ;;  %v5868_v35 = vpack.c.bf16 %v13239_v6, %v13227_v1  ;;  %v6155_v58 = vpack.c.bf16 %v6127_v60, %v6126_v26 }
 0x3d0   : > { %v6287_v52 = vpop.permute.xlu0 %6286  ;;  %v6485_v38 = vld [vmem:[#allocation3 + $0x68] sm:$0xff] }
 0x3d1   : > { %6355 = vst.msk [vmem:[#allocation3 + $0x90] sm:$0xff] %vm2233_vm3, %v6287_v52  ;;  %7232 = vmatprep.mubr.bf16.mxu0 %v6485_v38 }
 0x3d2   : > { %v2773_v20 = vpop.permute.xlu1 %2772  ;;  %7233 = vmatmul.mubr.bf16.gmra.mrb[104].mxu0 %v6484_v13  ;;  %v3300_v17 = vld [vmem:[#allocation3 + $0x290] sm:$0xff] }
 0x3d3   : > { %2827 = vst.msk [vmem:[#allocation3 + $0x2b8] sm:$0xff] %vm2233_vm3, %v2773_v20  ;;  %v6128_v20 = vld [vmem:[#allocation2 + $0x170] sm:$0xff] }
 0x3d4   : > { %5888 = vst.msk [vmem:[#allocation3 + $0x290] sm:$0xff] %vm1920_vm11, %v5864_v57  ;;  %v3059_v3 = vpop.permute.xlu0 %3058  ;;  %v3296_v59 = vld [vmem:[#allocation3 + $0x270] sm:$0xff] }
 0x3d5   : > { %3114 = vst.msk [vmem:[#allocation3 + $0x298] sm:$0xff] %vm2233_vm3, %v3059_v3  ;;  %4082 = vmatprep.mubr.bf16.mxu1 %v3296_v59  ;;  %v5869_v3 = vpack.c.bf16 %v13255_v62, %v13241_v16 }
 0x3d6   : > { %6175 = vst.msk [vmem:[#allocation3 + $0x270] sm:$0xff] %vm1920_vm11, %v6151_v55  ;;  %v6003_v23 = vpop.permute.xlu1 %6002  ;;  %4083 = vmatmul.mubr.bf16.gmra.mrb[108].mxu1 %v3295_v2  ;;  %v6494_v0 = vld [vmem:[#allocation3 + $0xb0] sm:$0xff] }
 0x3d7   : > { %6069 = vst.msk [vmem:[#allocation3 + $0xd8] sm:$0xff] %vm2233_vm3, %v6003_v23 }
 0x3d8   : > { %v6289_v63 = vpop.permute.xlu0 %6288  ;;  %v6490_v51 = vld [vmem:[#allocation3 + $0x90] sm:$0xff] }
 0x3d9   : > { %6356 = vst.msk [vmem:[#allocation3 + $0xb8] sm:$0xff] %vm2233_vm3, %v6289_v63  ;;  %7240 = vmatprep.mubr.bf16.mxu0 %v6490_v51 }
 0x3da   : > { %v2775_v50 = vpop.permute.xlu1 %2774  ;;  %7241 = vmatmul.mubr.bf16.gmra.mrb[108].mxu0 %v6489_v27  ;;  %v3305_v5 = vld [vmem:[#allocation3 + $0x2b8] sm:$0xff] }
 0x3db   : > { %2828 = vst.msk [vmem:[#allocation3 + $0x2e0] sm:$0xff] %vm2233_vm3, %v2775_v50  ;;  %v6130_v27 = vld [vmem:[#allocation2 + $0x180] sm:$0xff] }
 0x3dc   : > { %5889 = vst.msk [vmem:[#allocation3 + $0x2b8] sm:$0xff] %vm1920_vm11, %v5865_v7  ;;  %v3061_v32 = vpop.permute.xlu0 %3060  ;;  %v3301_v9 = vld [vmem:[#allocation3 + $0x298] sm:$0xff]  ;;  %v6131_v7 = vld [vmem:[#allocation2 + $0x188] sm:$0xff] }
 0x3dd   : > { %3115 = vst.msk [vmem:[#allocation3 + $0x2c0] sm:$0xff] %vm2233_vm3, %v3061_v32  ;;  %4090 = vmatprep.mubr.bf16.mxu1 %v3301_v9  ;;  %v6157_v9 = vpack.c.bf16 %v6131_v7, %v6130_v27 }
 0x3de   : > { %6176 = vst.msk [vmem:[#allocation3 + $0x298] sm:$0xff] %vm1920_vm11, %v6152_v4  ;;  %v6005_v48 = vpop.permute.xlu1 %6004  ;;  %4091 = vmatmul.mubr.bf16.gmra.mrb[112].mxu1 %v3300_v17  ;;  %v6499_v33 = vld [vmem:[#allocation3 + $0xd8] sm:$0xff]  ;;  %v6129_v17 = vld [vmem:[#allocation2 + $0x178] sm:$0xff] }
 0x3df   : > { %6070 = vst.msk [vmem:[#allocation3 + $0x100] sm:$0xff] %vm2233_vm3, %v6005_v48  ;;  %v6156_v63 = vpack.c.bf16 %v6129_v17, %v6128_v20  ;;  %v6506_v17 = vld [vmem:[#allocation3 + $0x110] sm:$0xff] }
 0x3e0   : > { %v6291_v43 = vpop.permute.xlu0 %6290  ;;  %v6495_v19 = vld [vmem:[#allocation3 + $0xb8] sm:$0xff] }
 0x3e1   : > { %6357 = vst.msk [vmem:[#allocation3 + $0xe0] sm:$0xff] %vm2233_vm3, %v6291_v43  ;;  %7248 = vmatprep.mubr.bf16.mxu0 %v6495_v19 }
 0x3e2   : > { %v2777_v44 = vpop.permute.xlu1 %2776  ;;  %7249 = vmatmul.mubr.bf16.gmra.mrb[112].mxu0 %v6494_v0  ;;  %v3310_v53 = vld [vmem:[#allocation3 + $0x2e0] sm:$0xff] }
 0x3e3   : > { %2829 = vst.msk [vmem:[#allocation3 + $0x308] sm:$0xff] %vm2233_vm3, %v2777_v44 }
 0x3e4   : > { %5890 = vst.msk [vmem:[#allocation3 + $0x2e0] sm:$0xff] %vm1920_vm11, %v5866_v61  ;;  %v3063_v24 = vpop.permute.xlu0 %3062  ;;  %v3306_v8 = vld [vmem:[#allocation3 + $0x2c0] sm:$0xff] }
 0x3e5   : > { %3116 = vst.msk [vmem:[#allocation3 + $0x2e8] sm:$0xff] %vm2233_vm3, %v3063_v24  ;;  %4098 = vmatprep.mubr.bf16.mxu1 %v3306_v8 }
 0x3e6   : > { %6177 = vst.msk [vmem:[#allocation3 + $0x2c0] sm:$0xff] %vm1920_vm11, %v6153_v46  ;;  %v6007_v25 = vpop.permute.xlu1 %6006  ;;  %4099 = vmatmul.mubr.bf16.gmra.mrb[116].mxu1 %v3305_v5  ;;  %v6504_v14 = vld [vmem:[#allocation3 + $0x100] sm:$0xff]  ;;  %v5870_v5 = vpack.c.bf16 %v13267_v39, %v13257_v22 }
 0x3e7   : > { %6071 = vst.msk [vmem:[#allocation3 + $0x128] sm:$0xff] %vm2233_vm3, %v6007_v25 }
 0x3e8   : > { %v6293_v42 = vpop.permute.xlu0 %6292  ;;  %v6500_v41 = vld [vmem:[#allocation3 + $0xe0] sm:$0xff] }
 0x3e9   : > { %6358 = vst.msk [vmem:[#allocation3 + $0x108] sm:$0xff] %vm2233_vm3, %v6293_v42  ;;  %7256 = vmatprep.mubr.bf16.mxu0 %v6500_v41 }
 0x3ea   : > { %v2779_v12 = vpop.permute.xlu1 %2778  ;;  %7257 = vmatmul.mubr.bf16.gmra.mrb[116].mxu0 %v6499_v33  ;;  %v3315_v31 = vld [vmem:[#allocation3 + $0x308] sm:$0xff] }
 0x3eb   : > { %2830 = vst.msk [vmem:[#allocation3 + $0x330] sm:$0xff] %vm2233_vm3, %v2779_v12 }
 0x3ec   : > { %5891 = vst.msk [vmem:[#allocation3 + $0x308] sm:$0xff] %vm1920_vm11, %v5867_v45  ;;  %v3065_v49 = vpop.permute.xlu0 %3064  ;;  %v3311_v11 = vld [vmem:[#allocation3 + $0x2e8] sm:$0xff] }
 0x3ed   : > { %3117 = vst.msk [vmem:[#allocation3 + $0x310] sm:$0xff] %vm2233_vm3, %v3065_v49  ;;  %4106 = vmatprep.mubr.bf16.mxu1 %v3311_v11 }
 0x3ee   : > { %6178 = vst.msk [vmem:[#allocation3 + $0x2e8] sm:$0xff] %vm1920_vm11, %v6154_v15  ;;  %v6009_v2 = vpop.permute.xlu1 %6008  ;;  %4107 = vmatmul.mubr.bf16.gmra.mrb[120].mxu1 %v3310_v53  ;;  %v6509_v55 = vld [vmem:[#allocation3 + $0x128] sm:$0xff]  ;;  %v6158_v53 = vpack.c.bf16 %v6133_v30, %v6132_v29 }
 0x3ef   : > { %6072 = vst.msk [vmem:[#allocation3 + $0x150] sm:$0xff] %vm2233_vm3, %v6009_v2  ;;  %v6486_v2 = vld [vmem:[#allocation3 + $0x70] sm:$0xff] }
 0x3f0   : > { %v6295_v36 = vpop.permute.xlu0 %6294  ;;  %v6505_v37 = vld [vmem:[#allocation3 + $0x108] sm:$0xff] }
 0x3f1   : > { %6359 = vst.msk [vmem:[#allocation3 + $0x130] sm:$0xff] %vm2233_vm3, %v6295_v36  ;;  %7264 = vmatprep.mubr.bf16.mxu0 %v6505_v37 }
 0x3f2   : > { %v2781_v52 = vpop.permute.xlu1 %2780  ;;  %7265 = vmatmul.mubr.bf16.gmra.mrb[120].mxu0 %v6504_v14  ;;  %v3320_v38 = vld [vmem:[#allocation3 + $0x330] sm:$0xff] }
 0x3f3   : > { %2831 = vst.msk [vmem:[#allocation3 + $0x358] sm:$0xff] %vm2233_vm3, %v2781_v52 }
 0x3f4   : > { %5892 = vst.msk [vmem:[#allocation3 + $0x330] sm:$0xff] %vm1920_vm11, %v5868_v35  ;;  %v3067_v47 = vpop.permute.xlu0 %3066  ;;  %v3316_v13 = vld [vmem:[#allocation3 + $0x310] sm:$0xff]  ;;  %v6491_v35 = vld [vmem:[#allocation3 + $0x98] sm:$0xff] }
 0x3f5   : > { %3118 = vst.msk [vmem:[#allocation3 + $0x338] sm:$0xff] %vm2233_vm3, %v3067_v47  ;;  %4114 = vmatprep.mubr.bf16.mxu1 %v3316_v13 }
 0x3f6   : > { %6179 = vst.msk [vmem:[#allocation3 + $0x310] sm:$0xff] %vm1920_vm11, %v6155_v58  ;;  %v6011_v57 = vpop.permute.xlu1 %6010  ;;  %4115 = vmatmul.mubr.bf16.gmra.mrb[124].mxu1 %v3315_v31  ;;  %v6514_v50 = vld [vmem:[#allocation3 + $0x150] sm:$0xff] }
 0x3f7   : > { %6073 = vst.msk [vmem:[#allocation3 + $0x178] sm:$0xff] %vm2233_vm3, %v6011_v57 }
 0x3f8   : > { %v6297_v1 = vpop.permute.xlu0 %6296  ;;  %v6510_v6 = vld [vmem:[#allocation3 + $0x130] sm:$0xff] }
 0x3f9   : > { %6360 = vst.msk [vmem:[#allocation3 + $0x158] sm:$0xff] %vm2233_vm3, %v6297_v1  ;;  %7272 = vmatprep.mubr.bf16.mxu0 %v6510_v6  ;;  %v6501_v6 = vld [vmem:[#allocation3 + $0xe8] sm:$0xff] }
 0x3fa   : > { %v2783_v59 = vpop.permute.xlu1 %2782  ;;  %7273 = vmatmul.mubr.bf16.gmra.mrb[124].mxu0 %v6509_v55  ;;  %v3325_v23 = vld [vmem:[#allocation3 + $0x358] sm:$0xff] }
 0x3fb   : > { %2832 = vst.msk [vmem:[#allocation3 + $0x380] sm:$0xff] %vm2233_vm3, %v2783_v59  ;;  %v13385_v55 = vld [vmem:[%s14036_s7] ss:$0 sm:$0xff] }
 0x3fc   : > { %5893 = vst.msk [vmem:[#allocation3 + $0x358] sm:$0xff] %vm1920_vm11, %v5869_v3  ;;  %v3069_v51 = vpop.permute.xlu0 %3068  ;;  %v3321_v10 = vld [vmem:[#allocation3 + $0x338] sm:$0xff] }
 0x3fd   : > { %3119 = vst.msk [vmem:[#allocation3 + $0x360] sm:$0xff] %vm2233_vm3, %v3069_v51  ;;  %4122 = vmatprep.mubr.bf16.mxu1 %v3321_v10 }
 0x3fe   : > { %6180 = vst.msk [vmem:[#allocation3 + $0x338] sm:$0xff] %vm1920_vm11, %v6156_v63  ;;  %v6013_v21 = vpop.permute.xlu1 %6012  ;;  %4123 = vmatmul.mubr.bf16.gmra.mrb[128].mxu1 %v3320_v38  ;;  %v6519_v0 = vld [vmem:[#allocation3 + $0x178] sm:$0xff]  ;;  %v6496_v38 = vld [vmem:[#allocation3 + $0xc0] sm:$0xff] }
 0x3ff   : > { %6074 = vst.msk [vmem:[#allocation3 + $0x1a0] sm:$0xff] %vm2233_vm3, %v6013_v21 }
 0x400   : > { %v6299_v16 = vpop.permute.xlu0 %6298  ;;  %v6515_v62 = vld [vmem:[#allocation3 + $0x158] sm:$0xff] }
 0x401   : > { %6361 = vst.msk [vmem:[#allocation3 + $0x180] sm:$0xff] %vm2233_vm3, %v6299_v16  ;;  %7280 = vmatprep.mubr.bf16.mxu0 %v6515_v62  ;;  %v14635_v62 = vld [vmem:[#allocation34_spill] sm:$0xff] }
 0x402   : > { %v2785_v4 = vpop.permute.xlu1 %2784  ;;  %7281 = vmatmul.mubr.bf16.gmra.mrb[128].mxu0 %v6514_v50  ;;  %v3330_v32 = vld [vmem:[#allocation3 + $0x380] sm:$0xff] }
 0x403   : > { %2833 = vst.msk [vmem:[#allocation3 + $0x3a8] sm:$0xff] %vm2233_vm3, %v2785_v4  ;;  %v6511_v4 = vld [vmem:[#allocation3 + $0x138] sm:$0xff] }
 0x404   : > { %5894 = vst.msk [vmem:[#allocation3 + $0x380] sm:$0xff] %vm1920_vm11, %v5870_v5  ;;  %v3071_v48 = vpop.permute.xlu0 %3070  ;;  %v3326_v43 = vld [vmem:[#allocation3 + $0x360] sm:$0xff] }
 0x405   : > { %3120 = vst.msk [vmem:[#allocation3 + $0x388] sm:$0xff] %vm2233_vm3, %v3071_v48  ;;  %4130 = vmatprep.mubr.bf16.mxu1 %v3326_v43  ;;  %v6516_v43 = vld [vmem:[#allocation3 + $0x160] sm:$0xff] }
 0x406   : > { %6181 = vst.msk [vmem:[#allocation3 + $0x360] sm:$0xff] %vm1920_vm11, %v6157_v9  ;;  %v6015_v19 = vpop.permute.xlu1 %6014  ;;  %4131 = vmatmul.mubr.bf16.gmra.mrb[132].mxu1 %v3325_v23  ;;  %v6524_v34 = vld [vmem:[#allocation3 + $0x1a0] sm:$0xff] }
 0x407   : > { %6075 = vst.msk [vmem:[#allocation3 + $0x1c8] sm:$0xff] %vm2233_vm3, %v6015_v19 }
 0x408   : > { %v6301_v22 = vpop.permute.xlu0 %6300  ;;  %v6520_v39 = vld [vmem:[#allocation3 + $0x180] sm:$0xff] }
 0x409   : > { %6362 = vst.msk [vmem:[#allocation3 + $0x1a8] sm:$0xff] %vm2233_vm3, %v6301_v22  ;;  %7288 = vmatprep.mubr.bf16.mxu0 %v6520_v39 }
 0x40a   : > { %v6017_v61 = vpop.permute.xlu1 %6016  ;;  %7289 = vmatmul.mubr.bf16.gmra.mrb[132].mxu0 %v6519_v0  ;;  %v3335_v44 = vld [vmem:[#allocation3 + $0x3a8] sm:$0xff] }
 0x40b   : > { %6076 = vst.msk [vmem:[#allocation3 + $0x1f0] sm:$0xff] %vm2233_vm3, %v6017_v61 }
 0x40c   : > { %5895 = vst.msk [vmem:[#allocation3 + $0x3a8] sm:$0xff] %vm1920_vm11, %v5871_v28  ;;  %v3073_v46 = vpop.permute.xlu0 %3072  ;;  %v3331_v24 = vld [vmem:[#allocation3 + $0x388] sm:$0xff] }
 0x40d   : > { %3121 = vst.msk [vmem:[#allocation3 + $0x3b0] sm:$0xff] %vm2233_vm3, %v3073_v46  ;;  %4138 = vmatprep.mubr.bf16.mxu1 %v3331_v24 }
 0x40e   : > { %6182 = vst.msk [vmem:[#allocation3 + $0x388] sm:$0xff] %vm1920_vm11, %v6158_v53  ;;  %v6019_v8 = vpop.permute.xlu1 %6018  ;;  %4139 = vmatmul.mubr.bf16.gmra.mrb[136].mxu1 %v3330_v32  ;;  %v6529_v12 = vld [vmem:[#allocation3 + $0x1c8] sm:$0xff] }
 0x40f   : > { %6077 = vst.msk [vmem:[#allocation3 + $0x218] sm:$0xff] %vm2233_vm3, %v6019_v8  ;;  %v14636_v32 = vld [vmem:[#allocation106_spill] sm:$0xff] }
 0x410   : > { %v6303_v25 = vpop.permute.xlu0 %6302  ;;  %v6525_v42 = vld [vmem:[#allocation3 + $0x1a8] sm:$0xff] }
 0x411   : > { %6363 = vst.msk [vmem:[#allocation3 + $0x1d0] sm:$0xff] %vm2233_vm3, %v6303_v25  ;;  %7296 = vmatprep.mubr.bf16.mxu0 %v6525_v42  ;;  %v6521_v25 = vld [vmem:[#allocation3 + $0x188] sm:$0xff]  ;;  %v14638_v42 = vld [vmem:[#allocation105_spill] sm:$0xff] }
 0x412   : > { %v6021_v54 = vpop.permute.xlu1 %6020  ;;  %7297 = vmatmul.mubr.bf16.gmra.mrb[136].mxu0 %v6524_v34  ;;  %v6534_v37 = vld [vmem:[#allocation3 + $0x1f0] sm:$0xff] }
 0x413   : > { %6078 = vst.msk [vmem:[#allocation3 + $0x240] sm:$0xff] %vm2233_vm3, %v6021_v54  ;;  %v6526_v54 = vld [vmem:[#allocation3 + $0x1b0] sm:$0xff] }
 0x414   : > { %v6305_v28 = vpop.permute.xlu0 %6304  ;;  %v3336_v41 = vld [vmem:[#allocation3 + $0x3b0] sm:$0xff] }
 0x415   : > { %6364 = vst.msk [vmem:[#allocation3 + $0x1f8] sm:$0xff] %vm2233_vm3, %v6305_v28  ;;  %4146 = vmatprep.mubr.bf16.mxu1 %v3336_v41 }
 0x416   : > { %6183 = vst.msk [vmem:[#allocation3 + $0x3b0] sm:$0xff] %vm1920_vm11, %v13091_v18  ;;  %v6023_v56 = vpop.permute.xlu1 %6022  ;;  %4147 = vmatmul.mubr.bf16.gmra.mrb[140].mxu1 %v3335_v44  ;;  %v6481_v18 = vld [vmem:[#allocation3 + $0x48] sm:$0xff]  ;;  %v6539_v47 = vld [vmem:[#allocation3 + $0x218] sm:$0xff] }
 0x417   : > { %6079 = vst.msk [vmem:[#allocation3 + $0x268] sm:$0xff] %vm2233_vm3, %v6023_v56  ;;  %8890 = vmatprep.mubr.msk.bf16.mxu1 %vm1920_vm11, %v6476_v40  ;;  %v14637_v44 = vld [vmem:[#allocation30_spill] sm:$0xff] }
 0x418   : > { %v6307_v33 = vpop.permute.xlu0 %6306  ;;  %v6530_v45 = vld [vmem:[#allocation3 + $0x1d0] sm:$0xff] }
 0x419   : > { %6365 = vst.msk [vmem:[#allocation3 + $0x220] sm:$0xff] %vm2233_vm3, %v6307_v33  ;;  %7304 = vmatprep.mubr.bf16.mxu0 %v6530_v45 }
 0x41a   : > { %v6025_v31 = vpop.permute.xlu1 %6024  ;;  %7305 = vmatmul.mubr.bf16.gmra.mrb[140].mxu0 %v6529_v12  ;;  %v6544_v23 = vld [vmem:[#allocation3 + $0x240] sm:$0xff] }
 0x41b   : > { %6080 = vst.msk [vmem:[#allocation3 + $0x290] sm:$0xff] %vm2233_vm3, %v6025_v31 }
 0x41c   : > { %v6309_v15 = vpop.permute.xlu0 %6308  ;;  %v6535_v49 = vld [vmem:[#allocation3 + $0x1f8] sm:$0xff] }
 0x41d   : > { %6366 = vst.msk [vmem:[#allocation3 + $0x248] sm:$0xff] %vm2233_vm3, %v6309_v15  ;;  %7312 = vmatprep.mubr.bf16.mxu0 %v6535_v49 }
 0x41e   : > { %v6027_v11 = vpop.permute.xlu1 %6026  ;;  %8891 = vmatmul.mubr.msk.bf16.vlgmr.msra.gmra.mrb[144].mxu1 %vm1920_vm11, %v6481_v18  ;;  %v6549_v39 = vld [vmem:[#allocation3 + $0x268] sm:$0xff]  ;;  %v14639_v18 = vld [vmem:[#allocation108_spill] sm:$0xff] }
 0x41f   : > { %6081 = vst.msk [vmem:[#allocation3 + $0x2b8] sm:$0xff] %vm2233_vm3, %v6027_v11  ;;  %8894 = vmatprep.mubr.msk.bf16.mxu1 %vm1920_vm11, %v6486_v2 }
 0x420   : > { %v6311_v36 = vpop.permute.xlu0 %6310  ;;  %v6540_v60 = vld [vmem:[#allocation3 + $0x220] sm:$0xff] }
 0x421   : > { %6367 = vst.msk [vmem:[#allocation3 + $0x270] sm:$0xff] %vm2233_vm3, %v6311_v36 }
 0x422   : > { %v6029_v26 = vpop.permute.xlu1 %6028  ;;  %7313 = vmatmul.mubr.bf16.gmra.mrb[144].mxu0 %v6534_v37  ;;  %v6554_v33 = vld [vmem:[#allocation3 + $0x290] sm:$0xff]  ;;  %v6531_v37 = vld [vmem:[#allocation3 + $0x1d8] sm:$0xff] }
 0x423   : > { %6082 = vst.msk [vmem:[#allocation3 + $0x2e0] sm:$0xff] %vm2233_vm3, %v6029_v26  ;;  %7320 = vmatprep.mubr.bf16.mxu0 %v6540_v60 }
 0x424   : > { %v6313_v14 = vpop.permute.xlu0 %6312  ;;  %v6545_v57 = vld [vmem:[#allocation3 + $0x248] sm:$0xff] }
 0x425   : > { %6368 = vst.msk [vmem:[#allocation3 + $0x298] sm:$0xff] %vm2233_vm3, %v6313_v14  ;;  %v14640_v14 = vld [vmem:[#allocation110_spill] sm:$0xff] }
 0x426   : > { %v6031_v52 = vpop.permute.xlu1 %6030  ;;  %8895 = vmatmul.mubr.msk.bf16.gmra.mrb[148].mxu1 %vm1920_vm11, %v6491_v35 }
 0x427   : > { %6083 = vst.msk [vmem:[#allocation3 + $0x308] sm:$0xff] %vm2233_vm3, %v6031_v52  ;;  %8898 = vmatprep.mubr.msk.bf16.mxu1 %vm1920_vm11, %v6496_v38  ;;  %v6536_v52 = vld [vmem:[#allocation3 + $0x200] sm:$0xff] }
 0x428   : > { %v6315_v58 = vpop.permute.xlu0 %6314  ;;  %v6550_v21 = vld [vmem:[#allocation3 + $0x270] sm:$0xff] }
 0x429   : > { %6369 = vst.msk [vmem:[#allocation3 + $0x2c0] sm:$0xff] %vm2233_vm3, %v6315_v58 }
 0x42a   : > { %v6033_v13 = vpop.permute.xlu1 %6032  ;;  %7321 = vmatmul.mubr.bf16.gmra.mrb[148].mxu0 %v6539_v47 }
 0x42b   : > { %6084 = vst.msk [vmem:[#allocation3 + $0x330] sm:$0xff] %vm2233_vm3, %v6033_v13  ;;  %7328 = vmatprep.mubr.bf16.mxu0 %v6545_v57  ;;  %v6559_v57 = vld [vmem:[#allocation3 + $0x2b8] sm:$0xff] }
 0x42c   : > { %v6317_v1 = vpop.permute.xlu0 %6316  ;;  %v6555_v0 = vld [vmem:[#allocation3 + $0x298] sm:$0xff] }
 0x42d   : > { %6370 = vst.msk [vmem:[#allocation3 + $0x2e8] sm:$0xff] %vm2233_vm3, %v6317_v1 }
 0x42e   : > { %v6035_v20 = vpop.permute.xlu1 %6034  ;;  %8899 = vmatmul.mubr.msk.bf16.gmra.mrb[152].mxu1 %vm1920_vm11, %v6501_v6 }
 0x42f   : > { %6085 = vst.msk [vmem:[#allocation3 + $0x358] sm:$0xff] %vm2233_vm3, %v6035_v20  ;;  %8902 = vmatprep.mubr.msk.bf16.mxu1 %vm1920_vm11, %v6506_v17 }
 0x430   : > { %v6319_v3 = vpop.permute.xlu0 %6318  ;;  %v6560_v15 = vld [vmem:[#allocation3 + $0x2c0] sm:$0xff] }
 0x431   : > { %6371 = vst.msk [vmem:[#allocation3 + $0x310] sm:$0xff] %vm2233_vm3, %v6319_v3  ;;  %v3964_v59 = vpop.f32.mrb[48].mxu1 }
 0x432   : > { %v8938_v63 = vadd.f32 %v13385_v55, %v3964_v59  ;;  %v6037_v51 = vpop.permute.xlu1 %6036  ;;  %v3966_v10 = vpop.f32.mrb[49].mxu1  ;;  %7329 = vmatmul.mubr.bf16.gmra.mrb[152].mxu0 %v6544_v23 }
 0x433   : > { %6086 = vst.msk [vmem:[#allocation3 + $0x380] sm:$0xff] %vm2233_vm3, %v6037_v51  ;;  %v3967_v16 = vpop.f32.mrb[50].mxu1  ;;  %7336 = vmatprep.mubr.bf16.mxu0 %v6550_v21  ;;  %v14641_v10 = vld [vmem:[#allocation107_spill] sm:$0xff] }
 0x434   : > { %v4190_v27 = vadd.f32 %v8938_v63, %v14635_v62  ;;  %v8939_v7 = vadd.f32 %v13385_v55, %v3967_v16  ;;  %v6321_v50 = vpop.permute.xlu0 %6320  ;;  %v3969_v5 = vpop.f32.mrb[51].mxu1  ;;  %v6565_v59 = vld [vmem:[#allocation3 + $0x2e8] sm:$0xff] }
 0x435   : > { %6372 = vst.msk [vmem:[#allocation3 + $0x338] sm:$0xff] %vm2233_vm3, %v6321_v50 }
 0x436   : > { %v4193_v9 = vadd.f32 %v8939_v7, %v14636_v32  ;;  %v6039_v48 = vpop.permute.xlu1 %6038  ;;  %8903 = vmatmul.mubr.msk.bf16.gmra.mrb[156].mxu1 %vm1920_vm11, %v6511_v4  ;;  %v4380_v28 = vmax.f32 %v4190_v27, 0.0  ;;  %v6541_v7 = vld [vmem:[#allocation3 + $0x228] sm:$0xff]  ;;  %v14642_v4 = vld [vmem:[#allocation109_spill] sm:$0xff] }
 0x437   : > { %6087 = vst.msk [vmem:[#allocation3 + $0x3a8] sm:$0xff] %vm2233_vm3, %v6039_v48  ;;  %8906 = vmatprep.mubr.msk.bf16.mxu1 %vm1920_vm11, %v6516_v43 }
 0x438   : > { %v6323_v19 = vpop.permute.xlu0 %6322  ;;  %v4381_v26 = vmax.f32 %v4193_v9, 0.0  ;;  %v6546_v9 = vld [vmem:[#allocation3 + $0x250] sm:$0xff] }
 0x439   : > { %6373 = vst.msk [vmem:[#allocation3 + $0x360] sm:$0xff] %vm2233_vm3, %v6323_v19  ;;  %v3972_v22 = vpop.f32.mrb[52].mxu1  ;;  %v6564_v19 = vld [vmem:[#allocation3 + $0x2e0] sm:$0xff] }
 0x43a   : > { %v8940_v29 = vadd.f32 %v13385_v55, %v3972_v22  ;;  %v3974_v30 = vpop.f32.mrb[53].mxu1  ;;  %7337 = vmatmul.mubr.bf16.gmra.mrb[156].mxu0 %v6549_v39 }
 0x43b   : > { %v3975_v61 = vpop.f32.mrb[54].mxu1  ;;  %7344 = vmatprep.mubr.bf16.mxu0 %v6555_v0  ;;  %v14643_v0 = vld [vmem:[#allocation112_spill] sm:$0xff] }
 0x43c   : > { %v4198_v53 = vadd.f32 %v8940_v29, %v14637_v44  ;;  %v8941_v46 = vadd.f32 %v13385_v55, %v3975_v61  ;;  %v6325_v24 = vpop.permute.xlu0 %6324  ;;  %v3977_v8 = vpop.f32.mrb[55].mxu1  ;;  %v6570_v29 = vld [vmem:[#allocation3 + $0x310] sm:$0xff] }
 0x43d   : > { %6374 = vst.msk [vmem:[#allocation3 + $0x388] sm:$0xff] %vm2233_vm3, %v6325_v24  ;;  %v14644_v24 = vld [vmem:[#allocation114_spill] sm:$0xff] }
 0x43e   : > { %v4201_v34 = vadd.f32 %v8941_v46, %v14638_v42  ;;  %8907 = vmatmul.mubr.msk.bf16.gmra.mrb[160].mxu1 %vm1920_vm11, %v6521_v25  ;;  %v4382_v38 = vmax.f32 %v4198_v53, 0.0  ;;  %v6551_v46 = vld [vmem:[#allocation3 + $0x278] sm:$0xff]  ;;  %v6556_v25 = vld [vmem:[#allocation3 + $0x2a0] sm:$0xff] }
 0x43f   : > { %8910 = vmatprep.mubr.msk.bf16.mxu1 %vm1920_vm11, %v6526_v54 }
 0x440   : > { %v4383_v41 = vmax.f32 %v4201_v34, 0.0  ;;  %v6327_v56 = vpop.permute.xlu0 %6326 }
 0x441   : > { %v3980_v40 = vpop.f32.mrb[56].mxu1  ;;  %6375 = vst.msk [vmem:[#allocation3 + $0x3b0] sm:$0xff] %vm2233_vm3, %v6327_v56 }
 0x442   : > { %v4428_v45 = vmax.f32 %v4380_v28, %v4383_v41  ;;  %v8942_v12 = vadd.f32 %v13385_v55, %v3980_v40  ;;  %v3982_v31 = vpop.f32.mrb[57].mxu1  ;;  %7345 = vmatmul.mubr.bf16.gmra.mrb[160].mxu0 %v6554_v33  ;;  %v6569_v28 = vld [vmem:[#allocation3 + $0x308] sm:$0xff]  ;;  %v6575_v33 = vld [vmem:[#allocation3 + $0x338] sm:$0xff] }
 0x443   : > { %v3983_v49 = vpop.f32.mrb[58].mxu1  ;;  %7352 = vmatprep.mubr.bf16.mxu0 %v6560_v15 }
 0x444   : > { %v4206_v11 = vadd.f32 %v8942_v12, %v14639_v18  ;;  %v8943_v2 = vadd.f32 %v13385_v55, %v3983_v49  ;;  %v3985_v36 = vpop.f32.mrb[59].mxu1  ;;  %v4477_v1 = vrot.slane %v4428_v45, 1  ;;  %v14645_v12 = vld [vmem:[#allocation111_spill] sm:$0xff]  ;;  %v6561_v18 = vld [vmem:[#allocation3 + $0x2c8] sm:$0xff] }
 0x445   : > { %v14646_v36 = vld [vmem:[#allocation113_spill] sm:$0xff] }
 0x446   : > { %v4384_v60 = vmax.f32 %v4206_v11, 0.0  ;;  %v4209_v35 = vadd.f32 %v8943_v2, %v14640_v14  ;;  %8911 = vmatmul.mubr.msk.bf16.gmra.mrb[164].mxu1 %vm1920_vm11, %v6531_v37 }
 0x447   : > { %8914 = vmatprep.mubr.msk.bf16.mxu1 %vm1920_vm11, %v6536_v52 }
 0x448   : > { %v4429_v58 = vmax.f32 %v4381_v26, %v4384_v60  ;;  %v4385_v47 = vmax.f32 %v4209_v35, 0.0  ;;  %v6566_v26 = vld [vmem:[#allocation3 + $0x2f0] sm:$0xff] }
 0x449   : > { %v3988_v13 = vpop.f32.mrb[60].mxu1 }
 0x44a   : > { %v4478_v6 = vrot.slane %v4429_v58, 1  ;;  %v4430_v20 = vmax.f32 %v4382_v38, %v4385_v47  ;;  %v8944_v17 = vadd.f32 %v13385_v55, %v3988_v13  ;;  %v3990_v3 = vpop.f32.mrb[61].mxu1  ;;  %7353 = vmatmul.mubr.bf16.gmra.mrb[164].mxu0 %v6559_v57  ;;  %v6574_v38 = vld [vmem:[#allocation3 + $0x330] sm:$0xff] }
 0x44b   : > { %v3991_v23 = vpop.f32.mrb[62].mxu1  ;;  %7360 = vmatprep.mubr.bf16.mxu0 %v6565_v59  ;;  %v14647_v59 = vld [vmem:[#allocation116_spill] sm:$0xff] }
 0x44c   : > { %v4479_v63 = vsel %vm4476_vm4, %v4477_v1, %v4478_v6  ;;  %v4480_v51 = vrot.slane %v4430_v20, 1  ;;  %v4214_v21 = vadd.f32 %v8944_v17, %v14641_v10  ;;  %v8945_v16 = vadd.f32 %v13385_v55, %v3991_v23  ;;  %v3993_v62 = vpop.f32.mrb[63].mxu1 }
 0x44d   : > { %v4541_v27 = vmax.f32 %v4428_v45, %v4479_v63 }
 0x44e   : > { %v4481_v50 = vsel %vm4476_vm4, %v4478_v6, %v4480_v51  ;;  %v4543_v5 = vmax.f32 %v4430_v20, %v4480_v51  ;;  %v4217_v32 = vadd.f32 %v8945_v16, %v14642_v4  ;;  %8915 = vmatmul.mubr.msk.bf16.gmra.mrb[168].mxu1 %vm1920_vm11, %v6541_v7  ;;  %v4386_v42 = vmax.f32 %v4214_v21, 0.0  ;;  %v6580_v6 = vld [vmem:[#allocation3 + $0x360] sm:$0xff]  ;;  %v6571_v21 = vld [vmem:[#allocation3 + $0x318] sm:$0xff] }
 0x44f   : > { %4565 = vst.msk [vmem:[#allocation4] sm:$0xff] %vm1920_vm11, %v4541_v27  ;;  %v4542_v48 = vmax.f32 %v4429_v58, %v4481_v50  ;;  %8918 = vmatprep.mubr.msk.bf16.mxu1 %vm1920_vm11, %v6546_v9  ;;  %v14648_v27 = vld [vmem:[#allocation118_spill] sm:$0xff]  ;;  %v6576_v50 = vld [vmem:[#allocation3 + $0x340] sm:$0xff] }
 0x450   : > { %4568 = vst.msk [vmem:[#allocation4 + $0x10] sm:$0x7f] %vm4567_vm5, %v4543_v5  ;;  %v4387_v11 = vmax.f32 %v4217_v32, 0.0  ;;  %v6579_v32 = vld [vmem:[#allocation3 + $0x358] sm:$0xff] }
 0x451   : > { %4566 = vst.msk [vmem:[#allocation4 + $0x8] sm:$0xff] %vm1920_vm11, %v4542_v48  ;;  %v3996_v43 = vpop.f32.mrb[64].mxu1 }
 0x452   : > { %v8946_v22 = vadd.f32 %v13385_v55, %v3996_v43  ;;  %v3998_v39 = vpop.f32.mrb[65].mxu1  ;;  %7361 = vmatmul.mubr.bf16.gmra.mrb[168].mxu0 %v6564_v19  ;;  %v6585_v43 = vld [vmem:[#allocation3 + $0x388] sm:$0xff] }
 0x453   : > { %v3999_v30 = vpop.f32.mrb[66].mxu1  ;;  %7368 = vmatprep.mubr.bf16.mxu0 %v6570_v29 }
 0x454   : > { %v4222_v61 = vadd.f32 %v8946_v22, %v14643_v0  ;;  %v8947_v44 = vadd.f32 %v13385_v55, %v3999_v30  ;;  %v4001_v53 = vpop.f32.mrb[67].mxu1  ;;  %v14649_v22 = vld [vmem:[#allocation115_spill] sm:$0xff]  ;;  %v6581_v0 = vld [vmem:[#allocation3 + $0x368] sm:$0xff] }
 0x455   : > { %v6586_v53 = vld [vmem:[#allocation3 + $0x390] sm:$0xff] }
 0x456   : > { %v4225_v8 = vadd.f32 %v8947_v44, %v14644_v24  ;;  %8919 = vmatmul.mubr.msk.bf16.gmra.mrb[172].mxu1 %vm1920_vm11, %v6551_v46  ;;  %v4388_v60 = vmax.f32 %v4222_v61, 0.0  ;;  %v14650_v61 = vld [vmem:[#allocation117_spill] sm:$0xff] }
 0x457   : > { %8922 = vmatprep.mubr.msk.bf16.mxu1 %vm1920_vm11, %v6556_v25 }
 0x458   : > { %v4389_v34 = vmax.f32 %v4225_v8, 0.0  ;;  %v6590_v8 = vld [vmem:[#allocation3 + $0x3b0] sm:$0xff] }
 0x459   : > { %v4004_v54 = vpop.f32.mrb[68].mxu1 }
 0x45a   : > { %v4431_v41 = vmax.f32 %v4386_v42, %v4389_v34  ;;  %v8948_v56 = vadd.f32 %v13385_v55, %v4004_v54  ;;  %v4006_v40 = vpop.f32.mrb[69].mxu1  ;;  %7369 = vmatmul.mubr.bf16.gmra.mrb[172].mxu0 %v6569_v28  ;;  %v6584_v42 = vld [vmem:[#allocation3 + $0x380] sm:$0xff] }
 0x45b   : > { %v4007_v45 = vpop.f32.mrb[70].mxu1  ;;  %7376 = vmatprep.mubr.bf16.mxu0 %v6575_v33  ;;  %v14651_v40 = vld [vmem:[#allocation120_spill] sm:$0xff] }
 0x45c   : > { %v4230_v31 = vadd.f32 %v8948_v56, %v14645_v12  ;;  %v8949_v15 = vadd.f32 %v13385_v55, %v4007_v45  ;;  %v4009_v49 = vpop.f32.mrb[71].mxu1  ;;  %v4482_v58 = vrot.slane %v4431_v41, 1  ;;  %v6591_v56 = vld [vmem:[#allocation3 + $0x3b8] sm:$0xff] }
 0x45d   : > { %v14652_v49 = vld [vmem:[#allocation122_spill] sm:$0xff] }
 0x45e   : > { %v4390_v2 = vmax.f32 %v4230_v31, 0.0  ;;  %v4233_v37 = vadd.f32 %v8949_v15, %v14646_v36  ;;  %8923 = vmatmul.mubr.msk.bf16.gmra.mrb[176].mxu1 %vm1920_vm11, %v6561_v18 }
 0x45f   : > { %8926 = vmatprep.mubr.msk.bf16.mxu1 %vm1920_vm11, %v6566_v26  ;;  %v6589_v26 = vld [vmem:[#allocation3 + $0x3a8] sm:$0xff] }
 0x460   : > { %v4432_v14 = vmax.f32 %v4387_v11, %v4390_v2  ;;  %v4391_v35 = vmax.f32 %v4233_v37, 0.0 }
 0x461   : > { %v4012_v52 = vpop.f32.mrb[72].mxu1 }
 0x462   : > { %v4483_v47 = vrot.slane %v4432_v14, 1  ;;  %v4433_v13 = vmax.f32 %v4388_v60, %v4391_v35  ;;  %v8950_v57 = vadd.f32 %v13385_v55, %v4012_v52  ;;  %v4014_v1 = vpop.f32.mrb[73].mxu1  ;;  %7377 = vmatmul.mubr.bf16.gmra.mrb[176].mxu0 %v6574_v38 }
 0x463   : > { %v4015_v20 = vpop.f32.mrb[74].mxu1  ;;  %7384 = vmatprep.mubr.bf16.mxu0 %v6580_v6 }
 0x464   : > { %v4484_v17 = vsel %vm4476_vm4, %v4482_v58, %v4483_v47  ;;  %v4485_v3 = vrot.slane %v4433_v13, 1  ;;  %v4238_v23 = vadd.f32 %v8950_v57, %v14647_v59  ;;  %v8951_v63 = vadd.f32 %v13385_v55, %v4015_v20  ;;  %v4017_v51 = vpop.f32.mrb[75].mxu1  ;;  %v14653_v57 = vld [vmem:[#allocation119_spill] sm:$0xff] }
 0x465   : > { %v4544_v10 = vmax.f32 %v4431_v41, %v4484_v17 }
 0x466   : > { %v4486_v16 = vsel %vm4476_vm4, %v4483_v47, %v4485_v3  ;;  %v4546_v62 = vmax.f32 %v4433_v13, %v4485_v3  ;;  %v4241_v7 = vadd.f32 %v8951_v63, %v14648_v27  ;;  %8927 = vmatmul.mubr.msk.bf16.gmra.mrb[180].mxu1 %vm1920_vm11, %v6571_v21  ;;  %v4392_v46 = vmax.f32 %v4238_v23, 0.0  ;;  %v14654_v23 = vld [vmem:[#allocation121_spill] sm:$0xff]  ;;  %v14655_v27 = vld [vmem:[#allocation124_spill] sm:$0xff] }
 0x467   : > { %4569 = vst.msk [vmem:[#allocation4 + $0x18] sm:$0xff] %vm1920_vm11, %v4544_v10  ;;  %v4545_v5 = vmax.f32 %v4432_v14, %v4486_v16  ;;  %8930 = vmatprep.mubr.msk.bf16.mxu1 %vm1920_vm11, %v6576_v50 }
 0x468   : > { %4571 = vst.msk [vmem:[#allocation4 + $0x28] sm:$0x7f] %vm4567_vm5, %v4546_v62  ;;  %v4393_v31 = vmax.f32 %v4241_v7, 0.0 }
 0x469   : > { %4570 = vst.msk [vmem:[#allocation4 + $0x20] sm:$0xff] %vm1920_vm11, %v4545_v5  ;;  %v4020_v4 = vpop.f32.mrb[76].mxu1 }
 0x46a   : > { %v8952_v9 = vadd.f32 %v13385_v55, %v4020_v4  ;;  %v4022_v48 = vpop.f32.mrb[77].mxu1  ;;  %7385 = vmatmul.mubr.bf16.gmra.mrb[180].mxu0 %v6579_v32  ;;  %v14656_v4 = vld [vmem:[#allocation126_spill] sm:$0xff] }
 0x46b   : > { %v4023_v19 = vpop.f32.mrb[78].mxu1  ;;  %7392 = vmatprep.mubr.bf16.mxu0 %v6585_v43 }
 0x46c   : > { %v4246_v39 = vadd.f32 %v8952_v9, %v14649_v22  ;;  %v8953_v29 = vadd.f32 %v13385_v55, %v4023_v19  ;;  %v4025_v30 = vpop.f32.mrb[79].mxu1 }
 0x46d   : > { %v14657_v30 = vld [vmem:[#allocation123_spill] sm:$0xff] }
 0x46e   : > { %v4249_v44 = vadd.f32 %v8953_v29, %v14650_v61  ;;  %8931 = vmatmul.mubr.msk.bf16.gmra.mrb[184].mxu1 %vm1920_vm11, %v6581_v0  ;;  %v4394_v11 = vmax.f32 %v4246_v39, 0.0 }
 0x46f   : > { %8934 = vmatprep.mubr.msk.bf16.mxu1 %vm1920_vm11, %v6586_v53 }
 0x470   : > { %v4395_v24 = vmax.f32 %v4249_v44, 0.0 }
 0x471   : > { %v4028_v25 = vpop.f32.mrb[80].mxu1 }
 0x472   : > { %v4434_v34 = vmax.f32 %v4392_v46, %v4395_v24  ;;  %v8954_v54 = vadd.f32 %v13385_v55, %v4028_v25  ;;  %v4030_v28 = vpop.f32.mrb[81].mxu1  ;;  %7393 = vmatmul.mubr.bf16.gmra.mrb[184].mxu0 %v6584_v42  ;;  %v14658_v24 = vld [vmem:[#allocation125_spill] sm:$0xff] }
 0x473   : > { %v4031_v41 = vpop.f32.mrb[82].mxu1  ;;  %7400 = vmatprep.mubr.bf16.mxu0 %v6590_v8 }
 0x474   : > { %v4254_v33 = vadd.f32 %v8954_v54, %v14651_v40  ;;  %v8955_v45 = vadd.f32 %v13385_v55, %v4031_v41  ;;  %v4033_v12 = vpop.f32.mrb[83].mxu1  ;;  %v4487_v60 = vrot.slane %v4434_v34, 1 }
 0x476   : > { %v4396_v15 = vmax.f32 %v4254_v33, 0.0  ;;  %v4257_v18 = vadd.f32 %v8955_v45, %v14652_v49  ;;  %8935 = vmatmul.mubr.msk.bf16.gmra.mrb[188].mxu1 %vm1920_vm11, %v6591_v56 }
 0x478   : > { %v4435_v2 = vmax.f32 %v4393_v31, %v4396_v15  ;;  %v4397_v36 = vmax.f32 %v4257_v18, 0.0  ;;  %v14659_v15 = vld [vmem:[#allocation128_spill] sm:$0xff] }
 0x479   : > { %v4036_v37 = vpop.f32.mrb[84].mxu1 }
 0x47a   : > { %v4488_v14 = vrot.slane %v4435_v2, 1  ;;  %v4436_v35 = vmax.f32 %v4394_v11, %v4397_v36  ;;  %v8956_v52 = vadd.f32 %v13385_v55, %v4036_v37  ;;  %v4038_v38 = vpop.f32.mrb[85].mxu1  ;;  %7401 = vmatmul.mubr.bf16.gmra.mrb[188].mxu0 %v6589_v26 }
 0x47b   : > { %v4039_v58 = vpop.f32.mrb[86].mxu1 }
 0x47c   : > { %v4489_v47 = vsel %vm4476_vm4, %v4487_v60, %v4488_v14  ;;  %v4490_v13 = vrot.slane %v4436_v35, 1  ;;  %v4262_v1 = vadd.f32 %v8956_v52, %v14653_v57  ;;  %v8957_v6 = vadd.f32 %v13385_v55, %v4039_v58  ;;  %v4041_v20 = vpop.f32.mrb[87].mxu1  ;;  %v14660_v60 = vld [vmem:[#allocation130_spill] sm:$0xff] }
 0x47d   : > { %v4547_v17 = vmax.f32 %v4434_v34, %v4489_v47 }
 0x47e   : > { %v4491_v3 = vsel %vm4476_vm4, %v4488_v14, %v4490_v13  ;;  %v4549_v59 = vmax.f32 %v4436_v35, %v4490_v13  ;;  %v4265_v63 = vadd.f32 %v8957_v6, %v14654_v23  ;;  %v4398_v9 = vmax.f32 %v4262_v1, 0.0  ;;  %v14661_v6 = vld [vmem:[#allocation127_spill] sm:$0xff]  ;;  %v14662_v23 = vld [vmem:[#allocation129_spill] sm:$0xff] }
 0x47f   : > { %4572 = vst.msk [vmem:[#allocation4 + $0x30] sm:$0xff] %vm1920_vm11, %v4547_v17  ;;  %v4548_v51 = vmax.f32 %v4435_v2, %v4491_v3 }
 0x480   : > { %4574 = vst.msk [vmem:[#allocation4 + $0x40] sm:$0x7f] %vm4567_vm5, %v4549_v59  ;;  %v4399_v53 = vmax.f32 %v4265_v63, 0.0 }
 0x481   : > { %4573 = vst.msk [vmem:[#allocation4 + $0x38] sm:$0xff] %vm1920_vm11, %v4548_v51  ;;  %v4044_v10 = vpop.f32.mrb[88].mxu1 }
 0x482   : > { %v8958_v21 = vadd.f32 %v13385_v55, %v4044_v10  ;;  %v4046_v16 = vpop.f32.mrb[89].mxu1 }
 0x483   : > { %v4047_v62 = vpop.f32.mrb[90].mxu1 }
 0x484   : > { %v4270_v7 = vadd.f32 %v8958_v21, %v14655_v27  ;;  %v8959_v50 = vadd.f32 %v13385_v55, %v4047_v62  ;;  %v4049_v5 = vpop.f32.mrb[91].mxu1 }
 0x486   : > { %v4273_v32 = vadd.f32 %v8959_v50, %v14656_v4  ;;  %v4400_v25 = vmax.f32 %v4270_v7, 0.0 }
 0x488   : > { %v4401_v48 = vmax.f32 %v4273_v32, 0.0  ;;  %v14663_v32 = vld [vmem:[#allocation132_spill] sm:$0xff] }
 0x489   : > { %v4052_v43 = vpop.f32.mrb[92].mxu1 }
 0x48a   : > { %v4437_v19 = vmax.f32 %v4398_v9, %v4401_v48  ;;  %v8960_v22 = vadd.f32 %v13385_v55, %v4052_v43  ;;  %v4054_v39 = vpop.f32.mrb[93].mxu1 }
 0x48b   : > { %v4055_v29 = vpop.f32.mrb[94].mxu1 }
 0x48c   : > { %v4278_v0 = vadd.f32 %v8960_v22, %v14657_v30  ;;  %v8961_v61 = vadd.f32 %v13385_v55, %v4055_v29  ;;  %v4057_v44 = vpop.f32.mrb[95].mxu1  ;;  %v4492_v28 = vrot.slane %v4437_v19, 1  ;;  %v14664_v29 = vld [vmem:[#allocation134_spill] sm:$0xff] }
 0x48e   : > { %v4402_v46 = vmax.f32 %v4278_v0, 0.0  ;;  %v4281_v8 = vadd.f32 %v8961_v61, %v14658_v24 }
 0x490   : > { %v4438_v42 = vmax.f32 %v4399_v53, %v4402_v46  ;;  %v4403_v34 = vmax.f32 %v4281_v8, 0.0 }
 0x491   : > { %v4060_v54 = vpop.f32.mrb[96].mxu1 }
 0x492   : > { %v4493_v41 = vrot.slane %v4438_v42, 1  ;;  %v4439_v56 = vmax.f32 %v4400_v25, %v4403_v34  ;;  %v8962_v40 = vadd.f32 %v13385_v55, %v4060_v54  ;;  %v4062_v33 = vpop.f32.mrb[97].mxu1 }
 0x493   : > { %v4063_v45 = vpop.f32.mrb[98].mxu1  ;;  %v14665_v33 = vld [vmem:[#allocation131_spill] sm:$0xff] }
 0x494   : > { %v4494_v12 = vsel %vm4476_vm4, %v4492_v28, %v4493_v41  ;;  %v4495_v31 = vrot.slane %v4439_v56, 1  ;;  %v4286_v49 = vadd.f32 %v8962_v40, %v14659_v15  ;;  %v8963_v18 = vadd.f32 %v13385_v55, %v4063_v45  ;;  %v4065_v11 = vpop.f32.mrb[99].mxu1 }
 0x495   : > { %v4550_v2 = vmax.f32 %v4437_v19, %v4494_v12  ;;  %v13478_v36 = vpop.f32.mrb[96].mxu0 }
 0x496   : > { %v4496_v37 = vsel %vm4476_vm4, %v4493_v41, %v4495_v31  ;;  %v4552_v26 = vmax.f32 %v4439_v56, %v4495_v31  ;;  %v4289_v14 = vadd.f32 %v8963_v18, %v14660_v60  ;;  %v7220_v35 = vpop.f32.mrb[97].mxu0  ;;  %v4404_v21 = vmax.f32 %v4286_v49, 0.0 }
 0x497   : > { %4575 = vst.msk [vmem:[#allocation4 + $0x48] sm:$0xff] %vm1920_vm11, %v4550_v2  ;;  %v4551_v52 = vmax.f32 %v4438_v42, %v4496_v37  ;;  %v13483_v38 = vpop.f32.mrb[98].mxu0  ;;  %v14666_v2 = vld [vmem:[#allocation133_spill] sm:$0xff] }
 0x498   : > { %4577 = vst.msk [vmem:[#allocation4 + $0x58] sm:$0x7f] %vm4567_vm5, %v4552_v26  ;;  %v7223_v58 = vpop.f32.mrb[99].mxu0  ;;  %v4405_v22 = vmax.f32 %v4289_v14, 0.0 }
 0x499   : > { %4576 = vst.msk [vmem:[#allocation4 + $0x50] sm:$0xff] %vm1920_vm11, %v4551_v52  ;;  %v4068_v47 = vpop.f32.mrb[100].mxu1 }
 0x49a   : > { %v8964_v13 = vadd.f32 %v13385_v55, %v4068_v47  ;;  %v4070_v57 = vpop.f32.mrb[101].mxu1 }
 0x49b   : > { %v4071_v1 = vpop.f32.mrb[102].mxu1  ;;  %v14667_v57 = vld [vmem:[#allocation136_spill] sm:$0xff] }
 0x49c   : > { %v4294_v20 = vadd.f32 %v8964_v13, %v14661_v6  ;;  %v8965_v17 = vadd.f32 %v13385_v55, %v4071_v1  ;;  %v4073_v3 = vpop.f32.mrb[103].mxu1 }
 0x49d   : > { %v13490_v59 = vpop.f32.mrb[100].mxu0  ;;  %v14668_v3 = vld [vmem:[#allocation138_spill] sm:$0xff] }
 0x49e   : > { %v4297_v63 = vadd.f32 %v8965_v17, %v14662_v23  ;;  %v7228_v51 = vpop.f32.mrb[101].mxu0  ;;  %v4406_v44 = vmax.f32 %v4294_v20, 0.0 }
 0x49f   : > { %v13493_v10 = vpop.f32.mrb[102].mxu0 }
 0x4a0   : > { %v4407_v16 = vmax.f32 %v4297_v63, 0.0  ;;  %v7231_v62 = vpop.f32.mrb[103].mxu0 }
 0x4a1   : > { %v4076_v27 = vpop.f32.mrb[104].mxu1 }
 0x4a2   : > { %v4440_v7 = vmax.f32 %v4404_v21, %v4407_v16  ;;  %v8966_v50 = vadd.f32 %v13385_v55, %v4076_v27  ;;  %v4078_v5 = vpop.f32.mrb[105].mxu1 }
 0x4a3   : > { %v4079_v4 = vpop.f32.mrb[106].mxu1 }
 0x4a4   : > { %v4302_v9 = vadd.f32 %v8966_v50, %v14663_v32  ;;  %v8967_v48 = vadd.f32 %v13385_v55, %v4079_v4  ;;  %v4081_v43 = vpop.f32.mrb[107].mxu1  ;;  %v4497_v25 = vrot.slane %v4440_v7, 1  ;;  %v14669_v32 = vld [vmem:[#allocation135_spill] sm:$0xff] }
 0x4a5   : > { %v13498_v19 = vpop.f32.mrb[104].mxu0 }
 0x4a6   : > { %v4408_v39 = vmax.f32 %v4302_v9, 0.0  ;;  %v4305_v30 = vadd.f32 %v8967_v48, %v14664_v29  ;;  %v7236_v0 = vpop.f32.mrb[105].mxu0 }
 0x4a7   : > { %v13501_v61 = vpop.f32.mrb[106].mxu0 }
 0x4a8   : > { %v4441_v53 = vmax.f32 %v4405_v22, %v4408_v39  ;;  %v4409_v46 = vmax.f32 %v4305_v30, 0.0  ;;  %v7239_v24 = vpop.f32.mrb[107].mxu0  ;;  %v14670_v30 = vld [vmem:[#allocation137_spill] sm:$0xff] }
 0x4a9   : > { %v4084_v8 = vpop.f32.mrb[108].mxu1 }
 0x4aa   : > { %v4498_v42 = vrot.slane %v4441_v53, 1  ;;  %v4442_v34 = vmax.f32 %v4406_v44, %v4409_v46  ;;  %v8968_v54 = vadd.f32 %v13385_v55, %v4084_v8  ;;  %v4086_v28 = vpop.f32.mrb[109].mxu1 }
 0x4ab   : > { %v4087_v41 = vpop.f32.mrb[110].mxu1 }
 0x4ac   : > { %v4499_v56 = vsel %vm4476_vm4, %v4497_v25, %v4498_v42  ;;  %v4500_v40 = vrot.slane %v4442_v34, 1  ;;  %v4310_v45 = vadd.f32 %v8968_v54, %v14665_v33  ;;  %v8969_v12 = vadd.f32 %v13385_v55, %v4087_v41  ;;  %v4089_v31 = vpop.f32.mrb[111].mxu1 }
 0x4ad   : > { %v4553_v15 = vmax.f32 %v4440_v7, %v4499_v56  ;;  %v13507_v49 = vpop.f32.mrb[108].mxu0 }
 0x4ae   : > { %v4501_v18 = vsel %vm4476_vm4, %v4498_v42, %v4500_v40  ;;  %v4555_v11 = vmax.f32 %v4442_v34, %v4500_v40  ;;  %v4313_v37 = vadd.f32 %v8969_v12, %v14666_v2  ;;  %v7244_v26 = vpop.f32.mrb[109].mxu0  ;;  %v4410_v21 = vmax.f32 %v4310_v45, 0.0  ;;  %v14671_v12 = vld [vmem:[#allocation140_spill] sm:$0xff] }
 0x4af   : > { %4578 = vst.msk [vmem:[#allocation4 + $0x60] sm:$0xff] %vm1920_vm11, %v4553_v15  ;;  %v4554_v60 = vmax.f32 %v4441_v53, %v4501_v18  ;;  %v13512_v14 = vpop.f32.mrb[110].mxu0 }
 0x4b0   : > { %4580 = vst.msk [vmem:[#allocation4 + $0x70] sm:$0x7f] %vm4567_vm5, %v4555_v11  ;;  %v7247_v35 = vpop.f32.mrb[111].mxu0  ;;  %v4411_v39 = vmax.f32 %v4313_v37, 0.0 }
 0x4b1   : > { %4579 = vst.msk [vmem:[#allocation4 + $0x68] sm:$0xff] %vm1920_vm11, %v4554_v60  ;;  %v4092_v52 = vpop.f32.mrb[112].mxu1  ;;  %v14672_v60 = vld [vmem:[#allocation142_spill] sm:$0xff] }
 0x4b2   : > { %v8970_v58 = vadd.f32 %v13385_v55, %v4092_v52  ;;  %v4094_v47 = vpop.f32.mrb[113].mxu1 }
 0x4b3   : > { %v4095_v13 = vpop.f32.mrb[114].mxu1 }
 0x4b4   : > { %v4318_v1 = vadd.f32 %v8970_v58, %v14667_v57  ;;  %v8971_v6 = vadd.f32 %v13385_v55, %v4095_v13  ;;  %v4097_v20 = vpop.f32.mrb[115].mxu1 }
 0x4b5   : > { %v13519_v17 = vpop.f32.mrb[112].mxu0 }
 0x4b6   : > { %v4321_v23 = vadd.f32 %v8971_v6, %v14668_v3  ;;  %v7252_v63 = vpop.f32.mrb[113].mxu0  ;;  %v4412_v46 = vmax.f32 %v4318_v1, 0.0  ;;  %v14673_v3 = vld [vmem:[#allocation139_spill] sm:$0xff] }
 0x4b7   : > { %v13522_v51 = vpop.f32.mrb[114].mxu0 }
 0x4b8   : > { %v4413_v16 = vmax.f32 %v4321_v23, 0.0  ;;  %v7255_v62 = vpop.f32.mrb[115].mxu0 }
 0x4b9   : > { %v4100_v27 = vpop.f32.mrb[116].mxu1  ;;  %v14674_v62 = vld [vmem:[#allocation141_spill] sm:$0xff] }
 0x4ba   : > { %v4443_v7 = vmax.f32 %v4410_v21, %v4413_v16  ;;  %v8972_v50 = vadd.f32 %v13385_v55, %v4100_v27  ;;  %v4102_v5 = vpop.f32.mrb[117].mxu1 }
 0x4bb   : > { %v4103_v4 = vpop.f32.mrb[118].mxu1 }
 0x4bc   : > { %v4326_v9 = vadd.f32 %v8972_v50, %v14669_v32  ;;  %v8973_v48 = vadd.f32 %v13385_v55, %v4103_v4  ;;  %v4105_v43 = vpop.f32.mrb[119].mxu1  ;;  %v4502_v34 = vrot.slane %v4443_v7, 1 }
 0x4bd   : > { %v13527_v22 = vpop.f32.mrb[116].mxu0 }
 0x4be   : > { %v4414_v29 = vmax.f32 %v4326_v9, 0.0  ;;  %v4329_v0 = vadd.f32 %v8973_v48, %v14670_v30  ;;  %v7260_v44 = vpop.f32.mrb[117].mxu0  ;;  %v14675_v30 = vld [vmem:[#allocation144_spill] sm:$0xff] }
 0x4bf   : > { %v13530_v53 = vpop.f32.mrb[118].mxu0 }
 0x4c0   : > { %v4444_v24 = vmax.f32 %v4411_v39, %v4414_v29  ;;  %v4415_v8 = vmax.f32 %v4329_v0, 0.0  ;;  %v7263_v25 = vpop.f32.mrb[119].mxu0 }
 0x4c1   : > { %v4108_v42 = vpop.f32.mrb[120].mxu1 }
 0x4c2   : > { %v4503_v54 = vrot.slane %v4444_v24, 1  ;;  %v4445_v28 = vmax.f32 %v4412_v46, %v4415_v8  ;;  %v8974_v41 = vadd.f32 %v13385_v55, %v4108_v42  ;;  %v4110_v56 = vpop.f32.mrb[121].mxu1  ;;  %v14676_v42 = vld [vmem:[#allocation146_spill] sm:$0xff] }
 0x4c3   : > { %v4111_v40 = vpop.f32.mrb[122].mxu1 }
 0x4c4   : > { %v4504_v33 = vsel %vm4476_vm4, %v4502_v34, %v4503_v54  ;;  %v4505_v45 = vrot.slane %v4445_v28, 1  ;;  %v4334_v31 = vadd.f32 %v8974_v41, %v14671_v12  ;;  %v8975_v15 = vadd.f32 %v13385_v55, %v4111_v40  ;;  %v4113_v18 = vpop.f32.mrb[123].mxu1 }
 0x4c5   : > { %v4556_v11 = vmax.f32 %v4443_v7, %v4504_v33  ;;  %v13536_v2 = vpop.f32.mrb[120].mxu0 }
 0x4c6   : > { %v4506_v37 = vsel %vm4476_vm4, %v4503_v54, %v4505_v45  ;;  %v4558_v26 = vmax.f32 %v4445_v28, %v4505_v45  ;;  %v4337_v35 = vadd.f32 %v8975_v15, %v14672_v60  ;;  %v7268_v52 = vpop.f32.mrb[121].mxu0  ;;  %v4416_v5 = vmax.f32 %v4334_v31, 0.0 }
 0x4c7   : > { %4581 = vst.msk [vmem:[#allocation4 + $0x78] sm:$0xff] %vm1920_vm11, %v4556_v11  ;;  %v4557_v58 = vmax.f32 %v4444_v24, %v4506_v37  ;;  %v13541_v47 = vpop.f32.mrb[122].mxu0 }
 0x4c8   : > { %4583 = vst.msk [vmem:[#allocation4 + $0x88] sm:$0x7f] %vm4567_vm5, %v4558_v26  ;;  %v7271_v13 = vpop.f32.mrb[123].mxu0  ;;  %v4417_v8 = vmax.f32 %v4337_v35, 0.0  ;;  %v14677_v35 = vld [vmem:[#allocation143_spill] sm:$0xff] }
 0x4c9   : > { %4582 = vst.msk [vmem:[#allocation4 + $0x80] sm:$0xff] %vm1920_vm11, %v4557_v58  ;;  %v4116_v57 = vpop.f32.mrb[124].mxu1 }
 0x4ca   : > { %v8976_v1 = vadd.f32 %v13385_v55, %v4116_v57  ;;  %v4118_v6 = vpop.f32.mrb[125].mxu1 }
 0x4cb   : > { %v4119_v20 = vpop.f32.mrb[126].mxu1 }
 0x4cc   : > { %v4342_v23 = vadd.f32 %v8976_v1, %v14673_v3  ;;  %v8977_v63 = vadd.f32 %v13385_v55, %v4119_v20  ;;  %v4121_v21 = vpop.f32.mrb[127].mxu1  ;;  %v14678_v3 = vld [vmem:[#allocation145_spill] sm:$0xff] }
 0x4cd   : > { %v13548_v16 = vpop.f32.mrb[124].mxu0 }
 0x4ce   : > { %v4345_v27 = vadd.f32 %v8977_v63, %v14674_v62  ;;  %v7276_v7 = vpop.f32.mrb[125].mxu0  ;;  %v4418_v41 = vmax.f32 %v4342_v23, 0.0 }
 0x4cf   : > { %v13551_v50 = vpop.f32.mrb[126].mxu0 }
 0x4d0   : > { %v4419_v4 = vmax.f32 %v4345_v27, 0.0  ;;  %v7279_v32 = vpop.f32.mrb[127].mxu0 }
 0x4d1   : > { %v4124_v9 = vpop.f32.mrb[128].mxu1 }
 0x4d2   : > { %v4446_v48 = vmax.f32 %v4416_v5, %v4419_v4  ;;  %v8978_v43 = vadd.f32 %v13385_v55, %v4124_v9  ;;  %v4126_v39 = vpop.f32.mrb[129].mxu1  ;;  %v14679_v9 = vld [vmem:[#allocation148_spill] sm:$0xff] }
 0x4d3   : > { %v4127_v29 = vpop.f32.mrb[130].mxu1 }
 0x4d4   : > { %v4350_v0 = vadd.f32 %v8978_v43, %v14675_v30  ;;  %v8979_v44 = vadd.f32 %v13385_v55, %v4127_v29  ;;  %v4129_v46 = vpop.f32.mrb[131].mxu1  ;;  %v4507_v12 = vrot.slane %v4446_v48, 1  ;;  %v14680_v30 = vld [vmem:[#allocation150_spill] sm:$0xff] }
 0x4d5   : > { %v13556_v24 = vpop.f32.mrb[128].mxu0 }
 0x4d6   : > { %v4420_v25 = vmax.f32 %v4350_v0, 0.0  ;;  %v4353_v34 = vadd.f32 %v8979_v44, %v14676_v42  ;;  %v7284_v54 = vpop.f32.mrb[129].mxu0 }
 0x4d7   : > { %v13559_v28 = vpop.f32.mrb[130].mxu0  ;;  %v8146_v54 = vld [vmem:[%s9593_s21] sm:$0x3f] }
 0x4d8   : > { %v4447_v56 = vmax.f32 %v4417_v8, %v4420_v25  ;;  %v4421_v40 = vmax.f32 %v4353_v34, 0.0  ;;  %v7287_v33 = vpop.f32.mrb[131].mxu0  ;;  %v8145_v8 = vld [vmem:[%s9588_s18] sm:$0x3f] }
 0x4d9   : > { %v4132_v45 = vpop.f32.mrb[132].mxu1  ;;  %v8147_v33 = vsub.f32 %v8145_v8, %v8146_v54 }
 0x4da   : > { %v4508_v31 = vrot.slane %v4447_v56, 1  ;;  %v4448_v15 = vmax.f32 %v4418_v41, %v4421_v40  ;;  %v8980_v18 = vadd.f32 %v13385_v55, %v4132_v45  ;;  %v4134_v11 = vpop.f32.mrb[133].mxu1  ;;  %v14681_v41 = vld [vmem:[#allocation9_spill] sm:$0xff] }
 0x4db   : > { %v4135_v37 = vpop.f32.mrb[134].mxu1  ;;  %v8157_v45 = vsub.s32 1, %v14681_v41 }
 0x4dc   : > { %v4509_v26 = vsel %vm4476_vm4, %v4507_v12, %v4508_v31  ;;  %v4510_v60 = vrot.slane %v4448_v15, 1  ;;  %v4358_v52 = vadd.f32 %v8980_v18, %v14677_v35  ;;  %v8981_v58 = vadd.f32 %v13385_v55, %v4135_v37  ;;  %v4137_v13 = vpop.f32.mrb[135].mxu1 }
 0x4dd   : > { %v4559_v57 = vmax.f32 %v4446_v48, %v4509_v26  ;;  %v13565_v1 = vpop.f32.mrb[132].mxu0  ;;  %v8161_v12 = vsub.s32 2, %v14681_v41  ;;  %v8986_v37 = vadd.f32 %v13385_v55, %v13478_v36  ;;  %v8169_v35 = vsub.s32 4, %v14681_v41 }
 0x4de   : > { %v4511_v6 = vsel %vm4476_vm4, %v4508_v31, %v4510_v60  ;;  %v4561_v20 = vmax.f32 %v4448_v15, %v4510_v60  ;;  %v4361_v23 = vadd.f32 %v8981_v58, %v14678_v3  ;;  %v7292_v63 = vpop.f32.mrb[133].mxu0  ;;  %v4422_v25 = vmax.f32 %v4358_v52, 0.0  ;;  %v14682_v52 = vld [vmem:[#allocation147_spill] sm:$0xff] }
 0x4df   : > { %4584 = vst.msk [vmem:[#allocation4 + $0x90] sm:$0xff] %vm1920_vm11, %v4559_v57  ;;  %v4560_v21 = vmax.f32 %v4447_v56, %v4511_v6  ;;  %v13570_v62 = vpop.f32.mrb[134].mxu0  ;;  %v8153_v56 = vsub.s32 0, %v14681_v41  ;;  %v8165_v31 = vsub.s32 3, %v14681_v41  ;;  %v8149_v60 = vmul.f32 %v8147_v33, %v8147_v33 }
 0x4e0   : > { %4586 = vst.msk [vmem:[#allocation4 + $0xa0] sm:$0x7f] %vm4567_vm5, %v4561_v20  ;;  %v7295_v27 = vpop.f32.mrb[135].mxu0  ;;  %v8173_v6 = vsub.s32 5, %v14681_v41  ;;  %v8988_v36 = vadd.f32 %v13385_v55, %v13490_v59  ;;  %v8989_v59 = vadd.f32 %v13385_v55, %v13493_v10  ;;  %v7870_v10 = vand.u32 1, %v14681_v41 }
 0x4e1   : > { %4585 = vst.msk [vmem:[#allocation4 + $0x98] sm:$0xff] %vm1920_vm11, %v4560_v21  ;;  %v4140_v7 = vpop.f32.mrb[136].mxu1  ;;  %v8154_v3 = vrot.slane %v8149_v60, %v8153_v56  ;;  %v8158_v63 = vrot.slane %v8149_v60, %v8157_v45  ;;  %v8162_v21 = vrot.slane %v8149_v60, %v8161_v12  ;;  %v8166_v27 = vrot.slane %v8149_v60, %v8165_v31 }
 0x4e2   : > { %v8982_v5 = vadd.f32 %v13385_v55, %v4140_v7  ;;  %v4142_v4 = vpop.f32.mrb[137].mxu1  ;;  %v4423_v7 = vmax.f32 %v4361_v23, 0.0  ;;  %vm7902_vm14 = vcmp.eq.s32.totalorder %v7870_v10, 0 }
 0x4e3   : > { %v4143_v32 = vpop.f32.mrb[138].mxu1  ;;  %v14683_v4 = vld [vmem:[#allocation149_spill] sm:$0xff] }
 0x4e4   : > { %v4366_v48 = vadd.f32 %v8982_v5, %v14679_v9  ;;  %v8983_v43 = vadd.f32 %v13385_v55, %v4143_v32  ;;  %v4145_v39 = vpop.f32.mrb[139].mxu1 }
 0x4e5   : > { %v13577_v29 = vpop.f32.mrb[136].mxu0 }
 0x4e6   : > { %v4369_v0 = vadd.f32 %v8983_v43, %v14680_v30  ;;  %v7300_v44 = vpop.f32.mrb[137].mxu0  ;;  %v4424_v43 = vmax.f32 %v4366_v48, 0.0  ;;  %v8182_v30 = vsel %vm8181_vm12, %v8154_v3, 0.0  ;;  %v8174_v48 = vrot.slane %v8149_v60, %v8173_v6 }
 0x4e7   : > { %v13580_v46 = vpop.f32.mrb[138].mxu0  ;;  %v8185_v44 = vsel %vm8181_vm12, %v8162_v21, 0.0 }
 0x4e8   : > { %v4425_v42 = vmax.f32 %v4369_v0, 0.0  ;;  %v7303_v34 = vpop.f32.mrb[139].mxu0  ;;  %v8183_v0 = vsel %vm8181_vm12, %v8158_v63, 0.0  ;;  %v8191_v41 = vsel %vm8181_vm12, %v8174_v48, 0.0 }
 0x4e9   : > { %v4148_v40 = vpop.f32.mrb[140].mxu1  ;;  %v8170_v34 = vrot.slane %v8149_v60, %v8169_v35  ;;  %v8184_v54 = vadd.f32 %v8183_v0, %v8182_v30  ;;  %v8987_v35 = vadd.f32 %v13385_v55, %v13483_v38 }
 0x4ea   : > { %v13588_v15 = vmax.f32 %v4422_v25, %v4425_v42  ;;  %v8984_v18 = vadd.f32 %v13385_v55, %v4148_v40  ;;  %v4150_v11 = vpop.f32.mrb[141].mxu1  ;;  %v8187_v40 = vsel %vm8181_vm12, %v8166_v27, 0.0 }
 0x4eb   : > { %v4151_v26 = vpop.f32.mrb[142].mxu1  ;;  %v14684_v11 = vld [vmem:[#allocation10_spill] sm:$0xff]  ;;  %v8189_v3 = vsel %vm8181_vm12, %v8170_v34, 0.0 }
 0x4ec   : > { %v4374_v58 = vadd.f32 %v8984_v18, %v14682_v52  ;;  %v8985_v13 = vadd.f32 %v13385_v55, %v4151_v26  ;;  %v4153_v57 = vpop.f32.mrb[143].mxu1  ;;  %v4512_v23 = vrot.slane %v13588_v15, 1  ;;  %v8186_v18 = vadd.f32 %v8185_v44, %v8184_v54 }
 0x4ed   : > { %v13597_v20 = vpop.f32.mrb[140].mxu0  ;;  %v7877_v26 = vand.u32 1, %v14684_v11 }
 0x4ee   : > { %v4426_v5 = vmax.f32 %v4374_v58, 0.0  ;;  %v4377_v32 = vadd.f32 %v8985_v13, %v14683_v4  ;;  %v7308_v9 = vpop.f32.mrb[141].mxu0 }
 0x4ef   : > { %v13602_v39 = vpop.f32.mrb[142].mxu0  ;;  %vm7903_vm13 = vcmp.eq.s32.totalorder %v7877_v26, 0 }
 0x4f0   : > { %v4450_v8 = vmax.f32 %v4423_v7, %v4426_v5  ;;  %v4427_v25 = vmax.f32 %v4377_v32, 0.0  ;;  %v7311_v42 = vpop.f32.mrb[143].mxu0  ;;  %v8188_v7 = vadd.f32 %v8187_v40, %v8186_v18 }
 0x4f1   : > { %v8892_v56 = vpop.f32.mrb[144].mxu1  ;;  %v14685_v42 = vmov 0.0  }
 0x4f2   : > { %v4513_v33 = vrot.slane %v4450_v8, 1  ;;  %v4451_v45 = vmax.f32 %v4424_v43, %v4427_v25  ;;  %v13611_v12 = vadd.f32 %v8988_v36, %v8892_v56  ;;  %v7443_v31 = vpop.f32.mrb[145].mxu1  ;;  %v8190_v9 = vadd.f32 %v8189_v3, %v8188_v7 }
 0x4f3   : > { %v7444_v52 = vadd.f32 %v8986_v37, %v7443_v31  ;;  %v8893_v58 = vpop.f32.mrb[146].mxu1  ;;  %v13639_v34 = vsel %vm7903_vm13, 1.0, %v14685_v42  ;;  %v13650_v48 = vsel %vm7902_vm14, 1.0, %v14685_v42 }
 0x4f4   : > { %v4514_v13 = vsel %vm4476_vm4, %v4512_v23, %v4513_v33  ;;  %v4515_v60 = vrot.slane %v4451_v45, 1  ;;  %v7455_v57 = vadd.f32 %v8989_v59, %v8893_v58  ;;  %v7446_v6 = vpop.f32.mrb[147].mxu1  ;;  %v8192_v25 = vadd.f32 %v8191_v41, %v8190_v9 }
 0x4f5   : > { %v4562_v63 = vmax.f32 %v13588_v15, %v4514_v13  ;;  %v7634_v21 = vmax.f32 %v7444_v52, 0.0  ;;  %v7447_v27 = vadd.f32 %v8987_v35, %v7446_v6  ;;  %v13620_v36 = vpop.f32.mrb[144].mxu0  ;;  %v13628_v15 = vld [vmem:[%s14036_s7] ss:$0 sm:$0xff] }
 0x4f6   : > { %v4516_v55 = vsel %vm4476_vm4, %v4513_v33, %v4515_v60  ;;  %v4564_v38 = vmax.f32 %v4451_v45, %v4515_v60  ;;  %v7637_v37 = vmax.f32 %v7455_v57, 0.0  ;;  %v7316_v5 = vpop.f32.mrb[145].mxu0  ;;  %v8992_v43 = vadd.f32 %v13628_v15, %v13507_v49  ;;  %8193 = vadd.xlane.f32.xlu1 %v8192_v25 }
 0x4f7   : > { %4587 = vst.msk [vmem:[#allocation4 + $0xa8] sm:$0xff] %vm1920_vm11, %v4562_v63  ;;  %v4563_v4 = vmax.f32 %v4450_v8, %v4516_v55  ;;  %v7317_v32 = vpop.f32.mrb[146].mxu0  ;;  %v8990_v44 = vadd.f32 %v13628_v15, %v13498_v19  ;;  %v8993_v54 = vadd.f32 %v13628_v15, %v13512_v14  ;;  %v8991_v23 = vadd.f32 %v13628_v15, %v13501_v61 }
 0x4f8   : > { %4589 = vst.msk [vmem:[#allocation4 + $0xb8] sm:$0x7f] %vm4567_vm5, %v4564_v38  ;;  %v13633_v30 = vmax.f32 %v7634_v21, %v7637_v37  ;;  %v7319_v0 = vpop.f32.mrb[147].mxu0  ;;  %v8994_v56 = vadd.f32 %v13628_v15, %v13519_v17  ;;  %v8995_v33 = vadd.f32 %v13628_v15, %v13522_v51  ;;  %v8996_v14 = vadd.f32 %v13628_v15, %v13527_v22 }
 0x4f9   : > { %4588 = vst.msk [vmem:[#allocation4 + $0xb0] sm:$0xff] %vm1920_vm11, %v4563_v4  ;;  %v8896_v8 = vpop.f32.mrb[148].mxu1  ;;  %v8997_v45 = vadd.f32 %v13628_v15, %v13530_v53  ;;  %v13660_v17 = vadd.f32 %v13628_v15, %v13536_v2  ;;  %v7635_v18 = vmax.f32 %v7447_v27, 0.0  ;;  %v13664_v52 = vadd.f32 %v13628_v15, %v13541_v47 }
 0x4fa   : > { %v13643_v49 = vadd.f32 %v8992_v43, %v8896_v8  ;;  %v7459_v59 = vpop.f32.mrb[149].mxu1  ;;  %v13668_v51 = vadd.f32 %v13628_v15, %v13548_v16  ;;  %v13672_v22 = vadd.f32 %v13628_v15, %v13551_v50  ;;  %v13676_v53 = vadd.f32 %v13628_v15, %v13556_v24 }
 0x4fb   : > { %v7460_v19 = vadd.f32 %v8990_v44, %v7459_v59  ;;  %v8897_v40 = vpop.f32.mrb[150].mxu1  ;;  %v13680_v58 = vadd.f32 %v13628_v15, %v13559_v28  ;;  %v7636_v47 = vmax.f32 %v13611_v12, 0.0  ;;  %v13685_v16 = vadd.f32 %v13628_v15, %v13565_v1 }
 0x4fc   : > { %v7471_v31 = vadd.f32 %v8993_v54, %v8897_v40  ;;  %v7462_v61 = vpop.f32.mrb[151].mxu1  ;;  %v13689_v50 = vadd.f32 %v13628_v15, %v13570_v62  ;;  %v13693_v24 = vadd.f32 %v13628_v15, %v13577_v29  ;;  %v13697_v28 = vadd.f32 %v13628_v15, %v13580_v46  ;;  %v7820_v54 = vld [vmem:[#allocation4 + $0x10] sm:$0x7f] }
 0x4fd   : > { %v7638_v11 = vmax.f32 %v7460_v19, 0.0  ;;  %v7463_v26 = vadd.f32 %v8991_v23, %v7462_v61  ;;  %v7322_v35 = vpop.f32.mrb[148].mxu0  ;;  %v13701_v57 = vadd.f32 %v13628_v15, %v13597_v20  ;;  %v7730_v1 = vrot.slane %v13633_v30, 1 }
 0x4fe   : > { %v7324_v2 = vpop.f32.mrb[149].mxu0  ;;  %v13706_v62 = vadd.f32 %v13628_v15, %v13602_v39  ;;  %v13710_v29 = vadd.f32 %v13628_v15, %v13620_v36  ;;  %v13713_v46 = vadd.f32 %v13628_v15, %v7317_v32  ;;  %v7640_v20 = vmax.f32 %v13643_v49, 0.0  ;;  %v7818_v36 = vld [vmem:[#allocation4] sm:$0xff] }
 0x4ff   : > { %v7683_v10 = vmax.f32 %v7635_v18, %v7638_v11  ;;  %v7639_v13 = vmax.f32 %v7463_v26, 0.0  ;;  %v7325_v60 = vpop.f32.mrb[150].mxu0  ;;  %v7641_v39 = vmax.f32 %v7471_v31, 0.0 }
 0x500   : > { %v7327_v12 = vpop.f32.mrb[151].mxu0  ;;  %v13723_v40 = vadd.f32 %v13628_v15, %v7325_v60 }
 0x501   : > { %v7731_v6 = vrot.slane %v7683_v10, 1  ;;  %v7684_v3 = vmax.f32 %v7636_v47, %v7639_v13  ;;  %v8900_v63 = vpop.f32.mrb[152].mxu1 }
 0x502   : > { %v7484_v21 = vadd.f32 %v8996_v14, %v8900_v63  ;;  %v7475_v27 = vpop.f32.mrb[153].mxu1 }
 0x503   : > { %v7732_v7 = vsel %vm4476_vm4, %v7730_v1, %v7731_v6  ;;  %v7733_v55 = vrot.slane %v7684_v3, 1  ;;  %v7476_v38 = vadd.f32 %v8994_v56, %v7475_v27  ;;  %v8901_v37 = vpop.f32.mrb[154].mxu1  ;;  %v7819_v56 = vld [vmem:[#allocation4 + $0x8] sm:$0xff] }
 0x504   : > { %v7794_v5 = vmax.f32 %v13633_v30, %v7732_v7  ;;  %v7644_v41 = vmax.f32 %v7484_v21, 0.0  ;;  %v7487_v4 = vadd.f32 %v8997_v45, %v8901_v37  ;;  %v7478_v9 = vpop.f32.mrb[155].mxu1  ;;  %v13720_v30 = vadd.f32 %v13628_v15, %v7322_v35 }
 0x505   : > { %v7734_v43 = vsel %vm4476_vm4, %v7731_v6, %v7733_v55  ;;  %v7796_v32 = vmax.f32 %v7684_v3, %v7733_v55  ;;  %v7642_v0 = vmax.f32 %v7476_v38, 0.0  ;;  %v7479_v44 = vadd.f32 %v8995_v33, %v7478_v9  ;;  %v7330_v8 = vpop.f32.mrb[152].mxu0 }
 0x506   : > { %v7842_v25 = vsub.f32 %v7794_v5, %v7818_v36  ;;  %v7795_v42 = vmax.f32 %v7683_v10, %v7734_v43  ;;  %v7686_v49 = vmax.f32 %v7641_v39, %v7644_v41  ;;  %v7645_v59 = vmax.f32 %v7487_v4, 0.0  ;;  %v7332_v23 = vpop.f32.mrb[153].mxu0 }
 0x507   : > { %v7844_v19 = vsub.f32 %v7796_v32, %v7820_v54  ;;  %v7643_v14 = vmax.f32 %v7479_v44, 0.0  ;;  %v7333_v45 = vpop.f32.mrb[154].mxu0  ;;  %v13732_v32 = vadd.f32 %v13628_v15, %v7330_v8 }
 0x508   : > { %v7917_v31 = vand.u32 2147483647, %v7842_v25  ;;  %v7965_v61 = vmul.f32 0.5, %v7842_v25  ;;  %v7843_v33 = vsub.f32 %v7795_v42, %v7819_v56  ;;  %v7736_v18 = vrot.slane %v7686_v49, 1  ;;  %v7335_v11 = vpop.f32.mrb[155].mxu0 }
 0x509   : > { %v7919_v26 = vand.u32 2147483647, %v7844_v19  ;;  %v7967_v2 = vmul.f32 0.5, %v7844_v19  ;;  %v7687_v47 = vmax.f32 %v7642_v0, %v7645_v59  ;;  %v7685_v10 = vmax.f32 %v7640_v20, %v7643_v14  ;;  %v8904_v13 = vpop.f32.mrb[156].mxu1  ;;  %v7823_v42 = vld [vmem:[#allocation4 + $0x28] sm:$0x7f] }
 0x50a   : > { %vm7941_vm9 = vcmp.lt.f32.partialorder %v7917_v31, 1.0  ;;  %v7989_v12 = vmul.f32 %v7965_v61, %v7842_v25  ;;  %v8583_v1 = vadd.f32 -0.5, %v7917_v31  ;;  %v7918_v35 = vand.u32 2147483647, %v7843_v33  ;;  %v7491_v6 = vpop.f32.mrb[157].mxu1  ;;  %v7822_v14 = vld [vmem:[#allocation4 + $0x20] sm:$0xff] }
 0x50b   : > { %vm7943_vm10 = vcmp.lt.f32.partialorder %v7919_v26, 1.0  ;;  %v7966_v60 = vmul.f32 0.5, %v7843_v33  ;;  %v7991_v3 = vmul.f32 %v7967_v2, %v7844_v19  ;;  %v8585_v63 = vadd.f32 -0.5, %v7919_v26  ;;  %v8905_v21 = vpop.f32.mrb[158].mxu1  ;;  %v7821_v11 = vld [vmem:[#allocation4 + $0x18] sm:$0xff] }
 0x50c   : > { %v8037_v27 = vsel %vm7941_vm9, %v7989_v12, %v8583_v1  ;;  %vm13725_vm1 = vcmp.lt.f32.partialorder %v7918_v35, 1.0  ;;  %v8584_v55 = vadd.f32 -0.5, %v7918_v35  ;;  %v7738_v38 = vrot.slane %v7687_v47, 1  ;;  %v7494_v37 = vpop.f32.mrb[159].mxu1 }
 0x50d   : > { %v8061_v20 = vmul.f32 %v13650_v48, %v8037_v27  ;;  %v7990_v5 = vmul.f32 %v7966_v60, %v7843_v33  ;;  %v8039_v39 = vsel %vm7943_vm10, %v7991_v3, %v8585_v63  ;;  %v7735_v41 = vrot.slane %v7685_v10, 1  ;;  %v7338_v4 = vpop.f32.mrb[156].mxu0 }
 0x50e   : > { %v8063_v9 = vmul.f32 0.0, %v8039_v39  ;;  %v7739_v36 = vsel %vm4476_vm4, %v7736_v18, %v7738_v38  ;;  %v7799_v43 = vmax.f32 %v7687_v47, %v7738_v38  ;;  %v7340_v0 = vpop.f32.mrb[157].mxu0  ;;  %v13738_v59 = vadd.f32 %v13628_v15, %v7333_v45 }
 0x50f   : > { %v8038_v44 = vsel %vm13725_vm1, %v7990_v5, %v8584_v55  ;;  %v7798_v25 = vmax.f32 %v7686_v49, %v7739_v36  ;;  %v7737_v54 = vsel %vm4476_vm4, %v7735_v41, %v7736_v18  ;;  %v7341_v23 = vpop.f32.mrb[158].mxu0  ;;  %v8086_v19 = vsel %vm1920_vm11, %v8061_v20, 0.0 }
 0x510   : > { %v8062_v56 = vmul.f32 %v13639_v34, %v8038_v44  ;;  %v7847_v31 = vsub.f32 %v7799_v43, %v7823_v42  ;;  %v7797_v8 = vmax.f32 %v7685_v10, %v7737_v54  ;;  %v7343_v61 = vpop.f32.mrb[159].mxu0  ;;  %v13743_v26 = vadd.f32 %v13668_v51, %v8904_v13 }
 0x511   : > { %v7846_v33 = vsub.f32 %v7798_v25, %v7822_v14  ;;  %v7492_v49 = vadd.f32 %v13660_v17, %v7491_v6  ;;  %v7503_v18 = vadd.f32 %v13672_v22, %v8905_v21  ;;  %v8908_v45 = vpop.f32.mrb[160].mxu1  ;;  %v8089_v10 = vsel %vm4567_vm5, %v8063_v9, 0.0 }
 0x512   : > { %v8087_v2 = vsel %vm1920_vm11, %v8062_v56, 0.0  ;;  %v7922_v47 = vand.u32 2147483647, %v7847_v31  ;;  %v7970_v12 = vmul.f32 0.5, %v7847_v31  ;;  %v7845_v1 = vsub.f32 %v7797_v8, %v7821_v11  ;;  %v7507_v35 = vpop.f32.mrb[161].mxu1 }
 0x513   : > { %v8088_v60 = vadd.f32 %v8087_v2, %v8086_v19  ;;  %v7921_v3 = vand.u32 2147483647, %v7846_v33  ;;  %v7969_v63 = vmul.f32 0.5, %v7846_v33  ;;  %v8909_v27 = vpop.f32.mrb[162].mxu1  ;;  %v7646_v0 = vmax.f32 %v7492_v49, 0.0 }
 0x514   : > { %vm13749_vm2 = vcmp.lt.f32.partialorder %v7922_v47, 1.0  ;;  %v7994_v17 = vmul.f32 %v7970_v12, %v7847_v31  ;;  %v8588_v13 = vadd.f32 -0.5, %v7922_v47  ;;  %v7920_v22 = vand.u32 2147483647, %v7845_v1  ;;  %v7510_v6 = vpop.f32.mrb[163].mxu1 }
 0x515   : > { %v8090_v21 = vadd.f32 %v8089_v10, %v8088_v60  ;;  %vm7945_vm15 = vcmp.lt.f32.partialorder %v7921_v3, 1.0  ;;  %v7993_v7 = vmul.f32 %v7969_v63, %v7846_v33  ;;  %v8587_v55 = vadd.f32 -0.5, %v7921_v3  ;;  %v7346_v38 = vpop.f32.mrb[160].mxu0 }
 0x516   : > { %v8042_v20 = vsel %vm13749_vm2, %v7994_v17, %v8588_v13  ;;  %vm13755_vm6 = vcmp.lt.f32.partialorder %v7920_v22, 1.0  ;;  %v7968_v39 = vmul.f32 0.5, %v7845_v1  ;;  %v8586_v41 = vadd.f32 -0.5, %v7920_v22  ;;  %v7348_v9 = vpop.f32.mrb[161].mxu0 }
 0x517   : > { %v8041_v36 = vsel %vm7945_vm15, %v7993_v7, %v8587_v55  ;;  %v8066_v43 = vmul.f32 0.0, %v8042_v20  ;;  %v7649_v44 = vmax.f32 %v7503_v18, 0.0  ;;  %v7349_v25 = vpop.f32.mrb[162].mxu0  ;;  %v7648_v56 = vmax.f32 %v13743_v26, 0.0 }
 0x518   : > { %v8065_v42 = vmul.f32 %v13639_v34, %v8041_v36  ;;  %v7992_v54 = vmul.f32 %v7968_v39, %v7845_v1  ;;  %v7495_v19 = vadd.f32 %v13664_v52, %v7494_v37  ;;  %v7351_v14 = vpop.f32.mrb[163].mxu0  ;;  %v13764_v61 = vadd.f32 %v13628_v15, %v7338_v4 }
 0x519   : > { %v8095_v31 = vsel %vm4567_vm5, %v8066_v43, 0.0  ;;  %v7688_v8 = vmax.f32 %v7646_v0, %v7649_v44  ;;  %v7516_v33 = vadd.f32 %v13685_v16, %v8908_v45  ;;  %v8912_v11 = vpop.f32.mrb[164].mxu1  ;;  %v13771_v2 = vadd.f32 %v13628_v15, %v7341_v23 }
 0x51a   : > { %v8040_v49 = vsel %vm13755_vm6, %v7992_v54, %v8586_v41  ;;  %v8093_v18 = vsel %vm1920_vm11, %v8065_v42, 0.0  ;;  %v7508_v52 = vadd.f32 %v13676_v53, %v7507_v35  ;;  %v7523_v37 = vpop.f32.mrb[165].mxu1  ;;  %v7647_v12 = vmax.f32 %v7495_v19, 0.0 }
 0x51b   : > { %v8064_v26 = vmul.f32 %v13650_v48, %v8040_v49  ;;  %v7740_v47 = vrot.slane %v7688_v8, 1  ;;  %v7519_v4 = vadd.f32 %v13689_v50, %v8909_v27  ;;  %v8913_v1 = vpop.f32.mrb[166].mxu1  ;;  %v7652_v16 = vmax.f32 %v7516_v33, 0.0  ;;  %v7824_v33 = vld [vmem:[#allocation4 + $0x30] sm:$0xff] }
 0x51c   : > { %v7650_v45 = vmax.f32 %v7508_v52, 0.0  ;;  %v7511_v60 = vadd.f32 %v13680_v58, %v7510_v6  ;;  %v13778_v10 = vadd.f32 %v13628_v15, %v7346_v38  ;;  %v7526_v3 = vpop.f32.mrb[167].mxu1  ;;  %v13782_v53 = vadd.f32 %v13628_v15, %v7349_v25 }
 0x51d   : > { %v8091_v23 = vsel %vm1920_vm11, %v8064_v26, 0.0  ;;  %v7532_v35 = vadd.f32 %v13701_v57, %v8912_v11  ;;  %v7524_v63 = vadd.f32 %v13693_v24, %v7523_v37  ;;  %v7354_v51 = vpop.f32.mrb[164].mxu0  ;;  %v7535_v13 = vadd.f32 %v13706_v62, %v8913_v1  ;;  %v7826_v26 = vld [vmem:[#allocation4 + $0x40] sm:$0x7f] }
 0x51e   : > { %v8092_v50 = vadd.f32 %v8091_v23, %v8090_v21  ;;  %v7689_v27 = vmax.f32 %v7647_v12, %v7650_v45  ;;  %v7651_v17 = vmax.f32 %v7511_v60, 0.0  ;;  %v7356_v58 = vpop.f32.mrb[165].mxu0  ;;  %v7653_v22 = vmax.f32 %v7519_v4, 0.0  ;;  %v7825_v4 = vld [vmem:[#allocation4 + $0x38] sm:$0xff] }
 0x51f   : > { %v7656_v6 = vmax.f32 %v7532_v35, 0.0  ;;  %v7654_v7 = vmax.f32 %v7524_v63, 0.0  ;;  %v7527_v55 = vadd.f32 %v13697_v28, %v7526_v3  ;;  %v7357_v38 = vpop.f32.mrb[166].mxu0  ;;  %v7657_v41 = vmax.f32 %v7535_v13, 0.0 }
 0x520   : > { %v8094_v20 = vadd.f32 %v8093_v18, %v8092_v50  ;;  %v7741_v5 = vrot.slane %v7689_v27, 1  ;;  %v7690_v39 = vmax.f32 %v7648_v56, %v7651_v17  ;;  %v7359_v57 = vpop.f32.mrb[167].mxu0  ;;  %v13789_v21 = vadd.f32 %v13628_v15, %v7354_v51  ;;  %v7829_v51 = vld [vmem:[#allocation4 + $0x58] sm:$0x7f] }
 0x521   : > { %v7692_v9 = vmax.f32 %v7653_v22, %v7656_v6  ;;  %v7655_v24 = vmax.f32 %v7527_v55, 0.0  ;;  %v13792_v36 = vadd.f32 %v13628_v15, %v7357_v38  ;;  %v8916_v62 = vpop.f32.mrb[168].mxu1  ;;  %v7693_v44 = vmax.f32 %v7654_v7, %v7657_v41 }
 0x522   : > { %v13794_v43 = vadd.f32 %v8095_v31, %v8094_v20  ;;  %v7742_v0 = vsel %vm4476_vm4, %v7740_v47, %v7741_v5  ;;  %v7743_v28 = vrot.slane %v7690_v39, 1  ;;  %v7539_v25 = vpop.f32.mrb[169].mxu1  ;;  %v13800_v19 = vadd.f32 %v13720_v30, %v8916_v62 }
 0x523   : > { %v7800_v42 = vmax.f32 %v7688_v8, %v7742_v0  ;;  %v7746_v54 = vrot.slane %v7692_v9, 1  ;;  %v13797_v56 = vmax.f32 %v7652_v16, %v7655_v24  ;;  %v13802_v14 = vpop.f32.mrb[170].mxu1  ;;  %v7748_v31 = vrot.slane %v7693_v44, 1 }
 0x524   : > { %v7744_v11 = vsel %vm4476_vm4, %v7741_v5, %v7743_v28  ;;  %v7802_v49 = vmax.f32 %v7690_v39, %v7743_v28  ;;  %v13806_v18 = vadd.f32 %v13710_v29, %v7539_v25  ;;  %v13808_v52 = vpop.f32.mrb[171].mxu1  ;;  %v7660_v30 = vmax.f32 %v13800_v19, 0.0 }
 0x525   : > { %v7848_v37 = vsub.f32 %v7800_v42, %v7824_v33  ;;  %v7801_v8 = vmax.f32 %v7689_v27, %v7744_v11  ;;  %v7745_v47 = vrot.slane %v13797_v56, 1  ;;  %v13812_v12 = vpop.f32.mrb[168].mxu0  ;;  %v7749_v16 = vsel %vm4476_vm4, %v7746_v54, %v7748_v31 }
 0x526   : > { %v7850_v1 = vsub.f32 %v7802_v49, %v7826_v26  ;;  %v7805_v45 = vmax.f32 %v7693_v44, %v7748_v31  ;;  %v7658_v60 = vmax.f32 %v13806_v18, 0.0  ;;  %v7364_v29 = vpop.f32.mrb[169].mxu0  ;;  %v7804_v63 = vmax.f32 %v7692_v9, %v7749_v16  ;;  %v7828_v9 = vld [vmem:[#allocation4 + $0x50] sm:$0xff] }
 0x527   : > { %v7923_v3 = vand.u32 2147483647, %v7848_v37  ;;  %v7971_v23 = vmul.f32 0.5, %v7848_v37  ;;  %v7849_v35 = vsub.f32 %v7801_v8, %v7825_v4  ;;  %v13816_v50 = vpop.f32.mrb[170].mxu0  ;;  %v7747_v58 = vsel %vm4476_vm4, %v7745_v47, %v7746_v54 }
 0x528   : > { %v7925_v27 = vand.u32 2147483647, %v7850_v1  ;;  %v7973_v17 = vmul.f32 0.5, %v7850_v1  ;;  %v7853_v13 = vsub.f32 %v7805_v45, %v7829_v51  ;;  %v7367_v22 = vpop.f32.mrb[171].mxu0  ;;  %v7852_v44 = vsub.f32 %v7804_v63, %v7828_v9 }
 0x529   : > { %vm13819_vm7 = vcmp.lt.f32.partialorder %v7923_v3, 1.0  ;;  %v7995_v7 = vmul.f32 %v7971_v23, %v7848_v37  ;;  %v8589_v55 = vadd.f32 -0.5, %v7923_v3  ;;  %v7924_v38 = vand.u32 2147483647, %v7849_v35  ;;  %v8920_v20 = vpop.f32.mrb[172].mxu1 }
 0x52a   : > { %vm13823_vm8 = vcmp.lt.f32.partialorder %v7925_v27, 1.0  ;;  %v7972_v39 = vmul.f32 0.5, %v7849_v35  ;;  %v7997_v41 = vmul.f32 %v7973_v17, %v7850_v1  ;;  %v8591_v57 = vadd.f32 -0.5, %v7925_v27  ;;  %v7555_v24 = vpop.f32.mrb[173].mxu1 }
 0x52b   : > { %v8043_v62 = vsel %vm13819_vm7, %v7995_v7, %v8589_v55  ;;  %vm13829_vm0 = vcmp.lt.f32.partialorder %v7924_v38, 1.0  ;;  %v8590_v28 = vadd.f32 -0.5, %v7924_v38  ;;  %v8921_v25 = vpop.f32.mrb[174].mxu1  ;;  %v7928_v11 = vand.u32 2147483647, %v7853_v13  ;;  %v7827_v38 = vld [vmem:[#allocation4 + $0x48] sm:$0xff] }
 0x52c   : > { %v8067_v42 = vmul.f32 %v13650_v48, %v8043_v62  ;;  %v7996_v54 = vmul.f32 %v7972_v39, %v7849_v35  ;;  %v8045_v33 = vsel %vm13823_vm8, %v7997_v41, %v8591_v57  ;;  %v7558_v49 = vpop.f32.mrb[175].mxu1  ;;  %v7927_v37 = vand.u32 2147483647, %v7852_v44 }
 0x52d   : > { %v8069_v31 = vmul.f32 0.0, %v8045_v33  ;;  %v7975_v8 = vmul.f32 0.5, %v7852_v44  ;;  %v7976_v26 = vmul.f32 0.5, %v7853_v13  ;;  %v7370_v47 = vpop.f32.mrb[172].mxu0  ;;  %vm13839_vm3 = vcmp.lt.f32.partialorder %v7928_v11, 1.0 }
 0x52e   : > { %v8044_v4 = vsel %vm13829_vm0, %v7996_v54, %v8590_v28  ;;  %v8097_v1 = vsel %vm1920_vm11, %v8067_v42, 0.0  ;;  %v8594_v45 = vadd.f32 -0.5, %v7928_v11  ;;  %v7372_v29 = vpop.f32.mrb[173].mxu0  ;;  %vm13846_vm12 = vcmp.lt.f32.partialorder %v7927_v37, 1.0 }
 0x52f   : > { %v8068_v3 = vmul.f32 %v13639_v34, %v8044_v4  ;;  %v8098_v23 = vadd.f32 %v8097_v1, %v13794_v43  ;;  %v8101_v35 = vsel %vm4567_vm5, %v8069_v31, 0.0  ;;  %v7373_v51 = vpop.f32.mrb[174].mxu0  ;;  %v7999_v27 = vmul.f32 %v7975_v8, %v7852_v44 }
 0x530   : > { %v8000_v17 = vmul.f32 %v7976_v26, %v7853_v13  ;;  %v8593_v22 = vadd.f32 -0.5, %v7927_v37  ;;  %v7803_v6 = vmax.f32 %v13797_v56, %v7747_v58  ;;  %v7375_v7 = vpop.f32.mrb[175].mxu0  ;;  %v7551_v5 = vadd.f32 %v13723_v40, %v13802_v14 }
 0x531   : > { %v8099_v55 = vsel %vm1920_vm11, %v8068_v3, 0.0  ;;  %v7543_v43 = vadd.f32 %v13713_v46, %v13808_v52  ;;  %v13858_v39 = vadd.f32 %v13628_v15, %v13812_v12  ;;  %v8924_v41 = vpop.f32.mrb[176].mxu1  ;;  %v13867_v44 = vadd.f32 %v13628_v15, %v13816_v50 }
 0x532   : > { %v8100_v57 = vadd.f32 %v8099_v55, %v8098_v23  ;;  %v8047_v13 = vsel %vm13846_vm12, %v7999_v27, %v8593_v22  ;;  %v8048_v56 = vsel %vm13839_vm3, %v8000_v17, %v8594_v45  ;;  %v7851_v58 = vsub.f32 %v7803_v6, %v7827_v38  ;;  %v7571_v9 = vpop.f32.mrb[177].mxu1 }
 0x533   : > { %v8071_v62 = vmul.f32 %v13639_v34, %v8047_v13  ;;  %v8072_v40 = vmul.f32 0.0, %v8048_v56  ;;  %v7661_v14 = vmax.f32 %v7551_v5, 0.0  ;;  %v7659_v0 = vmax.f32 %v7543_v43, 0.0  ;;  %v8925_v46 = vpop.f32.mrb[178].mxu1 }
 0x534   : > { %v8102_v52 = vadd.f32 %v8101_v35, %v8100_v57  ;;  %v7926_v28 = vand.u32 2147483647, %v7851_v58  ;;  %v7974_v12 = vmul.f32 0.5, %v7851_v58  ;;  %v7574_v42 = vpop.f32.mrb[179].mxu1  ;;  %v7564_v31 = vadd.f32 %v13764_v61, %v8920_v20 }
 0x535   : > { %v8107_v54 = vsel %vm4567_vm5, %v8072_v40, 0.0  ;;  %v8105_v33 = vsel %vm1920_vm11, %v8071_v62, 0.0  ;;  %v7694_v11 = vmax.f32 %v7658_v60, %v7661_v14  ;;  %v7378_v37 = vpop.f32.mrb[176].mxu0  ;;  %v7556_v4 = vadd.f32 %v13732_v32, %v7555_v24 }
 0x536   : > { %vm7950_vm13 = vcmp.lt.f32.partialorder %v7926_v28, 1.0  ;;  %v7998_v8 = vmul.f32 %v7974_v12, %v7851_v58  ;;  %v8592_v26 = vadd.f32 -0.5, %v7926_v28  ;;  %v7380_v1 = vpop.f32.mrb[177].mxu0  ;;  %v7664_v50 = vmax.f32 %v7564_v31, 0.0  ;;  %v7832_v12 = vld [vmem:[#allocation4 + $0x70] sm:$0x7f] }
 0x537   : > { %v7750_v16 = vrot.slane %v7694_v11, 1  ;;  %v7567_v45 = vadd.f32 %v13771_v2, %v8921_v25  ;;  %v7559_v29 = vadd.f32 %v13738_v59, %v7558_v49  ;;  %v7381_v3 = vpop.f32.mrb[178].mxu0  ;;  %v7662_v35 = vmax.f32 %v7556_v4, 0.0 }
 0x538   : > { %v8046_v23 = vsel %vm7950_vm13, %v7998_v8, %v8592_v26  ;;  %v9024_v18 = vadd.f32 %v13628_v15, %v7370_v47  ;;  %v13879_v61 = vadd.f32 %v13628_v15, %v7373_v51  ;;  %v7383_v60 = vpop.f32.mrb[179].mxu0  ;;  %v7580_v24 = vadd.f32 %v13789_v21, %v8924_v41  ;;  %v7831_v8 = vld [vmem:[#allocation4 + $0x68] sm:$0xff] }
 0x539   : > { %v8070_v20 = vmul.f32 %v13650_v48, %v8046_v23  ;;  %v7665_v63 = vmax.f32 %v7567_v45, 0.0  ;;  %v7663_v32 = vmax.f32 %v7559_v29, 0.0  ;;  %v8928_v27 = vpop.f32.mrb[180].mxu1  ;;  %v7695_v17 = vmax.f32 %v7659_v0, %v7662_v35  ;;  %v7835_v29 = vld [vmem:[#allocation4 + $0x88] sm:$0x7f] }
 0x53a   : > { %v7572_v2 = vadd.f32 %v13778_v10, %v7571_v9  ;;  %v7583_v59 = vadd.f32 %v13792_v36, %v8925_v46  ;;  %v7575_v25 = vadd.f32 %v13782_v53, %v7574_v42  ;;  %v7587_v49 = vpop.f32.mrb[181].mxu1  ;;  %v7668_v22 = vmax.f32 %v7580_v24, 0.0 }
 0x53b   : > { %v8103_v47 = vsel %vm1920_vm11, %v8070_v20, 0.0  ;;  %v7696_v51 = vmax.f32 %v7660_v30, %v7663_v32  ;;  %v13890_v6 = vadd.f32 %v13628_v15, %v7378_v37  ;;  %v13892_v7 = vpop.f32.mrb[182].mxu1  ;;  %v7751_v55 = vrot.slane %v7695_v17, 1 }
 0x53c   : > { %v8104_v21 = vadd.f32 %v8103_v47, %v8102_v52  ;;  %v7666_v38 = vmax.f32 %v7572_v2, 0.0  ;;  %v7669_v10 = vmax.f32 %v7583_v59, 0.0  ;;  %v13894_v5 = vpop.f32.mrb[183].mxu1  ;;  %v13896_v53 = vmax.f32 %v7665_v63, %v7668_v22  ;;  %v7830_v52 = vld [vmem:[#allocation4 + $0x60] sm:$0xff] }
 0x53d   : > { %v7753_v36 = vrot.slane %v7696_v51, 1  ;;  %v7667_v43 = vmax.f32 %v7575_v25, 0.0  ;;  %v13899_v41 = vadd.f32 %v13628_v15, %v7381_v3  ;;  %v13901_v19 = vpop.f32.mrb[180].mxu0  ;;  %v7752_v57 = vsel %vm4476_vm4, %v7750_v16, %v7751_v55 }
 0x53e   : > { %v8106_v30 = vadd.f32 %v8105_v33, %v8104_v21  ;;  %v7699_v13 = vmax.f32 %v7666_v38, %v7669_v10  ;;  %v13904_v56 = vadd.f32 %v9024_v18, %v8928_v27  ;;  %v7388_v58 = vpop.f32.mrb[181].mxu0  ;;  %v7806_v9 = vmax.f32 %v7694_v11, %v7752_v57 }
 0x53f   : > { %v7754_v62 = vsel %vm4476_vm4, %v7751_v55, %v7753_v36  ;;  %v7808_v40 = vmax.f32 %v7696_v51, %v7753_v36  ;;  %v7756_v14 = vrot.slane %v13896_v53, 1  ;;  %v13908_v0 = vpop.f32.mrb[182].mxu0  ;;  %v13910_v33 = vmax.f32 %v7664_v50, %v7667_v43  ;;  %v7834_v55 = vld [vmem:[#allocation4 + $0x80] sm:$0xff] }
 0x540   : > { %v8108_v46 = vadd.f32 %v8107_v54, %v8106_v30  ;;  %v7807_v28 = vmax.f32 %v7695_v17, %v7754_v62  ;;  %v7758_v42 = vrot.slane %v7699_v13, 1  ;;  %v7391_v31 = vpop.f32.mrb[183].mxu0  ;;  %v7854_v37 = vsub.f32 %v7806_v9, %v7830_v52 }
 0x541   : > { %v7856_v26 = vsub.f32 %v7808_v40, %v7832_v12  ;;  %v7672_v11 = vmax.f32 %v13904_v56, 0.0  ;;  %v13914_v4 = vadd.f32 %v13858_v39, %v7587_v49  ;;  %v13916_v1 = vpop.f32.mrb[184].mxu1  ;;  %v7755_v3 = vrot.slane %v13910_v33, 1 }
 0x542   : > { %v7855_v16 = vsub.f32 %v7807_v28, %v7831_v8  ;;  %v7759_v54 = vsel %vm4476_vm4, %v7756_v14, %v7758_v42  ;;  %v7811_v45 = vmax.f32 %v7699_v13, %v7758_v42  ;;  %v13920_v50 = vpop.f32.mrb[185].mxu1  ;;  %v7929_v23 = vand.u32 2147483647, %v7854_v37 }
 0x543   : > { %v7977_v35 = vmul.f32 0.5, %v7854_v37  ;;  %v7931_v18 = vand.u32 2147483647, %v7856_v26  ;;  %v7979_v60 = vmul.f32 0.5, %v7856_v26  ;;  %v7810_v39 = vmax.f32 %v13896_v53, %v7759_v54  ;;  %v13923_v24 = vpop.f32.mrb[186].mxu1 }
 0x544   : > { %v7930_v20 = vand.u32 2147483647, %v7855_v16  ;;  %v7978_v63 = vmul.f32 0.5, %v7855_v16  ;;  %v7859_v32 = vsub.f32 %v7811_v45, %v7835_v29  ;;  %vm13925_vm14 = vcmp.lt.f32.partialorder %v7929_v23, 1.0  ;;  %v7606_v25 = vpop.f32.mrb[187].mxu1 }
 0x545   : > { %v8001_v17 = vmul.f32 %v7977_v35, %v7854_v37  ;;  %v8595_v2 = vadd.f32 -0.5, %v7929_v23  ;;  %vm13929_vm9 = vcmp.lt.f32.partialorder %v7931_v18, 1.0  ;;  %v7394_v49 = vpop.f32.mrb[184].mxu0  ;;  %v8003_v22 = vmul.f32 %v7979_v60, %v7856_v26 }
 0x546   : > { %vm13933_vm10 = vcmp.lt.f32.partialorder %v7930_v20, 1.0  ;;  %v8002_v51 = vmul.f32 %v7978_v63, %v7855_v16  ;;  %v8596_v21 = vadd.f32 -0.5, %v7930_v20  ;;  %v7396_v38 = vpop.f32.mrb[185].mxu0  ;;  %v8597_v36 = vadd.f32 -0.5, %v7931_v18 }
 0x547   : > { %v8049_v10 = vsel %vm13925_vm14, %v8001_v17, %v8595_v2  ;;  %v7858_v53 = vsub.f32 %v7810_v39, %v7834_v55  ;;  %v7934_v43 = vand.u32 2147483647, %v7859_v32  ;;  %v7397_v30 = vpop.f32.mrb[186].mxu0  ;;  %v7982_v58 = vmul.f32 0.5, %v7859_v32  ;;  %v7833_v39 = vld [vmem:[#allocation4 + $0x78] sm:$0xff] }
 0x548   : > { %v8073_v57 = vmul.f32 %v13650_v48, %v8049_v10  ;;  %v8050_v13 = vsel %vm13933_vm10, %v8002_v51, %v8596_v21  ;;  %v7757_v9 = vsel %vm4476_vm4, %v7755_v3, %v7756_v14  ;;  %v7399_v62 = vpop.f32.mrb[187].mxu0  ;;  %v8051_v40 = vsel %vm13929_vm9, %v8003_v22, %v8597_v36 }
 0x549   : > { %v8074_v52 = vmul.f32 %v13639_v34, %v8050_v13  ;;  %v7933_v28 = vand.u32 2147483647, %v7858_v53  ;;  %vm13946_vm1 = vcmp.lt.f32.partialorder %v7934_v43, 1.0  ;;  %v8936_v42 = vpop.f32.mrb[188].mxu1  ;;  %v8075_v31 = vmul.f32 0.0, %v8051_v40 }
 0x54a   : > { %v8109_v37 = vsel %vm1920_vm11, %v8073_v57, 0.0  ;;  %v7981_v8 = vmul.f32 0.5, %v7858_v53  ;;  %v8006_v26 = vmul.f32 %v7982_v58, %v7859_v32  ;;  %v7619_v16 = vpop.f32.mrb[189].mxu1  ;;  %v8600_v18 = vadd.f32 -0.5, %v7934_v43 }
 0x54b   : > { %v8110_v54 = vadd.f32 %v8109_v37, %v8108_v46  ;;  %v8111_v14 = vsel %vm1920_vm11, %v8074_v52, 0.0  ;;  %vm13952_vm2 = vcmp.lt.f32.partialorder %v7933_v28, 1.0  ;;  %v8599_v29 = vadd.f32 -0.5, %v7933_v28  ;;  %v8937_v3 = vpop.f32.mrb[190].mxu1 }
 0x54c   : > { %v8113_v23 = vsel %vm4567_vm5, %v8075_v31, 0.0  ;;  %v8005_v35 = vmul.f32 %v7981_v8, %v7858_v53  ;;  %v7809_v60 = vmax.f32 %v13910_v33, %v7757_v9  ;;  %v7622_v20 = vpop.f32.mrb[191].mxu1  ;;  %v7670_v32 = vmax.f32 %v13914_v4, 0.0 }
 0x54d   : > { %v8112_v63 = vadd.f32 %v8111_v14, %v8110_v54  ;;  %v7599_v46 = vadd.f32 %v13879_v61, %v13892_v7  ;;  %v7591_v27 = vadd.f32 %v13867_v44, %v13894_v5  ;;  %v7402_v17 = vpop.f32.mrb[188].mxu0  ;;  %v8054_v59 = vsel %vm13946_vm1, %v8006_v26, %v8600_v18 }
 0x54e   : > { %v8053_v2 = vsel %vm13952_vm2, %v8005_v35, %v8599_v29  ;;  %v7857_v47 = vsub.f32 %v7809_v60, %v7833_v39  ;;  %v9028_v33 = vadd.f32 %v13628_v15, %v13901_v19  ;;  %v7404_v51 = vpop.f32.mrb[189].mxu0  ;;  %v8078_v4 = vmul.f32 0.0, %v8054_v59  ;;  %v7837_v39 = vld [vmem:[#allocation4 + $0x98] sm:$0xff] }
 0x54f   : > { %v8114_v22 = vadd.f32 %v8113_v23, %v8112_v63  ;;  %v7673_v21 = vmax.f32 %v7599_v46, 0.0  ;;  %v7671_v55 = vmax.f32 %v7591_v27, 0.0  ;;  %v7405_v61 = vpop.f32.mrb[190].mxu0  ;;  %v9029_v44 = vadd.f32 %v13628_v15, %v13908_v0  ;;  %v7836_v63 = vld [vmem:[#allocation4 + $0x90] sm:$0xff] }
 0x550   : > { %v7932_v7 = vand.u32 2147483647, %v7857_v47  ;;  %v7980_v38 = vmul.f32 0.5, %v7857_v47  ;;  %v7612_v5 = vadd.f32 %v9028_v33, %v13916_v1  ;;  %v7407_v10 = vpop.f32.mrb[191].mxu0  ;;  %v7604_v53 = vadd.f32 %v13890_v6, %v13920_v50 }
 0x551   : > { %v7700_v36 = vmax.f32 %v7670_v32, %v7673_v21  ;;  %v7607_v19 = vadd.f32 %v13899_v41, %v7606_v25  ;;  %v9030_v43 = vadd.f32 %v13628_v15, %v7394_v49  ;;  %v7615_v40 = vadd.f32 %v9029_v44, %v13923_v24 }
 0x552   : > { %vm7956_vm15 = vcmp.lt.f32.partialorder %v7932_v7, 1.0  ;;  %v8004_v57 = vmul.f32 %v7980_v38, %v7857_v47  ;;  %v8598_v13 = vadd.f32 -0.5, %v7932_v7  ;;  %v7676_v58 = vmax.f32 %v7612_v5, 0.0 }
 0x553   : > { %v7760_v9 = vrot.slane %v7700_v36, 1  ;;  %v7674_v62 = vmax.f32 %v7604_v53, 0.0  ;;  %v7675_v0 = vmax.f32 %v7607_v19, 0.0  ;;  %v9031_v1 = vadd.f32 %v13628_v15, %v7397_v30 }
 0x554   : > { %v8052_v52 = vsel %vm7956_vm15, %v8004_v57, %v8598_v13  ;;  %v7620_v28 = vadd.f32 %v9030_v43, %v7619_v16  ;;  %v9032_v12 = vadd.f32 %v13628_v15, %v7402_v17  ;;  %v7677_v50 = vmax.f32 %v7615_v40, 0.0 }
 0x555   : > { %v8076_v6 = vmul.f32 %v13650_v48, %v8052_v52  ;;  %v7701_v41 = vmax.f32 %v7671_v55, %v7674_v62  ;;  %v7702_v25 = vmax.f32 %v7672_v11, %v7675_v0  ;;  %v7623_v31 = vadd.f32 %v9031_v1, %v7622_v20 }
 0x556   : > { %v7678_v49 = vmax.f32 %v7620_v28, 0.0  ;;  %v7628_v37 = vadd.f32 %v9032_v12, %v8936_v42  ;;  %v9033_v8 = vadd.f32 %v13628_v15, %v7405_v61  ;;  %v8077_v30 = vmul.f32 %v13639_v34, %v8053_v2  ;;  %v7838_v15 = vld [vmem:[#allocation4 + $0xa0] sm:$0x7f] }
 0x557   : > { %v8115_v24 = vsel %vm1920_vm11, %v8076_v6, 0.0  ;;  %v7761_v26 = vrot.slane %v7701_v41, 1  ;;  %v7763_v54 = vrot.slane %v7702_v25, 1  ;;  %v7679_v14 = vmax.f32 %v7623_v31, 0.0  ;;  %v7841_v6 = vld [vmem:[#allocation4 + $0xb8] sm:$0x7f] }
 0x558   : > { %v8116_v16 = vadd.f32 %v8115_v24, %v8114_v22  ;;  %v7680_v45 = vmax.f32 %v7628_v37, 0.0  ;;  %v7631_v29 = vadd.f32 %v9033_v8, %v8937_v3  ;;  %v8117_v35 = vsel %vm1920_vm11, %v8077_v30, 0.0 }
 0x559   : > { %v7762_v23 = vsel %vm4476_vm4, %v7760_v9, %v7761_v26  ;;  %v7764_v56 = vsel %vm4476_vm4, %v7761_v26, %v7763_v54  ;;  %v7814_v11 = vmax.f32 %v7702_v25, %v7763_v54  ;;  %v7703_v60 = vmax.f32 %v7676_v58, %v7679_v14  ;;  %v7839_v9 = vld [vmem:[#allocation4 + $0xa8] sm:$0xff]  ;;  %v7840_v25 = vld [vmem:[#allocation4 + $0xb0] sm:$0xff] }
 0x55a   : > { %v7812_v42 = vmax.f32 %v7700_v36, %v7762_v23  ;;  %v7813_v18 = vmax.f32 %v7701_v41, %v7764_v56  ;;  %v7704_v20 = vmax.f32 %v7677_v50, %v7680_v45  ;;  %v7681_v46 = vmax.f32 %v7631_v29, 0.0 }
 0x55b   : > { %v7862_v32 = vsub.f32 %v7814_v11, %v7838_v15  ;;  %v8118_v27 = vadd.f32 %v8117_v35, %v8116_v16  ;;  %v8119_v17 = vsel %vm4567_vm5, %v8078_v4, 0.0  ;;  %v7765_v59 = vrot.slane %v7703_v60, 1 }
 0x55c   : > { %v7860_v3 = vsub.f32 %v7812_v42, %v7836_v63  ;;  %v7861_v2 = vsub.f32 %v7813_v18, %v7837_v39  ;;  %v7766_v47 = vrot.slane %v7704_v20, 1  ;;  %v7705_v22 = vmax.f32 %v7678_v49, %v7681_v46 }
 0x55d   : > { %v7937_v33 = vand.u32 2147483647, %v7862_v32  ;;  %v7985_v51 = vmul.f32 0.5, %v7862_v32  ;;  %v8120_v21 = vadd.f32 %v8119_v17, %v8118_v27 }
 0x55e   : > { %v7935_v55 = vand.u32 2147483647, %v7860_v3  ;;  %v7983_v61 = vmul.f32 0.5, %v7860_v3  ;;  %v7936_v7 = vand.u32 2147483647, %v7861_v2  ;;  %v7984_v38 = vmul.f32 0.5, %v7861_v2 }
 0x55f   : > { %vm13989_vm6 = vcmp.lt.f32.partialorder %v7937_v33, 1.0  ;;  %v8009_v5 = vmul.f32 %v7985_v51, %v7862_v32  ;;  %v8603_v10 = vadd.f32 -0.5, %v7937_v33  ;;  %v7767_v4 = vsel %vm4476_vm4, %v7765_v59, %v7766_v47 }
 0x560   : > { %vm13994_vm7 = vcmp.lt.f32.partialorder %v7935_v55, 1.0  ;;  %v8007_v53 = vmul.f32 %v7983_v61, %v7860_v3  ;;  %v8601_v19 = vadd.f32 -0.5, %v7935_v55  ;;  %v8008_v43 = vmul.f32 %v7984_v38, %v7861_v2 }
 0x561   : > { %v8602_v57 = vadd.f32 -0.5, %v7936_v7  ;;  %v7815_v13 = vmax.f32 %v7703_v60, %v7767_v4  ;;  %v7768_v58 = vrot.slane %v7705_v22, 1  ;;  %vm7960_vm8 = vcmp.lt.f32.partialorder %v7936_v7, 1.0 }
 0x562   : > { %v8055_v62 = vsel %vm13994_vm7, %v8007_v53, %v8601_v19  ;;  %v8057_v40 = vsel %vm13989_vm6, %v8009_v5, %v8603_v10 }
 0x563   : > { %v7863_v0 = vsub.f32 %v7815_v13, %v7839_v9  ;;  %v7769_v52 = vsel %vm4476_vm4, %v7766_v47, %v7768_v58  ;;  %v7817_v1 = vmax.f32 %v7705_v22, %v7768_v58  ;;  %v8056_v28 = vsel %vm7960_vm8, %v8008_v43, %v8602_v57 }
 0x564   : > { %v7816_v12 = vmax.f32 %v7704_v20, %v7769_v52  ;;  %v8079_v41 = vmul.f32 %v13650_v48, %v8055_v62  ;;  %v8080_v50 = vmul.f32 %v13639_v34, %v8056_v28  ;;  %v8081_v24 = vmul.f32 0.0, %v8057_v40 }
 0x565   : > { %v7865_v49 = vsub.f32 %v7817_v1, %v7841_v6  ;;  %v7938_v31 = vand.u32 2147483647, %v7863_v0  ;;  %v7986_v37 = vmul.f32 0.5, %v7863_v0 }
 0x566   : > { %v7864_v8 = vsub.f32 %v7816_v12, %v7840_v25  ;;  %v8121_v26 = vsel %vm1920_vm11, %v8079_v41, 0.0  ;;  %v8123_v54 = vsel %vm1920_vm11, %v8080_v50, 0.0  ;;  %v8125_v32 = vsel %vm4567_vm5, %v8081_v24, 0.0 }
 0x567   : > { %v7988_v30 = vmul.f32 0.5, %v7865_v49  ;;  %v7940_v16 = vand.u32 2147483647, %v7865_v49  ;;  %vm7962_vm4 = vcmp.lt.f32.partialorder %v7938_v31, 1.0  ;;  %v8010_v14 = vmul.f32 %v7986_v37, %v7863_v0 }
 0x568   : > { %v7939_v45 = vand.u32 2147483647, %v7864_v8  ;;  %v7987_v29 = vmul.f32 0.5, %v7864_v8  ;;  %v8604_v23 = vadd.f32 -0.5, %v7938_v31  ;;  %v8122_v56 = vadd.f32 %v8121_v26, %v8120_v21 }
 0x569   : > { %vm7964_vm0 = vcmp.lt.f32.partialorder %v7940_v16, 1.0  ;;  %v8012_v11 = vmul.f32 %v7988_v30, %v7865_v49  ;;  %v8606_v35 = vadd.f32 -0.5, %v7940_v16 }
 0x56a   : > { %vm7963_vm3 = vcmp.lt.f32.partialorder %v7939_v45, 1.0  ;;  %v8011_v42 = vmul.f32 %v7987_v29, %v7864_v8  ;;  %v8605_v18 = vadd.f32 -0.5, %v7939_v45  ;;  %v8058_v15 = vsel %vm7962_vm4, %v8010_v14, %v8604_v23 }
 0x56b   : > { %v8060_v60 = vsel %vm7964_vm0, %v8012_v11, %v8606_v35  ;;  %v8082_v20 = vmul.f32 %v13650_v48, %v8058_v15  ;;  %v8124_v63 = vadd.f32 %v8123_v54, %v8122_v56 }
 0x56c   : > { %v8059_v39 = vsel %vm7963_vm3, %v8011_v42, %v8605_v18  ;;  %v8084_v3 = vmul.f32 0.0, %v8060_v60 }
 0x56d   : > { %v8083_v46 = vmul.f32 %v13639_v34, %v8059_v39  ;;  %v8126_v27 = vadd.f32 %v8125_v32, %v8124_v63  ;;  %v8127_v17 = vsel %vm1920_vm11, %v8082_v20, 0.0 }
 0x56e   : > { %v8131_v33 = vsel %vm4567_vm5, %v8084_v3, 0.0 }
 0x56f   : > { %v8128_v2 = vadd.f32 %v8127_v17, %v8126_v27  ;;  %v8129_v59 = vsel %vm1920_vm11, %v8083_v46, 0.0 }
 0x571   : > { %v8130_v47 = vadd.f32 %v8129_v59, %v8128_v2 }
 0x573   : > { %v8132_v51 = vadd.f32 %v8131_v33, %v8130_v47 }
 0x575   : > { %8133 = vadd.xlane.f32.xlu0 %v8132_v51 }
 0x583   : > { %v8194_v22 = vpop.xlane.xlu1 %8193 }
 0x584   : > { %v8195_v48 = vrot.slane %v8194_v22, 4 }
 0x586   : > { %v8196_v21 = vadd.f32 %v8195_v48, %v8194_v22 }
 0x588   : > { %v8197_v55 = vrot.slane %v8196_v21, 2 }
 0x58a   : > { %v8198_v34 = vadd.f32 %v8197_v55, %v8196_v21 }
 0x58c   : > { %v8199_v10 = vrot.slane %v8198_v34, 1 }
 0x58e   : > { %v8200_v53 = vadd.f32 %v8199_v10, %v8198_v34 }
 0x602   : > { %v8134_v61 = vpop.xlane.xlu0 %8133 }
 0x603   : > { %v8135_v7 = vrot.slane %v8134_v61, 4 }
 0x605   : > { %v8136_v38 = vadd.f32 %v8135_v7, %v8134_v61 }
 0x607   : > { %v8137_v44 = vrot.slane %v8136_v38, 2 }
 0x609   : > { %v8138_v5 = vadd.f32 %v8137_v44, %v8136_v38 }
 0x60b   : > { %v8139_v4 = vrot.slane %v8138_v5, 1 }
 0x60d   : > { %v8140_v36 = vadd.f32 %v8139_v4, %v8138_v5 }
 0x60f   : > { %9324 = vpush %v8140_v36 }
 0x610   : > { %9326 = vpush %v8200_v53 }
 0x640   : > { %s9325_s20 = spop %9324 }
 0x641   : > { %s8142_s22 = sadd.f32 %s9325_s20, %s8607_s17  ;;  %s9327_s23 = spop %9326 }
 0x642   : > { %s8202_s24 = sadd.f32 %s9327_s23, %s8148_s19 }
 0x643   : > { %8144 = sst [smem:[#allocation5 + $0x1]] %s8142_s22  ;;  %s8216_s25 = smul.f32 0.00012207031, %s8142_s22 }
 0x644   : > { %8204 = sst [smem:[#allocation5]] %s8202_s24  ;;  %s8212_s26 = smul.f32 0.0006510417, %s8202_s24 }
 0x645   : > { %s8217_s15 = smul.f32 0.5, %s8216_s25 }
 0x647   : > { %s8218_s30 = sadd.f32 %s8217_s15, %s8212_s26 }
 0x649   : > { %9329 = sst [smem:[#allocation6]] (%p9334_p5), %s8218_s30 }
 0x64a   : > { %9498 = shalt.err (!%p9495_p10)
}
 0x64b   : > { %s9517_s16 = smov [#allocation6]  }
 0x64c   : > { %9331 = dma.smem_to_hbm (%p9334_p5), %s9517_s16, 16, %s14037_s8, [#allocation7]  }
 0x64d   : > { %9504 = dma.done.wait (%p9334_p5), [#allocation7], 16  }
 0x64e   : > { %9506 = vsyncadd (%p9334_p5), [#allocation7], 4294967280 }
 0x64f   : > { %8234 = sfence }
 0x650 PF: > { %s19_s27 = sadd.s32 1, %s9509_s27  }
 0x651   : > { %p16_p11 = scmp.ge.s32.totalorder %s19_s27, 4  }
 0x653   :  { %18 = sbr.rel (!%p16_p11) target bundleno = 1 (0x1), region = 101 }
 0x65a   :  { %8240 = vsyncpa [#allocation7], 1 }
 0x65b   :  { %8242 = vsyncpa [#allocation7 + $0x1], 1 }

</bundles_post_ra>
